<compile_context>
chip_gen: v7x
topology: tpu7x:2x2x1
jax: 0.10.0
libtpu: 0.0.40
codegen_flags: <defaults>
</compile_context>

<pallas_src>
import functools
import math

import jax
import jax.numpy as jnp
from jax.experimental import pallas as pl
from jax.experimental.pallas import tpu as pltpu


CONFIG = dict(
    num_conv_layers=2,
    cnn_features=[1, 4, 8],
    kernel_sizes=[3, 3],
    cnn_stride=1,
    pool_layer=True,
    pool_size=2,
    pool_stride=2,
    num_fc_layers=2,
    fc_features=[32, 16],
    dropout_probs=[0.25, 0.25],
    image_input_size=(16, 16),
)


def _net_dims(cfg):
    """Spatial dims after each conv and after the optional pool."""
    h, w = cfg["image_input_size"]
    conv_hw = []
    for i in range(cfg["num_conv_layers"]):
        k, s = cfg["kernel_sizes"][i], cfg["cnn_stride"]
        h, w = (h - k) // s + 1, (w - k) // s + 1
        conv_hw.append((h, w))
    if cfg["pool_layer"]:
        h = (h - cfg["pool_size"]) // cfg["pool_stride"] + 1
        w = (w - cfg["pool_size"]) // cfg["pool_stride"] + 1
    return conv_hw, (h, w)


# ----------------------------------------------------------------------------
# Fused single-launch kernel (one batch block of Nb samples per grid step)
# ----------------------------------------------------------------------------
def _net_kernel(x_ref, w1_ref, b1_ref, w2_ref, b2_ref,
                w1p_ref, bfc1_ref, wfc2_ref, bfc2_ref, wlin_ref, blin_ref,
                o_ref, x3_ref, act1_ref, act2_ref, pool_ref, *, dims):
    (nb, h_in, w_in, c1, k1, oh1, ow1, c2, k2, oh2, ow2, ph_out) = dims
    f32 = jnp.float32

    # ---- relayout (Nb, H*W) -> (H, W, Nb): batch on the 128-lane axis -------
    # One XLU transpose per block (idle slot); aligned 16-row slabs are then
    # stored into the 3-D scratch so conv rows are addressed on a leading dim.
    xt = jnp.transpose(x_ref[...])                      # (H*W, Nb)
    for r in range(h_in):
        x3_ref[r] = xt[r * w_in:(r + 1) * w_in, :]      # aligned slice, (W, Nb)

    # ---- conv1 + ReLU, one output row per iteration -------------------------
    # Shifted windows are hoisted and reused across all C1 output channels.
    @pl.loop(0, oh1)
    def _conv1_row(h):
        wins = []
        for i in range(k1):
            row = x3_ref[h + i]                         # (W, Nb)
            wins.append([row[j:j + ow1, :] for j in range(k1)])
        for oc in range(c1):
            acc = jnp.full((ow1, nb), b1_ref[oc], dtype=f32)
            for i in range(k1):
                for j in range(k1):
                    acc = acc + w1_ref[(oc * k1 + i) * k1 + j] * wins[i][j]
            act1_ref[oc, h] = jnp.maximum(acc, 0.0)

    # ---- conv2 + ReLU, one output row per iteration -------------------------
    # Each shifted act1 window is loaded once and reused across all C2 output
    # channels (8 row accumulators of (OW2, Nb) stay well inside 64 vregs).
    @pl.loop(0, oh2)
    def _conv2_row(h):
        accs = [jnp.full((ow2, nb), b2_ref[oc], dtype=f32) for oc in range(c2)]
        for ic in range(c1):
            for i in range(k2):
                row = act1_ref[ic, h + i]               # (OW1, Nb)
                for j in range(k2):
                    win = row[j:j + ow2, :]             # (OW2, Nb)
                    for oc in range(c2):
                        w = w2_ref[((oc * c1 + ic) * k2 + i) * k2 + j]
                        accs[oc] = accs[oc] + w * win
        for oc in range(c2):
            act2_ref[oc, h] = jnp.maximum(accs[oc], 0.0)

    # ---- MaxPool(2,2) packed for a single FC1 matmul ------------------------
    # Per (channel, pooled row): max over the H pair, then max with a one-row
    # sublane shift leaves the 2x2 maxima on EVEN rows of an 11-row slab.  All
    # 528 rows of pool_ref are (re)written every step (no init / NaN hazard);
    # odd rows multiply the zero columns of the prepacked FC1 weight.
    seglen = ow2 - 1
    for c in range(c2):
        for ph in range(ph_out):
            m = jnp.maximum(act2_ref[c, 2 * ph], act2_ref[c, 2 * ph + 1])
            pm = jnp.maximum(m[0:seglen, :], m[1:seglen + 1, :])   # (11, Nb)
            pool_ref[pl.ds((c * ph_out + ph) * seglen, seglen), :] = pm

    # ---- FC1 -> ReLU -> FC2 -> ReLU -> Linear (single MXU dots) -------------
    feats = pool_ref[...]                                          # (528, Nb)
    h1 = jnp.maximum(
        jnp.dot(w1p_ref[...], feats, preferred_element_type=f32) + bfc1_ref[...],
        0.0)
    # TODO(synk): nn.Dropout implemented as identity (eval / inference mode).
    h2 = jnp.maximum(
        jnp.dot(wfc2_ref[...], h1, preferred_element_type=f32) + bfc2_ref[...],
        0.0)
    out = jnp.dot(wlin_ref[...], h2, preferred_element_type=f32) + blin_ref[...]
    o_ref[...] = out.astype(o_ref.dtype)                           # (1, Nb)


# ----------------------------------------------------------------------------
# Parameter init (PyTorch-style shapes/ranges) and one-time kernel repacking
# ----------------------------------------------------------------------------
def _uniform(key, shape, bound):
    return jax.random.uniform(key, shape, jnp.float32, minval=-bound, maxval=bound)


def init_params(key, cfg):
    params = {"convs": [], "fcs": []}
    for i in range(cfg["num_conv_layers"]):
        cin, cout = cfg["cnn_features"][i], cfg["cnn_features"][i + 1]
        k = cfg["kernel_sizes"][i]
        key, kw_, kb_ = jax.random.split(key, 3)
        bound = 1.0 / math.sqrt(cin * k * k)
        params["convs"].append((_uniform(kw_, (cout, cin, k, k), bound),
                                _uniform(kb_, (cout,), bound)))
    _, (ph, pw) = _net_dims(cfg)
    num_conv_features = cfg["cnn_features"][-1] * ph * pw
    fc_features = [num_conv_features] + cfg["fc_features"]
    for i in range(cfg["num_fc_layers"]):
        fin, fout = fc_features[i], fc_features[i + 1]
        key, kw_, kb_ = jax.random.split(key, 3)
        bound = 1.0 / math.sqrt(fin)
        params["fcs"].append((_uniform(kw_, (fout, fin), bound),
                              _uniform(kb_, (fout,), bound)))
    key, kw_, kb_ = jax.random.split(key, 3)
    bound = 1.0 / math.sqrt(fc_features[-1])
    params["linear"] = (_uniform(kw_, (1, fc_features[-1]), bound),
                        _uniform(kb_, (1,), bound))
    return params


def prepare_params(params, cfg):
    """One-time repack of PyTorch-layout weights into kernel-ready layouts."""
    assert cfg["num_conv_layers"] == 2 and cfg["num_fc_layers"] == 2
    assert cfg["cnn_features"][0] == 1 and cfg["cnn_stride"] == 1
    assert cfg["pool_layer"] and cfg["pool_size"] == 2 and cfg["pool_stride"] == 2
    conv_hw, (ph_out, pw_out) = _net_dims(cfg)
    _, (oh2, ow2) = conv_hw
    assert oh2 % 2 == 0 and ow2 % 2 == 0
    c2 = cfg["cnn_features"][-1]
    f32 = jnp.float32

    (w1, b1), (w2, b2) = params["convs"]
    (fc1_w, fc1_b), (fc2_w, fc2_b) = params["fcs"]
    lin_w, lin_b = params["linear"]

    # FC1 weight regrouped per (channel, pooled row) segment of 11 packed rows;
    # real weights sit on even rows (matching the pooled-maxima positions and
    # the torch NCHW .view flatten order), odd rows are zero.
    seglen = ow2 - 1
    nf1 = fc1_w.shape[0]
    nseg = c2 * ph_out
    w1t = fc1_w.astype(f32).reshape(nf1, nseg, pw_out)
    w1p = jnp.zeros((nf1, nseg, seglen), f32).at[:, :, 0:2 * pw_out:2].set(w1t)

    return dict(
        w1_flat=w1.astype(f32).reshape(-1),          # SMEM scalars
        b1=b1.astype(f32),
        w2_flat=w2.astype(f32).reshape(-1),
        b2=b2.astype(f32),
        w1p=w1p.reshape(nf1, nseg * seglen),         # (32, 528)
        bfc1=fc1_b.astype(f32).reshape(-1, 1),       # (32, 1) - lane broadcast
        wfc2=fc2_w.astype(f32),                      # (16, 32)
        bfc2=fc2_b.astype(f32).reshape(-1, 1),       # (16, 1)
        wlin=lin_w.astype(f32),                      # (1, 16)
        blin=lin_b.astype(f32).reshape(-1, 1),       # (1, 1)
    )


# ----------------------------------------------------------------------------
# Forward pass: one pallas_call, gridded over batch blocks of Nb samples
# ----------------------------------------------------------------------------
def net_forward(prep, x, cfg, block_n=128):
    n = x.shape[0]
    h_in, w_in = cfg["image_input_size"]
    c0, c1, c2 = cfg["cnn_features"]
    assert c0 == 1
    k1, k2 = cfg["kernel_sizes"]
    conv_hw, (ph_out, _) = _net_dims(cfg)
    (oh1, ow1), (oh2, ow2) = conv_hw
    nb = block_n
    dims = (nb, h_in, w_in, c1, k1, oh1, ow1, c2, k2, oh2, ow2, ph_out)

    # Free reshape (C0 == 1, contiguous); the batch->lanes transpose happens
    # in-kernel so the only HBM traffic for x is the raw read.
    x2d = x.astype(jnp.float32).reshape(n, h_in * w_in)

    nf1 = prep["w1p"].shape[0]
    kfc1 = prep["w1p"].shape[1]
    nf2 = prep["wfc2"].shape[0]

    smem = pl.BlockSpec(memory_space=pltpu.MemorySpace.SMEM)
    kernel = functools.partial(_net_kernel, dims=dims)

    out = pl.pallas_call(
        kernel,
        out_shape=jax.ShapeDtypeStruct((1, n), jnp.float32),
        grid=(pl.cdiv(n, nb),),
        in_specs=[
            pl.BlockSpec((nb, h_in * w_in), lambda b: (b, 0)),   # x block
            smem, smem, smem, smem,                              # conv w/b scalars
            pl.BlockSpec((nf1, kfc1), lambda b: (0, 0)),         # packed FC1 weight
            pl.BlockSpec((nf1, 1), lambda b: (0, 0)),            # FC1 bias
            pl.BlockSpec((nf2, nf1), lambda b: (0, 0)),          # FC2 weight
            pl.BlockSpec((nf2, 1), lambda b: (0, 0)),            # FC2 bias
            pl.BlockSpec((1, nf2), lambda b: (0, 0)),            # final linear weight
            pl.BlockSpec((1, 1), lambda b: (0, 0)),              # final linear bias
        ],
        out_specs=pl.BlockSpec((1, nb), lambda b: (0, b)),       # lane-dense output
        scratch_shapes=[
            pltpu.VMEM((h_in, w_in, nb), jnp.float32),           # relaid-out input
            pltpu.VMEM((c1, oh1, ow1, nb), jnp.float32),         # conv1 activations
            pltpu.VMEM((c2, oh2, ow2, nb), jnp.float32),         # conv2 activations
            pltpu.VMEM((c2 * ph_out * (ow2 - 1), nb), jnp.float32),  # packed pool
        ],
        compiler_params=pltpu.CompilerParams(
            dimension_semantics=("parallel",)),
    )(x2d, prep["w1_flat"], prep["b1"], prep["w2_flat"], prep["b2"],
      prep["w1p"], prep["bfc1"], prep["wfc2"], prep["bfc2"],
      prep["wlin"], prep["blin"])
    return out.reshape(n, 1)


# ----------------------------------------------------------------------------
# Pure-JAX (XLA) reference, for correctness checking only
# ----------------------------------------------------------------------------
def net_forward_reference(params, x, cfg):
    hi = jax.lax.Precision.HIGHEST
    s = cfg["cnn_stride"]
    h = x.astype(jnp.float32)
    for (w, b) in params["convs"]:
        h = jax.lax.conv_general_dilated(
            h, w, (s, s), "VALID",
            dimension_numbers=("NCHW", "OIHW", "NCHW"), precision=hi)
        h = jnp.maximum(h + b.reshape(1, -1, 1, 1), 0.0)
    if cfg["pool_layer"]:
        n_, c_, hh, ww = h.shape
        p = cfg["pool_size"]
        h = h.reshape(n_, c_, hh // p, p, ww // p, p).max(axis=(3, 5))
    h = h.reshape(h.shape[0], -1)
    for (w, b) in params["fcs"]:
        h = jnp.maximum(jnp.dot(h, w.T, precision=hi) + b, 0.0)
    w, b = params["linear"]
    return jnp.dot(h, w.T, precision=hi) + b


if __name__ == "__main__":
    key = jax.random.PRNGKey(0)
    key_p, key_x = jax.random.split(key)
    params = init_params(key_p, CONFIG)
    prep = prepare_params(params, CONFIG)     # weight repacking happens ONCE here
    x = jax.random.normal(key_x, (2, 1) + CONFIG["image_input_size"], jnp.float32)

    fwd = jax.jit(functools.partial(net_forward, cfg=CONFIG))
    out = jax.block_until_ready(fwd(prep, x))
    assert out.shape == (2, 1)

    ref = net_forward_reference(params, x, CONFIG)
    assert jnp.allclose(out, ref, rtol=2e-2, atol=2e-2), (out, ref)
    print("KERNEL_OK")
</pallas_src>

<mosaic_0001>
module attributes {stable_mosaic.version = 11 : i64} {
  func.func @_net_kernel(%arg0: i32, %arg1: memref<128x256xf32, #tpu.memory_space<vmem>>, %arg2: memref<36xf32, #tpu.memory_space<smem>>, %arg3: memref<4xf32, #tpu.memory_space<smem>>, %arg4: memref<288xf32, #tpu.memory_space<smem>>, %arg5: memref<8xf32, #tpu.memory_space<smem>>, %arg6: memref<32x528xf32, #tpu.memory_space<vmem>>, %arg7: memref<32x1xf32, #tpu.memory_space<vmem>>, %arg8: memref<16x32xf32, #tpu.memory_space<vmem>>, %arg9: memref<16x1xf32, #tpu.memory_space<vmem>>, %arg10: memref<1x16xf32, #tpu.memory_space<vmem>>, %arg11: memref<1x1xf32, #tpu.memory_space<vmem>>, %arg12: memref<1x128xf32, #tpu.memory_space<vmem>>, %arg13: memref<16x16x128xf32, #tpu.memory_space<vmem>>, %arg14: memref<4x14x14x128xf32, #tpu.memory_space<vmem>>, %arg15: memref<8x12x12x128xf32, #tpu.memory_space<vmem>>, %arg16: memref<528x128xf32, #tpu.memory_space<vmem>>) attributes {dimension_semantics = [#tpu.dimension_semantics<parallel>], iteration_bounds = array<i64: 1>, scalar_prefetch = 0 : i64, scratch_operands = 4 : i64, tpu.core_type = #tpu.core_type<tc>, window_params = [{transform_indices = @transform_0, window_bounds = array<i64: 128, 256>}, {transform_indices = @transform_1, window_bounds = array<i64: 36>}, {transform_indices = @transform_2, window_bounds = array<i64: 4>}, {transform_indices = @transform_3, window_bounds = array<i64: 288>}, {transform_indices = @transform_4, window_bounds = array<i64: 8>}, {pipeline_mode = #tpu.pipeline_mode<synchronous>, transform_indices = @transform_5, window_bounds = array<i64: 32, 528>}, {pipeline_mode = #tpu.pipeline_mode<synchronous>, transform_indices = @transform_6, window_bounds = array<i64: 32, 1>}, {pipeline_mode = #tpu.pipeline_mode<synchronous>, transform_indices = @transform_7, window_bounds = array<i64: 16, 32>}, {pipeline_mode = #tpu.pipeline_mode<synchronous>, transform_indices = @transform_8, window_bounds = array<i64: 16, 1>}, {pipeline_mode = #tpu.pipeline_mode<synchronous>, transform_indices = @transform_9, window_bounds = array<i64: 1, 16>}, {pipeline_mode = #tpu.pipeline_mode<synchronous>, transform_indices = @transform_10, window_bounds = array<i64: 1, 1>}, {transform_indices = @transform_11, window_bounds = array<i64: 1, 128>}]} {
    %c0 = arith.constant 0 : index
    %c0_0 = arith.constant 0 : index
    %0 = vector.load %arg1[%c0, %c0_0] : memref<128x256xf32, #tpu.memory_space<vmem>>, vector<128x256xf32>
    %1 = tpu.transpose %0, [1, 0] : vector<128x256xf32> -> vector<256x128xf32>
    %2 = vector.extract_strided_slice %1 {offsets = [0, 0], sizes = [16, 128], strides = [1, 1]} : vector<256x128xf32> to vector<16x128xf32>
    %c0_1 = arith.constant 0 : index
    %c0_2 = arith.constant 0 : index
    %c0_3 = arith.constant 0 : index
    %3 = vector.load %arg13[%c0_1, %c0_2, %c0_3] : memref<16x16x128xf32, #tpu.memory_space<vmem>>, vector<1x16x128xf32>
    %4 = vector.shape_cast %3 : vector<1x16x128xf32> to vector<16x128xf32>
    %5 = vector.shape_cast %2 : vector<16x128xf32> to vector<1x16x128xf32>
    tpu.vector_store %arg13[%c0_1, %c0_2, %c0_3], %5 {strides = array<i32>} : memref<16x16x128xf32, #tpu.memory_space<vmem>>, vector<1x16x128xf32>,
    %6 = vector.extract_strided_slice %1 {offsets = [16, 0], sizes = [16, 128], strides = [1, 1]} : vector<256x128xf32> to vector<16x128xf32>
    %c1 = arith.constant 1 : index
    %c0_4 = arith.constant 0 : index
    %c0_5 = arith.constant 0 : index
    %7 = vector.load %arg13[%c1, %c0_4, %c0_5] : memref<16x16x128xf32, #tpu.memory_space<vmem>>, vector<1x16x128xf32>
    %8 = vector.shape_cast %7 : vector<1x16x128xf32> to vector<16x128xf32>
    %9 = vector.shape_cast %6 : vector<16x128xf32> to vector<1x16x128xf32>
    tpu.vector_store %arg13[%c1, %c0_4, %c0_5], %9 {strides = array<i32>} : memref<16x16x128xf32, #tpu.memory_space<vmem>>, vector<1x16x128xf32>,
    %10 = vector.extract_strided_slice %1 {offsets = [32, 0], sizes = [16, 128], strides = [1, 1]} : vector<256x128xf32> to vector<16x128xf32>
    %c2 = arith.constant 2 : index
    %c0_6 = arith.constant 0 : index
    %c0_7 = arith.constant 0 : index
    %11 = vector.load %arg13[%c2, %c0_6, %c0_7] : memref<16x16x128xf32, #tpu.memory_space<vmem>>, vector<1x16x128xf32>
    %12 = vector.shape_cast %11 : vector<1x16x128xf32> to vector<16x128xf32>
    %13 = vector.shape_cast %10 : vector<16x128xf32> to vector<1x16x128xf32>
    tpu.vector_store %arg13[%c2, %c0_6, %c0_7], %13 {strides = array<i32>} : memref<16x16x128xf32, #tpu.memory_space<vmem>>, vector<1x16x128xf32>,
    %14 = vector.extract_strided_slice %1 {offsets = [48, 0], sizes = [16, 128], strides = [1, 1]} : vector<256x128xf32> to vector<16x128xf32>
    %c3 = arith.constant 3 : index
    %c0_8 = arith.constant 0 : index
    %c0_9 = arith.constant 0 : index
    %15 = vector.load %arg13[%c3, %c0_8, %c0_9] : memref<16x16x128xf32, #tpu.memory_space<vmem>>, vector<1x16x128xf32>
    %16 = vector.shape_cast %15 : vector<1x16x128xf32> to vector<16x128xf32>
    %17 = vector.shape_cast %14 : vector<16x128xf32> to vector<1x16x128xf32>
    tpu.vector_store %arg13[%c3, %c0_8, %c0_9], %17 {strides = array<i32>} : memref<16x16x128xf32, #tpu.memory_space<vmem>>, vector<1x16x128xf32>,
    %18 = vector.extract_strided_slice %1 {offsets = [64, 0], sizes = [16, 128], strides = [1, 1]} : vector<256x128xf32> to vector<16x128xf32>
    %c4 = arith.constant 4 : index
    %c0_10 = arith.constant 0 : index
    %c0_11 = arith.constant 0 : index
    %19 = vector.load %arg13[%c4, %c0_10, %c0_11] : memref<16x16x128xf32, #tpu.memory_space<vmem>>, vector<1x16x128xf32>
    %20 = vector.shape_cast %19 : vector<1x16x128xf32> to vector<16x128xf32>
    %21 = vector.shape_cast %18 : vector<16x128xf32> to vector<1x16x128xf32>
    tpu.vector_store %arg13[%c4, %c0_10, %c0_11], %21 {strides = array<i32>} : memref<16x16x128xf32, #tpu.memory_space<vmem>>, vector<1x16x128xf32>,
    %22 = vector.extract_strided_slice %1 {offsets = [80, 0], sizes = [16, 128], strides = [1, 1]} : vector<256x128xf32> to vector<16x128xf32>
    %c5 = arith.constant 5 : index
    %c0_12 = arith.constant 0 : index
    %c0_13 = arith.constant 0 : index
    %23 = vector.load %arg13[%c5, %c0_12, %c0_13] : memref<16x16x128xf32, #tpu.memory_space<vmem>>, vector<1x16x128xf32>
    %24 = vector.shape_cast %23 : vector<1x16x128xf32> to vector<16x128xf32>
    %25 = vector.shape_cast %22 : vector<16x128xf32> to vector<1x16x128xf32>
    tpu.vector_store %arg13[%c5, %c0_12, %c0_13], %25 {strides = array<i32>} : memref<16x16x128xf32, #tpu.memory_space<vmem>>, vector<1x16x128xf32>,
    %26 = vector.extract_strided_slice %1 {offsets = [96, 0], sizes = [16, 128], strides = [1, 1]} : vector<256x128xf32> to vector<16x128xf32>
    %c6 = arith.constant 6 : index
    %c0_14 = arith.constant 0 : index
    %c0_15 = arith.constant 0 : index
    %27 = vector.load %arg13[%c6, %c0_14, %c0_15] : memref<16x16x128xf32, #tpu.memory_space<vmem>>, vector<1x16x128xf32>
    %28 = vector.shape_cast %27 : vector<1x16x128xf32> to vector<16x128xf32>
    %29 = vector.shape_cast %26 : vector<16x128xf32> to vector<1x16x128xf32>
    tpu.vector_store %arg13[%c6, %c0_14, %c0_15], %29 {strides = array<i32>} : memref<16x16x128xf32, #tpu.memory_space<vmem>>, vector<1x16x128xf32>,
    %30 = vector.extract_strided_slice %1 {offsets = [112, 0], sizes = [16, 128], strides = [1, 1]} : vector<256x128xf32> to vector<16x128xf32>
    %c7 = arith.constant 7 : index
    %c0_16 = arith.constant 0 : index
    %c0_17 = arith.constant 0 : index
    %31 = vector.load %arg13[%c7, %c0_16, %c0_17] : memref<16x16x128xf32, #tpu.memory_space<vmem>>, vector<1x16x128xf32>
    %32 = vector.shape_cast %31 : vector<1x16x128xf32> to vector<16x128xf32>
    %33 = vector.shape_cast %30 : vector<16x128xf32> to vector<1x16x128xf32>
    tpu.vector_store %arg13[%c7, %c0_16, %c0_17], %33 {strides = array<i32>} : memref<16x16x128xf32, #tpu.memory_space<vmem>>, vector<1x16x128xf32>,
    %34 = vector.extract_strided_slice %1 {offsets = [128, 0], sizes = [16, 128], strides = [1, 1]} : vector<256x128xf32> to vector<16x128xf32>
    %c8 = arith.constant 8 : index
    %c0_18 = arith.constant 0 : index
    %c0_19 = arith.constant 0 : index
    %35 = vector.load %arg13[%c8, %c0_18, %c0_19] : memref<16x16x128xf32, #tpu.memory_space<vmem>>, vector<1x16x128xf32>
    %36 = vector.shape_cast %35 : vector<1x16x128xf32> to vector<16x128xf32>
    %37 = vector.shape_cast %34 : vector<16x128xf32> to vector<1x16x128xf32>
    tpu.vector_store %arg13[%c8, %c0_18, %c0_19], %37 {strides = array<i32>} : memref<16x16x128xf32, #tpu.memory_space<vmem>>, vector<1x16x128xf32>,
    %38 = vector.extract_strided_slice %1 {offsets = [144, 0], sizes = [16, 128], strides = [1, 1]} : vector<256x128xf32> to vector<16x128xf32>
    %c9 = arith.constant 9 : index
    %c0_20 = arith.constant 0 : index
    %c0_21 = arith.constant 0 : index
    %39 = vector.load %arg13[%c9, %c0_20, %c0_21] : memref<16x16x128xf32, #tpu.memory_space<vmem>>, vector<1x16x128xf32>
    %40 = vector.shape_cast %39 : vector<1x16x128xf32> to vector<16x128xf32>
    %41 = vector.shape_cast %38 : vector<16x128xf32> to vector<1x16x128xf32>
    tpu.vector_store %arg13[%c9, %c0_20, %c0_21], %41 {strides = array<i32>} : memref<16x16x128xf32, #tpu.memory_space<vmem>>, vector<1x16x128xf32>,
    %42 = vector.extract_strided_slice %1 {offsets = [160, 0], sizes = [16, 128], strides = [1, 1]} : vector<256x128xf32> to vector<16x128xf32>
    %c10 = arith.constant 10 : index
    %c0_22 = arith.constant 0 : index
    %c0_23 = arith.constant 0 : index
    %43 = vector.load %arg13[%c10, %c0_22, %c0_23] : memref<16x16x128xf32, #tpu.memory_space<vmem>>, vector<1x16x128xf32>
    %44 = vector.shape_cast %43 : vector<1x16x128xf32> to vector<16x128xf32>
    %45 = vector.shape_cast %42 : vector<16x128xf32> to vector<1x16x128xf32>
    tpu.vector_store %arg13[%c10, %c0_22, %c0_23], %45 {strides = array<i32>} : memref<16x16x128xf32, #tpu.memory_space<vmem>>, vector<1x16x128xf32>,
    %46 = vector.extract_strided_slice %1 {offsets = [176, 0], sizes = [16, 128], strides = [1, 1]} : vector<256x128xf32> to vector<16x128xf32>
    %c11 = arith.constant 11 : index
    %c0_24 = arith.constant 0 : index
    %c0_25 = arith.constant 0 : index
    %47 = vector.load %arg13[%c11, %c0_24, %c0_25] : memref<16x16x128xf32, #tpu.memory_space<vmem>>, vector<1x16x128xf32>
    %48 = vector.shape_cast %47 : vector<1x16x128xf32> to vector<16x128xf32>
    %49 = vector.shape_cast %46 : vector<16x128xf32> to vector<1x16x128xf32>
    tpu.vector_store %arg13[%c11, %c0_24, %c0_25], %49 {strides = array<i32>} : memref<16x16x128xf32, #tpu.memory_space<vmem>>, vector<1x16x128xf32>,
    %50 = vector.extract_strided_slice %1 {offsets = [192, 0], sizes = [16, 128], strides = [1, 1]} : vector<256x128xf32> to vector<16x128xf32>
    %c12 = arith.constant 12 : index
    %c0_26 = arith.constant 0 : index
    %c0_27 = arith.constant 0 : index
    %51 = vector.load %arg13[%c12, %c0_26, %c0_27] : memref<16x16x128xf32, #tpu.memory_space<vmem>>, vector<1x16x128xf32>
    %52 = vector.shape_cast %51 : vector<1x16x128xf32> to vector<16x128xf32>
    %53 = vector.shape_cast %50 : vector<16x128xf32> to vector<1x16x128xf32>
    tpu.vector_store %arg13[%c12, %c0_26, %c0_27], %53 {strides = array<i32>} : memref<16x16x128xf32, #tpu.memory_space<vmem>>, vector<1x16x128xf32>,
    %54 = vector.extract_strided_slice %1 {offsets = [208, 0], sizes = [16, 128], strides = [1, 1]} : vector<256x128xf32> to vector<16x128xf32>
    %c13 = arith.constant 13 : index
    %c0_28 = arith.constant 0 : index
    %c0_29 = arith.constant 0 : index
    %55 = vector.load %arg13[%c13, %c0_28, %c0_29] : memref<16x16x128xf32, #tpu.memory_space<vmem>>, vector<1x16x128xf32>
    %56 = vector.shape_cast %55 : vector<1x16x128xf32> to vector<16x128xf32>
    %57 = vector.shape_cast %54 : vector<16x128xf32> to vector<1x16x128xf32>
    tpu.vector_store %arg13[%c13, %c0_28, %c0_29], %57 {strides = array<i32>} : memref<16x16x128xf32, #tpu.memory_space<vmem>>, vector<1x16x128xf32>,
    %58 = vector.extract_strided_slice %1 {offsets = [224, 0], sizes = [16, 128], strides = [1, 1]} : vector<256x128xf32> to vector<16x128xf32>
    %c14 = arith.constant 14 : index
    %c0_30 = arith.constant 0 : index
    %c0_31 = arith.constant 0 : index
    %59 = vector.load %arg13[%c14, %c0_30, %c0_31] : memref<16x16x128xf32, #tpu.memory_space<vmem>>, vector<1x16x128xf32>
    %60 = vector.shape_cast %59 : vector<1x16x128xf32> to vector<16x128xf32>
    %61 = vector.shape_cast %58 : vector<16x128xf32> to vector<1x16x128xf32>
    tpu.vector_store %arg13[%c14, %c0_30, %c0_31], %61 {strides = array<i32>} : memref<16x16x128xf32, #tpu.memory_space<vmem>>, vector<1x16x128xf32>,
    %62 = vector.extract_strided_slice %1 {offsets = [240, 0], sizes = [16, 128], strides = [1, 1]} : vector<256x128xf32> to vector<16x128xf32>
    %c15 = arith.constant 15 : index
    %c0_32 = arith.constant 0 : index
    %c0_33 = arith.constant 0 : index
    %63 = vector.load %arg13[%c15, %c0_32, %c0_33] : memref<16x16x128xf32, #tpu.memory_space<vmem>>, vector<1x16x128xf32>
    %64 = vector.shape_cast %63 : vector<1x16x128xf32> to vector<16x128xf32>
    %65 = vector.shape_cast %62 : vector<16x128xf32> to vector<1x16x128xf32>
    tpu.vector_store %arg13[%c15, %c0_32, %c0_33], %65 {strides = array<i32>} : memref<16x16x128xf32, #tpu.memory_space<vmem>>, vector<1x16x128xf32>,
    %c0_i32 = arith.constant 0 : i32
    %c14_i32 = arith.constant 14 : i32
    %66 = arith.addi %c0_i32, %c14_i32 : i32
    %c1_i32 = arith.constant 1 : i32
    scf.for %arg17 = %c0_i32 to %66 step %c1_i32  : i32 {
      %c1_i32_492 = arith.constant 1 : i32
      %521 = arith.muli %arg17, %c1_i32_492 : i32
      %c0_i32_493 = arith.constant 0 : i32
      %522 = arith.addi %c0_i32_493, %521 : i32
      %c0_i32_494 = arith.constant 0 : i32
      %523 = arith.addi %522, %c0_i32_494 : i32
      %524 = arith.index_cast %523 : i32 to index
      %c0_495 = arith.constant 0 : index
      %c0_496 = arith.constant 0 : index
      %525 = vector.load %arg13[%524, %c0_495, %c0_496] : memref<16x16x128xf32, #tpu.memory_space<vmem>>, vector<1x16x128xf32>
      %526 = vector.shape_cast %525 : vector<1x16x128xf32> to vector<16x128xf32>
      %527 = vector.extract_strided_slice %526 {offsets = [0, 0], sizes = [14, 128], strides = [1, 1]} : vector<16x128xf32> to vector<14x128xf32>
      %528 = vector.extract_strided_slice %526 {offsets = [1, 0], sizes = [14, 128], strides = [1, 1]} : vector<16x128xf32> to vector<14x128xf32>
      %529 = vector.extract_strided_slice %526 {offsets = [2, 0], sizes = [14, 128], strides = [1, 1]} : vector<16x128xf32> to vector<14x128xf32>
      %c1_i32_497 = arith.constant 1 : i32
      %530 = arith.addi %522, %c1_i32_497 : i32
      %531 = arith.index_cast %530 : i32 to index
      %c0_498 = arith.constant 0 : index
      %c0_499 = arith.constant 0 : index
      %532 = vector.load %arg13[%531, %c0_498, %c0_499] : memref<16x16x128xf32, #tpu.memory_space<vmem>>, vector<1x16x128xf32>
      %533 = vector.shape_cast %532 : vector<1x16x128xf32> to vector<16x128xf32>
      %534 = vector.extract_strided_slice %533 {offsets = [0, 0], sizes = [14, 128], strides = [1, 1]} : vector<16x128xf32> to vector<14x128xf32>
      %535 = vector.extract_strided_slice %533 {offsets = [1, 0], sizes = [14, 128], strides = [1, 1]} : vector<16x128xf32> to vector<14x128xf32>
      %536 = vector.extract_strided_slice %533 {offsets = [2, 0], sizes = [14, 128], strides = [1, 1]} : vector<16x128xf32> to vector<14x128xf32>
      %c2_i32 = arith.constant 2 : i32
      %537 = arith.addi %522, %c2_i32 : i32
      %538 = arith.index_cast %537 : i32 to index
      %c0_500 = arith.constant 0 : index
      %c0_501 = arith.constant 0 : index
      %539 = vector.load %arg13[%538, %c0_500, %c0_501] : memref<16x16x128xf32, #tpu.memory_space<vmem>>, vector<1x16x128xf32>
      %540 = vector.shape_cast %539 : vector<1x16x128xf32> to vector<16x128xf32>
      %541 = vector.extract_strided_slice %540 {offsets = [0, 0], sizes = [14, 128], strides = [1, 1]} : vector<16x128xf32> to vector<14x128xf32>
      %542 = vector.extract_strided_slice %540 {offsets = [1, 0], sizes = [14, 128], strides = [1, 1]} : vector<16x128xf32> to vector<14x128xf32>
      %543 = vector.extract_strided_slice %540 {offsets = [2, 0], sizes = [14, 128], strides = [1, 1]} : vector<16x128xf32> to vector<14x128xf32>
      %c0_502 = arith.constant 0 : index
      %544 = memref.load %arg3[%c0_502] : memref<4xf32, #tpu.memory_space<smem>>
      %545 = vector.broadcast %544 : f32 to vector<14x128xf32>
      %c0_503 = arith.constant 0 : index
      %546 = memref.load %arg2[%c0_503] : memref<36xf32, #tpu.memory_space<smem>>
      %547 = vector.broadcast %546 : f32 to vector<14x128xf32>
      %548 = arith.mulf %547, %527 : vector<14x128xf32>
      %549 = arith.addf %545, %548 : vector<14x128xf32>
      %c1_504 = arith.constant 1 : index
      %550 = memref.load %arg2[%c1_504] : memref<36xf32, #tpu.memory_space<smem>>
      %551 = vector.broadcast %550 : f32 to vector<14x128xf32>
      %552 = arith.mulf %551, %528 : vector<14x128xf32>
      %553 = arith.addf %549, %552 : vector<14x128xf32>
      %c2_505 = arith.constant 2 : index
      %554 = memref.load %arg2[%c2_505] : memref<36xf32, #tpu.memory_space<smem>>
      %555 = vector.broadcast %554 : f32 to vector<14x128xf32>
      %556 = arith.mulf %555, %529 : vector<14x128xf32>
      %557 = arith.addf %553, %556 : vector<14x128xf32>
      %c3_506 = arith.constant 3 : index
      %558 = memref.load %arg2[%c3_506] : memref<36xf32, #tpu.memory_space<smem>>
      %559 = vector.broadcast %558 : f32 to vector<14x128xf32>
      %560 = arith.mulf %559, %534 : vector<14x128xf32>
      %561 = arith.addf %557, %560 : vector<14x128xf32>
      %c4_507 = arith.constant 4 : index
      %562 = memref.load %arg2[%c4_507] : memref<36xf32, #tpu.memory_space<smem>>
      %563 = vector.broadcast %562 : f32 to vector<14x128xf32>
      %564 = arith.mulf %563, %535 : vector<14x128xf32>
      %565 = arith.addf %561, %564 : vector<14x128xf32>
      %c5_508 = arith.constant 5 : index
      %566 = memref.load %arg2[%c5_508] : memref<36xf32, #tpu.memory_space<smem>>
      %567 = vector.broadcast %566 : f32 to vector<14x128xf32>
      %568 = arith.mulf %567, %536 : vector<14x128xf32>
      %569 = arith.addf %565, %568 : vector<14x128xf32>
      %c6_509 = arith.constant 6 : index
      %570 = memref.load %arg2[%c6_509] : memref<36xf32, #tpu.memory_space<smem>>
      %571 = vector.broadcast %570 : f32 to vector<14x128xf32>
      %572 = arith.mulf %571, %541 : vector<14x128xf32>
      %573 = arith.addf %569, %572 : vector<14x128xf32>
      %c7_510 = arith.constant 7 : index
      %574 = memref.load %arg2[%c7_510] : memref<36xf32, #tpu.memory_space<smem>>
      %575 = vector.broadcast %574 : f32 to vector<14x128xf32>
      %576 = arith.mulf %575, %542 : vector<14x128xf32>
      %577 = arith.addf %573, %576 : vector<14x128xf32>
      %c8_511 = arith.constant 8 : index
      %578 = memref.load %arg2[%c8_511] : memref<36xf32, #tpu.memory_space<smem>>
      %579 = vector.broadcast %578 : f32 to vector<14x128xf32>
      %580 = arith.mulf %579, %543 : vector<14x128xf32>
      %581 = arith.addf %577, %580 : vector<14x128xf32>
      %cst_512 = arith.constant 0.000000e+00 : f32
      %582 = vector.broadcast %cst_512 : f32 to vector<14x128xf32>
      %583 = arith.maximumf %581, %582 : vector<14x128xf32>
      %c0_513 = arith.constant 0 : index
      %584 = arith.index_cast %522 : i32 to index
      %c0_514 = arith.constant 0 : index
      %c0_515 = arith.constant 0 : index
      %585 = vector.load %arg14[%c0_513, %584, %c0_514, %c0_515] : memref<4x14x14x128xf32, #tpu.memory_space<vmem>>, vector<1x1x14x128xf32>
      %586 = vector.shape_cast %585 : vector<1x1x14x128xf32> to vector<14x128xf32>
      %587 = vector.shape_cast %583 : vector<14x128xf32> to vector<1x1x14x128xf32>
      tpu.vector_store %arg14[%c0_513, %584, %c0_514, %c0_515], %587 {strides = array<i32>} : memref<4x14x14x128xf32, #tpu.memory_space<vmem>>, vector<1x1x14x128xf32>,
      %c1_516 = arith.constant 1 : index
      %588 = memref.load %arg3[%c1_516] : memref<4xf32, #tpu.memory_space<smem>>
      %589 = vector.broadcast %588 : f32 to vector<14x128xf32>
      %c9_517 = arith.constant 9 : index
      %590 = memref.load %arg2[%c9_517] : memref<36xf32, #tpu.memory_space<smem>>
      %591 = vector.broadcast %590 : f32 to vector<14x128xf32>
      %592 = arith.mulf %591, %527 : vector<14x128xf32>
      %593 = arith.addf %589, %592 : vector<14x128xf32>
      %c10_518 = arith.constant 10 : index
      %594 = memref.load %arg2[%c10_518] : memref<36xf32, #tpu.memory_space<smem>>
      %595 = vector.broadcast %594 : f32 to vector<14x128xf32>
      %596 = arith.mulf %595, %528 : vector<14x128xf32>
      %597 = arith.addf %593, %596 : vector<14x128xf32>
      %c11_519 = arith.constant 11 : index
      %598 = memref.load %arg2[%c11_519] : memref<36xf32, #tpu.memory_space<smem>>
      %599 = vector.broadcast %598 : f32 to vector<14x128xf32>
      %600 = arith.mulf %599, %529 : vector<14x128xf32>
      %601 = arith.addf %597, %600 : vector<14x128xf32>
      %c12_520 = arith.constant 12 : index
      %602 = memref.load %arg2[%c12_520] : memref<36xf32, #tpu.memory_space<smem>>
      %603 = vector.broadcast %602 : f32 to vector<14x128xf32>
      %604 = arith.mulf %603, %534 : vector<14x128xf32>
      %605 = arith.addf %601, %604 : vector<14x128xf32>
      %c13_521 = arith.constant 13 : index
      %606 = memref.load %arg2[%c13_521] : memref<36xf32, #tpu.memory_space<smem>>
      %607 = vector.broadcast %606 : f32 to vector<14x128xf32>
      %608 = arith.mulf %607, %535 : vector<14x128xf32>
      %609 = arith.addf %605, %608 : vector<14x128xf32>
      %c14_522 = arith.constant 14 : index
      %610 = memref.load %arg2[%c14_522] : memref<36xf32, #tpu.memory_space<smem>>
      %611 = vector.broadcast %610 : f32 to vector<14x128xf32>
      %612 = arith.mulf %611, %536 : vector<14x128xf32>
      %613 = arith.addf %609, %612 : vector<14x128xf32>
      %c15_523 = arith.constant 15 : index
      %614 = memref.load %arg2[%c15_523] : memref<36xf32, #tpu.memory_space<smem>>
      %615 = vector.broadcast %614 : f32 to vector<14x128xf32>
      %616 = arith.mulf %615, %541 : vector<14x128xf32>
      %617 = arith.addf %613, %616 : vector<14x128xf32>
      %c16 = arith.constant 16 : index
      %618 = memref.load %arg2[%c16] : memref<36xf32, #tpu.memory_space<smem>>
      %619 = vector.broadcast %618 : f32 to vector<14x128xf32>
      %620 = arith.mulf %619, %542 : vector<14x128xf32>
      %621 = arith.addf %617, %620 : vector<14x128xf32>
      %c17 = arith.constant 17 : index
      %622 = memref.load %arg2[%c17] : memref<36xf32, #tpu.memory_space<smem>>
      %623 = vector.broadcast %622 : f32 to vector<14x128xf32>
      %624 = arith.mulf %623, %543 : vector<14x128xf32>
      %625 = arith.addf %621, %624 : vector<14x128xf32>
      %cst_524 = arith.constant 0.000000e+00 : f32
      %626 = vector.broadcast %cst_524 : f32 to vector<14x128xf32>
      %627 = arith.maximumf %625, %626 : vector<14x128xf32>
      %c1_525 = arith.constant 1 : index
      %628 = arith.index_cast %522 : i32 to index
      %c0_526 = arith.constant 0 : index
      %c0_527 = arith.constant 0 : index
      %629 = vector.load %arg14[%c1_525, %628, %c0_526, %c0_527] : memref<4x14x14x128xf32, #tpu.memory_space<vmem>>, vector<1x1x14x128xf32>
      %630 = vector.shape_cast %629 : vector<1x1x14x128xf32> to vector<14x128xf32>
      %631 = vector.shape_cast %627 : vector<14x128xf32> to vector<1x1x14x128xf32>
      tpu.vector_store %arg14[%c1_525, %628, %c0_526, %c0_527], %631 {strides = array<i32>} : memref<4x14x14x128xf32, #tpu.memory_space<vmem>>, vector<1x1x14x128xf32>,
      %c2_528 = arith.constant 2 : index
      %632 = memref.load %arg3[%c2_528] : memref<4xf32, #tpu.memory_space<smem>>
      %633 = vector.broadcast %632 : f32 to vector<14x128xf32>
      %c18 = arith.constant 18 : index
      %634 = memref.load %arg2[%c18] : memref<36xf32, #tpu.memory_space<smem>>
      %635 = vector.broadcast %634 : f32 to vector<14x128xf32>
      %636 = arith.mulf %635, %527 : vector<14x128xf32>
      %637 = arith.addf %633, %636 : vector<14x128xf32>
      %c19 = arith.constant 19 : index
      %638 = memref.load %arg2[%c19] : memref<36xf32, #tpu.memory_space<smem>>
      %639 = vector.broadcast %638 : f32 to vector<14x128xf32>
      %640 = arith.mulf %639, %528 : vector<14x128xf32>
      %641 = arith.addf %637, %640 : vector<14x128xf32>
      %c20 = arith.constant 20 : index
      %642 = memref.load %arg2[%c20] : memref<36xf32, #tpu.memory_space<smem>>
      %643 = vector.broadcast %642 : f32 to vector<14x128xf32>
      %644 = arith.mulf %643, %529 : vector<14x128xf32>
      %645 = arith.addf %641, %644 : vector<14x128xf32>
      %c21 = arith.constant 21 : index
      %646 = memref.load %arg2[%c21] : memref<36xf32, #tpu.memory_space<smem>>
      %647 = vector.broadcast %646 : f32 to vector<14x128xf32>
      %648 = arith.mulf %647, %534 : vector<14x128xf32>
      %649 = arith.addf %645, %648 : vector<14x128xf32>
      %c22_529 = arith.constant 22 : index
      %650 = memref.load %arg2[%c22_529] : memref<36xf32, #tpu.memory_space<smem>>
      %651 = vector.broadcast %650 : f32 to vector<14x128xf32>
      %652 = arith.mulf %651, %535 : vector<14x128xf32>
      %653 = arith.addf %649, %652 : vector<14x128xf32>
      %c23 = arith.constant 23 : index
      %654 = memref.load %arg2[%c23] : memref<36xf32, #tpu.memory_space<smem>>
      %655 = vector.broadcast %654 : f32 to vector<14x128xf32>
      %656 = arith.mulf %655, %536 : vector<14x128xf32>
      %657 = arith.addf %653, %656 : vector<14x128xf32>
      %c24 = arith.constant 24 : index
      %658 = memref.load %arg2[%c24] : memref<36xf32, #tpu.memory_space<smem>>
      %659 = vector.broadcast %658 : f32 to vector<14x128xf32>
      %660 = arith.mulf %659, %541 : vector<14x128xf32>
      %661 = arith.addf %657, %660 : vector<14x128xf32>
      %c25 = arith.constant 25 : index
      %662 = memref.load %arg2[%c25] : memref<36xf32, #tpu.memory_space<smem>>
      %663 = vector.broadcast %662 : f32 to vector<14x128xf32>
      %664 = arith.mulf %663, %542 : vector<14x128xf32>
      %665 = arith.addf %661, %664 : vector<14x128xf32>
      %c26 = arith.constant 26 : index
      %666 = memref.load %arg2[%c26] : memref<36xf32, #tpu.memory_space<smem>>
      %667 = vector.broadcast %666 : f32 to vector<14x128xf32>
      %668 = arith.mulf %667, %543 : vector<14x128xf32>
      %669 = arith.addf %665, %668 : vector<14x128xf32>
      %cst_530 = arith.constant 0.000000e+00 : f32
      %670 = vector.broadcast %cst_530 : f32 to vector<14x128xf32>
      %671 = arith.maximumf %669, %670 : vector<14x128xf32>
      %c2_531 = arith.constant 2 : index
      %672 = arith.index_cast %522 : i32 to index
      %c0_532 = arith.constant 0 : index
      %c0_533 = arith.constant 0 : index
      %673 = vector.load %arg14[%c2_531, %672, %c0_532, %c0_533] : memref<4x14x14x128xf32, #tpu.memory_space<vmem>>, vector<1x1x14x128xf32>
      %674 = vector.shape_cast %673 : vector<1x1x14x128xf32> to vector<14x128xf32>
      %675 = vector.shape_cast %671 : vector<14x128xf32> to vector<1x1x14x128xf32>
      tpu.vector_store %arg14[%c2_531, %672, %c0_532, %c0_533], %675 {strides = array<i32>} : memref<4x14x14x128xf32, #tpu.memory_space<vmem>>, vector<1x1x14x128xf32>,
      %c3_534 = arith.constant 3 : index
      %676 = memref.load %arg3[%c3_534] : memref<4xf32, #tpu.memory_space<smem>>
      %677 = vector.broadcast %676 : f32 to vector<14x128xf32>
      %c27 = arith.constant 27 : index
      %678 = memref.load %arg2[%c27] : memref<36xf32, #tpu.memory_space<smem>>
      %679 = vector.broadcast %678 : f32 to vector<14x128xf32>
      %680 = arith.mulf %679, %527 : vector<14x128xf32>
      %681 = arith.addf %677, %680 : vector<14x128xf32>
      %c28 = arith.constant 28 : index
      %682 = memref.load %arg2[%c28] : memref<36xf32, #tpu.memory_space<smem>>
      %683 = vector.broadcast %682 : f32 to vector<14x128xf32>
      %684 = arith.mulf %683, %528 : vector<14x128xf32>
      %685 = arith.addf %681, %684 : vector<14x128xf32>
      %c29 = arith.constant 29 : index
      %686 = memref.load %arg2[%c29] : memref<36xf32, #tpu.memory_space<smem>>
      %687 = vector.broadcast %686 : f32 to vector<14x128xf32>
      %688 = arith.mulf %687, %529 : vector<14x128xf32>
      %689 = arith.addf %685, %688 : vector<14x128xf32>
      %c30 = arith.constant 30 : index
      %690 = memref.load %arg2[%c30] : memref<36xf32, #tpu.memory_space<smem>>
      %691 = vector.broadcast %690 : f32 to vector<14x128xf32>
      %692 = arith.mulf %691, %534 : vector<14x128xf32>
      %693 = arith.addf %689, %692 : vector<14x128xf32>
      %c31 = arith.constant 31 : index
      %694 = memref.load %arg2[%c31] : memref<36xf32, #tpu.memory_space<smem>>
      %695 = vector.broadcast %694 : f32 to vector<14x128xf32>
      %696 = arith.mulf %695, %535 : vector<14x128xf32>
      %697 = arith.addf %693, %696 : vector<14x128xf32>
      %c32 = arith.constant 32 : index
      %698 = memref.load %arg2[%c32] : memref<36xf32, #tpu.memory_space<smem>>
      %699 = vector.broadcast %698 : f32 to vector<14x128xf32>
      %700 = arith.mulf %699, %536 : vector<14x128xf32>
      %701 = arith.addf %697, %700 : vector<14x128xf32>
      %c33_535 = arith.constant 33 : index
      %702 = memref.load %arg2[%c33_535] : memref<36xf32, #tpu.memory_space<smem>>
      %703 = vector.broadcast %702 : f32 to vector<14x128xf32>
      %704 = arith.mulf %703, %541 : vector<14x128xf32>
      %705 = arith.addf %701, %704 : vector<14x128xf32>
      %c34 = arith.constant 34 : index
      %706 = memref.load %arg2[%c34] : memref<36xf32, #tpu.memory_space<smem>>
      %707 = vector.broadcast %706 : f32 to vector<14x128xf32>
      %708 = arith.mulf %707, %542 : vector<14x128xf32>
      %709 = arith.addf %705, %708 : vector<14x128xf32>
      %c35 = arith.constant 35 : index
      %710 = memref.load %arg2[%c35] : memref<36xf32, #tpu.memory_space<smem>>
      %711 = vector.broadcast %710 : f32 to vector<14x128xf32>
      %712 = arith.mulf %711, %543 : vector<14x128xf32>
      %713 = arith.addf %709, %712 : vector<14x128xf32>
      %cst_536 = arith.constant 0.000000e+00 : f32
      %714 = vector.broadcast %cst_536 : f32 to vector<14x128xf32>
      %715 = arith.maximumf %713, %714 : vector<14x128xf32>
      %c3_537 = arith.constant 3 : index
      %716 = arith.index_cast %522 : i32 to index
      %c0_538 = arith.constant 0 : index
      %c0_539 = arith.constant 0 : index
      %717 = vector.load %arg14[%c3_537, %716, %c0_538, %c0_539] : memref<4x14x14x128xf32, #tpu.memory_space<vmem>>, vector<1x1x14x128xf32>
      %718 = vector.shape_cast %717 : vector<1x1x14x128xf32> to vector<14x128xf32>
      %719 = vector.shape_cast %715 : vector<14x128xf32> to vector<1x1x14x128xf32>
      tpu.vector_store %arg14[%c3_537, %716, %c0_538, %c0_539], %719 {strides = array<i32>} : memref<4x14x14x128xf32, #tpu.memory_space<vmem>>, vector<1x1x14x128xf32>,
    }
    %c14_i32_34 = arith.constant 14 : i32
    %c0_i32_35 = arith.constant 0 : i32
    %c12_i32 = arith.constant 12 : i32
    %67 = arith.addi %c0_i32_35, %c12_i32 : i32
    %c1_i32_36 = arith.constant 1 : i32
    scf.for %arg17 = %c0_i32_35 to %67 step %c1_i32_36  : i32 {
      %c1_i32_492 = arith.constant 1 : i32
      %521 = arith.muli %arg17, %c1_i32_492 : i32
      %c0_i32_493 = arith.constant 0 : i32
      %522 = arith.addi %c0_i32_493, %521 : i32
      %c0_494 = arith.constant 0 : index
      %523 = memref.load %arg5[%c0_494] : memref<8xf32, #tpu.memory_space<smem>>
      %524 = vector.broadcast %523 : f32 to vector<12x128xf32>
      %c1_495 = arith.constant 1 : index
      %525 = memref.load %arg5[%c1_495] : memref<8xf32, #tpu.memory_space<smem>>
      %526 = vector.broadcast %525 : f32 to vector<12x128xf32>
      %c2_496 = arith.constant 2 : index
      %527 = memref.load %arg5[%c2_496] : memref<8xf32, #tpu.memory_space<smem>>
      %528 = vector.broadcast %527 : f32 to vector<12x128xf32>
      %c3_497 = arith.constant 3 : index
      %529 = memref.load %arg5[%c3_497] : memref<8xf32, #tpu.memory_space<smem>>
      %530 = vector.broadcast %529 : f32 to vector<12x128xf32>
      %c4_498 = arith.constant 4 : index
      %531 = memref.load %arg5[%c4_498] : memref<8xf32, #tpu.memory_space<smem>>
      %532 = vector.broadcast %531 : f32 to vector<12x128xf32>
      %c5_499 = arith.constant 5 : index
      %533 = memref.load %arg5[%c5_499] : memref<8xf32, #tpu.memory_space<smem>>
      %534 = vector.broadcast %533 : f32 to vector<12x128xf32>
      %c6_500 = arith.constant 6 : index
      %535 = memref.load %arg5[%c6_500] : memref<8xf32, #tpu.memory_space<smem>>
      %536 = vector.broadcast %535 : f32 to vector<12x128xf32>
      %c7_501 = arith.constant 7 : index
      %537 = memref.load %arg5[%c7_501] : memref<8xf32, #tpu.memory_space<smem>>
      %538 = vector.broadcast %537 : f32 to vector<12x128xf32>
      %c0_i32_502 = arith.constant 0 : i32
      %539 = arith.addi %522, %c0_i32_502 : i32
      %c0_503 = arith.constant 0 : index
      %540 = arith.index_cast %539 : i32 to index
      %c0_504 = arith.constant 0 : index
      %c0_505 = arith.constant 0 : index
      %541 = vector.load %arg14[%c0_503, %540, %c0_504, %c0_505] : memref<4x14x14x128xf32, #tpu.memory_space<vmem>>, vector<1x1x14x128xf32>
      %542 = vector.shape_cast %541 : vector<1x1x14x128xf32> to vector<14x128xf32>
      %543 = vector.extract_strided_slice %542 {offsets = [0, 0], sizes = [12, 128], strides = [1, 1]} : vector<14x128xf32> to vector<12x128xf32>
      %c0_506 = arith.constant 0 : index
      %544 = memref.load %arg4[%c0_506] : memref<288xf32, #tpu.memory_space<smem>>
      %545 = vector.broadcast %544 : f32 to vector<12x128xf32>
      %546 = arith.mulf %545, %543 : vector<12x128xf32>
      %547 = arith.addf %524, %546 : vector<12x128xf32>
      %c36 = arith.constant 36 : index
      %548 = memref.load %arg4[%c36] : memref<288xf32, #tpu.memory_space<smem>>
      %549 = vector.broadcast %548 : f32 to vector<12x128xf32>
      %550 = arith.mulf %549, %543 : vector<12x128xf32>
      %551 = arith.addf %526, %550 : vector<12x128xf32>
      %c72 = arith.constant 72 : index
      %552 = memref.load %arg4[%c72] : memref<288xf32, #tpu.memory_space<smem>>
      %553 = vector.broadcast %552 : f32 to vector<12x128xf32>
      %554 = arith.mulf %553, %543 : vector<12x128xf32>
      %555 = arith.addf %528, %554 : vector<12x128xf32>
      %c108 = arith.constant 108 : index
      %556 = memref.load %arg4[%c108] : memref<288xf32, #tpu.memory_space<smem>>
      %557 = vector.broadcast %556 : f32 to vector<12x128xf32>
      %558 = arith.mulf %557, %543 : vector<12x128xf32>
      %559 = arith.addf %530, %558 : vector<12x128xf32>
      %c144 = arith.constant 144 : index
      %560 = memref.load %arg4[%c144] : memref<288xf32, #tpu.memory_space<smem>>
      %561 = vector.broadcast %560 : f32 to vector<12x128xf32>
      %562 = arith.mulf %561, %543 : vector<12x128xf32>
      %563 = arith.addf %532, %562 : vector<12x128xf32>
      %c180 = arith.constant 180 : index
      %564 = memref.load %arg4[%c180] : memref<288xf32, #tpu.memory_space<smem>>
      %565 = vector.broadcast %564 : f32 to vector<12x128xf32>
      %566 = arith.mulf %565, %543 : vector<12x128xf32>
      %567 = arith.addf %534, %566 : vector<12x128xf32>
      %c216 = arith.constant 216 : index
      %568 = memref.load %arg4[%c216] : memref<288xf32, #tpu.memory_space<smem>>
      %569 = vector.broadcast %568 : f32 to vector<12x128xf32>
      %570 = arith.mulf %569, %543 : vector<12x128xf32>
      %571 = arith.addf %536, %570 : vector<12x128xf32>
      %c252 = arith.constant 252 : index
      %572 = memref.load %arg4[%c252] : memref<288xf32, #tpu.memory_space<smem>>
      %573 = vector.broadcast %572 : f32 to vector<12x128xf32>
      %574 = arith.mulf %573, %543 : vector<12x128xf32>
      %575 = arith.addf %538, %574 : vector<12x128xf32>
      %576 = vector.extract_strided_slice %542 {offsets = [1, 0], sizes = [12, 128], strides = [1, 1]} : vector<14x128xf32> to vector<12x128xf32>
      %c1_507 = arith.constant 1 : index
      %577 = memref.load %arg4[%c1_507] : memref<288xf32, #tpu.memory_space<smem>>
      %578 = vector.broadcast %577 : f32 to vector<12x128xf32>
      %579 = arith.mulf %578, %576 : vector<12x128xf32>
      %580 = arith.addf %547, %579 : vector<12x128xf32>
      %c37 = arith.constant 37 : index
      %581 = memref.load %arg4[%c37] : memref<288xf32, #tpu.memory_space<smem>>
      %582 = vector.broadcast %581 : f32 to vector<12x128xf32>
      %583 = arith.mulf %582, %576 : vector<12x128xf32>
      %584 = arith.addf %551, %583 : vector<12x128xf32>
      %c73 = arith.constant 73 : index
      %585 = memref.load %arg4[%c73] : memref<288xf32, #tpu.memory_space<smem>>
      %586 = vector.broadcast %585 : f32 to vector<12x128xf32>
      %587 = arith.mulf %586, %576 : vector<12x128xf32>
      %588 = arith.addf %555, %587 : vector<12x128xf32>
      %c109 = arith.constant 109 : index
      %589 = memref.load %arg4[%c109] : memref<288xf32, #tpu.memory_space<smem>>
      %590 = vector.broadcast %589 : f32 to vector<12x128xf32>
      %591 = arith.mulf %590, %576 : vector<12x128xf32>
      %592 = arith.addf %559, %591 : vector<12x128xf32>
      %c145 = arith.constant 145 : index
      %593 = memref.load %arg4[%c145] : memref<288xf32, #tpu.memory_space<smem>>
      %594 = vector.broadcast %593 : f32 to vector<12x128xf32>
      %595 = arith.mulf %594, %576 : vector<12x128xf32>
      %596 = arith.addf %563, %595 : vector<12x128xf32>
      %c181 = arith.constant 181 : index
      %597 = memref.load %arg4[%c181] : memref<288xf32, #tpu.memory_space<smem>>
      %598 = vector.broadcast %597 : f32 to vector<12x128xf32>
      %599 = arith.mulf %598, %576 : vector<12x128xf32>
      %600 = arith.addf %567, %599 : vector<12x128xf32>
      %c217 = arith.constant 217 : index
      %601 = memref.load %arg4[%c217] : memref<288xf32, #tpu.memory_space<smem>>
      %602 = vector.broadcast %601 : f32 to vector<12x128xf32>
      %603 = arith.mulf %602, %576 : vector<12x128xf32>
      %604 = arith.addf %571, %603 : vector<12x128xf32>
      %c253_508 = arith.constant 253 : index
      %605 = memref.load %arg4[%c253_508] : memref<288xf32, #tpu.memory_space<smem>>
      %606 = vector.broadcast %605 : f32 to vector<12x128xf32>
      %607 = arith.mulf %606, %576 : vector<12x128xf32>
      %608 = arith.addf %575, %607 : vector<12x128xf32>
      %609 = vector.extract_strided_slice %542 {offsets = [2, 0], sizes = [12, 128], strides = [1, 1]} : vector<14x128xf32> to vector<12x128xf32>
      %c2_509 = arith.constant 2 : index
      %610 = memref.load %arg4[%c2_509] : memref<288xf32, #tpu.memory_space<smem>>
      %611 = vector.broadcast %610 : f32 to vector<12x128xf32>
      %612 = arith.mulf %611, %609 : vector<12x128xf32>
      %613 = arith.addf %580, %612 : vector<12x128xf32>
      %c38 = arith.constant 38 : index
      %614 = memref.load %arg4[%c38] : memref<288xf32, #tpu.memory_space<smem>>
      %615 = vector.broadcast %614 : f32 to vector<12x128xf32>
      %616 = arith.mulf %615, %609 : vector<12x128xf32>
      %617 = arith.addf %584, %616 : vector<12x128xf32>
      %c74 = arith.constant 74 : index
      %618 = memref.load %arg4[%c74] : memref<288xf32, #tpu.memory_space<smem>>
      %619 = vector.broadcast %618 : f32 to vector<12x128xf32>
      %620 = arith.mulf %619, %609 : vector<12x128xf32>
      %621 = arith.addf %588, %620 : vector<12x128xf32>
      %c110_510 = arith.constant 110 : index
      %622 = memref.load %arg4[%c110_510] : memref<288xf32, #tpu.memory_space<smem>>
      %623 = vector.broadcast %622 : f32 to vector<12x128xf32>
      %624 = arith.mulf %623, %609 : vector<12x128xf32>
      %625 = arith.addf %592, %624 : vector<12x128xf32>
      %c146 = arith.constant 146 : index
      %626 = memref.load %arg4[%c146] : memref<288xf32, #tpu.memory_space<smem>>
      %627 = vector.broadcast %626 : f32 to vector<12x128xf32>
      %628 = arith.mulf %627, %609 : vector<12x128xf32>
      %629 = arith.addf %596, %628 : vector<12x128xf32>
      %c182 = arith.constant 182 : index
      %630 = memref.load %arg4[%c182] : memref<288xf32, #tpu.memory_space<smem>>
      %631 = vector.broadcast %630 : f32 to vector<12x128xf32>
      %632 = arith.mulf %631, %609 : vector<12x128xf32>
      %633 = arith.addf %600, %632 : vector<12x128xf32>
      %c218 = arith.constant 218 : index
      %634 = memref.load %arg4[%c218] : memref<288xf32, #tpu.memory_space<smem>>
      %635 = vector.broadcast %634 : f32 to vector<12x128xf32>
      %636 = arith.mulf %635, %609 : vector<12x128xf32>
      %637 = arith.addf %604, %636 : vector<12x128xf32>
      %c254 = arith.constant 254 : index
      %638 = memref.load %arg4[%c254] : memref<288xf32, #tpu.memory_space<smem>>
      %639 = vector.broadcast %638 : f32 to vector<12x128xf32>
      %640 = arith.mulf %639, %609 : vector<12x128xf32>
      %641 = arith.addf %608, %640 : vector<12x128xf32>
      %c1_i32_511 = arith.constant 1 : i32
      %642 = arith.addi %522, %c1_i32_511 : i32
      %c0_512 = arith.constant 0 : index
      %643 = arith.index_cast %642 : i32 to index
      %c0_513 = arith.constant 0 : index
      %c0_514 = arith.constant 0 : index
      %644 = vector.load %arg14[%c0_512, %643, %c0_513, %c0_514] : memref<4x14x14x128xf32, #tpu.memory_space<vmem>>, vector<1x1x14x128xf32>
      %645 = vector.shape_cast %644 : vector<1x1x14x128xf32> to vector<14x128xf32>
      %646 = vector.extract_strided_slice %645 {offsets = [0, 0], sizes = [12, 128], strides = [1, 1]} : vector<14x128xf32> to vector<12x128xf32>
      %c3_515 = arith.constant 3 : index
      %647 = memref.load %arg4[%c3_515] : memref<288xf32, #tpu.memory_space<smem>>
      %648 = vector.broadcast %647 : f32 to vector<12x128xf32>
      %649 = arith.mulf %648, %646 : vector<12x128xf32>
      %650 = arith.addf %613, %649 : vector<12x128xf32>
      %c39 = arith.constant 39 : index
      %651 = memref.load %arg4[%c39] : memref<288xf32, #tpu.memory_space<smem>>
      %652 = vector.broadcast %651 : f32 to vector<12x128xf32>
      %653 = arith.mulf %652, %646 : vector<12x128xf32>
      %654 = arith.addf %617, %653 : vector<12x128xf32>
      %c75 = arith.constant 75 : index
      %655 = memref.load %arg4[%c75] : memref<288xf32, #tpu.memory_space<smem>>
      %656 = vector.broadcast %655 : f32 to vector<12x128xf32>
      %657 = arith.mulf %656, %646 : vector<12x128xf32>
      %658 = arith.addf %621, %657 : vector<12x128xf32>
      %c111 = arith.constant 111 : index
      %659 = memref.load %arg4[%c111] : memref<288xf32, #tpu.memory_space<smem>>
      %660 = vector.broadcast %659 : f32 to vector<12x128xf32>
      %661 = arith.mulf %660, %646 : vector<12x128xf32>
      %662 = arith.addf %625, %661 : vector<12x128xf32>
      %c147 = arith.constant 147 : index
      %663 = memref.load %arg4[%c147] : memref<288xf32, #tpu.memory_space<smem>>
      %664 = vector.broadcast %663 : f32 to vector<12x128xf32>
      %665 = arith.mulf %664, %646 : vector<12x128xf32>
      %666 = arith.addf %629, %665 : vector<12x128xf32>
      %c183 = arith.constant 183 : index
      %667 = memref.load %arg4[%c183] : memref<288xf32, #tpu.memory_space<smem>>
      %668 = vector.broadcast %667 : f32 to vector<12x128xf32>
      %669 = arith.mulf %668, %646 : vector<12x128xf32>
      %670 = arith.addf %633, %669 : vector<12x128xf32>
      %c219 = arith.constant 219 : index
      %671 = memref.load %arg4[%c219] : memref<288xf32, #tpu.memory_space<smem>>
      %672 = vector.broadcast %671 : f32 to vector<12x128xf32>
      %673 = arith.mulf %672, %646 : vector<12x128xf32>
      %674 = arith.addf %637, %673 : vector<12x128xf32>
      %c255 = arith.constant 255 : index
      %675 = memref.load %arg4[%c255] : memref<288xf32, #tpu.memory_space<smem>>
      %676 = vector.broadcast %675 : f32 to vector<12x128xf32>
      %677 = arith.mulf %676, %646 : vector<12x128xf32>
      %678 = arith.addf %641, %677 : vector<12x128xf32>
      %679 = vector.extract_strided_slice %645 {offsets = [1, 0], sizes = [12, 128], strides = [1, 1]} : vector<14x128xf32> to vector<12x128xf32>
      %c4_516 = arith.constant 4 : index
      %680 = memref.load %arg4[%c4_516] : memref<288xf32, #tpu.memory_space<smem>>
      %681 = vector.broadcast %680 : f32 to vector<12x128xf32>
      %682 = arith.mulf %681, %679 : vector<12x128xf32>
      %683 = arith.addf %650, %682 : vector<12x128xf32>
      %c40 = arith.constant 40 : index
      %684 = memref.load %arg4[%c40] : memref<288xf32, #tpu.memory_space<smem>>
      %685 = vector.broadcast %684 : f32 to vector<12x128xf32>
      %686 = arith.mulf %685, %679 : vector<12x128xf32>
      %687 = arith.addf %654, %686 : vector<12x128xf32>
      %c76 = arith.constant 76 : index
      %688 = memref.load %arg4[%c76] : memref<288xf32, #tpu.memory_space<smem>>
      %689 = vector.broadcast %688 : f32 to vector<12x128xf32>
      %690 = arith.mulf %689, %679 : vector<12x128xf32>
      %691 = arith.addf %658, %690 : vector<12x128xf32>
      %c112 = arith.constant 112 : index
      %692 = memref.load %arg4[%c112] : memref<288xf32, #tpu.memory_space<smem>>
      %693 = vector.broadcast %692 : f32 to vector<12x128xf32>
      %694 = arith.mulf %693, %679 : vector<12x128xf32>
      %695 = arith.addf %662, %694 : vector<12x128xf32>
      %c148 = arith.constant 148 : index
      %696 = memref.load %arg4[%c148] : memref<288xf32, #tpu.memory_space<smem>>
      %697 = vector.broadcast %696 : f32 to vector<12x128xf32>
      %698 = arith.mulf %697, %679 : vector<12x128xf32>
      %699 = arith.addf %666, %698 : vector<12x128xf32>
      %c184 = arith.constant 184 : index
      %700 = memref.load %arg4[%c184] : memref<288xf32, #tpu.memory_space<smem>>
      %701 = vector.broadcast %700 : f32 to vector<12x128xf32>
      %702 = arith.mulf %701, %679 : vector<12x128xf32>
      %703 = arith.addf %670, %702 : vector<12x128xf32>
      %c220_517 = arith.constant 220 : index
      %704 = memref.load %arg4[%c220_517] : memref<288xf32, #tpu.memory_space<smem>>
      %705 = vector.broadcast %704 : f32 to vector<12x128xf32>
      %706 = arith.mulf %705, %679 : vector<12x128xf32>
      %707 = arith.addf %674, %706 : vector<12x128xf32>
      %c256 = arith.constant 256 : index
      %708 = memref.load %arg4[%c256] : memref<288xf32, #tpu.memory_space<smem>>
      %709 = vector.broadcast %708 : f32 to vector<12x128xf32>
      %710 = arith.mulf %709, %679 : vector<12x128xf32>
      %711 = arith.addf %678, %710 : vector<12x128xf32>
      %712 = vector.extract_strided_slice %645 {offsets = [2, 0], sizes = [12, 128], strides = [1, 1]} : vector<14x128xf32> to vector<12x128xf32>
      %c5_518 = arith.constant 5 : index
      %713 = memref.load %arg4[%c5_518] : memref<288xf32, #tpu.memory_space<smem>>
      %714 = vector.broadcast %713 : f32 to vector<12x128xf32>
      %715 = arith.mulf %714, %712 : vector<12x128xf32>
      %716 = arith.addf %683, %715 : vector<12x128xf32>
      %c41 = arith.constant 41 : index
      %717 = memref.load %arg4[%c41] : memref<288xf32, #tpu.memory_space<smem>>
      %718 = vector.broadcast %717 : f32 to vector<12x128xf32>
      %719 = arith.mulf %718, %712 : vector<12x128xf32>
      %720 = arith.addf %687, %719 : vector<12x128xf32>
      %c77_519 = arith.constant 77 : index
      %721 = memref.load %arg4[%c77_519] : memref<288xf32, #tpu.memory_space<smem>>
      %722 = vector.broadcast %721 : f32 to vector<12x128xf32>
      %723 = arith.mulf %722, %712 : vector<12x128xf32>
      %724 = arith.addf %691, %723 : vector<12x128xf32>
      %c113 = arith.constant 113 : index
      %725 = memref.load %arg4[%c113] : memref<288xf32, #tpu.memory_space<smem>>
      %726 = vector.broadcast %725 : f32 to vector<12x128xf32>
      %727 = arith.mulf %726, %712 : vector<12x128xf32>
      %728 = arith.addf %695, %727 : vector<12x128xf32>
      %c149 = arith.constant 149 : index
      %729 = memref.load %arg4[%c149] : memref<288xf32, #tpu.memory_space<smem>>
      %730 = vector.broadcast %729 : f32 to vector<12x128xf32>
      %731 = arith.mulf %730, %712 : vector<12x128xf32>
      %732 = arith.addf %699, %731 : vector<12x128xf32>
      %c185 = arith.constant 185 : index
      %733 = memref.load %arg4[%c185] : memref<288xf32, #tpu.memory_space<smem>>
      %734 = vector.broadcast %733 : f32 to vector<12x128xf32>
      %735 = arith.mulf %734, %712 : vector<12x128xf32>
      %736 = arith.addf %703, %735 : vector<12x128xf32>
      %c221 = arith.constant 221 : index
      %737 = memref.load %arg4[%c221] : memref<288xf32, #tpu.memory_space<smem>>
      %738 = vector.broadcast %737 : f32 to vector<12x128xf32>
      %739 = arith.mulf %738, %712 : vector<12x128xf32>
      %740 = arith.addf %707, %739 : vector<12x128xf32>
      %c257 = arith.constant 257 : index
      %741 = memref.load %arg4[%c257] : memref<288xf32, #tpu.memory_space<smem>>
      %742 = vector.broadcast %741 : f32 to vector<12x128xf32>
      %743 = arith.mulf %742, %712 : vector<12x128xf32>
      %744 = arith.addf %711, %743 : vector<12x128xf32>
      %c2_i32 = arith.constant 2 : i32
      %745 = arith.addi %522, %c2_i32 : i32
      %c0_520 = arith.constant 0 : index
      %746 = arith.index_cast %745 : i32 to index
      %c0_521 = arith.constant 0 : index
      %c0_522 = arith.constant 0 : index
      %747 = vector.load %arg14[%c0_520, %746, %c0_521, %c0_522] : memref<4x14x14x128xf32, #tpu.memory_space<vmem>>, vector<1x1x14x128xf32>
      %748 = vector.shape_cast %747 : vector<1x1x14x128xf32> to vector<14x128xf32>
      %749 = vector.extract_strided_slice %748 {offsets = [0, 0], sizes = [12, 128], strides = [1, 1]} : vector<14x128xf32> to vector<12x128xf32>
      %c6_523 = arith.constant 6 : index
      %750 = memref.load %arg4[%c6_523] : memref<288xf32, #tpu.memory_space<smem>>
      %751 = vector.broadcast %750 : f32 to vector<12x128xf32>
      %752 = arith.mulf %751, %749 : vector<12x128xf32>
      %753 = arith.addf %716, %752 : vector<12x128xf32>
      %c42 = arith.constant 42 : index
      %754 = memref.load %arg4[%c42] : memref<288xf32, #tpu.memory_space<smem>>
      %755 = vector.broadcast %754 : f32 to vector<12x128xf32>
      %756 = arith.mulf %755, %749 : vector<12x128xf32>
      %757 = arith.addf %720, %756 : vector<12x128xf32>
      %c78 = arith.constant 78 : index
      %758 = memref.load %arg4[%c78] : memref<288xf32, #tpu.memory_space<smem>>
      %759 = vector.broadcast %758 : f32 to vector<12x128xf32>
      %760 = arith.mulf %759, %749 : vector<12x128xf32>
      %761 = arith.addf %724, %760 : vector<12x128xf32>
      %c114 = arith.constant 114 : index
      %762 = memref.load %arg4[%c114] : memref<288xf32, #tpu.memory_space<smem>>
      %763 = vector.broadcast %762 : f32 to vector<12x128xf32>
      %764 = arith.mulf %763, %749 : vector<12x128xf32>
      %765 = arith.addf %728, %764 : vector<12x128xf32>
      %c150 = arith.constant 150 : index
      %766 = memref.load %arg4[%c150] : memref<288xf32, #tpu.memory_space<smem>>
      %767 = vector.broadcast %766 : f32 to vector<12x128xf32>
      %768 = arith.mulf %767, %749 : vector<12x128xf32>
      %769 = arith.addf %732, %768 : vector<12x128xf32>
      %c186 = arith.constant 186 : index
      %770 = memref.load %arg4[%c186] : memref<288xf32, #tpu.memory_space<smem>>
      %771 = vector.broadcast %770 : f32 to vector<12x128xf32>
      %772 = arith.mulf %771, %749 : vector<12x128xf32>
      %773 = arith.addf %736, %772 : vector<12x128xf32>
      %c222 = arith.constant 222 : index
      %774 = memref.load %arg4[%c222] : memref<288xf32, #tpu.memory_space<smem>>
      %775 = vector.broadcast %774 : f32 to vector<12x128xf32>
      %776 = arith.mulf %775, %749 : vector<12x128xf32>
      %777 = arith.addf %740, %776 : vector<12x128xf32>
      %c258 = arith.constant 258 : index
      %778 = memref.load %arg4[%c258] : memref<288xf32, #tpu.memory_space<smem>>
      %779 = vector.broadcast %778 : f32 to vector<12x128xf32>
      %780 = arith.mulf %779, %749 : vector<12x128xf32>
      %781 = arith.addf %744, %780 : vector<12x128xf32>
      %782 = vector.extract_strided_slice %748 {offsets = [1, 0], sizes = [12, 128], strides = [1, 1]} : vector<14x128xf32> to vector<12x128xf32>
      %c7_524 = arith.constant 7 : index
      %783 = memref.load %arg4[%c7_524] : memref<288xf32, #tpu.memory_space<smem>>
      %784 = vector.broadcast %783 : f32 to vector<12x128xf32>
      %785 = arith.mulf %784, %782 : vector<12x128xf32>
      %786 = arith.addf %753, %785 : vector<12x128xf32>
      %c43 = arith.constant 43 : index
      %787 = memref.load %arg4[%c43] : memref<288xf32, #tpu.memory_space<smem>>
      %788 = vector.broadcast %787 : f32 to vector<12x128xf32>
      %789 = arith.mulf %788, %782 : vector<12x128xf32>
      %790 = arith.addf %757, %789 : vector<12x128xf32>
      %c79 = arith.constant 79 : index
      %791 = memref.load %arg4[%c79] : memref<288xf32, #tpu.memory_space<smem>>
      %792 = vector.broadcast %791 : f32 to vector<12x128xf32>
      %793 = arith.mulf %792, %782 : vector<12x128xf32>
      %794 = arith.addf %761, %793 : vector<12x128xf32>
      %c115 = arith.constant 115 : index
      %795 = memref.load %arg4[%c115] : memref<288xf32, #tpu.memory_space<smem>>
      %796 = vector.broadcast %795 : f32 to vector<12x128xf32>
      %797 = arith.mulf %796, %782 : vector<12x128xf32>
      %798 = arith.addf %765, %797 : vector<12x128xf32>
      %c151 = arith.constant 151 : index
      %799 = memref.load %arg4[%c151] : memref<288xf32, #tpu.memory_space<smem>>
      %800 = vector.broadcast %799 : f32 to vector<12x128xf32>
      %801 = arith.mulf %800, %782 : vector<12x128xf32>
      %802 = arith.addf %769, %801 : vector<12x128xf32>
      %c187_525 = arith.constant 187 : index
      %803 = memref.load %arg4[%c187_525] : memref<288xf32, #tpu.memory_space<smem>>
      %804 = vector.broadcast %803 : f32 to vector<12x128xf32>
      %805 = arith.mulf %804, %782 : vector<12x128xf32>
      %806 = arith.addf %773, %805 : vector<12x128xf32>
      %c223 = arith.constant 223 : index
      %807 = memref.load %arg4[%c223] : memref<288xf32, #tpu.memory_space<smem>>
      %808 = vector.broadcast %807 : f32 to vector<12x128xf32>
      %809 = arith.mulf %808, %782 : vector<12x128xf32>
      %810 = arith.addf %777, %809 : vector<12x128xf32>
      %c259 = arith.constant 259 : index
      %811 = memref.load %arg4[%c259] : memref<288xf32, #tpu.memory_space<smem>>
      %812 = vector.broadcast %811 : f32 to vector<12x128xf32>
      %813 = arith.mulf %812, %782 : vector<12x128xf32>
      %814 = arith.addf %781, %813 : vector<12x128xf32>
      %815 = vector.extract_strided_slice %748 {offsets = [2, 0], sizes = [12, 128], strides = [1, 1]} : vector<14x128xf32> to vector<12x128xf32>
      %c8_526 = arith.constant 8 : index
      %816 = memref.load %arg4[%c8_526] : memref<288xf32, #tpu.memory_space<smem>>
      %817 = vector.broadcast %816 : f32 to vector<12x128xf32>
      %818 = arith.mulf %817, %815 : vector<12x128xf32>
      %819 = arith.addf %786, %818 : vector<12x128xf32>
      %c44_527 = arith.constant 44 : index
      %820 = memref.load %arg4[%c44_527] : memref<288xf32, #tpu.memory_space<smem>>
      %821 = vector.broadcast %820 : f32 to vector<12x128xf32>
      %822 = arith.mulf %821, %815 : vector<12x128xf32>
      %823 = arith.addf %790, %822 : vector<12x128xf32>
      %c80 = arith.constant 80 : index
      %824 = memref.load %arg4[%c80] : memref<288xf32, #tpu.memory_space<smem>>
      %825 = vector.broadcast %824 : f32 to vector<12x128xf32>
      %826 = arith.mulf %825, %815 : vector<12x128xf32>
      %827 = arith.addf %794, %826 : vector<12x128xf32>
      %c116 = arith.constant 116 : index
      %828 = memref.load %arg4[%c116] : memref<288xf32, #tpu.memory_space<smem>>
      %829 = vector.broadcast %828 : f32 to vector<12x128xf32>
      %830 = arith.mulf %829, %815 : vector<12x128xf32>
      %831 = arith.addf %798, %830 : vector<12x128xf32>
      %c152 = arith.constant 152 : index
      %832 = memref.load %arg4[%c152] : memref<288xf32, #tpu.memory_space<smem>>
      %833 = vector.broadcast %832 : f32 to vector<12x128xf32>
      %834 = arith.mulf %833, %815 : vector<12x128xf32>
      %835 = arith.addf %802, %834 : vector<12x128xf32>
      %c188 = arith.constant 188 : index
      %836 = memref.load %arg4[%c188] : memref<288xf32, #tpu.memory_space<smem>>
      %837 = vector.broadcast %836 : f32 to vector<12x128xf32>
      %838 = arith.mulf %837, %815 : vector<12x128xf32>
      %839 = arith.addf %806, %838 : vector<12x128xf32>
      %c224 = arith.constant 224 : index
      %840 = memref.load %arg4[%c224] : memref<288xf32, #tpu.memory_space<smem>>
      %841 = vector.broadcast %840 : f32 to vector<12x128xf32>
      %842 = arith.mulf %841, %815 : vector<12x128xf32>
      %843 = arith.addf %810, %842 : vector<12x128xf32>
      %c260 = arith.constant 260 : index
      %844 = memref.load %arg4[%c260] : memref<288xf32, #tpu.memory_space<smem>>
      %845 = vector.broadcast %844 : f32 to vector<12x128xf32>
      %846 = arith.mulf %845, %815 : vector<12x128xf32>
      %847 = arith.addf %814, %846 : vector<12x128xf32>
      %c0_i32_528 = arith.constant 0 : i32
      %848 = arith.addi %522, %c0_i32_528 : i32
      %c1_529 = arith.constant 1 : index
      %849 = arith.index_cast %848 : i32 to index
      %c0_530 = arith.constant 0 : index
      %c0_531 = arith.constant 0 : index
      %850 = vector.load %arg14[%c1_529, %849, %c0_530, %c0_531] : memref<4x14x14x128xf32, #tpu.memory_space<vmem>>, vector<1x1x14x128xf32>
      %851 = vector.shape_cast %850 : vector<1x1x14x128xf32> to vector<14x128xf32>
      %852 = vector.extract_strided_slice %851 {offsets = [0, 0], sizes = [12, 128], strides = [1, 1]} : vector<14x128xf32> to vector<12x128xf32>
      %c9_532 = arith.constant 9 : index
      %853 = memref.load %arg4[%c9_532] : memref<288xf32, #tpu.memory_space<smem>>
      %854 = vector.broadcast %853 : f32 to vector<12x128xf32>
      %855 = arith.mulf %854, %852 : vector<12x128xf32>
      %856 = arith.addf %819, %855 : vector<12x128xf32>
      %c45 = arith.constant 45 : index
      %857 = memref.load %arg4[%c45] : memref<288xf32, #tpu.memory_space<smem>>
      %858 = vector.broadcast %857 : f32 to vector<12x128xf32>
      %859 = arith.mulf %858, %852 : vector<12x128xf32>
      %860 = arith.addf %823, %859 : vector<12x128xf32>
      %c81 = arith.constant 81 : index
      %861 = memref.load %arg4[%c81] : memref<288xf32, #tpu.memory_space<smem>>
      %862 = vector.broadcast %861 : f32 to vector<12x128xf32>
      %863 = arith.mulf %862, %852 : vector<12x128xf32>
      %864 = arith.addf %827, %863 : vector<12x128xf32>
      %c117 = arith.constant 117 : index
      %865 = memref.load %arg4[%c117] : memref<288xf32, #tpu.memory_space<smem>>
      %866 = vector.broadcast %865 : f32 to vector<12x128xf32>
      %867 = arith.mulf %866, %852 : vector<12x128xf32>
      %868 = arith.addf %831, %867 : vector<12x128xf32>
      %c153 = arith.constant 153 : index
      %869 = memref.load %arg4[%c153] : memref<288xf32, #tpu.memory_space<smem>>
      %870 = vector.broadcast %869 : f32 to vector<12x128xf32>
      %871 = arith.mulf %870, %852 : vector<12x128xf32>
      %872 = arith.addf %835, %871 : vector<12x128xf32>
      %c189 = arith.constant 189 : index
      %873 = memref.load %arg4[%c189] : memref<288xf32, #tpu.memory_space<smem>>
      %874 = vector.broadcast %873 : f32 to vector<12x128xf32>
      %875 = arith.mulf %874, %852 : vector<12x128xf32>
      %876 = arith.addf %839, %875 : vector<12x128xf32>
      %c225 = arith.constant 225 : index
      %877 = memref.load %arg4[%c225] : memref<288xf32, #tpu.memory_space<smem>>
      %878 = vector.broadcast %877 : f32 to vector<12x128xf32>
      %879 = arith.mulf %878, %852 : vector<12x128xf32>
      %880 = arith.addf %843, %879 : vector<12x128xf32>
      %c261 = arith.constant 261 : index
      %881 = memref.load %arg4[%c261] : memref<288xf32, #tpu.memory_space<smem>>
      %882 = vector.broadcast %881 : f32 to vector<12x128xf32>
      %883 = arith.mulf %882, %852 : vector<12x128xf32>
      %884 = arith.addf %847, %883 : vector<12x128xf32>
      %885 = vector.extract_strided_slice %851 {offsets = [1, 0], sizes = [12, 128], strides = [1, 1]} : vector<14x128xf32> to vector<12x128xf32>
      %c10_533 = arith.constant 10 : index
      %886 = memref.load %arg4[%c10_533] : memref<288xf32, #tpu.memory_space<smem>>
      %887 = vector.broadcast %886 : f32 to vector<12x128xf32>
      %888 = arith.mulf %887, %885 : vector<12x128xf32>
      %889 = arith.addf %856, %888 : vector<12x128xf32>
      %c46 = arith.constant 46 : index
      %890 = memref.load %arg4[%c46] : memref<288xf32, #tpu.memory_space<smem>>
      %891 = vector.broadcast %890 : f32 to vector<12x128xf32>
      %892 = arith.mulf %891, %885 : vector<12x128xf32>
      %893 = arith.addf %860, %892 : vector<12x128xf32>
      %c82 = arith.constant 82 : index
      %894 = memref.load %arg4[%c82] : memref<288xf32, #tpu.memory_space<smem>>
      %895 = vector.broadcast %894 : f32 to vector<12x128xf32>
      %896 = arith.mulf %895, %885 : vector<12x128xf32>
      %897 = arith.addf %864, %896 : vector<12x128xf32>
      %c118 = arith.constant 118 : index
      %898 = memref.load %arg4[%c118] : memref<288xf32, #tpu.memory_space<smem>>
      %899 = vector.broadcast %898 : f32 to vector<12x128xf32>
      %900 = arith.mulf %899, %885 : vector<12x128xf32>
      %901 = arith.addf %868, %900 : vector<12x128xf32>
      %c154_534 = arith.constant 154 : index
      %902 = memref.load %arg4[%c154_534] : memref<288xf32, #tpu.memory_space<smem>>
      %903 = vector.broadcast %902 : f32 to vector<12x128xf32>
      %904 = arith.mulf %903, %885 : vector<12x128xf32>
      %905 = arith.addf %872, %904 : vector<12x128xf32>
      %c190 = arith.constant 190 : index
      %906 = memref.load %arg4[%c190] : memref<288xf32, #tpu.memory_space<smem>>
      %907 = vector.broadcast %906 : f32 to vector<12x128xf32>
      %908 = arith.mulf %907, %885 : vector<12x128xf32>
      %909 = arith.addf %876, %908 : vector<12x128xf32>
      %c226 = arith.constant 226 : index
      %910 = memref.load %arg4[%c226] : memref<288xf32, #tpu.memory_space<smem>>
      %911 = vector.broadcast %910 : f32 to vector<12x128xf32>
      %912 = arith.mulf %911, %885 : vector<12x128xf32>
      %913 = arith.addf %880, %912 : vector<12x128xf32>
      %c262 = arith.constant 262 : index
      %914 = memref.load %arg4[%c262] : memref<288xf32, #tpu.memory_space<smem>>
      %915 = vector.broadcast %914 : f32 to vector<12x128xf32>
      %916 = arith.mulf %915, %885 : vector<12x128xf32>
      %917 = arith.addf %884, %916 : vector<12x128xf32>
      %918 = vector.extract_strided_slice %851 {offsets = [2, 0], sizes = [12, 128], strides = [1, 1]} : vector<14x128xf32> to vector<12x128xf32>
      %c11_535 = arith.constant 11 : index
      %919 = memref.load %arg4[%c11_535] : memref<288xf32, #tpu.memory_space<smem>>
      %920 = vector.broadcast %919 : f32 to vector<12x128xf32>
      %921 = arith.mulf %920, %918 : vector<12x128xf32>
      %922 = arith.addf %889, %921 : vector<12x128xf32>
      %c47 = arith.constant 47 : index
      %923 = memref.load %arg4[%c47] : memref<288xf32, #tpu.memory_space<smem>>
      %924 = vector.broadcast %923 : f32 to vector<12x128xf32>
      %925 = arith.mulf %924, %918 : vector<12x128xf32>
      %926 = arith.addf %893, %925 : vector<12x128xf32>
      %c83 = arith.constant 83 : index
      %927 = memref.load %arg4[%c83] : memref<288xf32, #tpu.memory_space<smem>>
      %928 = vector.broadcast %927 : f32 to vector<12x128xf32>
      %929 = arith.mulf %928, %918 : vector<12x128xf32>
      %930 = arith.addf %897, %929 : vector<12x128xf32>
      %c119 = arith.constant 119 : index
      %931 = memref.load %arg4[%c119] : memref<288xf32, #tpu.memory_space<smem>>
      %932 = vector.broadcast %931 : f32 to vector<12x128xf32>
      %933 = arith.mulf %932, %918 : vector<12x128xf32>
      %934 = arith.addf %901, %933 : vector<12x128xf32>
      %c155 = arith.constant 155 : index
      %935 = memref.load %arg4[%c155] : memref<288xf32, #tpu.memory_space<smem>>
      %936 = vector.broadcast %935 : f32 to vector<12x128xf32>
      %937 = arith.mulf %936, %918 : vector<12x128xf32>
      %938 = arith.addf %905, %937 : vector<12x128xf32>
      %c191 = arith.constant 191 : index
      %939 = memref.load %arg4[%c191] : memref<288xf32, #tpu.memory_space<smem>>
      %940 = vector.broadcast %939 : f32 to vector<12x128xf32>
      %941 = arith.mulf %940, %918 : vector<12x128xf32>
      %942 = arith.addf %909, %941 : vector<12x128xf32>
      %c227 = arith.constant 227 : index
      %943 = memref.load %arg4[%c227] : memref<288xf32, #tpu.memory_space<smem>>
      %944 = vector.broadcast %943 : f32 to vector<12x128xf32>
      %945 = arith.mulf %944, %918 : vector<12x128xf32>
      %946 = arith.addf %913, %945 : vector<12x128xf32>
      %c263 = arith.constant 263 : index
      %947 = memref.load %arg4[%c263] : memref<288xf32, #tpu.memory_space<smem>>
      %948 = vector.broadcast %947 : f32 to vector<12x128xf32>
      %949 = arith.mulf %948, %918 : vector<12x128xf32>
      %950 = arith.addf %917, %949 : vector<12x128xf32>
      %c1_i32_536 = arith.constant 1 : i32
      %951 = arith.addi %522, %c1_i32_536 : i32
      %c1_537 = arith.constant 1 : index
      %952 = arith.index_cast %951 : i32 to index
      %c0_538 = arith.constant 0 : index
      %c0_539 = arith.constant 0 : index
      %953 = vector.load %arg14[%c1_537, %952, %c0_538, %c0_539] : memref<4x14x14x128xf32, #tpu.memory_space<vmem>>, vector<1x1x14x128xf32>
      %954 = vector.shape_cast %953 : vector<1x1x14x128xf32> to vector<14x128xf32>
      %955 = vector.extract_strided_slice %954 {offsets = [0, 0], sizes = [12, 128], strides = [1, 1]} : vector<14x128xf32> to vector<12x128xf32>
      %c12_540 = arith.constant 12 : index
      %956 = memref.load %arg4[%c12_540] : memref<288xf32, #tpu.memory_space<smem>>
      %957 = vector.broadcast %956 : f32 to vector<12x128xf32>
      %958 = arith.mulf %957, %955 : vector<12x128xf32>
      %959 = arith.addf %922, %958 : vector<12x128xf32>
      %c48 = arith.constant 48 : index
      %960 = memref.load %arg4[%c48] : memref<288xf32, #tpu.memory_space<smem>>
      %961 = vector.broadcast %960 : f32 to vector<12x128xf32>
      %962 = arith.mulf %961, %955 : vector<12x128xf32>
      %963 = arith.addf %926, %962 : vector<12x128xf32>
      %c84 = arith.constant 84 : index
      %964 = memref.load %arg4[%c84] : memref<288xf32, #tpu.memory_space<smem>>
      %965 = vector.broadcast %964 : f32 to vector<12x128xf32>
      %966 = arith.mulf %965, %955 : vector<12x128xf32>
      %967 = arith.addf %930, %966 : vector<12x128xf32>
      %c120 = arith.constant 120 : index
      %968 = memref.load %arg4[%c120] : memref<288xf32, #tpu.memory_space<smem>>
      %969 = vector.broadcast %968 : f32 to vector<12x128xf32>
      %970 = arith.mulf %969, %955 : vector<12x128xf32>
      %971 = arith.addf %934, %970 : vector<12x128xf32>
      %c156 = arith.constant 156 : index
      %972 = memref.load %arg4[%c156] : memref<288xf32, #tpu.memory_space<smem>>
      %973 = vector.broadcast %972 : f32 to vector<12x128xf32>
      %974 = arith.mulf %973, %955 : vector<12x128xf32>
      %975 = arith.addf %938, %974 : vector<12x128xf32>
      %c192 = arith.constant 192 : index
      %976 = memref.load %arg4[%c192] : memref<288xf32, #tpu.memory_space<smem>>
      %977 = vector.broadcast %976 : f32 to vector<12x128xf32>
      %978 = arith.mulf %977, %955 : vector<12x128xf32>
      %979 = arith.addf %942, %978 : vector<12x128xf32>
      %c228 = arith.constant 228 : index
      %980 = memref.load %arg4[%c228] : memref<288xf32, #tpu.memory_space<smem>>
      %981 = vector.broadcast %980 : f32 to vector<12x128xf32>
      %982 = arith.mulf %981, %955 : vector<12x128xf32>
      %983 = arith.addf %946, %982 : vector<12x128xf32>
      %c264_541 = arith.constant 264 : index
      %984 = memref.load %arg4[%c264_541] : memref<288xf32, #tpu.memory_space<smem>>
      %985 = vector.broadcast %984 : f32 to vector<12x128xf32>
      %986 = arith.mulf %985, %955 : vector<12x128xf32>
      %987 = arith.addf %950, %986 : vector<12x128xf32>
      %988 = vector.extract_strided_slice %954 {offsets = [1, 0], sizes = [12, 128], strides = [1, 1]} : vector<14x128xf32> to vector<12x128xf32>
      %c13_542 = arith.constant 13 : index
      %989 = memref.load %arg4[%c13_542] : memref<288xf32, #tpu.memory_space<smem>>
      %990 = vector.broadcast %989 : f32 to vector<12x128xf32>
      %991 = arith.mulf %990, %988 : vector<12x128xf32>
      %992 = arith.addf %959, %991 : vector<12x128xf32>
      %c49 = arith.constant 49 : index
      %993 = memref.load %arg4[%c49] : memref<288xf32, #tpu.memory_space<smem>>
      %994 = vector.broadcast %993 : f32 to vector<12x128xf32>
      %995 = arith.mulf %994, %988 : vector<12x128xf32>
      %996 = arith.addf %963, %995 : vector<12x128xf32>
      %c85 = arith.constant 85 : index
      %997 = memref.load %arg4[%c85] : memref<288xf32, #tpu.memory_space<smem>>
      %998 = vector.broadcast %997 : f32 to vector<12x128xf32>
      %999 = arith.mulf %998, %988 : vector<12x128xf32>
      %1000 = arith.addf %967, %999 : vector<12x128xf32>
      %c121_543 = arith.constant 121 : index
      %1001 = memref.load %arg4[%c121_543] : memref<288xf32, #tpu.memory_space<smem>>
      %1002 = vector.broadcast %1001 : f32 to vector<12x128xf32>
      %1003 = arith.mulf %1002, %988 : vector<12x128xf32>
      %1004 = arith.addf %971, %1003 : vector<12x128xf32>
      %c157 = arith.constant 157 : index
      %1005 = memref.load %arg4[%c157] : memref<288xf32, #tpu.memory_space<smem>>
      %1006 = vector.broadcast %1005 : f32 to vector<12x128xf32>
      %1007 = arith.mulf %1006, %988 : vector<12x128xf32>
      %1008 = arith.addf %975, %1007 : vector<12x128xf32>
      %c193 = arith.constant 193 : index
      %1009 = memref.load %arg4[%c193] : memref<288xf32, #tpu.memory_space<smem>>
      %1010 = vector.broadcast %1009 : f32 to vector<12x128xf32>
      %1011 = arith.mulf %1010, %988 : vector<12x128xf32>
      %1012 = arith.addf %979, %1011 : vector<12x128xf32>
      %c229 = arith.constant 229 : index
      %1013 = memref.load %arg4[%c229] : memref<288xf32, #tpu.memory_space<smem>>
      %1014 = vector.broadcast %1013 : f32 to vector<12x128xf32>
      %1015 = arith.mulf %1014, %988 : vector<12x128xf32>
      %1016 = arith.addf %983, %1015 : vector<12x128xf32>
      %c265 = arith.constant 265 : index
      %1017 = memref.load %arg4[%c265] : memref<288xf32, #tpu.memory_space<smem>>
      %1018 = vector.broadcast %1017 : f32 to vector<12x128xf32>
      %1019 = arith.mulf %1018, %988 : vector<12x128xf32>
      %1020 = arith.addf %987, %1019 : vector<12x128xf32>
      %1021 = vector.extract_strided_slice %954 {offsets = [2, 0], sizes = [12, 128], strides = [1, 1]} : vector<14x128xf32> to vector<12x128xf32>
      %c14_544 = arith.constant 14 : index
      %1022 = memref.load %arg4[%c14_544] : memref<288xf32, #tpu.memory_space<smem>>
      %1023 = vector.broadcast %1022 : f32 to vector<12x128xf32>
      %1024 = arith.mulf %1023, %1021 : vector<12x128xf32>
      %1025 = arith.addf %992, %1024 : vector<12x128xf32>
      %c50 = arith.constant 50 : index
      %1026 = memref.load %arg4[%c50] : memref<288xf32, #tpu.memory_space<smem>>
      %1027 = vector.broadcast %1026 : f32 to vector<12x128xf32>
      %1028 = arith.mulf %1027, %1021 : vector<12x128xf32>
      %1029 = arith.addf %996, %1028 : vector<12x128xf32>
      %c86 = arith.constant 86 : index
      %1030 = memref.load %arg4[%c86] : memref<288xf32, #tpu.memory_space<smem>>
      %1031 = vector.broadcast %1030 : f32 to vector<12x128xf32>
      %1032 = arith.mulf %1031, %1021 : vector<12x128xf32>
      %1033 = arith.addf %1000, %1032 : vector<12x128xf32>
      %c122 = arith.constant 122 : index
      %1034 = memref.load %arg4[%c122] : memref<288xf32, #tpu.memory_space<smem>>
      %1035 = vector.broadcast %1034 : f32 to vector<12x128xf32>
      %1036 = arith.mulf %1035, %1021 : vector<12x128xf32>
      %1037 = arith.addf %1004, %1036 : vector<12x128xf32>
      %c158 = arith.constant 158 : index
      %1038 = memref.load %arg4[%c158] : memref<288xf32, #tpu.memory_space<smem>>
      %1039 = vector.broadcast %1038 : f32 to vector<12x128xf32>
      %1040 = arith.mulf %1039, %1021 : vector<12x128xf32>
      %1041 = arith.addf %1008, %1040 : vector<12x128xf32>
      %c194 = arith.constant 194 : index
      %1042 = memref.load %arg4[%c194] : memref<288xf32, #tpu.memory_space<smem>>
      %1043 = vector.broadcast %1042 : f32 to vector<12x128xf32>
      %1044 = arith.mulf %1043, %1021 : vector<12x128xf32>
      %1045 = arith.addf %1012, %1044 : vector<12x128xf32>
      %c230 = arith.constant 230 : index
      %1046 = memref.load %arg4[%c230] : memref<288xf32, #tpu.memory_space<smem>>
      %1047 = vector.broadcast %1046 : f32 to vector<12x128xf32>
      %1048 = arith.mulf %1047, %1021 : vector<12x128xf32>
      %1049 = arith.addf %1016, %1048 : vector<12x128xf32>
      %c266 = arith.constant 266 : index
      %1050 = memref.load %arg4[%c266] : memref<288xf32, #tpu.memory_space<smem>>
      %1051 = vector.broadcast %1050 : f32 to vector<12x128xf32>
      %1052 = arith.mulf %1051, %1021 : vector<12x128xf32>
      %1053 = arith.addf %1020, %1052 : vector<12x128xf32>
      %c2_i32_545 = arith.constant 2 : i32
      %1054 = arith.addi %522, %c2_i32_545 : i32
      %c1_546 = arith.constant 1 : index
      %1055 = arith.index_cast %1054 : i32 to index
      %c0_547 = arith.constant 0 : index
      %c0_548 = arith.constant 0 : index
      %1056 = vector.load %arg14[%c1_546, %1055, %c0_547, %c0_548] : memref<4x14x14x128xf32, #tpu.memory_space<vmem>>, vector<1x1x14x128xf32>
      %1057 = vector.shape_cast %1056 : vector<1x1x14x128xf32> to vector<14x128xf32>
      %1058 = vector.extract_strided_slice %1057 {offsets = [0, 0], sizes = [12, 128], strides = [1, 1]} : vector<14x128xf32> to vector<12x128xf32>
      %c15_549 = arith.constant 15 : index
      %1059 = memref.load %arg4[%c15_549] : memref<288xf32, #tpu.memory_space<smem>>
      %1060 = vector.broadcast %1059 : f32 to vector<12x128xf32>
      %1061 = arith.mulf %1060, %1058 : vector<12x128xf32>
      %1062 = arith.addf %1025, %1061 : vector<12x128xf32>
      %c51 = arith.constant 51 : index
      %1063 = memref.load %arg4[%c51] : memref<288xf32, #tpu.memory_space<smem>>
      %1064 = vector.broadcast %1063 : f32 to vector<12x128xf32>
      %1065 = arith.mulf %1064, %1058 : vector<12x128xf32>
      %1066 = arith.addf %1029, %1065 : vector<12x128xf32>
      %c87 = arith.constant 87 : index
      %1067 = memref.load %arg4[%c87] : memref<288xf32, #tpu.memory_space<smem>>
      %1068 = vector.broadcast %1067 : f32 to vector<12x128xf32>
      %1069 = arith.mulf %1068, %1058 : vector<12x128xf32>
      %1070 = arith.addf %1033, %1069 : vector<12x128xf32>
      %c123 = arith.constant 123 : index
      %1071 = memref.load %arg4[%c123] : memref<288xf32, #tpu.memory_space<smem>>
      %1072 = vector.broadcast %1071 : f32 to vector<12x128xf32>
      %1073 = arith.mulf %1072, %1058 : vector<12x128xf32>
      %1074 = arith.addf %1037, %1073 : vector<12x128xf32>
      %c159 = arith.constant 159 : index
      %1075 = memref.load %arg4[%c159] : memref<288xf32, #tpu.memory_space<smem>>
      %1076 = vector.broadcast %1075 : f32 to vector<12x128xf32>
      %1077 = arith.mulf %1076, %1058 : vector<12x128xf32>
      %1078 = arith.addf %1041, %1077 : vector<12x128xf32>
      %c195 = arith.constant 195 : index
      %1079 = memref.load %arg4[%c195] : memref<288xf32, #tpu.memory_space<smem>>
      %1080 = vector.broadcast %1079 : f32 to vector<12x128xf32>
      %1081 = arith.mulf %1080, %1058 : vector<12x128xf32>
      %1082 = arith.addf %1045, %1081 : vector<12x128xf32>
      %c231_550 = arith.constant 231 : index
      %1083 = memref.load %arg4[%c231_550] : memref<288xf32, #tpu.memory_space<smem>>
      %1084 = vector.broadcast %1083 : f32 to vector<12x128xf32>
      %1085 = arith.mulf %1084, %1058 : vector<12x128xf32>
      %1086 = arith.addf %1049, %1085 : vector<12x128xf32>
      %c267 = arith.constant 267 : index
      %1087 = memref.load %arg4[%c267] : memref<288xf32, #tpu.memory_space<smem>>
      %1088 = vector.broadcast %1087 : f32 to vector<12x128xf32>
      %1089 = arith.mulf %1088, %1058 : vector<12x128xf32>
      %1090 = arith.addf %1053, %1089 : vector<12x128xf32>
      %1091 = vector.extract_strided_slice %1057 {offsets = [1, 0], sizes = [12, 128], strides = [1, 1]} : vector<14x128xf32> to vector<12x128xf32>
      %c16 = arith.constant 16 : index
      %1092 = memref.load %arg4[%c16] : memref<288xf32, #tpu.memory_space<smem>>
      %1093 = vector.broadcast %1092 : f32 to vector<12x128xf32>
      %1094 = arith.mulf %1093, %1091 : vector<12x128xf32>
      %1095 = arith.addf %1062, %1094 : vector<12x128xf32>
      %c52 = arith.constant 52 : index
      %1096 = memref.load %arg4[%c52] : memref<288xf32, #tpu.memory_space<smem>>
      %1097 = vector.broadcast %1096 : f32 to vector<12x128xf32>
      %1098 = arith.mulf %1097, %1091 : vector<12x128xf32>
      %1099 = arith.addf %1066, %1098 : vector<12x128xf32>
      %c88_551 = arith.constant 88 : index
      %1100 = memref.load %arg4[%c88_551] : memref<288xf32, #tpu.memory_space<smem>>
      %1101 = vector.broadcast %1100 : f32 to vector<12x128xf32>
      %1102 = arith.mulf %1101, %1091 : vector<12x128xf32>
      %1103 = arith.addf %1070, %1102 : vector<12x128xf32>
      %c124 = arith.constant 124 : index
      %1104 = memref.load %arg4[%c124] : memref<288xf32, #tpu.memory_space<smem>>
      %1105 = vector.broadcast %1104 : f32 to vector<12x128xf32>
      %1106 = arith.mulf %1105, %1091 : vector<12x128xf32>
      %1107 = arith.addf %1074, %1106 : vector<12x128xf32>
      %c160 = arith.constant 160 : index
      %1108 = memref.load %arg4[%c160] : memref<288xf32, #tpu.memory_space<smem>>
      %1109 = vector.broadcast %1108 : f32 to vector<12x128xf32>
      %1110 = arith.mulf %1109, %1091 : vector<12x128xf32>
      %1111 = arith.addf %1078, %1110 : vector<12x128xf32>
      %c196 = arith.constant 196 : index
      %1112 = memref.load %arg4[%c196] : memref<288xf32, #tpu.memory_space<smem>>
      %1113 = vector.broadcast %1112 : f32 to vector<12x128xf32>
      %1114 = arith.mulf %1113, %1091 : vector<12x128xf32>
      %1115 = arith.addf %1082, %1114 : vector<12x128xf32>
      %c232 = arith.constant 232 : index
      %1116 = memref.load %arg4[%c232] : memref<288xf32, #tpu.memory_space<smem>>
      %1117 = vector.broadcast %1116 : f32 to vector<12x128xf32>
      %1118 = arith.mulf %1117, %1091 : vector<12x128xf32>
      %1119 = arith.addf %1086, %1118 : vector<12x128xf32>
      %c268 = arith.constant 268 : index
      %1120 = memref.load %arg4[%c268] : memref<288xf32, #tpu.memory_space<smem>>
      %1121 = vector.broadcast %1120 : f32 to vector<12x128xf32>
      %1122 = arith.mulf %1121, %1091 : vector<12x128xf32>
      %1123 = arith.addf %1090, %1122 : vector<12x128xf32>
      %1124 = vector.extract_strided_slice %1057 {offsets = [2, 0], sizes = [12, 128], strides = [1, 1]} : vector<14x128xf32> to vector<12x128xf32>
      %c17 = arith.constant 17 : index
      %1125 = memref.load %arg4[%c17] : memref<288xf32, #tpu.memory_space<smem>>
      %1126 = vector.broadcast %1125 : f32 to vector<12x128xf32>
      %1127 = arith.mulf %1126, %1124 : vector<12x128xf32>
      %1128 = arith.addf %1095, %1127 : vector<12x128xf32>
      %c53 = arith.constant 53 : index
      %1129 = memref.load %arg4[%c53] : memref<288xf32, #tpu.memory_space<smem>>
      %1130 = vector.broadcast %1129 : f32 to vector<12x128xf32>
      %1131 = arith.mulf %1130, %1124 : vector<12x128xf32>
      %1132 = arith.addf %1099, %1131 : vector<12x128xf32>
      %c89 = arith.constant 89 : index
      %1133 = memref.load %arg4[%c89] : memref<288xf32, #tpu.memory_space<smem>>
      %1134 = vector.broadcast %1133 : f32 to vector<12x128xf32>
      %1135 = arith.mulf %1134, %1124 : vector<12x128xf32>
      %1136 = arith.addf %1103, %1135 : vector<12x128xf32>
      %c125 = arith.constant 125 : index
      %1137 = memref.load %arg4[%c125] : memref<288xf32, #tpu.memory_space<smem>>
      %1138 = vector.broadcast %1137 : f32 to vector<12x128xf32>
      %1139 = arith.mulf %1138, %1124 : vector<12x128xf32>
      %1140 = arith.addf %1107, %1139 : vector<12x128xf32>
      %c161 = arith.constant 161 : index
      %1141 = memref.load %arg4[%c161] : memref<288xf32, #tpu.memory_space<smem>>
      %1142 = vector.broadcast %1141 : f32 to vector<12x128xf32>
      %1143 = arith.mulf %1142, %1124 : vector<12x128xf32>
      %1144 = arith.addf %1111, %1143 : vector<12x128xf32>
      %c197 = arith.constant 197 : index
      %1145 = memref.load %arg4[%c197] : memref<288xf32, #tpu.memory_space<smem>>
      %1146 = vector.broadcast %1145 : f32 to vector<12x128xf32>
      %1147 = arith.mulf %1146, %1124 : vector<12x128xf32>
      %1148 = arith.addf %1115, %1147 : vector<12x128xf32>
      %c233 = arith.constant 233 : index
      %1149 = memref.load %arg4[%c233] : memref<288xf32, #tpu.memory_space<smem>>
      %1150 = vector.broadcast %1149 : f32 to vector<12x128xf32>
      %1151 = arith.mulf %1150, %1124 : vector<12x128xf32>
      %1152 = arith.addf %1119, %1151 : vector<12x128xf32>
      %c269 = arith.constant 269 : index
      %1153 = memref.load %arg4[%c269] : memref<288xf32, #tpu.memory_space<smem>>
      %1154 = vector.broadcast %1153 : f32 to vector<12x128xf32>
      %1155 = arith.mulf %1154, %1124 : vector<12x128xf32>
      %1156 = arith.addf %1123, %1155 : vector<12x128xf32>
      %c0_i32_552 = arith.constant 0 : i32
      %1157 = arith.addi %522, %c0_i32_552 : i32
      %c2_553 = arith.constant 2 : index
      %1158 = arith.index_cast %1157 : i32 to index
      %c0_554 = arith.constant 0 : index
      %c0_555 = arith.constant 0 : index
      %1159 = vector.load %arg14[%c2_553, %1158, %c0_554, %c0_555] : memref<4x14x14x128xf32, #tpu.memory_space<vmem>>, vector<1x1x14x128xf32>
      %1160 = vector.shape_cast %1159 : vector<1x1x14x128xf32> to vector<14x128xf32>
      %1161 = vector.extract_strided_slice %1160 {offsets = [0, 0], sizes = [12, 128], strides = [1, 1]} : vector<14x128xf32> to vector<12x128xf32>
      %c18 = arith.constant 18 : index
      %1162 = memref.load %arg4[%c18] : memref<288xf32, #tpu.memory_space<smem>>
      %1163 = vector.broadcast %1162 : f32 to vector<12x128xf32>
      %1164 = arith.mulf %1163, %1161 : vector<12x128xf32>
      %1165 = arith.addf %1128, %1164 : vector<12x128xf32>
      %c54 = arith.constant 54 : index
      %1166 = memref.load %arg4[%c54] : memref<288xf32, #tpu.memory_space<smem>>
      %1167 = vector.broadcast %1166 : f32 to vector<12x128xf32>
      %1168 = arith.mulf %1167, %1161 : vector<12x128xf32>
      %1169 = arith.addf %1132, %1168 : vector<12x128xf32>
      %c90 = arith.constant 90 : index
      %1170 = memref.load %arg4[%c90] : memref<288xf32, #tpu.memory_space<smem>>
      %1171 = vector.broadcast %1170 : f32 to vector<12x128xf32>
      %1172 = arith.mulf %1171, %1161 : vector<12x128xf32>
      %1173 = arith.addf %1136, %1172 : vector<12x128xf32>
      %c126 = arith.constant 126 : index
      %1174 = memref.load %arg4[%c126] : memref<288xf32, #tpu.memory_space<smem>>
      %1175 = vector.broadcast %1174 : f32 to vector<12x128xf32>
      %1176 = arith.mulf %1175, %1161 : vector<12x128xf32>
      %1177 = arith.addf %1140, %1176 : vector<12x128xf32>
      %c162 = arith.constant 162 : index
      %1178 = memref.load %arg4[%c162] : memref<288xf32, #tpu.memory_space<smem>>
      %1179 = vector.broadcast %1178 : f32 to vector<12x128xf32>
      %1180 = arith.mulf %1179, %1161 : vector<12x128xf32>
      %1181 = arith.addf %1144, %1180 : vector<12x128xf32>
      %c198_556 = arith.constant 198 : index
      %1182 = memref.load %arg4[%c198_556] : memref<288xf32, #tpu.memory_space<smem>>
      %1183 = vector.broadcast %1182 : f32 to vector<12x128xf32>
      %1184 = arith.mulf %1183, %1161 : vector<12x128xf32>
      %1185 = arith.addf %1148, %1184 : vector<12x128xf32>
      %c234 = arith.constant 234 : index
      %1186 = memref.load %arg4[%c234] : memref<288xf32, #tpu.memory_space<smem>>
      %1187 = vector.broadcast %1186 : f32 to vector<12x128xf32>
      %1188 = arith.mulf %1187, %1161 : vector<12x128xf32>
      %1189 = arith.addf %1152, %1188 : vector<12x128xf32>
      %c270 = arith.constant 270 : index
      %1190 = memref.load %arg4[%c270] : memref<288xf32, #tpu.memory_space<smem>>
      %1191 = vector.broadcast %1190 : f32 to vector<12x128xf32>
      %1192 = arith.mulf %1191, %1161 : vector<12x128xf32>
      %1193 = arith.addf %1156, %1192 : vector<12x128xf32>
      %1194 = vector.extract_strided_slice %1160 {offsets = [1, 0], sizes = [12, 128], strides = [1, 1]} : vector<14x128xf32> to vector<12x128xf32>
      %c19 = arith.constant 19 : index
      %1195 = memref.load %arg4[%c19] : memref<288xf32, #tpu.memory_space<smem>>
      %1196 = vector.broadcast %1195 : f32 to vector<12x128xf32>
      %1197 = arith.mulf %1196, %1194 : vector<12x128xf32>
      %1198 = arith.addf %1165, %1197 : vector<12x128xf32>
      %c55_557 = arith.constant 55 : index
      %1199 = memref.load %arg4[%c55_557] : memref<288xf32, #tpu.memory_space<smem>>
      %1200 = vector.broadcast %1199 : f32 to vector<12x128xf32>
      %1201 = arith.mulf %1200, %1194 : vector<12x128xf32>
      %1202 = arith.addf %1169, %1201 : vector<12x128xf32>
      %c91 = arith.constant 91 : index
      %1203 = memref.load %arg4[%c91] : memref<288xf32, #tpu.memory_space<smem>>
      %1204 = vector.broadcast %1203 : f32 to vector<12x128xf32>
      %1205 = arith.mulf %1204, %1194 : vector<12x128xf32>
      %1206 = arith.addf %1173, %1205 : vector<12x128xf32>
      %c127 = arith.constant 127 : index
      %1207 = memref.load %arg4[%c127] : memref<288xf32, #tpu.memory_space<smem>>
      %1208 = vector.broadcast %1207 : f32 to vector<12x128xf32>
      %1209 = arith.mulf %1208, %1194 : vector<12x128xf32>
      %1210 = arith.addf %1177, %1209 : vector<12x128xf32>
      %c163 = arith.constant 163 : index
      %1211 = memref.load %arg4[%c163] : memref<288xf32, #tpu.memory_space<smem>>
      %1212 = vector.broadcast %1211 : f32 to vector<12x128xf32>
      %1213 = arith.mulf %1212, %1194 : vector<12x128xf32>
      %1214 = arith.addf %1181, %1213 : vector<12x128xf32>
      %c199 = arith.constant 199 : index
      %1215 = memref.load %arg4[%c199] : memref<288xf32, #tpu.memory_space<smem>>
      %1216 = vector.broadcast %1215 : f32 to vector<12x128xf32>
      %1217 = arith.mulf %1216, %1194 : vector<12x128xf32>
      %1218 = arith.addf %1185, %1217 : vector<12x128xf32>
      %c235 = arith.constant 235 : index
      %1219 = memref.load %arg4[%c235] : memref<288xf32, #tpu.memory_space<smem>>
      %1220 = vector.broadcast %1219 : f32 to vector<12x128xf32>
      %1221 = arith.mulf %1220, %1194 : vector<12x128xf32>
      %1222 = arith.addf %1189, %1221 : vector<12x128xf32>
      %c271 = arith.constant 271 : index
      %1223 = memref.load %arg4[%c271] : memref<288xf32, #tpu.memory_space<smem>>
      %1224 = vector.broadcast %1223 : f32 to vector<12x128xf32>
      %1225 = arith.mulf %1224, %1194 : vector<12x128xf32>
      %1226 = arith.addf %1193, %1225 : vector<12x128xf32>
      %1227 = vector.extract_strided_slice %1160 {offsets = [2, 0], sizes = [12, 128], strides = [1, 1]} : vector<14x128xf32> to vector<12x128xf32>
      %c20 = arith.constant 20 : index
      %1228 = memref.load %arg4[%c20] : memref<288xf32, #tpu.memory_space<smem>>
      %1229 = vector.broadcast %1228 : f32 to vector<12x128xf32>
      %1230 = arith.mulf %1229, %1227 : vector<12x128xf32>
      %1231 = arith.addf %1198, %1230 : vector<12x128xf32>
      %c56 = arith.constant 56 : index
      %1232 = memref.load %arg4[%c56] : memref<288xf32, #tpu.memory_space<smem>>
      %1233 = vector.broadcast %1232 : f32 to vector<12x128xf32>
      %1234 = arith.mulf %1233, %1227 : vector<12x128xf32>
      %1235 = arith.addf %1202, %1234 : vector<12x128xf32>
      %c92 = arith.constant 92 : index
      %1236 = memref.load %arg4[%c92] : memref<288xf32, #tpu.memory_space<smem>>
      %1237 = vector.broadcast %1236 : f32 to vector<12x128xf32>
      %1238 = arith.mulf %1237, %1227 : vector<12x128xf32>
      %1239 = arith.addf %1206, %1238 : vector<12x128xf32>
      %c128 = arith.constant 128 : index
      %1240 = memref.load %arg4[%c128] : memref<288xf32, #tpu.memory_space<smem>>
      %1241 = vector.broadcast %1240 : f32 to vector<12x128xf32>
      %1242 = arith.mulf %1241, %1227 : vector<12x128xf32>
      %1243 = arith.addf %1210, %1242 : vector<12x128xf32>
      %c164 = arith.constant 164 : index
      %1244 = memref.load %arg4[%c164] : memref<288xf32, #tpu.memory_space<smem>>
      %1245 = vector.broadcast %1244 : f32 to vector<12x128xf32>
      %1246 = arith.mulf %1245, %1227 : vector<12x128xf32>
      %1247 = arith.addf %1214, %1246 : vector<12x128xf32>
      %c200 = arith.constant 200 : index
      %1248 = memref.load %arg4[%c200] : memref<288xf32, #tpu.memory_space<smem>>
      %1249 = vector.broadcast %1248 : f32 to vector<12x128xf32>
      %1250 = arith.mulf %1249, %1227 : vector<12x128xf32>
      %1251 = arith.addf %1218, %1250 : vector<12x128xf32>
      %c236 = arith.constant 236 : index
      %1252 = memref.load %arg4[%c236] : memref<288xf32, #tpu.memory_space<smem>>
      %1253 = vector.broadcast %1252 : f32 to vector<12x128xf32>
      %1254 = arith.mulf %1253, %1227 : vector<12x128xf32>
      %1255 = arith.addf %1222, %1254 : vector<12x128xf32>
      %c272 = arith.constant 272 : index
      %1256 = memref.load %arg4[%c272] : memref<288xf32, #tpu.memory_space<smem>>
      %1257 = vector.broadcast %1256 : f32 to vector<12x128xf32>
      %1258 = arith.mulf %1257, %1227 : vector<12x128xf32>
      %1259 = arith.addf %1226, %1258 : vector<12x128xf32>
      %c1_i32_558 = arith.constant 1 : i32
      %1260 = arith.addi %522, %c1_i32_558 : i32
      %c2_559 = arith.constant 2 : index
      %1261 = arith.index_cast %1260 : i32 to index
      %c0_560 = arith.constant 0 : index
      %c0_561 = arith.constant 0 : index
      %1262 = vector.load %arg14[%c2_559, %1261, %c0_560, %c0_561] : memref<4x14x14x128xf32, #tpu.memory_space<vmem>>, vector<1x1x14x128xf32>
      %1263 = vector.shape_cast %1262 : vector<1x1x14x128xf32> to vector<14x128xf32>
      %1264 = vector.extract_strided_slice %1263 {offsets = [0, 0], sizes = [12, 128], strides = [1, 1]} : vector<14x128xf32> to vector<12x128xf32>
      %c21 = arith.constant 21 : index
      %1265 = memref.load %arg4[%c21] : memref<288xf32, #tpu.memory_space<smem>>
      %1266 = vector.broadcast %1265 : f32 to vector<12x128xf32>
      %1267 = arith.mulf %1266, %1264 : vector<12x128xf32>
      %1268 = arith.addf %1231, %1267 : vector<12x128xf32>
      %c57 = arith.constant 57 : index
      %1269 = memref.load %arg4[%c57] : memref<288xf32, #tpu.memory_space<smem>>
      %1270 = vector.broadcast %1269 : f32 to vector<12x128xf32>
      %1271 = arith.mulf %1270, %1264 : vector<12x128xf32>
      %1272 = arith.addf %1235, %1271 : vector<12x128xf32>
      %c93 = arith.constant 93 : index
      %1273 = memref.load %arg4[%c93] : memref<288xf32, #tpu.memory_space<smem>>
      %1274 = vector.broadcast %1273 : f32 to vector<12x128xf32>
      %1275 = arith.mulf %1274, %1264 : vector<12x128xf32>
      %1276 = arith.addf %1239, %1275 : vector<12x128xf32>
      %c129 = arith.constant 129 : index
      %1277 = memref.load %arg4[%c129] : memref<288xf32, #tpu.memory_space<smem>>
      %1278 = vector.broadcast %1277 : f32 to vector<12x128xf32>
      %1279 = arith.mulf %1278, %1264 : vector<12x128xf32>
      %1280 = arith.addf %1243, %1279 : vector<12x128xf32>
      %c165_562 = arith.constant 165 : index
      %1281 = memref.load %arg4[%c165_562] : memref<288xf32, #tpu.memory_space<smem>>
      %1282 = vector.broadcast %1281 : f32 to vector<12x128xf32>
      %1283 = arith.mulf %1282, %1264 : vector<12x128xf32>
      %1284 = arith.addf %1247, %1283 : vector<12x128xf32>
      %c201 = arith.constant 201 : index
      %1285 = memref.load %arg4[%c201] : memref<288xf32, #tpu.memory_space<smem>>
      %1286 = vector.broadcast %1285 : f32 to vector<12x128xf32>
      %1287 = arith.mulf %1286, %1264 : vector<12x128xf32>
      %1288 = arith.addf %1251, %1287 : vector<12x128xf32>
      %c237 = arith.constant 237 : index
      %1289 = memref.load %arg4[%c237] : memref<288xf32, #tpu.memory_space<smem>>
      %1290 = vector.broadcast %1289 : f32 to vector<12x128xf32>
      %1291 = arith.mulf %1290, %1264 : vector<12x128xf32>
      %1292 = arith.addf %1255, %1291 : vector<12x128xf32>
      %c273 = arith.constant 273 : index
      %1293 = memref.load %arg4[%c273] : memref<288xf32, #tpu.memory_space<smem>>
      %1294 = vector.broadcast %1293 : f32 to vector<12x128xf32>
      %1295 = arith.mulf %1294, %1264 : vector<12x128xf32>
      %1296 = arith.addf %1259, %1295 : vector<12x128xf32>
      %1297 = vector.extract_strided_slice %1263 {offsets = [1, 0], sizes = [12, 128], strides = [1, 1]} : vector<14x128xf32> to vector<12x128xf32>
      %c22_563 = arith.constant 22 : index
      %1298 = memref.load %arg4[%c22_563] : memref<288xf32, #tpu.memory_space<smem>>
      %1299 = vector.broadcast %1298 : f32 to vector<12x128xf32>
      %1300 = arith.mulf %1299, %1297 : vector<12x128xf32>
      %1301 = arith.addf %1268, %1300 : vector<12x128xf32>
      %c58 = arith.constant 58 : index
      %1302 = memref.load %arg4[%c58] : memref<288xf32, #tpu.memory_space<smem>>
      %1303 = vector.broadcast %1302 : f32 to vector<12x128xf32>
      %1304 = arith.mulf %1303, %1297 : vector<12x128xf32>
      %1305 = arith.addf %1272, %1304 : vector<12x128xf32>
      %c94 = arith.constant 94 : index
      %1306 = memref.load %arg4[%c94] : memref<288xf32, #tpu.memory_space<smem>>
      %1307 = vector.broadcast %1306 : f32 to vector<12x128xf32>
      %1308 = arith.mulf %1307, %1297 : vector<12x128xf32>
      %1309 = arith.addf %1276, %1308 : vector<12x128xf32>
      %c130 = arith.constant 130 : index
      %1310 = memref.load %arg4[%c130] : memref<288xf32, #tpu.memory_space<smem>>
      %1311 = vector.broadcast %1310 : f32 to vector<12x128xf32>
      %1312 = arith.mulf %1311, %1297 : vector<12x128xf32>
      %1313 = arith.addf %1280, %1312 : vector<12x128xf32>
      %c166 = arith.constant 166 : index
      %1314 = memref.load %arg4[%c166] : memref<288xf32, #tpu.memory_space<smem>>
      %1315 = vector.broadcast %1314 : f32 to vector<12x128xf32>
      %1316 = arith.mulf %1315, %1297 : vector<12x128xf32>
      %1317 = arith.addf %1284, %1316 : vector<12x128xf32>
      %c202 = arith.constant 202 : index
      %1318 = memref.load %arg4[%c202] : memref<288xf32, #tpu.memory_space<smem>>
      %1319 = vector.broadcast %1318 : f32 to vector<12x128xf32>
      %1320 = arith.mulf %1319, %1297 : vector<12x128xf32>
      %1321 = arith.addf %1288, %1320 : vector<12x128xf32>
      %c238 = arith.constant 238 : index
      %1322 = memref.load %arg4[%c238] : memref<288xf32, #tpu.memory_space<smem>>
      %1323 = vector.broadcast %1322 : f32 to vector<12x128xf32>
      %1324 = arith.mulf %1323, %1297 : vector<12x128xf32>
      %1325 = arith.addf %1292, %1324 : vector<12x128xf32>
      %c274 = arith.constant 274 : index
      %1326 = memref.load %arg4[%c274] : memref<288xf32, #tpu.memory_space<smem>>
      %1327 = vector.broadcast %1326 : f32 to vector<12x128xf32>
      %1328 = arith.mulf %1327, %1297 : vector<12x128xf32>
      %1329 = arith.addf %1296, %1328 : vector<12x128xf32>
      %1330 = vector.extract_strided_slice %1263 {offsets = [2, 0], sizes = [12, 128], strides = [1, 1]} : vector<14x128xf32> to vector<12x128xf32>
      %c23 = arith.constant 23 : index
      %1331 = memref.load %arg4[%c23] : memref<288xf32, #tpu.memory_space<smem>>
      %1332 = vector.broadcast %1331 : f32 to vector<12x128xf32>
      %1333 = arith.mulf %1332, %1330 : vector<12x128xf32>
      %1334 = arith.addf %1301, %1333 : vector<12x128xf32>
      %c59 = arith.constant 59 : index
      %1335 = memref.load %arg4[%c59] : memref<288xf32, #tpu.memory_space<smem>>
      %1336 = vector.broadcast %1335 : f32 to vector<12x128xf32>
      %1337 = arith.mulf %1336, %1330 : vector<12x128xf32>
      %1338 = arith.addf %1305, %1337 : vector<12x128xf32>
      %c95 = arith.constant 95 : index
      %1339 = memref.load %arg4[%c95] : memref<288xf32, #tpu.memory_space<smem>>
      %1340 = vector.broadcast %1339 : f32 to vector<12x128xf32>
      %1341 = arith.mulf %1340, %1330 : vector<12x128xf32>
      %1342 = arith.addf %1309, %1341 : vector<12x128xf32>
      %c131 = arith.constant 131 : index
      %1343 = memref.load %arg4[%c131] : memref<288xf32, #tpu.memory_space<smem>>
      %1344 = vector.broadcast %1343 : f32 to vector<12x128xf32>
      %1345 = arith.mulf %1344, %1330 : vector<12x128xf32>
      %1346 = arith.addf %1313, %1345 : vector<12x128xf32>
      %c167 = arith.constant 167 : index
      %1347 = memref.load %arg4[%c167] : memref<288xf32, #tpu.memory_space<smem>>
      %1348 = vector.broadcast %1347 : f32 to vector<12x128xf32>
      %1349 = arith.mulf %1348, %1330 : vector<12x128xf32>
      %1350 = arith.addf %1317, %1349 : vector<12x128xf32>
      %c203 = arith.constant 203 : index
      %1351 = memref.load %arg4[%c203] : memref<288xf32, #tpu.memory_space<smem>>
      %1352 = vector.broadcast %1351 : f32 to vector<12x128xf32>
      %1353 = arith.mulf %1352, %1330 : vector<12x128xf32>
      %1354 = arith.addf %1321, %1353 : vector<12x128xf32>
      %c239 = arith.constant 239 : index
      %1355 = memref.load %arg4[%c239] : memref<288xf32, #tpu.memory_space<smem>>
      %1356 = vector.broadcast %1355 : f32 to vector<12x128xf32>
      %1357 = arith.mulf %1356, %1330 : vector<12x128xf32>
      %1358 = arith.addf %1325, %1357 : vector<12x128xf32>
      %c275_564 = arith.constant 275 : index
      %1359 = memref.load %arg4[%c275_564] : memref<288xf32, #tpu.memory_space<smem>>
      %1360 = vector.broadcast %1359 : f32 to vector<12x128xf32>
      %1361 = arith.mulf %1360, %1330 : vector<12x128xf32>
      %1362 = arith.addf %1329, %1361 : vector<12x128xf32>
      %c2_i32_565 = arith.constant 2 : i32
      %1363 = arith.addi %522, %c2_i32_565 : i32
      %c2_566 = arith.constant 2 : index
      %1364 = arith.index_cast %1363 : i32 to index
      %c0_567 = arith.constant 0 : index
      %c0_568 = arith.constant 0 : index
      %1365 = vector.load %arg14[%c2_566, %1364, %c0_567, %c0_568] : memref<4x14x14x128xf32, #tpu.memory_space<vmem>>, vector<1x1x14x128xf32>
      %1366 = vector.shape_cast %1365 : vector<1x1x14x128xf32> to vector<14x128xf32>
      %1367 = vector.extract_strided_slice %1366 {offsets = [0, 0], sizes = [12, 128], strides = [1, 1]} : vector<14x128xf32> to vector<12x128xf32>
      %c24 = arith.constant 24 : index
      %1368 = memref.load %arg4[%c24] : memref<288xf32, #tpu.memory_space<smem>>
      %1369 = vector.broadcast %1368 : f32 to vector<12x128xf32>
      %1370 = arith.mulf %1369, %1367 : vector<12x128xf32>
      %1371 = arith.addf %1334, %1370 : vector<12x128xf32>
      %c60 = arith.constant 60 : index
      %1372 = memref.load %arg4[%c60] : memref<288xf32, #tpu.memory_space<smem>>
      %1373 = vector.broadcast %1372 : f32 to vector<12x128xf32>
      %1374 = arith.mulf %1373, %1367 : vector<12x128xf32>
      %1375 = arith.addf %1338, %1374 : vector<12x128xf32>
      %c96 = arith.constant 96 : index
      %1376 = memref.load %arg4[%c96] : memref<288xf32, #tpu.memory_space<smem>>
      %1377 = vector.broadcast %1376 : f32 to vector<12x128xf32>
      %1378 = arith.mulf %1377, %1367 : vector<12x128xf32>
      %1379 = arith.addf %1342, %1378 : vector<12x128xf32>
      %c132_569 = arith.constant 132 : index
      %1380 = memref.load %arg4[%c132_569] : memref<288xf32, #tpu.memory_space<smem>>
      %1381 = vector.broadcast %1380 : f32 to vector<12x128xf32>
      %1382 = arith.mulf %1381, %1367 : vector<12x128xf32>
      %1383 = arith.addf %1346, %1382 : vector<12x128xf32>
      %c168 = arith.constant 168 : index
      %1384 = memref.load %arg4[%c168] : memref<288xf32, #tpu.memory_space<smem>>
      %1385 = vector.broadcast %1384 : f32 to vector<12x128xf32>
      %1386 = arith.mulf %1385, %1367 : vector<12x128xf32>
      %1387 = arith.addf %1350, %1386 : vector<12x128xf32>
      %c204 = arith.constant 204 : index
      %1388 = memref.load %arg4[%c204] : memref<288xf32, #tpu.memory_space<smem>>
      %1389 = vector.broadcast %1388 : f32 to vector<12x128xf32>
      %1390 = arith.mulf %1389, %1367 : vector<12x128xf32>
      %1391 = arith.addf %1354, %1390 : vector<12x128xf32>
      %c240 = arith.constant 240 : index
      %1392 = memref.load %arg4[%c240] : memref<288xf32, #tpu.memory_space<smem>>
      %1393 = vector.broadcast %1392 : f32 to vector<12x128xf32>
      %1394 = arith.mulf %1393, %1367 : vector<12x128xf32>
      %1395 = arith.addf %1358, %1394 : vector<12x128xf32>
      %c276 = arith.constant 276 : index
      %1396 = memref.load %arg4[%c276] : memref<288xf32, #tpu.memory_space<smem>>
      %1397 = vector.broadcast %1396 : f32 to vector<12x128xf32>
      %1398 = arith.mulf %1397, %1367 : vector<12x128xf32>
      %1399 = arith.addf %1362, %1398 : vector<12x128xf32>
      %1400 = vector.extract_strided_slice %1366 {offsets = [1, 0], sizes = [12, 128], strides = [1, 1]} : vector<14x128xf32> to vector<12x128xf32>
      %c25 = arith.constant 25 : index
      %1401 = memref.load %arg4[%c25] : memref<288xf32, #tpu.memory_space<smem>>
      %1402 = vector.broadcast %1401 : f32 to vector<12x128xf32>
      %1403 = arith.mulf %1402, %1400 : vector<12x128xf32>
      %1404 = arith.addf %1371, %1403 : vector<12x128xf32>
      %c61 = arith.constant 61 : index
      %1405 = memref.load %arg4[%c61] : memref<288xf32, #tpu.memory_space<smem>>
      %1406 = vector.broadcast %1405 : f32 to vector<12x128xf32>
      %1407 = arith.mulf %1406, %1400 : vector<12x128xf32>
      %1408 = arith.addf %1375, %1407 : vector<12x128xf32>
      %c97 = arith.constant 97 : index
      %1409 = memref.load %arg4[%c97] : memref<288xf32, #tpu.memory_space<smem>>
      %1410 = vector.broadcast %1409 : f32 to vector<12x128xf32>
      %1411 = arith.mulf %1410, %1400 : vector<12x128xf32>
      %1412 = arith.addf %1379, %1411 : vector<12x128xf32>
      %c133 = arith.constant 133 : index
      %1413 = memref.load %arg4[%c133] : memref<288xf32, #tpu.memory_space<smem>>
      %1414 = vector.broadcast %1413 : f32 to vector<12x128xf32>
      %1415 = arith.mulf %1414, %1400 : vector<12x128xf32>
      %1416 = arith.addf %1383, %1415 : vector<12x128xf32>
      %c169 = arith.constant 169 : index
      %1417 = memref.load %arg4[%c169] : memref<288xf32, #tpu.memory_space<smem>>
      %1418 = vector.broadcast %1417 : f32 to vector<12x128xf32>
      %1419 = arith.mulf %1418, %1400 : vector<12x128xf32>
      %1420 = arith.addf %1387, %1419 : vector<12x128xf32>
      %c205 = arith.constant 205 : index
      %1421 = memref.load %arg4[%c205] : memref<288xf32, #tpu.memory_space<smem>>
      %1422 = vector.broadcast %1421 : f32 to vector<12x128xf32>
      %1423 = arith.mulf %1422, %1400 : vector<12x128xf32>
      %1424 = arith.addf %1391, %1423 : vector<12x128xf32>
      %c241 = arith.constant 241 : index
      %1425 = memref.load %arg4[%c241] : memref<288xf32, #tpu.memory_space<smem>>
      %1426 = vector.broadcast %1425 : f32 to vector<12x128xf32>
      %1427 = arith.mulf %1426, %1400 : vector<12x128xf32>
      %1428 = arith.addf %1395, %1427 : vector<12x128xf32>
      %c277 = arith.constant 277 : index
      %1429 = memref.load %arg4[%c277] : memref<288xf32, #tpu.memory_space<smem>>
      %1430 = vector.broadcast %1429 : f32 to vector<12x128xf32>
      %1431 = arith.mulf %1430, %1400 : vector<12x128xf32>
      %1432 = arith.addf %1399, %1431 : vector<12x128xf32>
      %1433 = vector.extract_strided_slice %1366 {offsets = [2, 0], sizes = [12, 128], strides = [1, 1]} : vector<14x128xf32> to vector<12x128xf32>
      %c26 = arith.constant 26 : index
      %1434 = memref.load %arg4[%c26] : memref<288xf32, #tpu.memory_space<smem>>
      %1435 = vector.broadcast %1434 : f32 to vector<12x128xf32>
      %1436 = arith.mulf %1435, %1433 : vector<12x128xf32>
      %1437 = arith.addf %1404, %1436 : vector<12x128xf32>
      %c62 = arith.constant 62 : index
      %1438 = memref.load %arg4[%c62] : memref<288xf32, #tpu.memory_space<smem>>
      %1439 = vector.broadcast %1438 : f32 to vector<12x128xf32>
      %1440 = arith.mulf %1439, %1433 : vector<12x128xf32>
      %1441 = arith.addf %1408, %1440 : vector<12x128xf32>
      %c98 = arith.constant 98 : index
      %1442 = memref.load %arg4[%c98] : memref<288xf32, #tpu.memory_space<smem>>
      %1443 = vector.broadcast %1442 : f32 to vector<12x128xf32>
      %1444 = arith.mulf %1443, %1433 : vector<12x128xf32>
      %1445 = arith.addf %1412, %1444 : vector<12x128xf32>
      %c134 = arith.constant 134 : index
      %1446 = memref.load %arg4[%c134] : memref<288xf32, #tpu.memory_space<smem>>
      %1447 = vector.broadcast %1446 : f32 to vector<12x128xf32>
      %1448 = arith.mulf %1447, %1433 : vector<12x128xf32>
      %1449 = arith.addf %1416, %1448 : vector<12x128xf32>
      %c170 = arith.constant 170 : index
      %1450 = memref.load %arg4[%c170] : memref<288xf32, #tpu.memory_space<smem>>
      %1451 = vector.broadcast %1450 : f32 to vector<12x128xf32>
      %1452 = arith.mulf %1451, %1433 : vector<12x128xf32>
      %1453 = arith.addf %1420, %1452 : vector<12x128xf32>
      %c206 = arith.constant 206 : index
      %1454 = memref.load %arg4[%c206] : memref<288xf32, #tpu.memory_space<smem>>
      %1455 = vector.broadcast %1454 : f32 to vector<12x128xf32>
      %1456 = arith.mulf %1455, %1433 : vector<12x128xf32>
      %1457 = arith.addf %1424, %1456 : vector<12x128xf32>
      %c242_570 = arith.constant 242 : index
      %1458 = memref.load %arg4[%c242_570] : memref<288xf32, #tpu.memory_space<smem>>
      %1459 = vector.broadcast %1458 : f32 to vector<12x128xf32>
      %1460 = arith.mulf %1459, %1433 : vector<12x128xf32>
      %1461 = arith.addf %1428, %1460 : vector<12x128xf32>
      %c278 = arith.constant 278 : index
      %1462 = memref.load %arg4[%c278] : memref<288xf32, #tpu.memory_space<smem>>
      %1463 = vector.broadcast %1462 : f32 to vector<12x128xf32>
      %1464 = arith.mulf %1463, %1433 : vector<12x128xf32>
      %1465 = arith.addf %1432, %1464 : vector<12x128xf32>
      %c0_i32_571 = arith.constant 0 : i32
      %1466 = arith.addi %522, %c0_i32_571 : i32
      %c3_572 = arith.constant 3 : index
      %1467 = arith.index_cast %1466 : i32 to index
      %c0_573 = arith.constant 0 : index
      %c0_574 = arith.constant 0 : index
      %1468 = vector.load %arg14[%c3_572, %1467, %c0_573, %c0_574] : memref<4x14x14x128xf32, #tpu.memory_space<vmem>>, vector<1x1x14x128xf32>
      %1469 = vector.shape_cast %1468 : vector<1x1x14x128xf32> to vector<14x128xf32>
      %1470 = vector.extract_strided_slice %1469 {offsets = [0, 0], sizes = [12, 128], strides = [1, 1]} : vector<14x128xf32> to vector<12x128xf32>
      %c27 = arith.constant 27 : index
      %1471 = memref.load %arg4[%c27] : memref<288xf32, #tpu.memory_space<smem>>
      %1472 = vector.broadcast %1471 : f32 to vector<12x128xf32>
      %1473 = arith.mulf %1472, %1470 : vector<12x128xf32>
      %1474 = arith.addf %1437, %1473 : vector<12x128xf32>
      %c63 = arith.constant 63 : index
      %1475 = memref.load %arg4[%c63] : memref<288xf32, #tpu.memory_space<smem>>
      %1476 = vector.broadcast %1475 : f32 to vector<12x128xf32>
      %1477 = arith.mulf %1476, %1470 : vector<12x128xf32>
      %1478 = arith.addf %1441, %1477 : vector<12x128xf32>
      %c99_575 = arith.constant 99 : index
      %1479 = memref.load %arg4[%c99_575] : memref<288xf32, #tpu.memory_space<smem>>
      %1480 = vector.broadcast %1479 : f32 to vector<12x128xf32>
      %1481 = arith.mulf %1480, %1470 : vector<12x128xf32>
      %1482 = arith.addf %1445, %1481 : vector<12x128xf32>
      %c135 = arith.constant 135 : index
      %1483 = memref.load %arg4[%c135] : memref<288xf32, #tpu.memory_space<smem>>
      %1484 = vector.broadcast %1483 : f32 to vector<12x128xf32>
      %1485 = arith.mulf %1484, %1470 : vector<12x128xf32>
      %1486 = arith.addf %1449, %1485 : vector<12x128xf32>
      %c171 = arith.constant 171 : index
      %1487 = memref.load %arg4[%c171] : memref<288xf32, #tpu.memory_space<smem>>
      %1488 = vector.broadcast %1487 : f32 to vector<12x128xf32>
      %1489 = arith.mulf %1488, %1470 : vector<12x128xf32>
      %1490 = arith.addf %1453, %1489 : vector<12x128xf32>
      %c207 = arith.constant 207 : index
      %1491 = memref.load %arg4[%c207] : memref<288xf32, #tpu.memory_space<smem>>
      %1492 = vector.broadcast %1491 : f32 to vector<12x128xf32>
      %1493 = arith.mulf %1492, %1470 : vector<12x128xf32>
      %1494 = arith.addf %1457, %1493 : vector<12x128xf32>
      %c243 = arith.constant 243 : index
      %1495 = memref.load %arg4[%c243] : memref<288xf32, #tpu.memory_space<smem>>
      %1496 = vector.broadcast %1495 : f32 to vector<12x128xf32>
      %1497 = arith.mulf %1496, %1470 : vector<12x128xf32>
      %1498 = arith.addf %1461, %1497 : vector<12x128xf32>
      %c279 = arith.constant 279 : index
      %1499 = memref.load %arg4[%c279] : memref<288xf32, #tpu.memory_space<smem>>
      %1500 = vector.broadcast %1499 : f32 to vector<12x128xf32>
      %1501 = arith.mulf %1500, %1470 : vector<12x128xf32>
      %1502 = arith.addf %1465, %1501 : vector<12x128xf32>
      %1503 = vector.extract_strided_slice %1469 {offsets = [1, 0], sizes = [12, 128], strides = [1, 1]} : vector<14x128xf32> to vector<12x128xf32>
      %c28 = arith.constant 28 : index
      %1504 = memref.load %arg4[%c28] : memref<288xf32, #tpu.memory_space<smem>>
      %1505 = vector.broadcast %1504 : f32 to vector<12x128xf32>
      %1506 = arith.mulf %1505, %1503 : vector<12x128xf32>
      %1507 = arith.addf %1474, %1506 : vector<12x128xf32>
      %c64 = arith.constant 64 : index
      %1508 = memref.load %arg4[%c64] : memref<288xf32, #tpu.memory_space<smem>>
      %1509 = vector.broadcast %1508 : f32 to vector<12x128xf32>
      %1510 = arith.mulf %1509, %1503 : vector<12x128xf32>
      %1511 = arith.addf %1478, %1510 : vector<12x128xf32>
      %c100 = arith.constant 100 : index
      %1512 = memref.load %arg4[%c100] : memref<288xf32, #tpu.memory_space<smem>>
      %1513 = vector.broadcast %1512 : f32 to vector<12x128xf32>
      %1514 = arith.mulf %1513, %1503 : vector<12x128xf32>
      %1515 = arith.addf %1482, %1514 : vector<12x128xf32>
      %c136 = arith.constant 136 : index
      %1516 = memref.load %arg4[%c136] : memref<288xf32, #tpu.memory_space<smem>>
      %1517 = vector.broadcast %1516 : f32 to vector<12x128xf32>
      %1518 = arith.mulf %1517, %1503 : vector<12x128xf32>
      %1519 = arith.addf %1486, %1518 : vector<12x128xf32>
      %c172 = arith.constant 172 : index
      %1520 = memref.load %arg4[%c172] : memref<288xf32, #tpu.memory_space<smem>>
      %1521 = vector.broadcast %1520 : f32 to vector<12x128xf32>
      %1522 = arith.mulf %1521, %1503 : vector<12x128xf32>
      %1523 = arith.addf %1490, %1522 : vector<12x128xf32>
      %c208 = arith.constant 208 : index
      %1524 = memref.load %arg4[%c208] : memref<288xf32, #tpu.memory_space<smem>>
      %1525 = vector.broadcast %1524 : f32 to vector<12x128xf32>
      %1526 = arith.mulf %1525, %1503 : vector<12x128xf32>
      %1527 = arith.addf %1494, %1526 : vector<12x128xf32>
      %c244 = arith.constant 244 : index
      %1528 = memref.load %arg4[%c244] : memref<288xf32, #tpu.memory_space<smem>>
      %1529 = vector.broadcast %1528 : f32 to vector<12x128xf32>
      %1530 = arith.mulf %1529, %1503 : vector<12x128xf32>
      %1531 = arith.addf %1498, %1530 : vector<12x128xf32>
      %c280 = arith.constant 280 : index
      %1532 = memref.load %arg4[%c280] : memref<288xf32, #tpu.memory_space<smem>>
      %1533 = vector.broadcast %1532 : f32 to vector<12x128xf32>
      %1534 = arith.mulf %1533, %1503 : vector<12x128xf32>
      %1535 = arith.addf %1502, %1534 : vector<12x128xf32>
      %1536 = vector.extract_strided_slice %1469 {offsets = [2, 0], sizes = [12, 128], strides = [1, 1]} : vector<14x128xf32> to vector<12x128xf32>
      %c29 = arith.constant 29 : index
      %1537 = memref.load %arg4[%c29] : memref<288xf32, #tpu.memory_space<smem>>
      %1538 = vector.broadcast %1537 : f32 to vector<12x128xf32>
      %1539 = arith.mulf %1538, %1536 : vector<12x128xf32>
      %1540 = arith.addf %1507, %1539 : vector<12x128xf32>
      %c65 = arith.constant 65 : index
      %1541 = memref.load %arg4[%c65] : memref<288xf32, #tpu.memory_space<smem>>
      %1542 = vector.broadcast %1541 : f32 to vector<12x128xf32>
      %1543 = arith.mulf %1542, %1536 : vector<12x128xf32>
      %1544 = arith.addf %1511, %1543 : vector<12x128xf32>
      %c101 = arith.constant 101 : index
      %1545 = memref.load %arg4[%c101] : memref<288xf32, #tpu.memory_space<smem>>
      %1546 = vector.broadcast %1545 : f32 to vector<12x128xf32>
      %1547 = arith.mulf %1546, %1536 : vector<12x128xf32>
      %1548 = arith.addf %1515, %1547 : vector<12x128xf32>
      %c137 = arith.constant 137 : index
      %1549 = memref.load %arg4[%c137] : memref<288xf32, #tpu.memory_space<smem>>
      %1550 = vector.broadcast %1549 : f32 to vector<12x128xf32>
      %1551 = arith.mulf %1550, %1536 : vector<12x128xf32>
      %1552 = arith.addf %1519, %1551 : vector<12x128xf32>
      %c173 = arith.constant 173 : index
      %1553 = memref.load %arg4[%c173] : memref<288xf32, #tpu.memory_space<smem>>
      %1554 = vector.broadcast %1553 : f32 to vector<12x128xf32>
      %1555 = arith.mulf %1554, %1536 : vector<12x128xf32>
      %1556 = arith.addf %1523, %1555 : vector<12x128xf32>
      %c209_576 = arith.constant 209 : index
      %1557 = memref.load %arg4[%c209_576] : memref<288xf32, #tpu.memory_space<smem>>
      %1558 = vector.broadcast %1557 : f32 to vector<12x128xf32>
      %1559 = arith.mulf %1558, %1536 : vector<12x128xf32>
      %1560 = arith.addf %1527, %1559 : vector<12x128xf32>
      %c245 = arith.constant 245 : index
      %1561 = memref.load %arg4[%c245] : memref<288xf32, #tpu.memory_space<smem>>
      %1562 = vector.broadcast %1561 : f32 to vector<12x128xf32>
      %1563 = arith.mulf %1562, %1536 : vector<12x128xf32>
      %1564 = arith.addf %1531, %1563 : vector<12x128xf32>
      %c281 = arith.constant 281 : index
      %1565 = memref.load %arg4[%c281] : memref<288xf32, #tpu.memory_space<smem>>
      %1566 = vector.broadcast %1565 : f32 to vector<12x128xf32>
      %1567 = arith.mulf %1566, %1536 : vector<12x128xf32>
      %1568 = arith.addf %1535, %1567 : vector<12x128xf32>
      %c1_i32_577 = arith.constant 1 : i32
      %1569 = arith.addi %522, %c1_i32_577 : i32
      %c3_578 = arith.constant 3 : index
      %1570 = arith.index_cast %1569 : i32 to index
      %c0_579 = arith.constant 0 : index
      %c0_580 = arith.constant 0 : index
      %1571 = vector.load %arg14[%c3_578, %1570, %c0_579, %c0_580] : memref<4x14x14x128xf32, #tpu.memory_space<vmem>>, vector<1x1x14x128xf32>
      %1572 = vector.shape_cast %1571 : vector<1x1x14x128xf32> to vector<14x128xf32>
      %1573 = vector.extract_strided_slice %1572 {offsets = [0, 0], sizes = [12, 128], strides = [1, 1]} : vector<14x128xf32> to vector<12x128xf32>
      %c30 = arith.constant 30 : index
      %1574 = memref.load %arg4[%c30] : memref<288xf32, #tpu.memory_space<smem>>
      %1575 = vector.broadcast %1574 : f32 to vector<12x128xf32>
      %1576 = arith.mulf %1575, %1573 : vector<12x128xf32>
      %1577 = arith.addf %1540, %1576 : vector<12x128xf32>
      %c66_581 = arith.constant 66 : index
      %1578 = memref.load %arg4[%c66_581] : memref<288xf32, #tpu.memory_space<smem>>
      %1579 = vector.broadcast %1578 : f32 to vector<12x128xf32>
      %1580 = arith.mulf %1579, %1573 : vector<12x128xf32>
      %1581 = arith.addf %1544, %1580 : vector<12x128xf32>
      %c102 = arith.constant 102 : index
      %1582 = memref.load %arg4[%c102] : memref<288xf32, #tpu.memory_space<smem>>
      %1583 = vector.broadcast %1582 : f32 to vector<12x128xf32>
      %1584 = arith.mulf %1583, %1573 : vector<12x128xf32>
      %1585 = arith.addf %1548, %1584 : vector<12x128xf32>
      %c138 = arith.constant 138 : index
      %1586 = memref.load %arg4[%c138] : memref<288xf32, #tpu.memory_space<smem>>
      %1587 = vector.broadcast %1586 : f32 to vector<12x128xf32>
      %1588 = arith.mulf %1587, %1573 : vector<12x128xf32>
      %1589 = arith.addf %1552, %1588 : vector<12x128xf32>
      %c174 = arith.constant 174 : index
      %1590 = memref.load %arg4[%c174] : memref<288xf32, #tpu.memory_space<smem>>
      %1591 = vector.broadcast %1590 : f32 to vector<12x128xf32>
      %1592 = arith.mulf %1591, %1573 : vector<12x128xf32>
      %1593 = arith.addf %1556, %1592 : vector<12x128xf32>
      %c210 = arith.constant 210 : index
      %1594 = memref.load %arg4[%c210] : memref<288xf32, #tpu.memory_space<smem>>
      %1595 = vector.broadcast %1594 : f32 to vector<12x128xf32>
      %1596 = arith.mulf %1595, %1573 : vector<12x128xf32>
      %1597 = arith.addf %1560, %1596 : vector<12x128xf32>
      %c246 = arith.constant 246 : index
      %1598 = memref.load %arg4[%c246] : memref<288xf32, #tpu.memory_space<smem>>
      %1599 = vector.broadcast %1598 : f32 to vector<12x128xf32>
      %1600 = arith.mulf %1599, %1573 : vector<12x128xf32>
      %1601 = arith.addf %1564, %1600 : vector<12x128xf32>
      %c282 = arith.constant 282 : index
      %1602 = memref.load %arg4[%c282] : memref<288xf32, #tpu.memory_space<smem>>
      %1603 = vector.broadcast %1602 : f32 to vector<12x128xf32>
      %1604 = arith.mulf %1603, %1573 : vector<12x128xf32>
      %1605 = arith.addf %1568, %1604 : vector<12x128xf32>
      %1606 = vector.extract_strided_slice %1572 {offsets = [1, 0], sizes = [12, 128], strides = [1, 1]} : vector<14x128xf32> to vector<12x128xf32>
      %c31 = arith.constant 31 : index
      %1607 = memref.load %arg4[%c31] : memref<288xf32, #tpu.memory_space<smem>>
      %1608 = vector.broadcast %1607 : f32 to vector<12x128xf32>
      %1609 = arith.mulf %1608, %1606 : vector<12x128xf32>
      %1610 = arith.addf %1577, %1609 : vector<12x128xf32>
      %c67 = arith.constant 67 : index
      %1611 = memref.load %arg4[%c67] : memref<288xf32, #tpu.memory_space<smem>>
      %1612 = vector.broadcast %1611 : f32 to vector<12x128xf32>
      %1613 = arith.mulf %1612, %1606 : vector<12x128xf32>
      %1614 = arith.addf %1581, %1613 : vector<12x128xf32>
      %c103 = arith.constant 103 : index
      %1615 = memref.load %arg4[%c103] : memref<288xf32, #tpu.memory_space<smem>>
      %1616 = vector.broadcast %1615 : f32 to vector<12x128xf32>
      %1617 = arith.mulf %1616, %1606 : vector<12x128xf32>
      %1618 = arith.addf %1585, %1617 : vector<12x128xf32>
      %c139 = arith.constant 139 : index
      %1619 = memref.load %arg4[%c139] : memref<288xf32, #tpu.memory_space<smem>>
      %1620 = vector.broadcast %1619 : f32 to vector<12x128xf32>
      %1621 = arith.mulf %1620, %1606 : vector<12x128xf32>
      %1622 = arith.addf %1589, %1621 : vector<12x128xf32>
      %c175 = arith.constant 175 : index
      %1623 = memref.load %arg4[%c175] : memref<288xf32, #tpu.memory_space<smem>>
      %1624 = vector.broadcast %1623 : f32 to vector<12x128xf32>
      %1625 = arith.mulf %1624, %1606 : vector<12x128xf32>
      %1626 = arith.addf %1593, %1625 : vector<12x128xf32>
      %c211 = arith.constant 211 : index
      %1627 = memref.load %arg4[%c211] : memref<288xf32, #tpu.memory_space<smem>>
      %1628 = vector.broadcast %1627 : f32 to vector<12x128xf32>
      %1629 = arith.mulf %1628, %1606 : vector<12x128xf32>
      %1630 = arith.addf %1597, %1629 : vector<12x128xf32>
      %c247 = arith.constant 247 : index
      %1631 = memref.load %arg4[%c247] : memref<288xf32, #tpu.memory_space<smem>>
      %1632 = vector.broadcast %1631 : f32 to vector<12x128xf32>
      %1633 = arith.mulf %1632, %1606 : vector<12x128xf32>
      %1634 = arith.addf %1601, %1633 : vector<12x128xf32>
      %c283 = arith.constant 283 : index
      %1635 = memref.load %arg4[%c283] : memref<288xf32, #tpu.memory_space<smem>>
      %1636 = vector.broadcast %1635 : f32 to vector<12x128xf32>
      %1637 = arith.mulf %1636, %1606 : vector<12x128xf32>
      %1638 = arith.addf %1605, %1637 : vector<12x128xf32>
      %1639 = vector.extract_strided_slice %1572 {offsets = [2, 0], sizes = [12, 128], strides = [1, 1]} : vector<14x128xf32> to vector<12x128xf32>
      %c32 = arith.constant 32 : index
      %1640 = memref.load %arg4[%c32] : memref<288xf32, #tpu.memory_space<smem>>
      %1641 = vector.broadcast %1640 : f32 to vector<12x128xf32>
      %1642 = arith.mulf %1641, %1639 : vector<12x128xf32>
      %1643 = arith.addf %1610, %1642 : vector<12x128xf32>
      %c68 = arith.constant 68 : index
      %1644 = memref.load %arg4[%c68] : memref<288xf32, #tpu.memory_space<smem>>
      %1645 = vector.broadcast %1644 : f32 to vector<12x128xf32>
      %1646 = arith.mulf %1645, %1639 : vector<12x128xf32>
      %1647 = arith.addf %1614, %1646 : vector<12x128xf32>
      %c104 = arith.constant 104 : index
      %1648 = memref.load %arg4[%c104] : memref<288xf32, #tpu.memory_space<smem>>
      %1649 = vector.broadcast %1648 : f32 to vector<12x128xf32>
      %1650 = arith.mulf %1649, %1639 : vector<12x128xf32>
      %1651 = arith.addf %1618, %1650 : vector<12x128xf32>
      %c140 = arith.constant 140 : index
      %1652 = memref.load %arg4[%c140] : memref<288xf32, #tpu.memory_space<smem>>
      %1653 = vector.broadcast %1652 : f32 to vector<12x128xf32>
      %1654 = arith.mulf %1653, %1639 : vector<12x128xf32>
      %1655 = arith.addf %1622, %1654 : vector<12x128xf32>
      %c176_582 = arith.constant 176 : index
      %1656 = memref.load %arg4[%c176_582] : memref<288xf32, #tpu.memory_space<smem>>
      %1657 = vector.broadcast %1656 : f32 to vector<12x128xf32>
      %1658 = arith.mulf %1657, %1639 : vector<12x128xf32>
      %1659 = arith.addf %1626, %1658 : vector<12x128xf32>
      %c212 = arith.constant 212 : index
      %1660 = memref.load %arg4[%c212] : memref<288xf32, #tpu.memory_space<smem>>
      %1661 = vector.broadcast %1660 : f32 to vector<12x128xf32>
      %1662 = arith.mulf %1661, %1639 : vector<12x128xf32>
      %1663 = arith.addf %1630, %1662 : vector<12x128xf32>
      %c248 = arith.constant 248 : index
      %1664 = memref.load %arg4[%c248] : memref<288xf32, #tpu.memory_space<smem>>
      %1665 = vector.broadcast %1664 : f32 to vector<12x128xf32>
      %1666 = arith.mulf %1665, %1639 : vector<12x128xf32>
      %1667 = arith.addf %1634, %1666 : vector<12x128xf32>
      %c284 = arith.constant 284 : index
      %1668 = memref.load %arg4[%c284] : memref<288xf32, #tpu.memory_space<smem>>
      %1669 = vector.broadcast %1668 : f32 to vector<12x128xf32>
      %1670 = arith.mulf %1669, %1639 : vector<12x128xf32>
      %1671 = arith.addf %1638, %1670 : vector<12x128xf32>
      %c2_i32_583 = arith.constant 2 : i32
      %1672 = arith.addi %522, %c2_i32_583 : i32
      %c3_584 = arith.constant 3 : index
      %1673 = arith.index_cast %1672 : i32 to index
      %c0_585 = arith.constant 0 : index
      %c0_586 = arith.constant 0 : index
      %1674 = vector.load %arg14[%c3_584, %1673, %c0_585, %c0_586] : memref<4x14x14x128xf32, #tpu.memory_space<vmem>>, vector<1x1x14x128xf32>
      %1675 = vector.shape_cast %1674 : vector<1x1x14x128xf32> to vector<14x128xf32>
      %1676 = vector.extract_strided_slice %1675 {offsets = [0, 0], sizes = [12, 128], strides = [1, 1]} : vector<14x128xf32> to vector<12x128xf32>
      %c33_587 = arith.constant 33 : index
      %1677 = memref.load %arg4[%c33_587] : memref<288xf32, #tpu.memory_space<smem>>
      %1678 = vector.broadcast %1677 : f32 to vector<12x128xf32>
      %1679 = arith.mulf %1678, %1676 : vector<12x128xf32>
      %1680 = arith.addf %1643, %1679 : vector<12x128xf32>
      %c69 = arith.constant 69 : index
      %1681 = memref.load %arg4[%c69] : memref<288xf32, #tpu.memory_space<smem>>
      %1682 = vector.broadcast %1681 : f32 to vector<12x128xf32>
      %1683 = arith.mulf %1682, %1676 : vector<12x128xf32>
      %1684 = arith.addf %1647, %1683 : vector<12x128xf32>
      %c105 = arith.constant 105 : index
      %1685 = memref.load %arg4[%c105] : memref<288xf32, #tpu.memory_space<smem>>
      %1686 = vector.broadcast %1685 : f32 to vector<12x128xf32>
      %1687 = arith.mulf %1686, %1676 : vector<12x128xf32>
      %1688 = arith.addf %1651, %1687 : vector<12x128xf32>
      %c141 = arith.constant 141 : index
      %1689 = memref.load %arg4[%c141] : memref<288xf32, #tpu.memory_space<smem>>
      %1690 = vector.broadcast %1689 : f32 to vector<12x128xf32>
      %1691 = arith.mulf %1690, %1676 : vector<12x128xf32>
      %1692 = arith.addf %1655, %1691 : vector<12x128xf32>
      %c177 = arith.constant 177 : index
      %1693 = memref.load %arg4[%c177] : memref<288xf32, #tpu.memory_space<smem>>
      %1694 = vector.broadcast %1693 : f32 to vector<12x128xf32>
      %1695 = arith.mulf %1694, %1676 : vector<12x128xf32>
      %1696 = arith.addf %1659, %1695 : vector<12x128xf32>
      %c213 = arith.constant 213 : index
      %1697 = memref.load %arg4[%c213] : memref<288xf32, #tpu.memory_space<smem>>
      %1698 = vector.broadcast %1697 : f32 to vector<12x128xf32>
      %1699 = arith.mulf %1698, %1676 : vector<12x128xf32>
      %1700 = arith.addf %1663, %1699 : vector<12x128xf32>
      %c249 = arith.constant 249 : index
      %1701 = memref.load %arg4[%c249] : memref<288xf32, #tpu.memory_space<smem>>
      %1702 = vector.broadcast %1701 : f32 to vector<12x128xf32>
      %1703 = arith.mulf %1702, %1676 : vector<12x128xf32>
      %1704 = arith.addf %1667, %1703 : vector<12x128xf32>
      %c285 = arith.constant 285 : index
      %1705 = memref.load %arg4[%c285] : memref<288xf32, #tpu.memory_space<smem>>
      %1706 = vector.broadcast %1705 : f32 to vector<12x128xf32>
      %1707 = arith.mulf %1706, %1676 : vector<12x128xf32>
      %1708 = arith.addf %1671, %1707 : vector<12x128xf32>
      %1709 = vector.extract_strided_slice %1675 {offsets = [1, 0], sizes = [12, 128], strides = [1, 1]} : vector<14x128xf32> to vector<12x128xf32>
      %c34 = arith.constant 34 : index
      %1710 = memref.load %arg4[%c34] : memref<288xf32, #tpu.memory_space<smem>>
      %1711 = vector.broadcast %1710 : f32 to vector<12x128xf32>
      %1712 = arith.mulf %1711, %1709 : vector<12x128xf32>
      %1713 = arith.addf %1680, %1712 : vector<12x128xf32>
      %c70 = arith.constant 70 : index
      %1714 = memref.load %arg4[%c70] : memref<288xf32, #tpu.memory_space<smem>>
      %1715 = vector.broadcast %1714 : f32 to vector<12x128xf32>
      %1716 = arith.mulf %1715, %1709 : vector<12x128xf32>
      %1717 = arith.addf %1684, %1716 : vector<12x128xf32>
      %c106 = arith.constant 106 : index
      %1718 = memref.load %arg4[%c106] : memref<288xf32, #tpu.memory_space<smem>>
      %1719 = vector.broadcast %1718 : f32 to vector<12x128xf32>
      %1720 = arith.mulf %1719, %1709 : vector<12x128xf32>
      %1721 = arith.addf %1688, %1720 : vector<12x128xf32>
      %c142 = arith.constant 142 : index
      %1722 = memref.load %arg4[%c142] : memref<288xf32, #tpu.memory_space<smem>>
      %1723 = vector.broadcast %1722 : f32 to vector<12x128xf32>
      %1724 = arith.mulf %1723, %1709 : vector<12x128xf32>
      %1725 = arith.addf %1692, %1724 : vector<12x128xf32>
      %c178 = arith.constant 178 : index
      %1726 = memref.load %arg4[%c178] : memref<288xf32, #tpu.memory_space<smem>>
      %1727 = vector.broadcast %1726 : f32 to vector<12x128xf32>
      %1728 = arith.mulf %1727, %1709 : vector<12x128xf32>
      %1729 = arith.addf %1696, %1728 : vector<12x128xf32>
      %c214 = arith.constant 214 : index
      %1730 = memref.load %arg4[%c214] : memref<288xf32, #tpu.memory_space<smem>>
      %1731 = vector.broadcast %1730 : f32 to vector<12x128xf32>
      %1732 = arith.mulf %1731, %1709 : vector<12x128xf32>
      %1733 = arith.addf %1700, %1732 : vector<12x128xf32>
      %c250 = arith.constant 250 : index
      %1734 = memref.load %arg4[%c250] : memref<288xf32, #tpu.memory_space<smem>>
      %1735 = vector.broadcast %1734 : f32 to vector<12x128xf32>
      %1736 = arith.mulf %1735, %1709 : vector<12x128xf32>
      %1737 = arith.addf %1704, %1736 : vector<12x128xf32>
      %c286_588 = arith.constant 286 : index
      %1738 = memref.load %arg4[%c286_588] : memref<288xf32, #tpu.memory_space<smem>>
      %1739 = vector.broadcast %1738 : f32 to vector<12x128xf32>
      %1740 = arith.mulf %1739, %1709 : vector<12x128xf32>
      %1741 = arith.addf %1708, %1740 : vector<12x128xf32>
      %1742 = vector.extract_strided_slice %1675 {offsets = [2, 0], sizes = [12, 128], strides = [1, 1]} : vector<14x128xf32> to vector<12x128xf32>
      %c35 = arith.constant 35 : index
      %1743 = memref.load %arg4[%c35] : memref<288xf32, #tpu.memory_space<smem>>
      %1744 = vector.broadcast %1743 : f32 to vector<12x128xf32>
      %1745 = arith.mulf %1744, %1742 : vector<12x128xf32>
      %1746 = arith.addf %1713, %1745 : vector<12x128xf32>
      %c71 = arith.constant 71 : index
      %1747 = memref.load %arg4[%c71] : memref<288xf32, #tpu.memory_space<smem>>
      %1748 = vector.broadcast %1747 : f32 to vector<12x128xf32>
      %1749 = arith.mulf %1748, %1742 : vector<12x128xf32>
      %1750 = arith.addf %1717, %1749 : vector<12x128xf32>
      %c107 = arith.constant 107 : index
      %1751 = memref.load %arg4[%c107] : memref<288xf32, #tpu.memory_space<smem>>
      %1752 = vector.broadcast %1751 : f32 to vector<12x128xf32>
      %1753 = arith.mulf %1752, %1742 : vector<12x128xf32>
      %1754 = arith.addf %1721, %1753 : vector<12x128xf32>
      %c143_589 = arith.constant 143 : index
      %1755 = memref.load %arg4[%c143_589] : memref<288xf32, #tpu.memory_space<smem>>
      %1756 = vector.broadcast %1755 : f32 to vector<12x128xf32>
      %1757 = arith.mulf %1756, %1742 : vector<12x128xf32>
      %1758 = arith.addf %1725, %1757 : vector<12x128xf32>
      %c179 = arith.constant 179 : index
      %1759 = memref.load %arg4[%c179] : memref<288xf32, #tpu.memory_space<smem>>
      %1760 = vector.broadcast %1759 : f32 to vector<12x128xf32>
      %1761 = arith.mulf %1760, %1742 : vector<12x128xf32>
      %1762 = arith.addf %1729, %1761 : vector<12x128xf32>
      %c215 = arith.constant 215 : index
      %1763 = memref.load %arg4[%c215] : memref<288xf32, #tpu.memory_space<smem>>
      %1764 = vector.broadcast %1763 : f32 to vector<12x128xf32>
      %1765 = arith.mulf %1764, %1742 : vector<12x128xf32>
      %1766 = arith.addf %1733, %1765 : vector<12x128xf32>
      %c251 = arith.constant 251 : index
      %1767 = memref.load %arg4[%c251] : memref<288xf32, #tpu.memory_space<smem>>
      %1768 = vector.broadcast %1767 : f32 to vector<12x128xf32>
      %1769 = arith.mulf %1768, %1742 : vector<12x128xf32>
      %1770 = arith.addf %1737, %1769 : vector<12x128xf32>
      %c287 = arith.constant 287 : index
      %1771 = memref.load %arg4[%c287] : memref<288xf32, #tpu.memory_space<smem>>
      %1772 = vector.broadcast %1771 : f32 to vector<12x128xf32>
      %1773 = arith.mulf %1772, %1742 : vector<12x128xf32>
      %1774 = arith.addf %1741, %1773 : vector<12x128xf32>
      %cst_590 = arith.constant 0.000000e+00 : f32
      %1775 = vector.broadcast %cst_590 : f32 to vector<12x128xf32>
      %1776 = arith.maximumf %1746, %1775 : vector<12x128xf32>
      %c0_591 = arith.constant 0 : index
      %1777 = arith.index_cast %522 : i32 to index
      %c0_592 = arith.constant 0 : index
      %c0_593 = arith.constant 0 : index
      %1778 = vector.load %arg15[%c0_591, %1777, %c0_592, %c0_593] : memref<8x12x12x128xf32, #tpu.memory_space<vmem>>, vector<1x1x12x128xf32>
      %1779 = vector.shape_cast %1778 : vector<1x1x12x128xf32> to vector<12x128xf32>
      %1780 = vector.shape_cast %1776 : vector<12x128xf32> to vector<1x1x12x128xf32>
      tpu.vector_store %arg15[%c0_591, %1777, %c0_592, %c0_593], %1780 {strides = array<i32>} : memref<8x12x12x128xf32, #tpu.memory_space<vmem>>, vector<1x1x12x128xf32>,
      %cst_594 = arith.constant 0.000000e+00 : f32
      %1781 = vector.broadcast %cst_594 : f32 to vector<12x128xf32>
      %1782 = arith.maximumf %1750, %1781 : vector<12x128xf32>
      %c1_595 = arith.constant 1 : index
      %1783 = arith.index_cast %522 : i32 to index
      %c0_596 = arith.constant 0 : index
      %c0_597 = arith.constant 0 : index
      %1784 = vector.load %arg15[%c1_595, %1783, %c0_596, %c0_597] : memref<8x12x12x128xf32, #tpu.memory_space<vmem>>, vector<1x1x12x128xf32>
      %1785 = vector.shape_cast %1784 : vector<1x1x12x128xf32> to vector<12x128xf32>
      %1786 = vector.shape_cast %1782 : vector<12x128xf32> to vector<1x1x12x128xf32>
      tpu.vector_store %arg15[%c1_595, %1783, %c0_596, %c0_597], %1786 {strides = array<i32>} : memref<8x12x12x128xf32, #tpu.memory_space<vmem>>, vector<1x1x12x128xf32>,
      %cst_598 = arith.constant 0.000000e+00 : f32
      %1787 = vector.broadcast %cst_598 : f32 to vector<12x128xf32>
      %1788 = arith.maximumf %1754, %1787 : vector<12x128xf32>
      %c2_599 = arith.constant 2 : index
      %1789 = arith.index_cast %522 : i32 to index
      %c0_600 = arith.constant 0 : index
      %c0_601 = arith.constant 0 : index
      %1790 = vector.load %arg15[%c2_599, %1789, %c0_600, %c0_601] : memref<8x12x12x128xf32, #tpu.memory_space<vmem>>, vector<1x1x12x128xf32>
      %1791 = vector.shape_cast %1790 : vector<1x1x12x128xf32> to vector<12x128xf32>
      %1792 = vector.shape_cast %1788 : vector<12x128xf32> to vector<1x1x12x128xf32>
      tpu.vector_store %arg15[%c2_599, %1789, %c0_600, %c0_601], %1792 {strides = array<i32>} : memref<8x12x12x128xf32, #tpu.memory_space<vmem>>, vector<1x1x12x128xf32>,
      %cst_602 = arith.constant 0.000000e+00 : f32
      %1793 = vector.broadcast %cst_602 : f32 to vector<12x128xf32>
      %1794 = arith.maximumf %1758, %1793 : vector<12x128xf32>
      %c3_603 = arith.constant 3 : index
      %1795 = arith.index_cast %522 : i32 to index
      %c0_604 = arith.constant 0 : index
      %c0_605 = arith.constant 0 : index
      %1796 = vector.load %arg15[%c3_603, %1795, %c0_604, %c0_605] : memref<8x12x12x128xf32, #tpu.memory_space<vmem>>, vector<1x1x12x128xf32>
      %1797 = vector.shape_cast %1796 : vector<1x1x12x128xf32> to vector<12x128xf32>
      %1798 = vector.shape_cast %1794 : vector<12x128xf32> to vector<1x1x12x128xf32>
      tpu.vector_store %arg15[%c3_603, %1795, %c0_604, %c0_605], %1798 {strides = array<i32>} : memref<8x12x12x128xf32, #tpu.memory_space<vmem>>, vector<1x1x12x128xf32>,
      %cst_606 = arith.constant 0.000000e+00 : f32
      %1799 = vector.broadcast %cst_606 : f32 to vector<12x128xf32>
      %1800 = arith.maximumf %1762, %1799 : vector<12x128xf32>
      %c4_607 = arith.constant 4 : index
      %1801 = arith.index_cast %522 : i32 to index
      %c0_608 = arith.constant 0 : index
      %c0_609 = arith.constant 0 : index
      %1802 = vector.load %arg15[%c4_607, %1801, %c0_608, %c0_609] : memref<8x12x12x128xf32, #tpu.memory_space<vmem>>, vector<1x1x12x128xf32>
      %1803 = vector.shape_cast %1802 : vector<1x1x12x128xf32> to vector<12x128xf32>
      %1804 = vector.shape_cast %1800 : vector<12x128xf32> to vector<1x1x12x128xf32>
      tpu.vector_store %arg15[%c4_607, %1801, %c0_608, %c0_609], %1804 {strides = array<i32>} : memref<8x12x12x128xf32, #tpu.memory_space<vmem>>, vector<1x1x12x128xf32>,
      %cst_610 = arith.constant 0.000000e+00 : f32
      %1805 = vector.broadcast %cst_610 : f32 to vector<12x128xf32>
      %1806 = arith.maximumf %1766, %1805 : vector<12x128xf32>
      %c5_611 = arith.constant 5 : index
      %1807 = arith.index_cast %522 : i32 to index
      %c0_612 = arith.constant 0 : index
      %c0_613 = arith.constant 0 : index
      %1808 = vector.load %arg15[%c5_611, %1807, %c0_612, %c0_613] : memref<8x12x12x128xf32, #tpu.memory_space<vmem>>, vector<1x1x12x128xf32>
      %1809 = vector.shape_cast %1808 : vector<1x1x12x128xf32> to vector<12x128xf32>
      %1810 = vector.shape_cast %1806 : vector<12x128xf32> to vector<1x1x12x128xf32>
      tpu.vector_store %arg15[%c5_611, %1807, %c0_612, %c0_613], %1810 {strides = array<i32>} : memref<8x12x12x128xf32, #tpu.memory_space<vmem>>, vector<1x1x12x128xf32>,
      %cst_614 = arith.constant 0.000000e+00 : f32
      %1811 = vector.broadcast %cst_614 : f32 to vector<12x128xf32>
      %1812 = arith.maximumf %1770, %1811 : vector<12x128xf32>
      %c6_615 = arith.constant 6 : index
      %1813 = arith.index_cast %522 : i32 to index
      %c0_616 = arith.constant 0 : index
      %c0_617 = arith.constant 0 : index
      %1814 = vector.load %arg15[%c6_615, %1813, %c0_616, %c0_617] : memref<8x12x12x128xf32, #tpu.memory_space<vmem>>, vector<1x1x12x128xf32>
      %1815 = vector.shape_cast %1814 : vector<1x1x12x128xf32> to vector<12x128xf32>
      %1816 = vector.shape_cast %1812 : vector<12x128xf32> to vector<1x1x12x128xf32>
      tpu.vector_store %arg15[%c6_615, %1813, %c0_616, %c0_617], %1816 {strides = array<i32>} : memref<8x12x12x128xf32, #tpu.memory_space<vmem>>, vector<1x1x12x128xf32>,
      %cst_618 = arith.constant 0.000000e+00 : f32
      %1817 = vector.broadcast %cst_618 : f32 to vector<12x128xf32>
      %1818 = arith.maximumf %1774, %1817 : vector<12x128xf32>
      %c7_619 = arith.constant 7 : index
      %1819 = arith.index_cast %522 : i32 to index
      %c0_620 = arith.constant 0 : index
      %c0_621 = arith.constant 0 : index
      %1820 = vector.load %arg15[%c7_619, %1819, %c0_620, %c0_621] : memref<8x12x12x128xf32, #tpu.memory_space<vmem>>, vector<1x1x12x128xf32>
      %1821 = vector.shape_cast %1820 : vector<1x1x12x128xf32> to vector<12x128xf32>
      %1822 = vector.shape_cast %1818 : vector<12x128xf32> to vector<1x1x12x128xf32>
      tpu.vector_store %arg15[%c7_619, %1819, %c0_620, %c0_621], %1822 {strides = array<i32>} : memref<8x12x12x128xf32, #tpu.memory_space<vmem>>, vector<1x1x12x128xf32>,
    }
    %c12_i32_37 = arith.constant 12 : i32
    %c0_38 = arith.constant 0 : index
    %c0_39 = arith.constant 0 : index
    %c0_40 = arith.constant 0 : index
    %c0_41 = arith.constant 0 : index
    %68 = vector.load %arg15[%c0_38, %c0_39, %c0_40, %c0_41] : memref<8x12x12x128xf32, #tpu.memory_space<vmem>>, vector<1x1x12x128xf32>
    %69 = vector.shape_cast %68 : vector<1x1x12x128xf32> to vector<12x128xf32>
    %c0_42 = arith.constant 0 : index
    %c1_43 = arith.constant 1 : index
    %c0_44 = arith.constant 0 : index
    %c0_45 = arith.constant 0 : index
    %70 = vector.load %arg15[%c0_42, %c1_43, %c0_44, %c0_45] : memref<8x12x12x128xf32, #tpu.memory_space<vmem>>, vector<1x1x12x128xf32>
    %71 = vector.shape_cast %70 : vector<1x1x12x128xf32> to vector<12x128xf32>
    %72 = arith.maximumf %69, %71 : vector<12x128xf32>
    %73 = vector.extract_strided_slice %72 {offsets = [0, 0], sizes = [11, 128], strides = [1, 1]} : vector<12x128xf32> to vector<11x128xf32>
    %74 = vector.extract_strided_slice %72 {offsets = [1, 0], sizes = [11, 128], strides = [1, 1]} : vector<12x128xf32> to vector<11x128xf32>
    %75 = arith.maximumf %73, %74 : vector<11x128xf32>
    %c0_46 = arith.constant 0 : index
    %c0_47 = arith.constant 0 : index
    %76 = vector.load %arg16[%c0_46, %c0_47] : memref<528x128xf32, #tpu.memory_space<vmem>>, vector<11x128xf32>
    tpu.vector_store %arg16[%c0_46, %c0_47], %75 {strides = array<i32>} : memref<528x128xf32, #tpu.memory_space<vmem>>, vector<11x128xf32>,
    %c0_48 = arith.constant 0 : index
    %c2_49 = arith.constant 2 : index
    %c0_50 = arith.constant 0 : index
    %c0_51 = arith.constant 0 : index
    %77 = vector.load %arg15[%c0_48, %c2_49, %c0_50, %c0_51] : memref<8x12x12x128xf32, #tpu.memory_space<vmem>>, vector<1x1x12x128xf32>
    %78 = vector.shape_cast %77 : vector<1x1x12x128xf32> to vector<12x128xf32>
    %c0_52 = arith.constant 0 : index
    %c3_53 = arith.constant 3 : index
    %c0_54 = arith.constant 0 : index
    %c0_55 = arith.constant 0 : index
    %79 = vector.load %arg15[%c0_52, %c3_53, %c0_54, %c0_55] : memref<8x12x12x128xf32, #tpu.memory_space<vmem>>, vector<1x1x12x128xf32>
    %80 = vector.shape_cast %79 : vector<1x1x12x128xf32> to vector<12x128xf32>
    %81 = arith.maximumf %78, %80 : vector<12x128xf32>
    %82 = vector.extract_strided_slice %81 {offsets = [0, 0], sizes = [11, 128], strides = [1, 1]} : vector<12x128xf32> to vector<11x128xf32>
    %83 = vector.extract_strided_slice %81 {offsets = [1, 0], sizes = [11, 128], strides = [1, 1]} : vector<12x128xf32> to vector<11x128xf32>
    %84 = arith.maximumf %82, %83 : vector<11x128xf32>
    %c11_56 = arith.constant 11 : index
    %c0_57 = arith.constant 0 : index
    %85 = vector.load %arg16[%c11_56, %c0_57] : memref<528x128xf32, #tpu.memory_space<vmem>>, vector<11x128xf32>
    tpu.vector_store %arg16[%c11_56, %c0_57], %84 {strides = array<i32>} : memref<528x128xf32, #tpu.memory_space<vmem>>, vector<11x128xf32>,
    %c0_58 = arith.constant 0 : index
    %c4_59 = arith.constant 4 : index
    %c0_60 = arith.constant 0 : index
    %c0_61 = arith.constant 0 : index
    %86 = vector.load %arg15[%c0_58, %c4_59, %c0_60, %c0_61] : memref<8x12x12x128xf32, #tpu.memory_space<vmem>>, vector<1x1x12x128xf32>
    %87 = vector.shape_cast %86 : vector<1x1x12x128xf32> to vector<12x128xf32>
    %c0_62 = arith.constant 0 : index
    %c5_63 = arith.constant 5 : index
    %c0_64 = arith.constant 0 : index
    %c0_65 = arith.constant 0 : index
    %88 = vector.load %arg15[%c0_62, %c5_63, %c0_64, %c0_65] : memref<8x12x12x128xf32, #tpu.memory_space<vmem>>, vector<1x1x12x128xf32>
    %89 = vector.shape_cast %88 : vector<1x1x12x128xf32> to vector<12x128xf32>
    %90 = arith.maximumf %87, %89 : vector<12x128xf32>
    %91 = vector.extract_strided_slice %90 {offsets = [0, 0], sizes = [11, 128], strides = [1, 1]} : vector<12x128xf32> to vector<11x128xf32>
    %92 = vector.extract_strided_slice %90 {offsets = [1, 0], sizes = [11, 128], strides = [1, 1]} : vector<12x128xf32> to vector<11x128xf32>
    %93 = arith.maximumf %91, %92 : vector<11x128xf32>
    %c22 = arith.constant 22 : index
    %c0_66 = arith.constant 0 : index
    %94 = vector.load %arg16[%c22, %c0_66] : memref<528x128xf32, #tpu.memory_space<vmem>>, vector<11x128xf32>
    tpu.vector_store %arg16[%c22, %c0_66], %93 {strides = array<i32>} : memref<528x128xf32, #tpu.memory_space<vmem>>, vector<11x128xf32>,
    %c0_67 = arith.constant 0 : index
    %c6_68 = arith.constant 6 : index
    %c0_69 = arith.constant 0 : index
    %c0_70 = arith.constant 0 : index
    %95 = vector.load %arg15[%c0_67, %c6_68, %c0_69, %c0_70] : memref<8x12x12x128xf32, #tpu.memory_space<vmem>>, vector<1x1x12x128xf32>
    %96 = vector.shape_cast %95 : vector<1x1x12x128xf32> to vector<12x128xf32>
    %c0_71 = arith.constant 0 : index
    %c7_72 = arith.constant 7 : index
    %c0_73 = arith.constant 0 : index
    %c0_74 = arith.constant 0 : index
    %97 = vector.load %arg15[%c0_71, %c7_72, %c0_73, %c0_74] : memref<8x12x12x128xf32, #tpu.memory_space<vmem>>, vector<1x1x12x128xf32>
    %98 = vector.shape_cast %97 : vector<1x1x12x128xf32> to vector<12x128xf32>
    %99 = arith.maximumf %96, %98 : vector<12x128xf32>
    %100 = vector.extract_strided_slice %99 {offsets = [0, 0], sizes = [11, 128], strides = [1, 1]} : vector<12x128xf32> to vector<11x128xf32>
    %101 = vector.extract_strided_slice %99 {offsets = [1, 0], sizes = [11, 128], strides = [1, 1]} : vector<12x128xf32> to vector<11x128xf32>
    %102 = arith.maximumf %100, %101 : vector<11x128xf32>
    %c33 = arith.constant 33 : index
    %c0_75 = arith.constant 0 : index
    %103 = vector.load %arg16[%c33, %c0_75] : memref<528x128xf32, #tpu.memory_space<vmem>>, vector<11x128xf32>
    tpu.vector_store %arg16[%c33, %c0_75], %102 {strides = array<i32>} : memref<528x128xf32, #tpu.memory_space<vmem>>, vector<11x128xf32>,
    %c0_76 = arith.constant 0 : index
    %c8_77 = arith.constant 8 : index
    %c0_78 = arith.constant 0 : index
    %c0_79 = arith.constant 0 : index
    %104 = vector.load %arg15[%c0_76, %c8_77, %c0_78, %c0_79] : memref<8x12x12x128xf32, #tpu.memory_space<vmem>>, vector<1x1x12x128xf32>
    %105 = vector.shape_cast %104 : vector<1x1x12x128xf32> to vector<12x128xf32>
    %c0_80 = arith.constant 0 : index
    %c9_81 = arith.constant 9 : index
    %c0_82 = arith.constant 0 : index
    %c0_83 = arith.constant 0 : index
    %106 = vector.load %arg15[%c0_80, %c9_81, %c0_82, %c0_83] : memref<8x12x12x128xf32, #tpu.memory_space<vmem>>, vector<1x1x12x128xf32>
    %107 = vector.shape_cast %106 : vector<1x1x12x128xf32> to vector<12x128xf32>
    %108 = arith.maximumf %105, %107 : vector<12x128xf32>
    %109 = vector.extract_strided_slice %108 {offsets = [0, 0], sizes = [11, 128], strides = [1, 1]} : vector<12x128xf32> to vector<11x128xf32>
    %110 = vector.extract_strided_slice %108 {offsets = [1, 0], sizes = [11, 128], strides = [1, 1]} : vector<12x128xf32> to vector<11x128xf32>
    %111 = arith.maximumf %109, %110 : vector<11x128xf32>
    %c44 = arith.constant 44 : index
    %c0_84 = arith.constant 0 : index
    %112 = vector.load %arg16[%c44, %c0_84] : memref<528x128xf32, #tpu.memory_space<vmem>>, vector<11x128xf32>
    tpu.vector_store %arg16[%c44, %c0_84], %111 {strides = array<i32>} : memref<528x128xf32, #tpu.memory_space<vmem>>, vector<11x128xf32>,
    %c0_85 = arith.constant 0 : index
    %c10_86 = arith.constant 10 : index
    %c0_87 = arith.constant 0 : index
    %c0_88 = arith.constant 0 : index
    %113 = vector.load %arg15[%c0_85, %c10_86, %c0_87, %c0_88] : memref<8x12x12x128xf32, #tpu.memory_space<vmem>>, vector<1x1x12x128xf32>
    %114 = vector.shape_cast %113 : vector<1x1x12x128xf32> to vector<12x128xf32>
    %c0_89 = arith.constant 0 : index
    %c11_90 = arith.constant 11 : index
    %c0_91 = arith.constant 0 : index
    %c0_92 = arith.constant 0 : index
    %115 = vector.load %arg15[%c0_89, %c11_90, %c0_91, %c0_92] : memref<8x12x12x128xf32, #tpu.memory_space<vmem>>, vector<1x1x12x128xf32>
    %116 = vector.shape_cast %115 : vector<1x1x12x128xf32> to vector<12x128xf32>
    %117 = arith.maximumf %114, %116 : vector<12x128xf32>
    %118 = vector.extract_strided_slice %117 {offsets = [0, 0], sizes = [11, 128], strides = [1, 1]} : vector<12x128xf32> to vector<11x128xf32>
    %119 = vector.extract_strided_slice %117 {offsets = [1, 0], sizes = [11, 128], strides = [1, 1]} : vector<12x128xf32> to vector<11x128xf32>
    %120 = arith.maximumf %118, %119 : vector<11x128xf32>
    %c55 = arith.constant 55 : index
    %c0_93 = arith.constant 0 : index
    %121 = vector.load %arg16[%c55, %c0_93] : memref<528x128xf32, #tpu.memory_space<vmem>>, vector<11x128xf32>
    tpu.vector_store %arg16[%c55, %c0_93], %120 {strides = array<i32>} : memref<528x128xf32, #tpu.memory_space<vmem>>, vector<11x128xf32>,
    %c1_94 = arith.constant 1 : index
    %c0_95 = arith.constant 0 : index
    %c0_96 = arith.constant 0 : index
    %c0_97 = arith.constant 0 : index
    %122 = vector.load %arg15[%c1_94, %c0_95, %c0_96, %c0_97] : memref<8x12x12x128xf32, #tpu.memory_space<vmem>>, vector<1x1x12x128xf32>
    %123 = vector.shape_cast %122 : vector<1x1x12x128xf32> to vector<12x128xf32>
    %c1_98 = arith.constant 1 : index
    %c1_99 = arith.constant 1 : index
    %c0_100 = arith.constant 0 : index
    %c0_101 = arith.constant 0 : index
    %124 = vector.load %arg15[%c1_98, %c1_99, %c0_100, %c0_101] : memref<8x12x12x128xf32, #tpu.memory_space<vmem>>, vector<1x1x12x128xf32>
    %125 = vector.shape_cast %124 : vector<1x1x12x128xf32> to vector<12x128xf32>
    %126 = arith.maximumf %123, %125 : vector<12x128xf32>
    %127 = vector.extract_strided_slice %126 {offsets = [0, 0], sizes = [11, 128], strides = [1, 1]} : vector<12x128xf32> to vector<11x128xf32>
    %128 = vector.extract_strided_slice %126 {offsets = [1, 0], sizes = [11, 128], strides = [1, 1]} : vector<12x128xf32> to vector<11x128xf32>
    %129 = arith.maximumf %127, %128 : vector<11x128xf32>
    %c66 = arith.constant 66 : index
    %c0_102 = arith.constant 0 : index
    %130 = vector.load %arg16[%c66, %c0_102] : memref<528x128xf32, #tpu.memory_space<vmem>>, vector<11x128xf32>
    tpu.vector_store %arg16[%c66, %c0_102], %129 {strides = array<i32>} : memref<528x128xf32, #tpu.memory_space<vmem>>, vector<11x128xf32>,
    %c1_103 = arith.constant 1 : index
    %c2_104 = arith.constant 2 : index
    %c0_105 = arith.constant 0 : index
    %c0_106 = arith.constant 0 : index
    %131 = vector.load %arg15[%c1_103, %c2_104, %c0_105, %c0_106] : memref<8x12x12x128xf32, #tpu.memory_space<vmem>>, vector<1x1x12x128xf32>
    %132 = vector.shape_cast %131 : vector<1x1x12x128xf32> to vector<12x128xf32>
    %c1_107 = arith.constant 1 : index
    %c3_108 = arith.constant 3 : index
    %c0_109 = arith.constant 0 : index
    %c0_110 = arith.constant 0 : index
    %133 = vector.load %arg15[%c1_107, %c3_108, %c0_109, %c0_110] : memref<8x12x12x128xf32, #tpu.memory_space<vmem>>, vector<1x1x12x128xf32>
    %134 = vector.shape_cast %133 : vector<1x1x12x128xf32> to vector<12x128xf32>
    %135 = arith.maximumf %132, %134 : vector<12x128xf32>
    %136 = vector.extract_strided_slice %135 {offsets = [0, 0], sizes = [11, 128], strides = [1, 1]} : vector<12x128xf32> to vector<11x128xf32>
    %137 = vector.extract_strided_slice %135 {offsets = [1, 0], sizes = [11, 128], strides = [1, 1]} : vector<12x128xf32> to vector<11x128xf32>
    %138 = arith.maximumf %136, %137 : vector<11x128xf32>
    %c77 = arith.constant 77 : index
    %c0_111 = arith.constant 0 : index
    %139 = vector.load %arg16[%c77, %c0_111] : memref<528x128xf32, #tpu.memory_space<vmem>>, vector<11x128xf32>
    tpu.vector_store %arg16[%c77, %c0_111], %138 {strides = array<i32>} : memref<528x128xf32, #tpu.memory_space<vmem>>, vector<11x128xf32>,
    %c1_112 = arith.constant 1 : index
    %c4_113 = arith.constant 4 : index
    %c0_114 = arith.constant 0 : index
    %c0_115 = arith.constant 0 : index
    %140 = vector.load %arg15[%c1_112, %c4_113, %c0_114, %c0_115] : memref<8x12x12x128xf32, #tpu.memory_space<vmem>>, vector<1x1x12x128xf32>
    %141 = vector.shape_cast %140 : vector<1x1x12x128xf32> to vector<12x128xf32>
    %c1_116 = arith.constant 1 : index
    %c5_117 = arith.constant 5 : index
    %c0_118 = arith.constant 0 : index
    %c0_119 = arith.constant 0 : index
    %142 = vector.load %arg15[%c1_116, %c5_117, %c0_118, %c0_119] : memref<8x12x12x128xf32, #tpu.memory_space<vmem>>, vector<1x1x12x128xf32>
    %143 = vector.shape_cast %142 : vector<1x1x12x128xf32> to vector<12x128xf32>
    %144 = arith.maximumf %141, %143 : vector<12x128xf32>
    %145 = vector.extract_strided_slice %144 {offsets = [0, 0], sizes = [11, 128], strides = [1, 1]} : vector<12x128xf32> to vector<11x128xf32>
    %146 = vector.extract_strided_slice %144 {offsets = [1, 0], sizes = [11, 128], strides = [1, 1]} : vector<12x128xf32> to vector<11x128xf32>
    %147 = arith.maximumf %145, %146 : vector<11x128xf32>
    %c88 = arith.constant 88 : index
    %c0_120 = arith.constant 0 : index
    %148 = vector.load %arg16[%c88, %c0_120] : memref<528x128xf32, #tpu.memory_space<vmem>>, vector<11x128xf32>
    tpu.vector_store %arg16[%c88, %c0_120], %147 {strides = array<i32>} : memref<528x128xf32, #tpu.memory_space<vmem>>, vector<11x128xf32>,
    %c1_121 = arith.constant 1 : index
    %c6_122 = arith.constant 6 : index
    %c0_123 = arith.constant 0 : index
    %c0_124 = arith.constant 0 : index
    %149 = vector.load %arg15[%c1_121, %c6_122, %c0_123, %c0_124] : memref<8x12x12x128xf32, #tpu.memory_space<vmem>>, vector<1x1x12x128xf32>
    %150 = vector.shape_cast %149 : vector<1x1x12x128xf32> to vector<12x128xf32>
    %c1_125 = arith.constant 1 : index
    %c7_126 = arith.constant 7 : index
    %c0_127 = arith.constant 0 : index
    %c0_128 = arith.constant 0 : index
    %151 = vector.load %arg15[%c1_125, %c7_126, %c0_127, %c0_128] : memref<8x12x12x128xf32, #tpu.memory_space<vmem>>, vector<1x1x12x128xf32>
    %152 = vector.shape_cast %151 : vector<1x1x12x128xf32> to vector<12x128xf32>
    %153 = arith.maximumf %150, %152 : vector<12x128xf32>
    %154 = vector.extract_strided_slice %153 {offsets = [0, 0], sizes = [11, 128], strides = [1, 1]} : vector<12x128xf32> to vector<11x128xf32>
    %155 = vector.extract_strided_slice %153 {offsets = [1, 0], sizes = [11, 128], strides = [1, 1]} : vector<12x128xf32> to vector<11x128xf32>
    %156 = arith.maximumf %154, %155 : vector<11x128xf32>
    %c99 = arith.constant 99 : index
    %c0_129 = arith.constant 0 : index
    %157 = vector.load %arg16[%c99, %c0_129] : memref<528x128xf32, #tpu.memory_space<vmem>>, vector<11x128xf32>
    tpu.vector_store %arg16[%c99, %c0_129], %156 {strides = array<i32>} : memref<528x128xf32, #tpu.memory_space<vmem>>, vector<11x128xf32>,
    %c1_130 = arith.constant 1 : index
    %c8_131 = arith.constant 8 : index
    %c0_132 = arith.constant 0 : index
    %c0_133 = arith.constant 0 : index
    %158 = vector.load %arg15[%c1_130, %c8_131, %c0_132, %c0_133] : memref<8x12x12x128xf32, #tpu.memory_space<vmem>>, vector<1x1x12x128xf32>
    %159 = vector.shape_cast %158 : vector<1x1x12x128xf32> to vector<12x128xf32>
    %c1_134 = arith.constant 1 : index
    %c9_135 = arith.constant 9 : index
    %c0_136 = arith.constant 0 : index
    %c0_137 = arith.constant 0 : index
    %160 = vector.load %arg15[%c1_134, %c9_135, %c0_136, %c0_137] : memref<8x12x12x128xf32, #tpu.memory_space<vmem>>, vector<1x1x12x128xf32>
    %161 = vector.shape_cast %160 : vector<1x1x12x128xf32> to vector<12x128xf32>
    %162 = arith.maximumf %159, %161 : vector<12x128xf32>
    %163 = vector.extract_strided_slice %162 {offsets = [0, 0], sizes = [11, 128], strides = [1, 1]} : vector<12x128xf32> to vector<11x128xf32>
    %164 = vector.extract_strided_slice %162 {offsets = [1, 0], sizes = [11, 128], strides = [1, 1]} : vector<12x128xf32> to vector<11x128xf32>
    %165 = arith.maximumf %163, %164 : vector<11x128xf32>
    %c110 = arith.constant 110 : index
    %c0_138 = arith.constant 0 : index
    %166 = vector.load %arg16[%c110, %c0_138] : memref<528x128xf32, #tpu.memory_space<vmem>>, vector<11x128xf32>
    tpu.vector_store %arg16[%c110, %c0_138], %165 {strides = array<i32>} : memref<528x128xf32, #tpu.memory_space<vmem>>, vector<11x128xf32>,
    %c1_139 = arith.constant 1 : index
    %c10_140 = arith.constant 10 : index
    %c0_141 = arith.constant 0 : index
    %c0_142 = arith.constant 0 : index
    %167 = vector.load %arg15[%c1_139, %c10_140, %c0_141, %c0_142] : memref<8x12x12x128xf32, #tpu.memory_space<vmem>>, vector<1x1x12x128xf32>
    %168 = vector.shape_cast %167 : vector<1x1x12x128xf32> to vector<12x128xf32>
    %c1_143 = arith.constant 1 : index
    %c11_144 = arith.constant 11 : index
    %c0_145 = arith.constant 0 : index
    %c0_146 = arith.constant 0 : index
    %169 = vector.load %arg15[%c1_143, %c11_144, %c0_145, %c0_146] : memref<8x12x12x128xf32, #tpu.memory_space<vmem>>, vector<1x1x12x128xf32>
    %170 = vector.shape_cast %169 : vector<1x1x12x128xf32> to vector<12x128xf32>
    %171 = arith.maximumf %168, %170 : vector<12x128xf32>
    %172 = vector.extract_strided_slice %171 {offsets = [0, 0], sizes = [11, 128], strides = [1, 1]} : vector<12x128xf32> to vector<11x128xf32>
    %173 = vector.extract_strided_slice %171 {offsets = [1, 0], sizes = [11, 128], strides = [1, 1]} : vector<12x128xf32> to vector<11x128xf32>
    %174 = arith.maximumf %172, %173 : vector<11x128xf32>
    %c121 = arith.constant 121 : index
    %c0_147 = arith.constant 0 : index
    %175 = vector.load %arg16[%c121, %c0_147] : memref<528x128xf32, #tpu.memory_space<vmem>>, vector<11x128xf32>
    tpu.vector_store %arg16[%c121, %c0_147], %174 {strides = array<i32>} : memref<528x128xf32, #tpu.memory_space<vmem>>, vector<11x128xf32>,
    %c2_148 = arith.constant 2 : index
    %c0_149 = arith.constant 0 : index
    %c0_150 = arith.constant 0 : index
    %c0_151 = arith.constant 0 : index
    %176 = vector.load %arg15[%c2_148, %c0_149, %c0_150, %c0_151] : memref<8x12x12x128xf32, #tpu.memory_space<vmem>>, vector<1x1x12x128xf32>
    %177 = vector.shape_cast %176 : vector<1x1x12x128xf32> to vector<12x128xf32>
    %c2_152 = arith.constant 2 : index
    %c1_153 = arith.constant 1 : index
    %c0_154 = arith.constant 0 : index
    %c0_155 = arith.constant 0 : index
    %178 = vector.load %arg15[%c2_152, %c1_153, %c0_154, %c0_155] : memref<8x12x12x128xf32, #tpu.memory_space<vmem>>, vector<1x1x12x128xf32>
    %179 = vector.shape_cast %178 : vector<1x1x12x128xf32> to vector<12x128xf32>
    %180 = arith.maximumf %177, %179 : vector<12x128xf32>
    %181 = vector.extract_strided_slice %180 {offsets = [0, 0], sizes = [11, 128], strides = [1, 1]} : vector<12x128xf32> to vector<11x128xf32>
    %182 = vector.extract_strided_slice %180 {offsets = [1, 0], sizes = [11, 128], strides = [1, 1]} : vector<12x128xf32> to vector<11x128xf32>
    %183 = arith.maximumf %181, %182 : vector<11x128xf32>
    %c132 = arith.constant 132 : index
    %c0_156 = arith.constant 0 : index
    %184 = vector.load %arg16[%c132, %c0_156] : memref<528x128xf32, #tpu.memory_space<vmem>>, vector<11x128xf32>
    tpu.vector_store %arg16[%c132, %c0_156], %183 {strides = array<i32>} : memref<528x128xf32, #tpu.memory_space<vmem>>, vector<11x128xf32>,
    %c2_157 = arith.constant 2 : index
    %c2_158 = arith.constant 2 : index
    %c0_159 = arith.constant 0 : index
    %c0_160 = arith.constant 0 : index
    %185 = vector.load %arg15[%c2_157, %c2_158, %c0_159, %c0_160] : memref<8x12x12x128xf32, #tpu.memory_space<vmem>>, vector<1x1x12x128xf32>
    %186 = vector.shape_cast %185 : vector<1x1x12x128xf32> to vector<12x128xf32>
    %c2_161 = arith.constant 2 : index
    %c3_162 = arith.constant 3 : index
    %c0_163 = arith.constant 0 : index
    %c0_164 = arith.constant 0 : index
    %187 = vector.load %arg15[%c2_161, %c3_162, %c0_163, %c0_164] : memref<8x12x12x128xf32, #tpu.memory_space<vmem>>, vector<1x1x12x128xf32>
    %188 = vector.shape_cast %187 : vector<1x1x12x128xf32> to vector<12x128xf32>
    %189 = arith.maximumf %186, %188 : vector<12x128xf32>
    %190 = vector.extract_strided_slice %189 {offsets = [0, 0], sizes = [11, 128], strides = [1, 1]} : vector<12x128xf32> to vector<11x128xf32>
    %191 = vector.extract_strided_slice %189 {offsets = [1, 0], sizes = [11, 128], strides = [1, 1]} : vector<12x128xf32> to vector<11x128xf32>
    %192 = arith.maximumf %190, %191 : vector<11x128xf32>
    %c143 = arith.constant 143 : index
    %c0_165 = arith.constant 0 : index
    %193 = vector.load %arg16[%c143, %c0_165] : memref<528x128xf32, #tpu.memory_space<vmem>>, vector<11x128xf32>
    tpu.vector_store %arg16[%c143, %c0_165], %192 {strides = array<i32>} : memref<528x128xf32, #tpu.memory_space<vmem>>, vector<11x128xf32>,
    %c2_166 = arith.constant 2 : index
    %c4_167 = arith.constant 4 : index
    %c0_168 = arith.constant 0 : index
    %c0_169 = arith.constant 0 : index
    %194 = vector.load %arg15[%c2_166, %c4_167, %c0_168, %c0_169] : memref<8x12x12x128xf32, #tpu.memory_space<vmem>>, vector<1x1x12x128xf32>
    %195 = vector.shape_cast %194 : vector<1x1x12x128xf32> to vector<12x128xf32>
    %c2_170 = arith.constant 2 : index
    %c5_171 = arith.constant 5 : index
    %c0_172 = arith.constant 0 : index
    %c0_173 = arith.constant 0 : index
    %196 = vector.load %arg15[%c2_170, %c5_171, %c0_172, %c0_173] : memref<8x12x12x128xf32, #tpu.memory_space<vmem>>, vector<1x1x12x128xf32>
    %197 = vector.shape_cast %196 : vector<1x1x12x128xf32> to vector<12x128xf32>
    %198 = arith.maximumf %195, %197 : vector<12x128xf32>
    %199 = vector.extract_strided_slice %198 {offsets = [0, 0], sizes = [11, 128], strides = [1, 1]} : vector<12x128xf32> to vector<11x128xf32>
    %200 = vector.extract_strided_slice %198 {offsets = [1, 0], sizes = [11, 128], strides = [1, 1]} : vector<12x128xf32> to vector<11x128xf32>
    %201 = arith.maximumf %199, %200 : vector<11x128xf32>
    %c154 = arith.constant 154 : index
    %c0_174 = arith.constant 0 : index
    %202 = vector.load %arg16[%c154, %c0_174] : memref<528x128xf32, #tpu.memory_space<vmem>>, vector<11x128xf32>
    tpu.vector_store %arg16[%c154, %c0_174], %201 {strides = array<i32>} : memref<528x128xf32, #tpu.memory_space<vmem>>, vector<11x128xf32>,
    %c2_175 = arith.constant 2 : index
    %c6_176 = arith.constant 6 : index
    %c0_177 = arith.constant 0 : index
    %c0_178 = arith.constant 0 : index
    %203 = vector.load %arg15[%c2_175, %c6_176, %c0_177, %c0_178] : memref<8x12x12x128xf32, #tpu.memory_space<vmem>>, vector<1x1x12x128xf32>
    %204 = vector.shape_cast %203 : vector<1x1x12x128xf32> to vector<12x128xf32>
    %c2_179 = arith.constant 2 : index
    %c7_180 = arith.constant 7 : index
    %c0_181 = arith.constant 0 : index
    %c0_182 = arith.constant 0 : index
    %205 = vector.load %arg15[%c2_179, %c7_180, %c0_181, %c0_182] : memref<8x12x12x128xf32, #tpu.memory_space<vmem>>, vector<1x1x12x128xf32>
    %206 = vector.shape_cast %205 : vector<1x1x12x128xf32> to vector<12x128xf32>
    %207 = arith.maximumf %204, %206 : vector<12x128xf32>
    %208 = vector.extract_strided_slice %207 {offsets = [0, 0], sizes = [11, 128], strides = [1, 1]} : vector<12x128xf32> to vector<11x128xf32>
    %209 = vector.extract_strided_slice %207 {offsets = [1, 0], sizes = [11, 128], strides = [1, 1]} : vector<12x128xf32> to vector<11x128xf32>
    %210 = arith.maximumf %208, %209 : vector<11x128xf32>
    %c165 = arith.constant 165 : index
    %c0_183 = arith.constant 0 : index
    %211 = vector.load %arg16[%c165, %c0_183] : memref<528x128xf32, #tpu.memory_space<vmem>>, vector<11x128xf32>
    tpu.vector_store %arg16[%c165, %c0_183], %210 {strides = array<i32>} : memref<528x128xf32, #tpu.memory_space<vmem>>, vector<11x128xf32>,
    %c2_184 = arith.constant 2 : index
    %c8_185 = arith.constant 8 : index
    %c0_186 = arith.constant 0 : index
    %c0_187 = arith.constant 0 : index
    %212 = vector.load %arg15[%c2_184, %c8_185, %c0_186, %c0_187] : memref<8x12x12x128xf32, #tpu.memory_space<vmem>>, vector<1x1x12x128xf32>
    %213 = vector.shape_cast %212 : vector<1x1x12x128xf32> to vector<12x128xf32>
    %c2_188 = arith.constant 2 : index
    %c9_189 = arith.constant 9 : index
    %c0_190 = arith.constant 0 : index
    %c0_191 = arith.constant 0 : index
    %214 = vector.load %arg15[%c2_188, %c9_189, %c0_190, %c0_191] : memref<8x12x12x128xf32, #tpu.memory_space<vmem>>, vector<1x1x12x128xf32>
    %215 = vector.shape_cast %214 : vector<1x1x12x128xf32> to vector<12x128xf32>
    %216 = arith.maximumf %213, %215 : vector<12x128xf32>
    %217 = vector.extract_strided_slice %216 {offsets = [0, 0], sizes = [11, 128], strides = [1, 1]} : vector<12x128xf32> to vector<11x128xf32>
    %218 = vector.extract_strided_slice %216 {offsets = [1, 0], sizes = [11, 128], strides = [1, 1]} : vector<12x128xf32> to vector<11x128xf32>
    %219 = arith.maximumf %217, %218 : vector<11x128xf32>
    %c176 = arith.constant 176 : index
    %c0_192 = arith.constant 0 : index
    %220 = vector.load %arg16[%c176, %c0_192] : memref<528x128xf32, #tpu.memory_space<vmem>>, vector<11x128xf32>
    tpu.vector_store %arg16[%c176, %c0_192], %219 {strides = array<i32>} : memref<528x128xf32, #tpu.memory_space<vmem>>, vector<11x128xf32>,
    %c2_193 = arith.constant 2 : index
    %c10_194 = arith.constant 10 : index
    %c0_195 = arith.constant 0 : index
    %c0_196 = arith.constant 0 : index
    %221 = vector.load %arg15[%c2_193, %c10_194, %c0_195, %c0_196] : memref<8x12x12x128xf32, #tpu.memory_space<vmem>>, vector<1x1x12x128xf32>
    %222 = vector.shape_cast %221 : vector<1x1x12x128xf32> to vector<12x128xf32>
    %c2_197 = arith.constant 2 : index
    %c11_198 = arith.constant 11 : index
    %c0_199 = arith.constant 0 : index
    %c0_200 = arith.constant 0 : index
    %223 = vector.load %arg15[%c2_197, %c11_198, %c0_199, %c0_200] : memref<8x12x12x128xf32, #tpu.memory_space<vmem>>, vector<1x1x12x128xf32>
    %224 = vector.shape_cast %223 : vector<1x1x12x128xf32> to vector<12x128xf32>
    %225 = arith.maximumf %222, %224 : vector<12x128xf32>
    %226 = vector.extract_strided_slice %225 {offsets = [0, 0], sizes = [11, 128], strides = [1, 1]} : vector<12x128xf32> to vector<11x128xf32>
    %227 = vector.extract_strided_slice %225 {offsets = [1, 0], sizes = [11, 128], strides = [1, 1]} : vector<12x128xf32> to vector<11x128xf32>
    %228 = arith.maximumf %226, %227 : vector<11x128xf32>
    %c187 = arith.constant 187 : index
    %c0_201 = arith.constant 0 : index
    %229 = vector.load %arg16[%c187, %c0_201] : memref<528x128xf32, #tpu.memory_space<vmem>>, vector<11x128xf32>
    tpu.vector_store %arg16[%c187, %c0_201], %228 {strides = array<i32>} : memref<528x128xf32, #tpu.memory_space<vmem>>, vector<11x128xf32>,
    %c3_202 = arith.constant 3 : index
    %c0_203 = arith.constant 0 : index
    %c0_204 = arith.constant 0 : index
    %c0_205 = arith.constant 0 : index
    %230 = vector.load %arg15[%c3_202, %c0_203, %c0_204, %c0_205] : memref<8x12x12x128xf32, #tpu.memory_space<vmem>>, vector<1x1x12x128xf32>
    %231 = vector.shape_cast %230 : vector<1x1x12x128xf32> to vector<12x128xf32>
    %c3_206 = arith.constant 3 : index
    %c1_207 = arith.constant 1 : index
    %c0_208 = arith.constant 0 : index
    %c0_209 = arith.constant 0 : index
    %232 = vector.load %arg15[%c3_206, %c1_207, %c0_208, %c0_209] : memref<8x12x12x128xf32, #tpu.memory_space<vmem>>, vector<1x1x12x128xf32>
    %233 = vector.shape_cast %232 : vector<1x1x12x128xf32> to vector<12x128xf32>
    %234 = arith.maximumf %231, %233 : vector<12x128xf32>
    %235 = vector.extract_strided_slice %234 {offsets = [0, 0], sizes = [11, 128], strides = [1, 1]} : vector<12x128xf32> to vector<11x128xf32>
    %236 = vector.extract_strided_slice %234 {offsets = [1, 0], sizes = [11, 128], strides = [1, 1]} : vector<12x128xf32> to vector<11x128xf32>
    %237 = arith.maximumf %235, %236 : vector<11x128xf32>
    %c198 = arith.constant 198 : index
    %c0_210 = arith.constant 0 : index
    %238 = vector.load %arg16[%c198, %c0_210] : memref<528x128xf32, #tpu.memory_space<vmem>>, vector<11x128xf32>
    tpu.vector_store %arg16[%c198, %c0_210], %237 {strides = array<i32>} : memref<528x128xf32, #tpu.memory_space<vmem>>, vector<11x128xf32>,
    %c3_211 = arith.constant 3 : index
    %c2_212 = arith.constant 2 : index
    %c0_213 = arith.constant 0 : index
    %c0_214 = arith.constant 0 : index
    %239 = vector.load %arg15[%c3_211, %c2_212, %c0_213, %c0_214] : memref<8x12x12x128xf32, #tpu.memory_space<vmem>>, vector<1x1x12x128xf32>
    %240 = vector.shape_cast %239 : vector<1x1x12x128xf32> to vector<12x128xf32>
    %c3_215 = arith.constant 3 : index
    %c3_216 = arith.constant 3 : index
    %c0_217 = arith.constant 0 : index
    %c0_218 = arith.constant 0 : index
    %241 = vector.load %arg15[%c3_215, %c3_216, %c0_217, %c0_218] : memref<8x12x12x128xf32, #tpu.memory_space<vmem>>, vector<1x1x12x128xf32>
    %242 = vector.shape_cast %241 : vector<1x1x12x128xf32> to vector<12x128xf32>
    %243 = arith.maximumf %240, %242 : vector<12x128xf32>
    %244 = vector.extract_strided_slice %243 {offsets = [0, 0], sizes = [11, 128], strides = [1, 1]} : vector<12x128xf32> to vector<11x128xf32>
    %245 = vector.extract_strided_slice %243 {offsets = [1, 0], sizes = [11, 128], strides = [1, 1]} : vector<12x128xf32> to vector<11x128xf32>
    %246 = arith.maximumf %244, %245 : vector<11x128xf32>
    %c209 = arith.constant 209 : index
    %c0_219 = arith.constant 0 : index
    %247 = vector.load %arg16[%c209, %c0_219] : memref<528x128xf32, #tpu.memory_space<vmem>>, vector<11x128xf32>
    tpu.vector_store %arg16[%c209, %c0_219], %246 {strides = array<i32>} : memref<528x128xf32, #tpu.memory_space<vmem>>, vector<11x128xf32>,
    %c3_220 = arith.constant 3 : index
    %c4_221 = arith.constant 4 : index
    %c0_222 = arith.constant 0 : index
    %c0_223 = arith.constant 0 : index
    %248 = vector.load %arg15[%c3_220, %c4_221, %c0_222, %c0_223] : memref<8x12x12x128xf32, #tpu.memory_space<vmem>>, vector<1x1x12x128xf32>
    %249 = vector.shape_cast %248 : vector<1x1x12x128xf32> to vector<12x128xf32>
    %c3_224 = arith.constant 3 : index
    %c5_225 = arith.constant 5 : index
    %c0_226 = arith.constant 0 : index
    %c0_227 = arith.constant 0 : index
    %250 = vector.load %arg15[%c3_224, %c5_225, %c0_226, %c0_227] : memref<8x12x12x128xf32, #tpu.memory_space<vmem>>, vector<1x1x12x128xf32>
    %251 = vector.shape_cast %250 : vector<1x1x12x128xf32> to vector<12x128xf32>
    %252 = arith.maximumf %249, %251 : vector<12x128xf32>
    %253 = vector.extract_strided_slice %252 {offsets = [0, 0], sizes = [11, 128], strides = [1, 1]} : vector<12x128xf32> to vector<11x128xf32>
    %254 = vector.extract_strided_slice %252 {offsets = [1, 0], sizes = [11, 128], strides = [1, 1]} : vector<12x128xf32> to vector<11x128xf32>
    %255 = arith.maximumf %253, %254 : vector<11x128xf32>
    %c220 = arith.constant 220 : index
    %c0_228 = arith.constant 0 : index
    %256 = vector.load %arg16[%c220, %c0_228] : memref<528x128xf32, #tpu.memory_space<vmem>>, vector<11x128xf32>
    tpu.vector_store %arg16[%c220, %c0_228], %255 {strides = array<i32>} : memref<528x128xf32, #tpu.memory_space<vmem>>, vector<11x128xf32>,
    %c3_229 = arith.constant 3 : index
    %c6_230 = arith.constant 6 : index
    %c0_231 = arith.constant 0 : index
    %c0_232 = arith.constant 0 : index
    %257 = vector.load %arg15[%c3_229, %c6_230, %c0_231, %c0_232] : memref<8x12x12x128xf32, #tpu.memory_space<vmem>>, vector<1x1x12x128xf32>
    %258 = vector.shape_cast %257 : vector<1x1x12x128xf32> to vector<12x128xf32>
    %c3_233 = arith.constant 3 : index
    %c7_234 = arith.constant 7 : index
    %c0_235 = arith.constant 0 : index
    %c0_236 = arith.constant 0 : index
    %259 = vector.load %arg15[%c3_233, %c7_234, %c0_235, %c0_236] : memref<8x12x12x128xf32, #tpu.memory_space<vmem>>, vector<1x1x12x128xf32>
    %260 = vector.shape_cast %259 : vector<1x1x12x128xf32> to vector<12x128xf32>
    %261 = arith.maximumf %258, %260 : vector<12x128xf32>
    %262 = vector.extract_strided_slice %261 {offsets = [0, 0], sizes = [11, 128], strides = [1, 1]} : vector<12x128xf32> to vector<11x128xf32>
    %263 = vector.extract_strided_slice %261 {offsets = [1, 0], sizes = [11, 128], strides = [1, 1]} : vector<12x128xf32> to vector<11x128xf32>
    %264 = arith.maximumf %262, %263 : vector<11x128xf32>
    %c231 = arith.constant 231 : index
    %c0_237 = arith.constant 0 : index
    %265 = vector.load %arg16[%c231, %c0_237] : memref<528x128xf32, #tpu.memory_space<vmem>>, vector<11x128xf32>
    tpu.vector_store %arg16[%c231, %c0_237], %264 {strides = array<i32>} : memref<528x128xf32, #tpu.memory_space<vmem>>, vector<11x128xf32>,
    %c3_238 = arith.constant 3 : index
    %c8_239 = arith.constant 8 : index
    %c0_240 = arith.constant 0 : index
    %c0_241 = arith.constant 0 : index
    %266 = vector.load %arg15[%c3_238, %c8_239, %c0_240, %c0_241] : memref<8x12x12x128xf32, #tpu.memory_space<vmem>>, vector<1x1x12x128xf32>
    %267 = vector.shape_cast %266 : vector<1x1x12x128xf32> to vector<12x128xf32>
    %c3_242 = arith.constant 3 : index
    %c9_243 = arith.constant 9 : index
    %c0_244 = arith.constant 0 : index
    %c0_245 = arith.constant 0 : index
    %268 = vector.load %arg15[%c3_242, %c9_243, %c0_244, %c0_245] : memref<8x12x12x128xf32, #tpu.memory_space<vmem>>, vector<1x1x12x128xf32>
    %269 = vector.shape_cast %268 : vector<1x1x12x128xf32> to vector<12x128xf32>
    %270 = arith.maximumf %267, %269 : vector<12x128xf32>
    %271 = vector.extract_strided_slice %270 {offsets = [0, 0], sizes = [11, 128], strides = [1, 1]} : vector<12x128xf32> to vector<11x128xf32>
    %272 = vector.extract_strided_slice %270 {offsets = [1, 0], sizes = [11, 128], strides = [1, 1]} : vector<12x128xf32> to vector<11x128xf32>
    %273 = arith.maximumf %271, %272 : vector<11x128xf32>
    %c242 = arith.constant 242 : index
    %c0_246 = arith.constant 0 : index
    %274 = vector.load %arg16[%c242, %c0_246] : memref<528x128xf32, #tpu.memory_space<vmem>>, vector<11x128xf32>
    tpu.vector_store %arg16[%c242, %c0_246], %273 {strides = array<i32>} : memref<528x128xf32, #tpu.memory_space<vmem>>, vector<11x128xf32>,
    %c3_247 = arith.constant 3 : index
    %c10_248 = arith.constant 10 : index
    %c0_249 = arith.constant 0 : index
    %c0_250 = arith.constant 0 : index
    %275 = vector.load %arg15[%c3_247, %c10_248, %c0_249, %c0_250] : memref<8x12x12x128xf32, #tpu.memory_space<vmem>>, vector<1x1x12x128xf32>
    %276 = vector.shape_cast %275 : vector<1x1x12x128xf32> to vector<12x128xf32>
    %c3_251 = arith.constant 3 : index
    %c11_252 = arith.constant 11 : index
    %c0_253 = arith.constant 0 : index
    %c0_254 = arith.constant 0 : index
    %277 = vector.load %arg15[%c3_251, %c11_252, %c0_253, %c0_254] : memref<8x12x12x128xf32, #tpu.memory_space<vmem>>, vector<1x1x12x128xf32>
    %278 = vector.shape_cast %277 : vector<1x1x12x128xf32> to vector<12x128xf32>
    %279 = arith.maximumf %276, %278 : vector<12x128xf32>
    %280 = vector.extract_strided_slice %279 {offsets = [0, 0], sizes = [11, 128], strides = [1, 1]} : vector<12x128xf32> to vector<11x128xf32>
    %281 = vector.extract_strided_slice %279 {offsets = [1, 0], sizes = [11, 128], strides = [1, 1]} : vector<12x128xf32> to vector<11x128xf32>
    %282 = arith.maximumf %280, %281 : vector<11x128xf32>
    %c253 = arith.constant 253 : index
    %c0_255 = arith.constant 0 : index
    %283 = vector.load %arg16[%c253, %c0_255] : memref<528x128xf32, #tpu.memory_space<vmem>>, vector<11x128xf32>
    tpu.vector_store %arg16[%c253, %c0_255], %282 {strides = array<i32>} : memref<528x128xf32, #tpu.memory_space<vmem>>, vector<11x128xf32>,
    %c4_256 = arith.constant 4 : index
    %c0_257 = arith.constant 0 : index
    %c0_258 = arith.constant 0 : index
    %c0_259 = arith.constant 0 : index
    %284 = vector.load %arg15[%c4_256, %c0_257, %c0_258, %c0_259] : memref<8x12x12x128xf32, #tpu.memory_space<vmem>>, vector<1x1x12x128xf32>
    %285 = vector.shape_cast %284 : vector<1x1x12x128xf32> to vector<12x128xf32>
    %c4_260 = arith.constant 4 : index
    %c1_261 = arith.constant 1 : index
    %c0_262 = arith.constant 0 : index
    %c0_263 = arith.constant 0 : index
    %286 = vector.load %arg15[%c4_260, %c1_261, %c0_262, %c0_263] : memref<8x12x12x128xf32, #tpu.memory_space<vmem>>, vector<1x1x12x128xf32>
    %287 = vector.shape_cast %286 : vector<1x1x12x128xf32> to vector<12x128xf32>
    %288 = arith.maximumf %285, %287 : vector<12x128xf32>
    %289 = vector.extract_strided_slice %288 {offsets = [0, 0], sizes = [11, 128], strides = [1, 1]} : vector<12x128xf32> to vector<11x128xf32>
    %290 = vector.extract_strided_slice %288 {offsets = [1, 0], sizes = [11, 128], strides = [1, 1]} : vector<12x128xf32> to vector<11x128xf32>
    %291 = arith.maximumf %289, %290 : vector<11x128xf32>
    %c264 = arith.constant 264 : index
    %c0_264 = arith.constant 0 : index
    %292 = vector.load %arg16[%c264, %c0_264] : memref<528x128xf32, #tpu.memory_space<vmem>>, vector<11x128xf32>
    tpu.vector_store %arg16[%c264, %c0_264], %291 {strides = array<i32>} : memref<528x128xf32, #tpu.memory_space<vmem>>, vector<11x128xf32>,
    %c4_265 = arith.constant 4 : index
    %c2_266 = arith.constant 2 : index
    %c0_267 = arith.constant 0 : index
    %c0_268 = arith.constant 0 : index
    %293 = vector.load %arg15[%c4_265, %c2_266, %c0_267, %c0_268] : memref<8x12x12x128xf32, #tpu.memory_space<vmem>>, vector<1x1x12x128xf32>
    %294 = vector.shape_cast %293 : vector<1x1x12x128xf32> to vector<12x128xf32>
    %c4_269 = arith.constant 4 : index
    %c3_270 = arith.constant 3 : index
    %c0_271 = arith.constant 0 : index
    %c0_272 = arith.constant 0 : index
    %295 = vector.load %arg15[%c4_269, %c3_270, %c0_271, %c0_272] : memref<8x12x12x128xf32, #tpu.memory_space<vmem>>, vector<1x1x12x128xf32>
    %296 = vector.shape_cast %295 : vector<1x1x12x128xf32> to vector<12x128xf32>
    %297 = arith.maximumf %294, %296 : vector<12x128xf32>
    %298 = vector.extract_strided_slice %297 {offsets = [0, 0], sizes = [11, 128], strides = [1, 1]} : vector<12x128xf32> to vector<11x128xf32>
    %299 = vector.extract_strided_slice %297 {offsets = [1, 0], sizes = [11, 128], strides = [1, 1]} : vector<12x128xf32> to vector<11x128xf32>
    %300 = arith.maximumf %298, %299 : vector<11x128xf32>
    %c275 = arith.constant 275 : index
    %c0_273 = arith.constant 0 : index
    %301 = vector.load %arg16[%c275, %c0_273] : memref<528x128xf32, #tpu.memory_space<vmem>>, vector<11x128xf32>
    tpu.vector_store %arg16[%c275, %c0_273], %300 {strides = array<i32>} : memref<528x128xf32, #tpu.memory_space<vmem>>, vector<11x128xf32>,
    %c4_274 = arith.constant 4 : index
    %c4_275 = arith.constant 4 : index
    %c0_276 = arith.constant 0 : index
    %c0_277 = arith.constant 0 : index
    %302 = vector.load %arg15[%c4_274, %c4_275, %c0_276, %c0_277] : memref<8x12x12x128xf32, #tpu.memory_space<vmem>>, vector<1x1x12x128xf32>
    %303 = vector.shape_cast %302 : vector<1x1x12x128xf32> to vector<12x128xf32>
    %c4_278 = arith.constant 4 : index
    %c5_279 = arith.constant 5 : index
    %c0_280 = arith.constant 0 : index
    %c0_281 = arith.constant 0 : index
    %304 = vector.load %arg15[%c4_278, %c5_279, %c0_280, %c0_281] : memref<8x12x12x128xf32, #tpu.memory_space<vmem>>, vector<1x1x12x128xf32>
    %305 = vector.shape_cast %304 : vector<1x1x12x128xf32> to vector<12x128xf32>
    %306 = arith.maximumf %303, %305 : vector<12x128xf32>
    %307 = vector.extract_strided_slice %306 {offsets = [0, 0], sizes = [11, 128], strides = [1, 1]} : vector<12x128xf32> to vector<11x128xf32>
    %308 = vector.extract_strided_slice %306 {offsets = [1, 0], sizes = [11, 128], strides = [1, 1]} : vector<12x128xf32> to vector<11x128xf32>
    %309 = arith.maximumf %307, %308 : vector<11x128xf32>
    %c286 = arith.constant 286 : index
    %c0_282 = arith.constant 0 : index
    %310 = vector.load %arg16[%c286, %c0_282] : memref<528x128xf32, #tpu.memory_space<vmem>>, vector<11x128xf32>
    tpu.vector_store %arg16[%c286, %c0_282], %309 {strides = array<i32>} : memref<528x128xf32, #tpu.memory_space<vmem>>, vector<11x128xf32>,
    %c4_283 = arith.constant 4 : index
    %c6_284 = arith.constant 6 : index
    %c0_285 = arith.constant 0 : index
    %c0_286 = arith.constant 0 : index
    %311 = vector.load %arg15[%c4_283, %c6_284, %c0_285, %c0_286] : memref<8x12x12x128xf32, #tpu.memory_space<vmem>>, vector<1x1x12x128xf32>
    %312 = vector.shape_cast %311 : vector<1x1x12x128xf32> to vector<12x128xf32>
    %c4_287 = arith.constant 4 : index
    %c7_288 = arith.constant 7 : index
    %c0_289 = arith.constant 0 : index
    %c0_290 = arith.constant 0 : index
    %313 = vector.load %arg15[%c4_287, %c7_288, %c0_289, %c0_290] : memref<8x12x12x128xf32, #tpu.memory_space<vmem>>, vector<1x1x12x128xf32>
    %314 = vector.shape_cast %313 : vector<1x1x12x128xf32> to vector<12x128xf32>
    %315 = arith.maximumf %312, %314 : vector<12x128xf32>
    %316 = vector.extract_strided_slice %315 {offsets = [0, 0], sizes = [11, 128], strides = [1, 1]} : vector<12x128xf32> to vector<11x128xf32>
    %317 = vector.extract_strided_slice %315 {offsets = [1, 0], sizes = [11, 128], strides = [1, 1]} : vector<12x128xf32> to vector<11x128xf32>
    %318 = arith.maximumf %316, %317 : vector<11x128xf32>
    %c297 = arith.constant 297 : index
    %c0_291 = arith.constant 0 : index
    %319 = vector.load %arg16[%c297, %c0_291] : memref<528x128xf32, #tpu.memory_space<vmem>>, vector<11x128xf32>
    tpu.vector_store %arg16[%c297, %c0_291], %318 {strides = array<i32>} : memref<528x128xf32, #tpu.memory_space<vmem>>, vector<11x128xf32>,
    %c4_292 = arith.constant 4 : index
    %c8_293 = arith.constant 8 : index
    %c0_294 = arith.constant 0 : index
    %c0_295 = arith.constant 0 : index
    %320 = vector.load %arg15[%c4_292, %c8_293, %c0_294, %c0_295] : memref<8x12x12x128xf32, #tpu.memory_space<vmem>>, vector<1x1x12x128xf32>
    %321 = vector.shape_cast %320 : vector<1x1x12x128xf32> to vector<12x128xf32>
    %c4_296 = arith.constant 4 : index
    %c9_297 = arith.constant 9 : index
    %c0_298 = arith.constant 0 : index
    %c0_299 = arith.constant 0 : index
    %322 = vector.load %arg15[%c4_296, %c9_297, %c0_298, %c0_299] : memref<8x12x12x128xf32, #tpu.memory_space<vmem>>, vector<1x1x12x128xf32>
    %323 = vector.shape_cast %322 : vector<1x1x12x128xf32> to vector<12x128xf32>
    %324 = arith.maximumf %321, %323 : vector<12x128xf32>
    %325 = vector.extract_strided_slice %324 {offsets = [0, 0], sizes = [11, 128], strides = [1, 1]} : vector<12x128xf32> to vector<11x128xf32>
    %326 = vector.extract_strided_slice %324 {offsets = [1, 0], sizes = [11, 128], strides = [1, 1]} : vector<12x128xf32> to vector<11x128xf32>
    %327 = arith.maximumf %325, %326 : vector<11x128xf32>
    %c308 = arith.constant 308 : index
    %c0_300 = arith.constant 0 : index
    %328 = vector.load %arg16[%c308, %c0_300] : memref<528x128xf32, #tpu.memory_space<vmem>>, vector<11x128xf32>
    tpu.vector_store %arg16[%c308, %c0_300], %327 {strides = array<i32>} : memref<528x128xf32, #tpu.memory_space<vmem>>, vector<11x128xf32>,
    %c4_301 = arith.constant 4 : index
    %c10_302 = arith.constant 10 : index
    %c0_303 = arith.constant 0 : index
    %c0_304 = arith.constant 0 : index
    %329 = vector.load %arg15[%c4_301, %c10_302, %c0_303, %c0_304] : memref<8x12x12x128xf32, #tpu.memory_space<vmem>>, vector<1x1x12x128xf32>
    %330 = vector.shape_cast %329 : vector<1x1x12x128xf32> to vector<12x128xf32>
    %c4_305 = arith.constant 4 : index
    %c11_306 = arith.constant 11 : index
    %c0_307 = arith.constant 0 : index
    %c0_308 = arith.constant 0 : index
    %331 = vector.load %arg15[%c4_305, %c11_306, %c0_307, %c0_308] : memref<8x12x12x128xf32, #tpu.memory_space<vmem>>, vector<1x1x12x128xf32>
    %332 = vector.shape_cast %331 : vector<1x1x12x128xf32> to vector<12x128xf32>
    %333 = arith.maximumf %330, %332 : vector<12x128xf32>
    %334 = vector.extract_strided_slice %333 {offsets = [0, 0], sizes = [11, 128], strides = [1, 1]} : vector<12x128xf32> to vector<11x128xf32>
    %335 = vector.extract_strided_slice %333 {offsets = [1, 0], sizes = [11, 128], strides = [1, 1]} : vector<12x128xf32> to vector<11x128xf32>
    %336 = arith.maximumf %334, %335 : vector<11x128xf32>
    %c319 = arith.constant 319 : index
    %c0_309 = arith.constant 0 : index
    %337 = vector.load %arg16[%c319, %c0_309] : memref<528x128xf32, #tpu.memory_space<vmem>>, vector<11x128xf32>
    tpu.vector_store %arg16[%c319, %c0_309], %336 {strides = array<i32>} : memref<528x128xf32, #tpu.memory_space<vmem>>, vector<11x128xf32>,
    %c5_310 = arith.constant 5 : index
    %c0_311 = arith.constant 0 : index
    %c0_312 = arith.constant 0 : index
    %c0_313 = arith.constant 0 : index
    %338 = vector.load %arg15[%c5_310, %c0_311, %c0_312, %c0_313] : memref<8x12x12x128xf32, #tpu.memory_space<vmem>>, vector<1x1x12x128xf32>
    %339 = vector.shape_cast %338 : vector<1x1x12x128xf32> to vector<12x128xf32>
    %c5_314 = arith.constant 5 : index
    %c1_315 = arith.constant 1 : index
    %c0_316 = arith.constant 0 : index
    %c0_317 = arith.constant 0 : index
    %340 = vector.load %arg15[%c5_314, %c1_315, %c0_316, %c0_317] : memref<8x12x12x128xf32, #tpu.memory_space<vmem>>, vector<1x1x12x128xf32>
    %341 = vector.shape_cast %340 : vector<1x1x12x128xf32> to vector<12x128xf32>
    %342 = arith.maximumf %339, %341 : vector<12x128xf32>
    %343 = vector.extract_strided_slice %342 {offsets = [0, 0], sizes = [11, 128], strides = [1, 1]} : vector<12x128xf32> to vector<11x128xf32>
    %344 = vector.extract_strided_slice %342 {offsets = [1, 0], sizes = [11, 128], strides = [1, 1]} : vector<12x128xf32> to vector<11x128xf32>
    %345 = arith.maximumf %343, %344 : vector<11x128xf32>
    %c330 = arith.constant 330 : index
    %c0_318 = arith.constant 0 : index
    %346 = vector.load %arg16[%c330, %c0_318] : memref<528x128xf32, #tpu.memory_space<vmem>>, vector<11x128xf32>
    tpu.vector_store %arg16[%c330, %c0_318], %345 {strides = array<i32>} : memref<528x128xf32, #tpu.memory_space<vmem>>, vector<11x128xf32>,
    %c5_319 = arith.constant 5 : index
    %c2_320 = arith.constant 2 : index
    %c0_321 = arith.constant 0 : index
    %c0_322 = arith.constant 0 : index
    %347 = vector.load %arg15[%c5_319, %c2_320, %c0_321, %c0_322] : memref<8x12x12x128xf32, #tpu.memory_space<vmem>>, vector<1x1x12x128xf32>
    %348 = vector.shape_cast %347 : vector<1x1x12x128xf32> to vector<12x128xf32>
    %c5_323 = arith.constant 5 : index
    %c3_324 = arith.constant 3 : index
    %c0_325 = arith.constant 0 : index
    %c0_326 = arith.constant 0 : index
    %349 = vector.load %arg15[%c5_323, %c3_324, %c0_325, %c0_326] : memref<8x12x12x128xf32, #tpu.memory_space<vmem>>, vector<1x1x12x128xf32>
    %350 = vector.shape_cast %349 : vector<1x1x12x128xf32> to vector<12x128xf32>
    %351 = arith.maximumf %348, %350 : vector<12x128xf32>
    %352 = vector.extract_strided_slice %351 {offsets = [0, 0], sizes = [11, 128], strides = [1, 1]} : vector<12x128xf32> to vector<11x128xf32>
    %353 = vector.extract_strided_slice %351 {offsets = [1, 0], sizes = [11, 128], strides = [1, 1]} : vector<12x128xf32> to vector<11x128xf32>
    %354 = arith.maximumf %352, %353 : vector<11x128xf32>
    %c341 = arith.constant 341 : index
    %c0_327 = arith.constant 0 : index
    %355 = vector.load %arg16[%c341, %c0_327] : memref<528x128xf32, #tpu.memory_space<vmem>>, vector<11x128xf32>
    tpu.vector_store %arg16[%c341, %c0_327], %354 {strides = array<i32>} : memref<528x128xf32, #tpu.memory_space<vmem>>, vector<11x128xf32>,
    %c5_328 = arith.constant 5 : index
    %c4_329 = arith.constant 4 : index
    %c0_330 = arith.constant 0 : index
    %c0_331 = arith.constant 0 : index
    %356 = vector.load %arg15[%c5_328, %c4_329, %c0_330, %c0_331] : memref<8x12x12x128xf32, #tpu.memory_space<vmem>>, vector<1x1x12x128xf32>
    %357 = vector.shape_cast %356 : vector<1x1x12x128xf32> to vector<12x128xf32>
    %c5_332 = arith.constant 5 : index
    %c5_333 = arith.constant 5 : index
    %c0_334 = arith.constant 0 : index
    %c0_335 = arith.constant 0 : index
    %358 = vector.load %arg15[%c5_332, %c5_333, %c0_334, %c0_335] : memref<8x12x12x128xf32, #tpu.memory_space<vmem>>, vector<1x1x12x128xf32>
    %359 = vector.shape_cast %358 : vector<1x1x12x128xf32> to vector<12x128xf32>
    %360 = arith.maximumf %357, %359 : vector<12x128xf32>
    %361 = vector.extract_strided_slice %360 {offsets = [0, 0], sizes = [11, 128], strides = [1, 1]} : vector<12x128xf32> to vector<11x128xf32>
    %362 = vector.extract_strided_slice %360 {offsets = [1, 0], sizes = [11, 128], strides = [1, 1]} : vector<12x128xf32> to vector<11x128xf32>
    %363 = arith.maximumf %361, %362 : vector<11x128xf32>
    %c352 = arith.constant 352 : index
    %c0_336 = arith.constant 0 : index
    %364 = vector.load %arg16[%c352, %c0_336] : memref<528x128xf32, #tpu.memory_space<vmem>>, vector<11x128xf32>
    tpu.vector_store %arg16[%c352, %c0_336], %363 {strides = array<i32>} : memref<528x128xf32, #tpu.memory_space<vmem>>, vector<11x128xf32>,
    %c5_337 = arith.constant 5 : index
    %c6_338 = arith.constant 6 : index
    %c0_339 = arith.constant 0 : index
    %c0_340 = arith.constant 0 : index
    %365 = vector.load %arg15[%c5_337, %c6_338, %c0_339, %c0_340] : memref<8x12x12x128xf32, #tpu.memory_space<vmem>>, vector<1x1x12x128xf32>
    %366 = vector.shape_cast %365 : vector<1x1x12x128xf32> to vector<12x128xf32>
    %c5_341 = arith.constant 5 : index
    %c7_342 = arith.constant 7 : index
    %c0_343 = arith.constant 0 : index
    %c0_344 = arith.constant 0 : index
    %367 = vector.load %arg15[%c5_341, %c7_342, %c0_343, %c0_344] : memref<8x12x12x128xf32, #tpu.memory_space<vmem>>, vector<1x1x12x128xf32>
    %368 = vector.shape_cast %367 : vector<1x1x12x128xf32> to vector<12x128xf32>
    %369 = arith.maximumf %366, %368 : vector<12x128xf32>
    %370 = vector.extract_strided_slice %369 {offsets = [0, 0], sizes = [11, 128], strides = [1, 1]} : vector<12x128xf32> to vector<11x128xf32>
    %371 = vector.extract_strided_slice %369 {offsets = [1, 0], sizes = [11, 128], strides = [1, 1]} : vector<12x128xf32> to vector<11x128xf32>
    %372 = arith.maximumf %370, %371 : vector<11x128xf32>
    %c363 = arith.constant 363 : index
    %c0_345 = arith.constant 0 : index
    %373 = vector.load %arg16[%c363, %c0_345] : memref<528x128xf32, #tpu.memory_space<vmem>>, vector<11x128xf32>
    tpu.vector_store %arg16[%c363, %c0_345], %372 {strides = array<i32>} : memref<528x128xf32, #tpu.memory_space<vmem>>, vector<11x128xf32>,
    %c5_346 = arith.constant 5 : index
    %c8_347 = arith.constant 8 : index
    %c0_348 = arith.constant 0 : index
    %c0_349 = arith.constant 0 : index
    %374 = vector.load %arg15[%c5_346, %c8_347, %c0_348, %c0_349] : memref<8x12x12x128xf32, #tpu.memory_space<vmem>>, vector<1x1x12x128xf32>
    %375 = vector.shape_cast %374 : vector<1x1x12x128xf32> to vector<12x128xf32>
    %c5_350 = arith.constant 5 : index
    %c9_351 = arith.constant 9 : index
    %c0_352 = arith.constant 0 : index
    %c0_353 = arith.constant 0 : index
    %376 = vector.load %arg15[%c5_350, %c9_351, %c0_352, %c0_353] : memref<8x12x12x128xf32, #tpu.memory_space<vmem>>, vector<1x1x12x128xf32>
    %377 = vector.shape_cast %376 : vector<1x1x12x128xf32> to vector<12x128xf32>
    %378 = arith.maximumf %375, %377 : vector<12x128xf32>
    %379 = vector.extract_strided_slice %378 {offsets = [0, 0], sizes = [11, 128], strides = [1, 1]} : vector<12x128xf32> to vector<11x128xf32>
    %380 = vector.extract_strided_slice %378 {offsets = [1, 0], sizes = [11, 128], strides = [1, 1]} : vector<12x128xf32> to vector<11x128xf32>
    %381 = arith.maximumf %379, %380 : vector<11x128xf32>
    %c374 = arith.constant 374 : index
    %c0_354 = arith.constant 0 : index
    %382 = vector.load %arg16[%c374, %c0_354] : memref<528x128xf32, #tpu.memory_space<vmem>>, vector<11x128xf32>
    tpu.vector_store %arg16[%c374, %c0_354], %381 {strides = array<i32>} : memref<528x128xf32, #tpu.memory_space<vmem>>, vector<11x128xf32>,
    %c5_355 = arith.constant 5 : index
    %c10_356 = arith.constant 10 : index
    %c0_357 = arith.constant 0 : index
    %c0_358 = arith.constant 0 : index
    %383 = vector.load %arg15[%c5_355, %c10_356, %c0_357, %c0_358] : memref<8x12x12x128xf32, #tpu.memory_space<vmem>>, vector<1x1x12x128xf32>
    %384 = vector.shape_cast %383 : vector<1x1x12x128xf32> to vector<12x128xf32>
    %c5_359 = arith.constant 5 : index
    %c11_360 = arith.constant 11 : index
    %c0_361 = arith.constant 0 : index
    %c0_362 = arith.constant 0 : index
    %385 = vector.load %arg15[%c5_359, %c11_360, %c0_361, %c0_362] : memref<8x12x12x128xf32, #tpu.memory_space<vmem>>, vector<1x1x12x128xf32>
    %386 = vector.shape_cast %385 : vector<1x1x12x128xf32> to vector<12x128xf32>
    %387 = arith.maximumf %384, %386 : vector<12x128xf32>
    %388 = vector.extract_strided_slice %387 {offsets = [0, 0], sizes = [11, 128], strides = [1, 1]} : vector<12x128xf32> to vector<11x128xf32>
    %389 = vector.extract_strided_slice %387 {offsets = [1, 0], sizes = [11, 128], strides = [1, 1]} : vector<12x128xf32> to vector<11x128xf32>
    %390 = arith.maximumf %388, %389 : vector<11x128xf32>
    %c385 = arith.constant 385 : index
    %c0_363 = arith.constant 0 : index
    %391 = vector.load %arg16[%c385, %c0_363] : memref<528x128xf32, #tpu.memory_space<vmem>>, vector<11x128xf32>
    tpu.vector_store %arg16[%c385, %c0_363], %390 {strides = array<i32>} : memref<528x128xf32, #tpu.memory_space<vmem>>, vector<11x128xf32>,
    %c6_364 = arith.constant 6 : index
    %c0_365 = arith.constant 0 : index
    %c0_366 = arith.constant 0 : index
    %c0_367 = arith.constant 0 : index
    %392 = vector.load %arg15[%c6_364, %c0_365, %c0_366, %c0_367] : memref<8x12x12x128xf32, #tpu.memory_space<vmem>>, vector<1x1x12x128xf32>
    %393 = vector.shape_cast %392 : vector<1x1x12x128xf32> to vector<12x128xf32>
    %c6_368 = arith.constant 6 : index
    %c1_369 = arith.constant 1 : index
    %c0_370 = arith.constant 0 : index
    %c0_371 = arith.constant 0 : index
    %394 = vector.load %arg15[%c6_368, %c1_369, %c0_370, %c0_371] : memref<8x12x12x128xf32, #tpu.memory_space<vmem>>, vector<1x1x12x128xf32>
    %395 = vector.shape_cast %394 : vector<1x1x12x128xf32> to vector<12x128xf32>
    %396 = arith.maximumf %393, %395 : vector<12x128xf32>
    %397 = vector.extract_strided_slice %396 {offsets = [0, 0], sizes = [11, 128], strides = [1, 1]} : vector<12x128xf32> to vector<11x128xf32>
    %398 = vector.extract_strided_slice %396 {offsets = [1, 0], sizes = [11, 128], strides = [1, 1]} : vector<12x128xf32> to vector<11x128xf32>
    %399 = arith.maximumf %397, %398 : vector<11x128xf32>
    %c396 = arith.constant 396 : index
    %c0_372 = arith.constant 0 : index
    %400 = vector.load %arg16[%c396, %c0_372] : memref<528x128xf32, #tpu.memory_space<vmem>>, vector<11x128xf32>
    tpu.vector_store %arg16[%c396, %c0_372], %399 {strides = array<i32>} : memref<528x128xf32, #tpu.memory_space<vmem>>, vector<11x128xf32>,
    %c6_373 = arith.constant 6 : index
    %c2_374 = arith.constant 2 : index
    %c0_375 = arith.constant 0 : index
    %c0_376 = arith.constant 0 : index
    %401 = vector.load %arg15[%c6_373, %c2_374, %c0_375, %c0_376] : memref<8x12x12x128xf32, #tpu.memory_space<vmem>>, vector<1x1x12x128xf32>
    %402 = vector.shape_cast %401 : vector<1x1x12x128xf32> to vector<12x128xf32>
    %c6_377 = arith.constant 6 : index
    %c3_378 = arith.constant 3 : index
    %c0_379 = arith.constant 0 : index
    %c0_380 = arith.constant 0 : index
    %403 = vector.load %arg15[%c6_377, %c3_378, %c0_379, %c0_380] : memref<8x12x12x128xf32, #tpu.memory_space<vmem>>, vector<1x1x12x128xf32>
    %404 = vector.shape_cast %403 : vector<1x1x12x128xf32> to vector<12x128xf32>
    %405 = arith.maximumf %402, %404 : vector<12x128xf32>
    %406 = vector.extract_strided_slice %405 {offsets = [0, 0], sizes = [11, 128], strides = [1, 1]} : vector<12x128xf32> to vector<11x128xf32>
    %407 = vector.extract_strided_slice %405 {offsets = [1, 0], sizes = [11, 128], strides = [1, 1]} : vector<12x128xf32> to vector<11x128xf32>
    %408 = arith.maximumf %406, %407 : vector<11x128xf32>
    %c407 = arith.constant 407 : index
    %c0_381 = arith.constant 0 : index
    %409 = vector.load %arg16[%c407, %c0_381] : memref<528x128xf32, #tpu.memory_space<vmem>>, vector<11x128xf32>
    tpu.vector_store %arg16[%c407, %c0_381], %408 {strides = array<i32>} : memref<528x128xf32, #tpu.memory_space<vmem>>, vector<11x128xf32>,
    %c6_382 = arith.constant 6 : index
    %c4_383 = arith.constant 4 : index
    %c0_384 = arith.constant 0 : index
    %c0_385 = arith.constant 0 : index
    %410 = vector.load %arg15[%c6_382, %c4_383, %c0_384, %c0_385] : memref<8x12x12x128xf32, #tpu.memory_space<vmem>>, vector<1x1x12x128xf32>
    %411 = vector.shape_cast %410 : vector<1x1x12x128xf32> to vector<12x128xf32>
    %c6_386 = arith.constant 6 : index
    %c5_387 = arith.constant 5 : index
    %c0_388 = arith.constant 0 : index
    %c0_389 = arith.constant 0 : index
    %412 = vector.load %arg15[%c6_386, %c5_387, %c0_388, %c0_389] : memref<8x12x12x128xf32, #tpu.memory_space<vmem>>, vector<1x1x12x128xf32>
    %413 = vector.shape_cast %412 : vector<1x1x12x128xf32> to vector<12x128xf32>
    %414 = arith.maximumf %411, %413 : vector<12x128xf32>
    %415 = vector.extract_strided_slice %414 {offsets = [0, 0], sizes = [11, 128], strides = [1, 1]} : vector<12x128xf32> to vector<11x128xf32>
    %416 = vector.extract_strided_slice %414 {offsets = [1, 0], sizes = [11, 128], strides = [1, 1]} : vector<12x128xf32> to vector<11x128xf32>
    %417 = arith.maximumf %415, %416 : vector<11x128xf32>
    %c418 = arith.constant 418 : index
    %c0_390 = arith.constant 0 : index
    %418 = vector.load %arg16[%c418, %c0_390] : memref<528x128xf32, #tpu.memory_space<vmem>>, vector<11x128xf32>
    tpu.vector_store %arg16[%c418, %c0_390], %417 {strides = array<i32>} : memref<528x128xf32, #tpu.memory_space<vmem>>, vector<11x128xf32>,
    %c6_391 = arith.constant 6 : index
    %c6_392 = arith.constant 6 : index
    %c0_393 = arith.constant 0 : index
    %c0_394 = arith.constant 0 : index
    %419 = vector.load %arg15[%c6_391, %c6_392, %c0_393, %c0_394] : memref<8x12x12x128xf32, #tpu.memory_space<vmem>>, vector<1x1x12x128xf32>
    %420 = vector.shape_cast %419 : vector<1x1x12x128xf32> to vector<12x128xf32>
    %c6_395 = arith.constant 6 : index
    %c7_396 = arith.constant 7 : index
    %c0_397 = arith.constant 0 : index
    %c0_398 = arith.constant 0 : index
    %421 = vector.load %arg15[%c6_395, %c7_396, %c0_397, %c0_398] : memref<8x12x12x128xf32, #tpu.memory_space<vmem>>, vector<1x1x12x128xf32>
    %422 = vector.shape_cast %421 : vector<1x1x12x128xf32> to vector<12x128xf32>
    %423 = arith.maximumf %420, %422 : vector<12x128xf32>
    %424 = vector.extract_strided_slice %423 {offsets = [0, 0], sizes = [11, 128], strides = [1, 1]} : vector<12x128xf32> to vector<11x128xf32>
    %425 = vector.extract_strided_slice %423 {offsets = [1, 0], sizes = [11, 128], strides = [1, 1]} : vector<12x128xf32> to vector<11x128xf32>
    %426 = arith.maximumf %424, %425 : vector<11x128xf32>
    %c429 = arith.constant 429 : index
    %c0_399 = arith.constant 0 : index
    %427 = vector.load %arg16[%c429, %c0_399] : memref<528x128xf32, #tpu.memory_space<vmem>>, vector<11x128xf32>
    tpu.vector_store %arg16[%c429, %c0_399], %426 {strides = array<i32>} : memref<528x128xf32, #tpu.memory_space<vmem>>, vector<11x128xf32>,
    %c6_400 = arith.constant 6 : index
    %c8_401 = arith.constant 8 : index
    %c0_402 = arith.constant 0 : index
    %c0_403 = arith.constant 0 : index
    %428 = vector.load %arg15[%c6_400, %c8_401, %c0_402, %c0_403] : memref<8x12x12x128xf32, #tpu.memory_space<vmem>>, vector<1x1x12x128xf32>
    %429 = vector.shape_cast %428 : vector<1x1x12x128xf32> to vector<12x128xf32>
    %c6_404 = arith.constant 6 : index
    %c9_405 = arith.constant 9 : index
    %c0_406 = arith.constant 0 : index
    %c0_407 = arith.constant 0 : index
    %430 = vector.load %arg15[%c6_404, %c9_405, %c0_406, %c0_407] : memref<8x12x12x128xf32, #tpu.memory_space<vmem>>, vector<1x1x12x128xf32>
    %431 = vector.shape_cast %430 : vector<1x1x12x128xf32> to vector<12x128xf32>
    %432 = arith.maximumf %429, %431 : vector<12x128xf32>
    %433 = vector.extract_strided_slice %432 {offsets = [0, 0], sizes = [11, 128], strides = [1, 1]} : vector<12x128xf32> to vector<11x128xf32>
    %434 = vector.extract_strided_slice %432 {offsets = [1, 0], sizes = [11, 128], strides = [1, 1]} : vector<12x128xf32> to vector<11x128xf32>
    %435 = arith.maximumf %433, %434 : vector<11x128xf32>
    %c440 = arith.constant 440 : index
    %c0_408 = arith.constant 0 : index
    %436 = vector.load %arg16[%c440, %c0_408] : memref<528x128xf32, #tpu.memory_space<vmem>>, vector<11x128xf32>
    tpu.vector_store %arg16[%c440, %c0_408], %435 {strides = array<i32>} : memref<528x128xf32, #tpu.memory_space<vmem>>, vector<11x128xf32>,
    %c6_409 = arith.constant 6 : index
    %c10_410 = arith.constant 10 : index
    %c0_411 = arith.constant 0 : index
    %c0_412 = arith.constant 0 : index
    %437 = vector.load %arg15[%c6_409, %c10_410, %c0_411, %c0_412] : memref<8x12x12x128xf32, #tpu.memory_space<vmem>>, vector<1x1x12x128xf32>
    %438 = vector.shape_cast %437 : vector<1x1x12x128xf32> to vector<12x128xf32>
    %c6_413 = arith.constant 6 : index
    %c11_414 = arith.constant 11 : index
    %c0_415 = arith.constant 0 : index
    %c0_416 = arith.constant 0 : index
    %439 = vector.load %arg15[%c6_413, %c11_414, %c0_415, %c0_416] : memref<8x12x12x128xf32, #tpu.memory_space<vmem>>, vector<1x1x12x128xf32>
    %440 = vector.shape_cast %439 : vector<1x1x12x128xf32> to vector<12x128xf32>
    %441 = arith.maximumf %438, %440 : vector<12x128xf32>
    %442 = vector.extract_strided_slice %441 {offsets = [0, 0], sizes = [11, 128], strides = [1, 1]} : vector<12x128xf32> to vector<11x128xf32>
    %443 = vector.extract_strided_slice %441 {offsets = [1, 0], sizes = [11, 128], strides = [1, 1]} : vector<12x128xf32> to vector<11x128xf32>
    %444 = arith.maximumf %442, %443 : vector<11x128xf32>
    %c451 = arith.constant 451 : index
    %c0_417 = arith.constant 0 : index
    %445 = vector.load %arg16[%c451, %c0_417] : memref<528x128xf32, #tpu.memory_space<vmem>>, vector<11x128xf32>
    tpu.vector_store %arg16[%c451, %c0_417], %444 {strides = array<i32>} : memref<528x128xf32, #tpu.memory_space<vmem>>, vector<11x128xf32>,
    %c7_418 = arith.constant 7 : index
    %c0_419 = arith.constant 0 : index
    %c0_420 = arith.constant 0 : index
    %c0_421 = arith.constant 0 : index
    %446 = vector.load %arg15[%c7_418, %c0_419, %c0_420, %c0_421] : memref<8x12x12x128xf32, #tpu.memory_space<vmem>>, vector<1x1x12x128xf32>
    %447 = vector.shape_cast %446 : vector<1x1x12x128xf32> to vector<12x128xf32>
    %c7_422 = arith.constant 7 : index
    %c1_423 = arith.constant 1 : index
    %c0_424 = arith.constant 0 : index
    %c0_425 = arith.constant 0 : index
    %448 = vector.load %arg15[%c7_422, %c1_423, %c0_424, %c0_425] : memref<8x12x12x128xf32, #tpu.memory_space<vmem>>, vector<1x1x12x128xf32>
    %449 = vector.shape_cast %448 : vector<1x1x12x128xf32> to vector<12x128xf32>
    %450 = arith.maximumf %447, %449 : vector<12x128xf32>
    %451 = vector.extract_strided_slice %450 {offsets = [0, 0], sizes = [11, 128], strides = [1, 1]} : vector<12x128xf32> to vector<11x128xf32>
    %452 = vector.extract_strided_slice %450 {offsets = [1, 0], sizes = [11, 128], strides = [1, 1]} : vector<12x128xf32> to vector<11x128xf32>
    %453 = arith.maximumf %451, %452 : vector<11x128xf32>
    %c462 = arith.constant 462 : index
    %c0_426 = arith.constant 0 : index
    %454 = vector.load %arg16[%c462, %c0_426] : memref<528x128xf32, #tpu.memory_space<vmem>>, vector<11x128xf32>
    tpu.vector_store %arg16[%c462, %c0_426], %453 {strides = array<i32>} : memref<528x128xf32, #tpu.memory_space<vmem>>, vector<11x128xf32>,
    %c7_427 = arith.constant 7 : index
    %c2_428 = arith.constant 2 : index
    %c0_429 = arith.constant 0 : index
    %c0_430 = arith.constant 0 : index
    %455 = vector.load %arg15[%c7_427, %c2_428, %c0_429, %c0_430] : memref<8x12x12x128xf32, #tpu.memory_space<vmem>>, vector<1x1x12x128xf32>
    %456 = vector.shape_cast %455 : vector<1x1x12x128xf32> to vector<12x128xf32>
    %c7_431 = arith.constant 7 : index
    %c3_432 = arith.constant 3 : index
    %c0_433 = arith.constant 0 : index
    %c0_434 = arith.constant 0 : index
    %457 = vector.load %arg15[%c7_431, %c3_432, %c0_433, %c0_434] : memref<8x12x12x128xf32, #tpu.memory_space<vmem>>, vector<1x1x12x128xf32>
    %458 = vector.shape_cast %457 : vector<1x1x12x128xf32> to vector<12x128xf32>
    %459 = arith.maximumf %456, %458 : vector<12x128xf32>
    %460 = vector.extract_strided_slice %459 {offsets = [0, 0], sizes = [11, 128], strides = [1, 1]} : vector<12x128xf32> to vector<11x128xf32>
    %461 = vector.extract_strided_slice %459 {offsets = [1, 0], sizes = [11, 128], strides = [1, 1]} : vector<12x128xf32> to vector<11x128xf32>
    %462 = arith.maximumf %460, %461 : vector<11x128xf32>
    %c473 = arith.constant 473 : index
    %c0_435 = arith.constant 0 : index
    %463 = vector.load %arg16[%c473, %c0_435] : memref<528x128xf32, #tpu.memory_space<vmem>>, vector<11x128xf32>
    tpu.vector_store %arg16[%c473, %c0_435], %462 {strides = array<i32>} : memref<528x128xf32, #tpu.memory_space<vmem>>, vector<11x128xf32>,
    %c7_436 = arith.constant 7 : index
    %c4_437 = arith.constant 4 : index
    %c0_438 = arith.constant 0 : index
    %c0_439 = arith.constant 0 : index
    %464 = vector.load %arg15[%c7_436, %c4_437, %c0_438, %c0_439] : memref<8x12x12x128xf32, #tpu.memory_space<vmem>>, vector<1x1x12x128xf32>
    %465 = vector.shape_cast %464 : vector<1x1x12x128xf32> to vector<12x128xf32>
    %c7_440 = arith.constant 7 : index
    %c5_441 = arith.constant 5 : index
    %c0_442 = arith.constant 0 : index
    %c0_443 = arith.constant 0 : index
    %466 = vector.load %arg15[%c7_440, %c5_441, %c0_442, %c0_443] : memref<8x12x12x128xf32, #tpu.memory_space<vmem>>, vector<1x1x12x128xf32>
    %467 = vector.shape_cast %466 : vector<1x1x12x128xf32> to vector<12x128xf32>
    %468 = arith.maximumf %465, %467 : vector<12x128xf32>
    %469 = vector.extract_strided_slice %468 {offsets = [0, 0], sizes = [11, 128], strides = [1, 1]} : vector<12x128xf32> to vector<11x128xf32>
    %470 = vector.extract_strided_slice %468 {offsets = [1, 0], sizes = [11, 128], strides = [1, 1]} : vector<12x128xf32> to vector<11x128xf32>
    %471 = arith.maximumf %469, %470 : vector<11x128xf32>
    %c484 = arith.constant 484 : index
    %c0_444 = arith.constant 0 : index
    %472 = vector.load %arg16[%c484, %c0_444] : memref<528x128xf32, #tpu.memory_space<vmem>>, vector<11x128xf32>
    tpu.vector_store %arg16[%c484, %c0_444], %471 {strides = array<i32>} : memref<528x128xf32, #tpu.memory_space<vmem>>, vector<11x128xf32>,
    %c7_445 = arith.constant 7 : index
    %c6_446 = arith.constant 6 : index
    %c0_447 = arith.constant 0 : index
    %c0_448 = arith.constant 0 : index
    %473 = vector.load %arg15[%c7_445, %c6_446, %c0_447, %c0_448] : memref<8x12x12x128xf32, #tpu.memory_space<vmem>>, vector<1x1x12x128xf32>
    %474 = vector.shape_cast %473 : vector<1x1x12x128xf32> to vector<12x128xf32>
    %c7_449 = arith.constant 7 : index
    %c7_450 = arith.constant 7 : index
    %c0_451 = arith.constant 0 : index
    %c0_452 = arith.constant 0 : index
    %475 = vector.load %arg15[%c7_449, %c7_450, %c0_451, %c0_452] : memref<8x12x12x128xf32, #tpu.memory_space<vmem>>, vector<1x1x12x128xf32>
    %476 = vector.shape_cast %475 : vector<1x1x12x128xf32> to vector<12x128xf32>
    %477 = arith.maximumf %474, %476 : vector<12x128xf32>
    %478 = vector.extract_strided_slice %477 {offsets = [0, 0], sizes = [11, 128], strides = [1, 1]} : vector<12x128xf32> to vector<11x128xf32>
    %479 = vector.extract_strided_slice %477 {offsets = [1, 0], sizes = [11, 128], strides = [1, 1]} : vector<12x128xf32> to vector<11x128xf32>
    %480 = arith.maximumf %478, %479 : vector<11x128xf32>
    %c495 = arith.constant 495 : index
    %c0_453 = arith.constant 0 : index
    %481 = vector.load %arg16[%c495, %c0_453] : memref<528x128xf32, #tpu.memory_space<vmem>>, vector<11x128xf32>
    tpu.vector_store %arg16[%c495, %c0_453], %480 {strides = array<i32>} : memref<528x128xf32, #tpu.memory_space<vmem>>, vector<11x128xf32>,
    %c7_454 = arith.constant 7 : index
    %c8_455 = arith.constant 8 : index
    %c0_456 = arith.constant 0 : index
    %c0_457 = arith.constant 0 : index
    %482 = vector.load %arg15[%c7_454, %c8_455, %c0_456, %c0_457] : memref<8x12x12x128xf32, #tpu.memory_space<vmem>>, vector<1x1x12x128xf32>
    %483 = vector.shape_cast %482 : vector<1x1x12x128xf32> to vector<12x128xf32>
    %c7_458 = arith.constant 7 : index
    %c9_459 = arith.constant 9 : index
    %c0_460 = arith.constant 0 : index
    %c0_461 = arith.constant 0 : index
    %484 = vector.load %arg15[%c7_458, %c9_459, %c0_460, %c0_461] : memref<8x12x12x128xf32, #tpu.memory_space<vmem>>, vector<1x1x12x128xf32>
    %485 = vector.shape_cast %484 : vector<1x1x12x128xf32> to vector<12x128xf32>
    %486 = arith.maximumf %483, %485 : vector<12x128xf32>
    %487 = vector.extract_strided_slice %486 {offsets = [0, 0], sizes = [11, 128], strides = [1, 1]} : vector<12x128xf32> to vector<11x128xf32>
    %488 = vector.extract_strided_slice %486 {offsets = [1, 0], sizes = [11, 128], strides = [1, 1]} : vector<12x128xf32> to vector<11x128xf32>
    %489 = arith.maximumf %487, %488 : vector<11x128xf32>
    %c506 = arith.constant 506 : index
    %c0_462 = arith.constant 0 : index
    %490 = vector.load %arg16[%c506, %c0_462] : memref<528x128xf32, #tpu.memory_space<vmem>>, vector<11x128xf32>
    tpu.vector_store %arg16[%c506, %c0_462], %489 {strides = array<i32>} : memref<528x128xf32, #tpu.memory_space<vmem>>, vector<11x128xf32>,
    %c7_463 = arith.constant 7 : index
    %c10_464 = arith.constant 10 : index
    %c0_465 = arith.constant 0 : index
    %c0_466 = arith.constant 0 : index
    %491 = vector.load %arg15[%c7_463, %c10_464, %c0_465, %c0_466] : memref<8x12x12x128xf32, #tpu.memory_space<vmem>>, vector<1x1x12x128xf32>
    %492 = vector.shape_cast %491 : vector<1x1x12x128xf32> to vector<12x128xf32>
    %c7_467 = arith.constant 7 : index
    %c11_468 = arith.constant 11 : index
    %c0_469 = arith.constant 0 : index
    %c0_470 = arith.constant 0 : index
    %493 = vector.load %arg15[%c7_467, %c11_468, %c0_469, %c0_470] : memref<8x12x12x128xf32, #tpu.memory_space<vmem>>, vector<1x1x12x128xf32>
    %494 = vector.shape_cast %493 : vector<1x1x12x128xf32> to vector<12x128xf32>
    %495 = arith.maximumf %492, %494 : vector<12x128xf32>
    %496 = vector.extract_strided_slice %495 {offsets = [0, 0], sizes = [11, 128], strides = [1, 1]} : vector<12x128xf32> to vector<11x128xf32>
    %497 = vector.extract_strided_slice %495 {offsets = [1, 0], sizes = [11, 128], strides = [1, 1]} : vector<12x128xf32> to vector<11x128xf32>
    %498 = arith.maximumf %496, %497 : vector<11x128xf32>
    %c517 = arith.constant 517 : index
    %c0_471 = arith.constant 0 : index
    %499 = vector.load %arg16[%c517, %c0_471] : memref<528x128xf32, #tpu.memory_space<vmem>>, vector<11x128xf32>
    tpu.vector_store %arg16[%c517, %c0_471], %498 {strides = array<i32>} : memref<528x128xf32, #tpu.memory_space<vmem>>, vector<11x128xf32>,
    %c0_472 = arith.constant 0 : index
    %c0_473 = arith.constant 0 : index
    %500 = vector.load %arg16[%c0_472, %c0_473] : memref<528x128xf32, #tpu.memory_space<vmem>>, vector<528x128xf32>
    %c0_474 = arith.constant 0 : index
    %c0_475 = arith.constant 0 : index
    %501 = vector.load %arg6[%c0_474, %c0_475] : memref<32x528xf32, #tpu.memory_space<vmem>>, vector<32x528xf32>
    %cst = arith.constant dense<0.000000e+00> : vector<32x128xf32>
    %502 = tpu.matmul %501, %500, %cst {dimension_numbers = #tpu.dot_dimension_numbers<[1], [0], [0], [1], [0, 0, 1, 1], [], []>} : vector<32x528xf32>, vector<528x128xf32>, vector<32x128xf32> -> vector<32x128xf32>
    %c0_476 = arith.constant 0 : index
    %c0_477 = arith.constant 0 : index
    %503 = vector.load %arg7[%c0_476, %c0_477] : memref<32x1xf32, #tpu.memory_space<vmem>>, vector<32x1xf32>
    %504 = vector.broadcast %503 : vector<32x1xf32> to vector<32x128xf32>
    %505 = arith.addf %502, %504 : vector<32x128xf32>
    %cst_478 = arith.constant 0.000000e+00 : f32
    %506 = vector.broadcast %cst_478 : f32 to vector<32x128xf32>
    %507 = arith.maximumf %505, %506 : vector<32x128xf32>
    %c0_479 = arith.constant 0 : index
    %c0_480 = arith.constant 0 : index
    %508 = vector.load %arg8[%c0_479, %c0_480] : memref<16x32xf32, #tpu.memory_space<vmem>>, vector<16x32xf32>
    %cst_481 = arith.constant dense<0.000000e+00> : vector<16x128xf32>
    %509 = tpu.matmul %508, %507, %cst_481 {dimension_numbers = #tpu.dot_dimension_numbers<[1], [0], [0], [1], [0, 0, 1, 1], [], []>} : vector<16x32xf32>, vector<32x128xf32>, vector<16x128xf32> -> vector<16x128xf32>
    %c0_482 = arith.constant 0 : index
    %c0_483 = arith.constant 0 : index
    %510 = vector.load %arg9[%c0_482, %c0_483] : memref<16x1xf32, #tpu.memory_space<vmem>>, vector<16x1xf32>
    %511 = vector.broadcast %510 : vector<16x1xf32> to vector<16x128xf32>
    %512 = arith.addf %509, %511 : vector<16x128xf32>
    %cst_484 = arith.constant 0.000000e+00 : f32
    %513 = vector.broadcast %cst_484 : f32 to vector<16x128xf32>
    %514 = arith.maximumf %512, %513 : vector<16x128xf32>
    %c0_485 = arith.constant 0 : index
    %c0_486 = arith.constant 0 : index
    %515 = vector.load %arg10[%c0_485, %c0_486] : memref<1x16xf32, #tpu.memory_space<vmem>>, vector<1x16xf32>
    %cst_487 = arith.constant dense<0.000000e+00> : vector<1x128xf32>
    %516 = tpu.matmul %515, %514, %cst_487 {dimension_numbers = #tpu.dot_dimension_numbers<[1], [0], [0], [1], [0, 0, 1, 1], [], []>} : vector<1x16xf32>, vector<16x128xf32>, vector<1x128xf32> -> vector<1x128xf32>
    %c0_488 = arith.constant 0 : index
    %c0_489 = arith.constant 0 : index
    %517 = vector.load %arg11[%c0_488, %c0_489] : memref<1x1xf32, #tpu.memory_space<vmem>>, vector<1x1xf32>
    %518 = vector.broadcast %517 : vector<1x1xf32> to vector<1x128xf32>
    %519 = arith.addf %516, %518 : vector<1x128xf32>
    %c0_490 = arith.constant 0 : index
    %c0_491 = arith.constant 0 : index
    %520 = vector.load %arg12[%c0_490, %c0_491] : memref<1x128xf32, #tpu.memory_space<vmem>>, vector<1x128xf32>
    tpu.vector_store %arg12[%c0_490, %c0_491], %519 {strides = array<i32>} : memref<1x128xf32, #tpu.memory_space<vmem>>, vector<1x128xf32>,
    return
  }
  func.func @transform_0(%arg0: i32) -> (i32, i32) {
    %c0_i32 = arith.constant 0 : i32
    %c0_i32_0 = arith.constant 0 : i32
    return %arg0, %c0_i32 : i32, i32
  }
  func.func @transform_1(%arg0: i32) -> i32 {
    %c0_i32 = arith.constant 0 : i32
    %c0_i32_0 = arith.constant 0 : i32
    return %c0_i32 : i32
  }
  func.func @transform_2(%arg0: i32) -> i32 {
    %c0_i32 = arith.constant 0 : i32
    %c0_i32_0 = arith.constant 0 : i32
    return %c0_i32 : i32
  }
  func.func @transform_3(%arg0: i32) -> i32 {
    %c0_i32 = arith.constant 0 : i32
    %c0_i32_0 = arith.constant 0 : i32
    return %c0_i32 : i32
  }
  func.func @transform_4(%arg0: i32) -> i32 {
    %c0_i32 = arith.constant 0 : i32
    %c0_i32_0 = arith.constant 0 : i32
    return %c0_i32 : i32
  }
  func.func @transform_5(%arg0: i32) -> (i32, i32) {
    %c0_i32 = arith.constant 0 : i32
    %c0_i32_0 = arith.constant 0 : i32
    %c0_i32_1 = arith.constant 0 : i32
    return %c0_i32, %c0_i32_0 : i32, i32
  }
  func.func @transform_6(%arg0: i32) -> (i32, i32) {
    %c0_i32 = arith.constant 0 : i32
    %c0_i32_0 = arith.constant 0 : i32
    %c0_i32_1 = arith.constant 0 : i32
    return %c0_i32, %c0_i32_0 : i32, i32
  }
  func.func @transform_7(%arg0: i32) -> (i32, i32) {
    %c0_i32 = arith.constant 0 : i32
    %c0_i32_0 = arith.constant 0 : i32
    %c0_i32_1 = arith.constant 0 : i32
    return %c0_i32, %c0_i32_0 : i32, i32
  }
  func.func @transform_8(%arg0: i32) -> (i32, i32) {
    %c0_i32 = arith.constant 0 : i32
    %c0_i32_0 = arith.constant 0 : i32
    %c0_i32_1 = arith.constant 0 : i32
    return %c0_i32, %c0_i32_0 : i32, i32
  }
  func.func @transform_9(%arg0: i32) -> (i32, i32) {
    %c0_i32 = arith.constant 0 : i32
    %c0_i32_0 = arith.constant 0 : i32
    %c0_i32_1 = arith.constant 0 : i32
    return %c0_i32, %c0_i32_0 : i32, i32
  }
  func.func @transform_10(%arg0: i32) -> (i32, i32) {
    %c0_i32 = arith.constant 0 : i32
    %c0_i32_0 = arith.constant 0 : i32
    %c0_i32_1 = arith.constant 0 : i32
    return %c0_i32, %c0_i32_0 : i32, i32
  }
  func.func @transform_11(%arg0: i32) -> (i32, i32) {
    %c0_i32 = arith.constant 0 : i32
    %c0_i32_0 = arith.constant 0 : i32
    return %c0_i32, %arg0 : i32, i32
  }
}

</mosaic_0001>

<bundles_post_ra>
// kernel: net_forward.1
= control target key start
LH: loop header
LB: loop body
LE: loop exit
PB: predicated region body
PF: predicated region fallthrough
CT: control target
= control target key end

     0   :  { %s10401_s0 = inlined_call_operand.vmem [shape: f32[2,256], index: 0, kind: input, shape index: {}]   ;;  %s10402_s1 = inlined_call_operand.vmem [shape: f32[36], index: 1, kind: input, shape index: {}]   ;;  %s10403_s2 = inlined_call_operand.vmem [shape: f32[4], index: 2, kind: input, shape index: {}]   ;;  %s10404_s3 = inlined_call_operand.vmem [shape: f32[288], index: 3, kind: input, shape index: {}]   ;;  %s10405_s4 = inlined_call_operand.vmem [shape: f32[8], index: 4, kind: input, shape index: {}]   ;;  %s10406_s5 = inlined_call_operand.hbm [shape: f32[32,528], index: 5, kind: input, shape index: {}]   ;;  %s10407_s6 = inlined_call_operand.vmem [shape: f32[32,1], index: 6, kind: input, shape index: {}]   ;;  %s10408_s7 = inlined_call_operand.vmem [shape: f32[16,32], index: 7, kind: input, shape index: {}]   ;;  %s10409_s8 = inlined_call_operand.vmem [shape: f32[16,1], index: 8, kind: input, shape index: {}]   ;;  %s10410_s9 = inlined_call_operand.vmem [shape: f32[1,16], index: 9, kind: input, shape index: {}]   ;;  %s10411_s10 = inlined_call_operand.<no memory space> [shape: f32[1,1], index: 10, kind: input, shape index: {}]   ;;  %s10412_s11 = inlined_call_operand.hbm [shape: f32[1,2], index: 11, kind: output, shape index: {}]  }
   0x1   :  { %v16_v0 = vstv %s10411_s10 }
   0x2   :  { %17 = vst [vmem:[#allocation6] sm:$0x1] %v16_v0 }
   0x3   :  { %18 = vsyncpa [#allocation10], 0 }
   0x4   :  { %19 = vsyncpa [#allocation12], 0 }
   0x5   :  { %20 = vsyncpa [#allocation15], 0 }
   0x6   :  { %21 = vsyncpa [#allocation8], 0  ;;  %s41_s21 = sshll.u32 %s10403_s2, 4  ;;  %s42_s21 = int_to_ptr.vmem [resolvable:$true] %s41_s21 }
   0x7   :  { %22 = vsyncpa [#allocation9], 0  ;;  %s31_s24 = sshll.u32 %s10402_s1, 4  ;;  %s6589_s25 = scalar_lea.vmem %s42_s21, 16  ;;  %s32_s24 = int_to_ptr.vmem [resolvable:$true] %s31_s24 }
   0x8   :  { %p6590_p0 = scmp.ne.s32.totalorder %s42_s21, %s6589_s25  ;;  %p6594_p1 = scmp.lt.s32.totalorder %s42_s21, %s42_s21 }
   0x9   :  { %p6595_p2 = scmp.lt.s32.totalorder %s6589_s25, %s6589_s25 }
   0xb   :  { %p6596_p3 = por %p6595_p2, %p6594_p1 }
   0xd   :  { %p6597_p4 = pnand %p6596_p3, %p6590_p0 }
   0xf   :  { %6600 = shalt.err (!%p6597_p4)
}
  0x10   :  { %s6707_s10 = smov [#allocation11]   ;;  %s6601_s26 = scalar_lea.vmem %s32_s24, 16 }
  0x11   :  { %44 = dma.vmem_to_smem %s42_s21, 16, %s6707_s10, [#allocation12]  }
  0x12   :  { %p6602_p5 = scmp.ne.s32.totalorder %s32_s24, %s6601_s26  ;;  %p6606_p6 = scmp.lt.s32.totalorder %s32_s24, %s32_s24 }
  0x13   :  { %p6607_p7 = scmp.lt.s32.totalorder %s6601_s26, %s6601_s26 }
  0x15   :  { %p6608_p8 = por %p6607_p7, %p6606_p6 }
  0x17   :  { %p6609_p9 = pnand %p6608_p8, %p6602_p5 }
  0x19   :  { %6612 = shalt.err (!%p6609_p9)
}
  0x1a   :  { %s6708_s2 = smov [#allocation7]   ;;  %s51_s28 = sshll.u32 %s10404_s3, 4  ;;  %s52_s28 = int_to_ptr.vmem [resolvable:$true] %s51_s28 }
  0x1b   :  { %34 = dma.vmem_to_smem %s32_s24, 16, %s6708_s2, [#allocation10]  }
  0x1c   :  { %s61_s12 = sshll.u32 %s10405_s4, 4  ;;  %s6613_s13 = scalar_lea.vmem %s52_s28, 48  ;;  %s62_s12 = int_to_ptr.vmem [resolvable:$true] %s61_s12 }
  0x1d   :  { %p6614_p10 = scmp.ne.s32.totalorder %s52_s28, %s6613_s13  ;;  %s6617_s14 = scalar_lea.vmem %s52_s28, 64 }
  0x1e   :  { %p6618_p11 = scmp.lt.s32.totalorder %s52_s28, %s52_s28  ;;  %p6619_p12 = scmp.lt.s32.totalorder %s6617_s14, %s6613_s13 }
  0x20   :  { %p6620_p13 = por %p6619_p12, %p6618_p11 }
  0x22   :  { %p6621_p0 = pnand %p6620_p13, %p6614_p10 }
  0x24   :  { %6624 = shalt.err (!%p6621_p0)
}
  0x25   :  { %s6709_s15 = smov [#allocation13]   ;;  %s6625_s16 = scalar_lea.vmem %s62_s12, 16 }
  0x26   :  { %54 = dma.vmem_to_smem %s52_s28, 48, %s6709_s15, [#allocation12]  }
  0x27   :  { %p6626_p1 = scmp.ne.s32.totalorder %s62_s12, %s6625_s16  ;;  %p6630_p2 = scmp.lt.s32.totalorder %s62_s12, %s62_s12 }
  0x28   :  { %p6631_p3 = scmp.lt.s32.totalorder %s6625_s16, %s6625_s16 }
  0x2a   :  { %p6632_p4 = por %p6631_p3, %p6630_p2 }
  0x2c   :  { %p6633_p5 = pnand %p6632_p4, %p6626_p1 }
  0x2e   :  { %6636 = shalt.err (!%p6633_p5)
}
  0x2f   :  { %s6710_s3 = smov [#allocation14]   ;;  %s6711_s4 = smov [#allocation16]  }
  0x30   :  { %64 = dma.vmem_to_smem %s62_s12, 16, %s6710_s3, [#allocation15]  }
  0x31   :  { %s70_s17 = sshll.u32 %s6711_s4, 4  ;;  %s6637_s20 = scalar_lea.hbm %s10406_s5, 2560  ;;  %s71_s17 = int_to_ptr.vmem [resolvable:$true] %s70_s17 }
  0x32   :  { %p6638_p6 = scmp.ne.s32.totalorder %s10406_s5, %s6637_s20  ;;  %p6641_p7 = scmp.lt.u32.totalorder %s6637_s20, %s10406_s5 }
  0x34   :  { %p6643_p8 = pnand %p6641_p7, %p6638_p6 }
  0x36   :  { %6646 = shalt.err (!%p6643_p8)
}
  0x37   :  { %s6647_s25 = scalar_lea.vmem %s71_s17, 2560  ;;  %p6652_p10 = scmp.lt.s32.totalorder %s71_s17, %s71_s17 }
  0x38   :  { %p6648_p9 = scmp.ne.s32.totalorder %s71_s17, %s6647_s25  ;;  %p6653_p11 = scmp.lt.s32.totalorder %s6647_s25, %s6647_s25 }
  0x3a   :  { %p6654_p12 = por %p6653_p11, %p6652_p10 }
  0x3c   :  { %p6655_p13 = pnand %p6654_p12, %p6648_p9 }
  0x3e   :  { %6658 = shalt.err (!%p6655_p13)
}
  0x3f   :  { %s6712_s10 = smov 640   ;;  %s6713_s26 = smov 40  }
  0x40   :  { %76 = dma.hbm_to_vmem [thread:$0]  %s10406_s5, 2560, %s71_s17, [#allocation8], %s6712_s10, %s6712_s10, %s6713_s26  }
  0x41   :  { %6689 = dma.done.wait [#allocation10], 16  }
  0x42   :  { %6690 = vsyncadd [#allocation10], 4294967280 }
  0x43   :  { %6691 = dma.done.wait [#allocation12], 64  }
  0x44   :  { %6692 = vsyncadd [#allocation12], 4294967232 }
  0x45   :  { %6693 = dma.done.wait [#allocation15], 16  }
  0x46   :  { %6694 = vsyncadd [#allocation15], 4294967280 }
  0x47   :  { %6695 = dma.done.wait [#allocation8], 2560  }
  0x48   :  { %6696 = vsyncadd [#allocation8], 4294964736 }
  0x49   :  { %102 = sfence }
  0x4a   :  { %v236_v1 = vlaneseq  ;;  %v6557_v2 = vld.sshfl [vmem:[%s10401_s0] sm:$0xff pattern:$0x76325410]  ;;  %v6558_v3 = vld.sshfl [vmem:[%s10401_s0 + $0x8] sm:$0xff pattern:$0x76325410] }
  0x4b   :  { %v6559_v5 = vld.sshfl [vmem:[%s10401_s0 + $0x10] sm:$0xff pattern:$0x76325410]  ;;  %v6560_v6 = vld.sshfl [vmem:[%s10401_s0 + $0x18] sm:$0xff pattern:$0x76325410]  ;;  %v248_v9 = vcombine.high %v6557_v2, %v6558_v3  ;;  %v247_v10 = vcombine.low %v6557_v2, %v6558_v3 }
  0x4c   :  { %v6812_v4 = vshrl.u32 %v236_v1, 7  ;;  %v6561_v7 = vld.sshfl [vmem:[%s10401_s0 + $0x20] sm:$0xff pattern:$0x76325410]  ;;  %v266_v13 = vcombine.high %v6559_v5, %v6560_v6  ;;  %v265_v14 = vcombine.low %v6559_v5, %v6560_v6 }
  0x4d   :  { %v6562_v8 = vld.sshfl [vmem:[%s10401_s0 + $0x28] sm:$0xff pattern:$0x76325410]  ;;  %v6563_v11 = vld.sshfl [vmem:[%s10401_s0 + $0x30] sm:$0xff pattern:$0x76325410]  ;;  %583 = vxpose.xlu1.b32.start [1/16] %v248_v9, 128  ;;  %551 = vxpose.xlu0.b32.start [1/16] %v247_v10, 128 }
  0x4e   :  { %v6564_v12 = vld.sshfl [vmem:[%s10401_s0 + $0x38] sm:$0xff pattern:$0x76325410]  ;;  %v6565_v15 = vld.sshfl [vmem:[%s10401_s0 + $0x40] sm:$0xff pattern:$0x76325410]  ;;  %v284_v17 = vcombine.high %v6561_v7, %v6562_v8  ;;  %v283_v18 = vcombine.low %v6561_v7, %v6562_v8 }
  0x4f   :  { %v6566_v16 = vld.sshfl [vmem:[%s10401_s0 + $0x48] sm:$0xff pattern:$0x76325410]  ;;  %v302_v19 = vcombine.high %v6563_v11, %v6564_v12  ;;  %v6567_v20 = vld.sshfl [vmem:[%s10401_s0 + $0x50] sm:$0xff pattern:$0x76325410]  ;;  %v301_v22 = vcombine.low %v6563_v11, %v6564_v12 }
  0x50   :  { %v6568_v21 = vld.sshfl [vmem:[%s10401_s0 + $0x58] sm:$0xff pattern:$0x76325410]  ;;  %v6569_v23 = vld.sshfl [vmem:[%s10401_s0 + $0x60] sm:$0xff pattern:$0x76325410]  ;;  %v320_v25 = vcombine.high %v6565_v15, %v6566_v16  ;;  %v319_v26 = vcombine.low %v6565_v15, %v6566_v16 }
  0x51   :  { %584 = vxpose.xlu1.b32.cont [2/16] %v266_v13, 128  ;;  %552 = vxpose.xlu0.b32.cont [2/16] %v265_v14, 128  ;;  %v6570_v24 = vld.sshfl [vmem:[%s10401_s0 + $0x68] sm:$0xff pattern:$0x76325410]  ;;  %v6571_v27 = vld.sshfl [vmem:[%s10401_s0 + $0x70] sm:$0xff pattern:$0x76325410]  ;;  %v338_v29 = vcombine.high %v6567_v20, %v6568_v21  ;;  %v337_v30 = vcombine.low %v6567_v20, %v6568_v21 }
  0x52   :  { %v6572_v28 = vld.sshfl [vmem:[%s10401_s0 + $0x78] sm:$0xff pattern:$0x76325410]  ;;  %v356_v31 = vcombine.high %v6569_v23, %v6570_v24  ;;  %v6573_v32 = vld.sshfl [vmem:[%s10401_s0 + $0x80] sm:$0xff pattern:$0x76325410]  ;;  %v355_v34 = vcombine.low %v6569_v23, %v6570_v24 }
  0x53   :  { %v6574_v33 = vld.sshfl [vmem:[%s10401_s0 + $0x88] sm:$0xff pattern:$0x76325410]  ;;  %v374_v35 = vcombine.high %v6571_v27, %v6572_v28  ;;  %v373_v36 = vcombine.low %v6571_v27, %v6572_v28  ;;  %v6575_v37 = vld.sshfl [vmem:[%s10401_s0 + $0x90] sm:$0xff pattern:$0x76325410] }
  0x54   :  { %v6576_v38 = vld.sshfl [vmem:[%s10401_s0 + $0x98] sm:$0xff pattern:$0x76325410]  ;;  %v392_v39 = vcombine.high %v6573_v32, %v6574_v33  ;;  %v6577_v40 = vld.sshfl [vmem:[%s10401_s0 + $0xa0] sm:$0xff pattern:$0x76325410]  ;;  %v391_v42 = vcombine.low %v6573_v32, %v6574_v33 }
  0x55   :  { %585 = vxpose.xlu1.b32.cont [3/16] %v284_v17, 128  ;;  %553 = vxpose.xlu0.b32.cont [3/16] %v283_v18, 128  ;;  %v6578_v41 = vld.sshfl [vmem:[%s10401_s0 + $0xa8] sm:$0xff pattern:$0x76325410]  ;;  %v410_v43 = vcombine.high %v6575_v37, %v6576_v38  ;;  %v409_v44 = vcombine.low %v6575_v37, %v6576_v38  ;;  %v6579_v45 = vld.sshfl [vmem:[%s10401_s0 + $0xb0] sm:$0xff pattern:$0x76325410] }
  0x56   :  { %v6580_v46 = vld.sshfl [vmem:[%s10401_s0 + $0xb8] sm:$0xff pattern:$0x76325410]  ;;  %v428_v47 = vcombine.high %v6577_v40, %v6578_v41  ;;  %v6581_v48 = vld.sshfl [vmem:[%s10401_s0 + $0xc0] sm:$0xff pattern:$0x76325410]  ;;  %v427_v50 = vcombine.low %v6577_v40, %v6578_v41 }
  0x57   :  { %v6582_v49 = vld.sshfl [vmem:[%s10401_s0 + $0xc8] sm:$0xff pattern:$0x76325410]  ;;  %v446_v51 = vcombine.high %v6579_v45, %v6580_v46  ;;  %v445_v52 = vcombine.low %v6579_v45, %v6580_v46  ;;  %v6583_v53 = vld.sshfl [vmem:[%s10401_s0 + $0xd0] sm:$0xff pattern:$0x76325410] }
  0x58   :  { %v6584_v54 = vld.sshfl [vmem:[%s10401_s0 + $0xd8] sm:$0xff pattern:$0x76325410]  ;;  %v464_v55 = vcombine.high %v6581_v48, %v6582_v49  ;;  %v6585_v56 = vld.sshfl [vmem:[%s10401_s0 + $0xe0] sm:$0xff pattern:$0x76325410]  ;;  %v463_v58 = vcombine.low %v6581_v48, %v6582_v49 }
  0x59   :  { %586 = vxpose.xlu1.b32.cont [4/16] %v302_v19, 128  ;;  %554 = vxpose.xlu0.b32.cont [4/16] %v301_v22, 128  ;;  %v6586_v57 = vld.sshfl [vmem:[%s10401_s0 + $0xe8] sm:$0xff pattern:$0x76325410]  ;;  %v482_v59 = vcombine.high %v6583_v53, %v6584_v54  ;;  %v481_v60 = vcombine.low %v6583_v53, %v6584_v54  ;;  %v6587_v61 = vld.sshfl [vmem:[%s10401_s0 + $0xf0] sm:$0xff pattern:$0x76325410] }
  0x5a   :  { %v6588_v62 = vld.sshfl [vmem:[%s10401_s0 + $0xf8] sm:$0xff pattern:$0x76325410]  ;;  %v500_v63 = vcombine.high %v6585_v56, %v6586_v57  ;;  %v499_v0 = vcombine.low %v6585_v56, %v6586_v57  ;;  %s6904_s0 = smov 0  }
  0x5b   :  { %v518_v1 = vcombine.high %v6587_v61, %v6588_v62  ;;  %v517_v2 = vcombine.low %v6587_v61, %v6588_v62 }
  0x5d   :  { %587 = vxpose.xlu1.b32.cont [5/16] %v320_v25, 128  ;;  %555 = vxpose.xlu0.b32.cont [5/16] %v319_v26, 128 }
  0x61   :  { %588 = vxpose.xlu1.b32.cont [6/16] %v338_v29, 128  ;;  %556 = vxpose.xlu0.b32.cont [6/16] %v337_v30, 128 }
  0x65   :  { %589 = vxpose.xlu1.b32.cont [7/16] %v356_v31, 128  ;;  %557 = vxpose.xlu0.b32.cont [7/16] %v355_v34, 128 }
  0x69   :  { %590 = vxpose.xlu1.b32.cont [8/16] %v374_v35, 128  ;;  %558 = vxpose.xlu0.b32.cont [8/16] %v373_v36, 128 }
  0x6d   :  { %591 = vxpose.xlu1.b32.cont [9/16] %v392_v39, 128  ;;  %559 = vxpose.xlu0.b32.cont [9/16] %v391_v42, 128 }
  0x71   :  { %592 = vxpose.xlu1.b32.cont [10/16] %v410_v43, 128  ;;  %560 = vxpose.xlu0.b32.cont [10/16] %v409_v44, 128 }
  0x75   :  { %593 = vxpose.xlu1.b32.cont [11/16] %v428_v47, 128  ;;  %561 = vxpose.xlu0.b32.cont [11/16] %v427_v50, 128 }
  0x79   :  { %594 = vxpose.xlu1.b32.cont [12/16] %v446_v51, 128  ;;  %562 = vxpose.xlu0.b32.cont [12/16] %v445_v52, 128 }
  0x7d   :  { %595 = vxpose.xlu1.b32.cont [13/16] %v464_v55, 128  ;;  %563 = vxpose.xlu0.b32.cont [13/16] %v463_v58, 128 }
  0x81   :  { %596 = vxpose.xlu1.b32.cont [14/16] %v482_v59, 128  ;;  %564 = vxpose.xlu0.b32.cont [14/16] %v481_v60, 128 }
  0x85   :  { %597 = vxpose.xlu1.b32.cont [15/16] %v500_v63, 128  ;;  %565 = vxpose.xlu0.b32.cont [15/16] %v499_v0, 128 }
  0x89   :  { %598 = vxpose.xlu1.b32.end [16/16] %v518_v1, 128  ;;  %566 = vxpose.xlu0.b32.end [16/16] %v517_v2, 128 }
  0xcd   :  { %v599_v3 = vpop.trf.xlu1  ;;  %v567_v5 = vpop.trf.xlu0 }
  0xce   :  { %639 = vst [vmem:[#allocation2 + $0x80] sm:$0xff] %v599_v3  ;;  %615 = vst [vmem:[#allocation2] sm:$0xff] %v567_v5 }
  0xd1   :  { %v600_v6 = vpop.trf.xlu1  ;;  %v568_v7 = vpop.trf.xlu0 }
  0xd2   :  { %640 = vst [vmem:[#allocation2 + $0x88] sm:$0xff] %v600_v6  ;;  %616 = vst [vmem:[#allocation2 + $0x8] sm:$0xff] %v568_v7 }
  0xd5   :  { %v601_v8 = vpop.trf.xlu1  ;;  %v569_v9 = vpop.trf.xlu0 }
  0xd6   :  { %642 = vst [vmem:[#allocation2 + $0x90] sm:$0xff] %v601_v8  ;;  %618 = vst [vmem:[#allocation2 + $0x10] sm:$0xff] %v569_v9 }
  0xd9   :  { %v602_v10 = vpop.trf.xlu1  ;;  %v570_v11 = vpop.trf.xlu0 }
  0xda   :  { %643 = vst [vmem:[#allocation2 + $0x98] sm:$0xff] %v602_v10  ;;  %619 = vst [vmem:[#allocation2 + $0x18] sm:$0xff] %v570_v11 }
  0xdd   :  { %v603_v12 = vpop.trf.xlu1  ;;  %v571_v13 = vpop.trf.xlu0 }
  0xde   :  { %645 = vst [vmem:[#allocation2 + $0xa0] sm:$0xff] %v603_v12  ;;  %621 = vst [vmem:[#allocation2 + $0x20] sm:$0xff] %v571_v13 }
  0xe1   :  { %v604_v14 = vpop.trf.xlu1  ;;  %v572_v15 = vpop.trf.xlu0 }
  0xe2   :  { %646 = vst [vmem:[#allocation2 + $0xa8] sm:$0xff] %v604_v14  ;;  %622 = vst [vmem:[#allocation2 + $0x28] sm:$0xff] %v572_v15 }
  0xe5   :  { %v605_v16 = vpop.trf.xlu1  ;;  %v573_v17 = vpop.trf.xlu0 }
  0xe6   :  { %648 = vst [vmem:[#allocation2 + $0xb0] sm:$0xff] %v605_v16  ;;  %624 = vst [vmem:[#allocation2 + $0x30] sm:$0xff] %v573_v17 }
  0xe9   :  { %v606_v18 = vpop.trf.xlu1  ;;  %v574_v19 = vpop.trf.xlu0 }
  0xea   :  { %649 = vst [vmem:[#allocation2 + $0xb8] sm:$0xff] %v606_v18  ;;  %625 = vst [vmem:[#allocation2 + $0x38] sm:$0xff] %v574_v19 }
  0xed   :  { %v607_v20 = vpop.trf.xlu1  ;;  %v575_v21 = vpop.trf.xlu0 }
  0xee   :  { %651 = vst [vmem:[#allocation2 + $0xc0] sm:$0xff] %v607_v20  ;;  %627 = vst [vmem:[#allocation2 + $0x40] sm:$0xff] %v575_v21 }
  0xf1   :  { %v608_v22 = vpop.trf.xlu1  ;;  %v576_v23 = vpop.trf.xlu0 }
  0xf2   :  { %652 = vst [vmem:[#allocation2 + $0xc8] sm:$0xff] %v608_v22  ;;  %628 = vst [vmem:[#allocation2 + $0x48] sm:$0xff] %v576_v23 }
  0xf5   :  { %v609_v24 = vpop.trf.xlu1  ;;  %v577_v25 = vpop.trf.xlu0 }
  0xf6   :  { %654 = vst [vmem:[#allocation2 + $0xd0] sm:$0xff] %v609_v24  ;;  %630 = vst [vmem:[#allocation2 + $0x50] sm:$0xff] %v577_v25 }
  0xf9   :  { %v610_v26 = vpop.trf.xlu1  ;;  %v578_v27 = vpop.trf.xlu0 }
  0xfa   :  { %655 = vst [vmem:[#allocation2 + $0xd8] sm:$0xff] %v610_v26  ;;  %631 = vst [vmem:[#allocation2 + $0x58] sm:$0xff] %v578_v27 }
  0xfd   :  { %v611_v28 = vpop.trf.xlu1  ;;  %v579_v29 = vpop.trf.xlu0 }
  0xfe   :  { %657 = vst [vmem:[#allocation2 + $0xe0] sm:$0xff] %v611_v28  ;;  %633 = vst [vmem:[#allocation2 + $0x60] sm:$0xff] %v579_v29 }
 0x101   :  { %v612_v30 = vpop.trf.xlu1  ;;  %v580_v31 = vpop.trf.xlu0 }
 0x102   :  { %658 = vst [vmem:[#allocation2 + $0xe8] sm:$0xff] %v612_v30  ;;  %634 = vst [vmem:[#allocation2 + $0x68] sm:$0xff] %v580_v31 }
 0x105   :  { %v613_v32 = vpop.trf.xlu1  ;;  %v581_v33 = vpop.trf.xlu0 }
 0x106   :  { %660 = vst [vmem:[#allocation2 + $0xf0] sm:$0xff] %v613_v32  ;;  %636 = vst [vmem:[#allocation2 + $0x70] sm:$0xff] %v581_v33 }
 0x109   :  { %v614_v34 = vpop.trf.xlu1  ;;  %v582_v35 = vpop.trf.xlu0 }
 0x10a   :  { %661 = vst [vmem:[#allocation2 + $0xf8] sm:$0xff] %v614_v34  ;;  %637 = vst [vmem:[#allocation2 + $0x78] sm:$0xff] %v582_v35 }
 0x10b LB: > { %s6909_s19 = sld [smem:[#allocation11]]  ;;  %s5874_s21 = sshll.u32 %s6701_s0, 4  ;;  %vm696_vm0 = vcmask 1046528   ;;  %vm710_vm1 = vcmask 1045504   ;;  %s6701_s0 = sphi %s6904_s0, %s667_s0  }
 0x10c   : > { %s684_s20 = sld [smem:[#allocation7]]  ;;  %s5881_s22 = sld [smem:[#allocation7 + $0x1]] }
 0x10d   : > { %s5882_s23 = sld [smem:[#allocation7 + $0x2]]  ;;  %s6912_s24 = sld [smem:[#allocation7 + $0x3]] }
 0x10e   : > { %s6916_s25 = scalar_lea.vmem [#allocation2], %s5874_s21  ;;  %s5884_s10 = sld [smem:[#allocation7 + $0x4]] }
 0x10f   : > { %s6924_s26 = sld [smem:[#allocation7 + $0x5]]  ;;  %s6926_s2 = sld [smem:[#allocation7 + $0x6]] }
 0x110   : > { %s6929_s1 = sld [smem:[#allocation7 + $0x7]]  ;;  %s6935_s27 = sld [smem:[#allocation7 + $0x8]] }
 0x111   : > { %v6919_v36 = vld [vmem:[%s6916_s25] sm:$0xff]  ;;  %v6922_v37 = vld [vmem:[%s6916_s25 + $0x8] sm:$0xff]  ;;  %v683_v38 = vstv %s6909_s19  ;;  %v6932_v40 = vld [vmem:[%s6916_s25 + $0x10] sm:$0xff]  ;;  %s6954_s28 = sld [smem:[#allocation11 + $0x1]]  ;;  %s6965_s30 = sld [smem:[#allocation7 + $0xa]] }
 0x112   : > { %v685_v39 = vstv %s684_s20  ;;  %v691_v42 = vstv %s5881_s22  ;;  %v6938_v43 = vld [vmem:[%s6916_s25 + $0x18] sm:$0xff]  ;;  %v6947_v52 = vld [vmem:[%s6916_s25 + $0x20] sm:$0xff]  ;;  %s6956_s29 = sld [smem:[#allocation7 + $0x9]]  ;;  %s6967_s5 = sld [smem:[#allocation7 + $0xb]] }
 0x113   : > { %v686_v41 = vmul.f32 %v685_v39, %v6919_v36  ;;  %v692_v44 = vmul.f32 %v691_v42, %v6919_v36  ;;  %v693_v45 = vmul.f32 %v691_v42, %v6922_v37  ;;  %v705_v46 = vstv %s5882_s23  ;;  %v6959_v61 = vld [vmem:[%s6916_s25 + $0x28] sm:$0xff]  ;;  %s6980_s12 = sld [smem:[#allocation7 + $0xc]]  ;;  %s6987_s13 = sld [smem:[#allocation7 + $0xd]] }
 0x114   : > { %v687_v47 = vmul.f32 %v685_v39, %v6922_v37  ;;  %v706_v49 = vmul.f32 %v705_v46, %v6919_v36  ;;  %v707_v50 = vmul.f32 %v705_v46, %v6922_v37  ;;  %v719_v51 = vstv %s6912_s24  ;;  %s6996_s14 = sld [smem:[#allocation7 + $0xe]]  ;;  %s7008_s15 = sld [smem:[#allocation7 + $0xf]] }
 0x115   : > { %v688_v48 = vadd.f32 %v686_v41, %v683_v38  ;;  %v697_v53 = vrot.slane %v692_v44, 1  ;;  %v698_v54 = vrot.slane %v693_v45, 1  ;;  %v720_v55 = vmul.f32 %v6932_v40, %v719_v51  ;;  %s7021_s16 = sld [smem:[#allocation7 + $0x10]]  ;;  %s7023_s3 = sld [smem:[#allocation7 + $0x11]] }
 0x116   : > { %v725_v56 = vstv %s5884_s10  ;;  %v711_v57 = vrot.slane %v706_v49, 2  ;;  %v712_v58 = vrot.slane %v707_v50, 2  ;;  %v738_v63 = vstv %s6924_s26  ;;  %s7045_s4 = sld [smem:[#allocation11 + $0x2]]  ;;  %s7050_s18 = sld [smem:[#allocation7 + $0x13]] }
 0x117   : > { %v726_v59 = vmul.f32 %v6932_v40, %v725_v56  ;;  %v6952_v60 = vmul.f32 %v6938_v43, %v725_v56  ;;  %v699_v62 = vsel %vm696_vm0, %v697_v53, %v698_v54  ;;  %v751_v0 = vstv %s6926_s2  ;;  %s7047_s17 = sld [smem:[#allocation7 + $0x12]]  ;;  %s7052_s19 = sld [smem:[#allocation7 + $0x14]] }
 0x118   : > { %v757_v1 = vstv %s6929_s1  ;;  %v702_v2 = vadd.f32 %v699_v62, %v688_v48  ;;  %v713_v3 = vsel %vm710_vm1, %v711_v57, %v712_v58  ;;  %v739_v7 = vmul.f32 %v6932_v40, %v738_v63  ;;  %s7059_s20 = sld [smem:[#allocation7 + $0x15]]  ;;  %s7061_s22 = sld [smem:[#allocation7 + $0x16]] }
 0x119   : > { %v730_v5 = vrot.slane %v726_v59, 1  ;;  %v731_v6 = vrot.slane %v6952_v60, 1  ;;  %v740_v8 = vmul.f32 %v6938_v43, %v738_v63  ;;  %v752_v9 = vmul.f32 %v6947_v52, %v751_v0  ;;  %s7065_s23 = scalar_lea.vmem [#allocation3], %s5874_s21  ;;  %s7093_s21 = sld [smem:[#allocation7 + $0x17]] }
 0x11a   : > { %v758_v10 = vmul.f32 %v6947_v52, %v757_v1  ;;  %v716_v11 = vadd.f32 %v713_v3, %v702_v2  ;;  %v6977_v13 = vmul.f32 %v6959_v61, %v757_v1  ;;  %v770_v14 = vstv %s6935_s27  ;;  %s7108_s24 = sld [smem:[#allocation7 + $0x18]]  ;;  %s7114_s25 = sld [smem:[#allocation7 + $0x19]] }
 0x11b   : > { %v732_v12 = vsel %vm696_vm0, %v730_v5, %v731_v6  ;;  %v743_v15 = vrot.slane %v739_v7, 2  ;;  %v744_v16 = vrot.slane %v740_v8, 2  ;;  %v771_v18 = vmul.f32 %v6947_v52, %v770_v14  ;;  %s7127_s10 = sld [smem:[#allocation7 + $0x1a]]  ;;  %s7137_s26 = sld [smem:[#allocation11 + $0x3]] }
 0x11c   : > { %v762_v17 = vrot.slane %v758_v10, 1  ;;  %v722_v19 = vadd.f32 %v720_v55, %v716_v11  ;;  %v763_v20 = vrot.slane %v6977_v13, 1  ;;  %v6985_v21 = vmul.f32 %v6959_v61, %v770_v14  ;;  %s7150_s2 = sld [smem:[#allocation7 + $0x1b]]  ;;  %s7152_s1 = sld [smem:[#allocation7 + $0x1c]] }
 0x11d   : > { %v689_v22 = vadd.f32 %v687_v47, %v683_v38  ;;  %v745_v23 = vsel %vm710_vm1, %v743_v15, %v744_v16  ;;  %v775_v24 = vrot.slane %v771_v18, 2  ;;  %v721_v25 = vmul.f32 %v6938_v43, %v719_v51  ;;  %s7161_s27 = sld [smem:[#allocation7 + $0x1d]]  ;;  %s667_s0 = sadd.s32 1, %s6701_s0  }
 0x11e   : > { %v753_v26 = vmul.f32 %v6959_v61, %v751_v0  ;;  %v735_v27 = vadd.f32 %v732_v12, %v722_v19  ;;  %v764_v28 = vsel %vm696_vm0, %v762_v17, %v763_v20  ;;  %v776_v29 = vrot.slane %v6985_v21, 2  ;;  %p664_p0 = scmp.ge.s32.totalorder %s667_s0, 14  }
 0x11f   : > { %v703_v30 = vadd.f32 %v698_v54, %v689_v22  ;;  %v788_v31 = vstv %s6954_s28  ;;  %v790_v32 = vstv %s6956_s29  ;;  %v796_v33 = vstv %s6965_s30  ;;  %s7163_s28 = sld [smem:[#allocation7 + $0x1e]]  ;;  %s7181_s29 = sld [smem:[#allocation7 + $0x1f]] }
 0x120   : > { %v809_v34 = vstv %s6967_s5  ;;  %v748_v35 = vadd.f32 %v745_v23, %v735_v27  ;;  %v777_v38 = vsel %vm710_vm1, %v775_v24, %v776_v29  ;;  %v791_v41 = vmul.f32 %v790_v32, %v6919_v36  ;;  %s7183_s30 = sld [smem:[#allocation7 + $0x20]]  ;;  %s7198_s5 = sld [smem:[#allocation7 + $0x21]] }
 0x121   : > { %v717_v39 = vadd.f32 %v712_v58, %v703_v30  ;;  %v797_v42 = vmul.f32 %v796_v33, %v6919_v36  ;;  %v7012_v44 = vmul.f32 %v796_v33, %v6922_v37  ;;  %v810_v45 = vmul.f32 %v809_v34, %v6919_v36 }
 0x122   : > { %v7016_v46 = vmul.f32 %v809_v34, %v6922_v37  ;;  %v754_v47 = vadd.f32 %v752_v9, %v748_v35  ;;  %v793_v49 = vadd.f32 %v791_v41, %v788_v31  ;;  %v822_v50 = vstv %s6980_s12  ;;  %s7204_s12 = sld [smem:[#allocation7 + $0x22]] }
 0x123   : > { %v723_v48 = vadd.f32 %v721_v25, %v717_v39  ;;  %v801_v51 = vrot.slane %v797_v42, 1  ;;  %v802_v53 = vrot.slane %v7012_v44, 1  ;;  %v814_v54 = vrot.slane %v810_v45, 2 }
 0x124   : > { %v815_v55 = vrot.slane %v7016_v46, 2  ;;  %v767_v56 = vadd.f32 %v764_v28, %v754_v47  ;;  %v823_v58 = vmul.f32 %v6932_v40, %v822_v50  ;;  %v828_v59 = vstv %s6987_s13  ;;  %s7206_s13 = sld [smem:[#allocation7 + $0x23]] }
 0x125   : > { %v736_v57 = vadd.f32 %v731_v6, %v723_v48  ;;  %v803_v60 = vsel %vm696_vm0, %v801_v51, %v802_v53  ;;  %v829_v63 = vmul.f32 %v6932_v40, %v828_v59  ;;  %v7037_v0 = vmul.f32 %v6938_v43, %v828_v59 }
 0x126   : > { %v816_v62 = vsel %vm710_vm1, %v814_v54, %v815_v55  ;;  %v780_v1 = vadd.f32 %v777_v38, %v767_v56  ;;  %v806_v3 = vadd.f32 %v803_v60, %v793_v49  ;;  %v841_v5 = vstv %s6996_s14  ;;  %s7249_s14 = smov (%p664_p0), 0  }
 0x127   : > { %v749_v2 = vadd.f32 %v744_v16, %v736_v57  ;;  %v833_v6 = vrot.slane %v829_v63, 1  ;;  %v834_v7 = vrot.slane %v7037_v0, 1  ;;  %v842_v8 = vmul.f32 %v6932_v40, %v841_v5 }
 0x128   : > { %v7043_v9 = vmul.f32 %v6938_v43, %v841_v5  ;;  %v782_v10 = vmax.f32 %v780_v1, 0.0  ;;  %v819_v12 = vadd.f32 %v816_v62, %v806_v3  ;;  %v854_v14 = vstv %s7008_s15 }
 0x129   : > { %v755_v11 = vadd.f32 %v753_v26, %v749_v2  ;;  %v835_v15 = vsel %vm696_vm0, %v833_v6, %v834_v7  ;;  %v846_v16 = vrot.slane %v842_v8, 2  ;;  %v855_v18 = vmul.f32 %v6947_v52, %v854_v14 }
 0x12a   : > { %v847_v17 = vrot.slane %v7043_v9, 2  ;;  %785 = vst [vmem:[%s7065_s23] sm:$0xff] %v782_v10  ;;  %v825_v22 = vadd.f32 %v823_v58, %v819_v12  ;;  %v860_v23 = vstv %s7021_s16  ;;  %v873_v24 = vstv %s7023_s3 }
 0x12b   : > { %v768_v19 = vadd.f32 %v763_v20, %v755_v11  ;;  %v861_v26 = vmul.f32 %v6947_v52, %v860_v23  ;;  %v7077_v27 = vmul.f32 %v6959_v61, %v860_v23  ;;  %v874_v28 = vmul.f32 %v6947_v52, %v873_v24 }
 0x12c   : > { %v848_v25 = vsel %vm710_vm1, %v846_v16, %v847_v17  ;;  %v838_v20 = vadd.f32 %v835_v15, %v825_v22  ;;  %v7083_v30 = vmul.f32 %v6959_v61, %v873_v24  ;;  %v792_v33 = vmul.f32 %v790_v32, %v6922_v37 }
 0x12d   : > { %v781_v13 = vadd.f32 %v776_v29, %v768_v19  ;;  %v865_v34 = vrot.slane %v861_v26, 1  ;;  %v866_v35 = vrot.slane %v7077_v27, 1  ;;  %v878_v38 = vrot.slane %v874_v28, 2 }
 0x12e   : > { %v824_v39 = vmul.f32 %v6938_v43, %v822_v50  ;;  %v851_v21 = vadd.f32 %v848_v25, %v838_v20  ;;  %v879_v29 = vrot.slane %v7083_v30, 2  ;;  %v794_v42 = vadd.f32 %v792_v33, %v788_v31 }
 0x12f   : > { %v783_v41 = vmax.f32 %v781_v13, 0.0  ;;  %v867_v32 = vsel %vm696_vm0, %v865_v34, %v866_v35  ;;  %v856_v45 = vmul.f32 %v6959_v61, %v854_v14  ;;  %v892_v47 = vstv %s7045_s4 }
 0x130   : > { %v894_v48 = vstv %s7047_s17  ;;  %v857_v49 = vadd.f32 %v855_v18, %v851_v21  ;;  %v880_v50 = vsel %vm710_vm1, %v878_v38, %v879_v29  ;;  %v807_v31 = vadd.f32 %v802_v53, %v794_v42 }
 0x131   : > { %786 = vst [vmem:[%s7065_s23 + $0x8] sm:$0x3f] %v783_v41  ;;  %v895_v51 = vmul.f32 %v894_v48, %v6919_v36  ;;  %v900_v54 = vstv %s7050_s18  ;;  %v913_v56 = vstv %s7052_s19  ;;  %v926_v57 = vstv %s7059_s20 }
 0x132   : > { %v932_v58 = vstv %s7061_s22  ;;  %v870_v59 = vadd.f32 %v867_v32, %v857_v49  ;;  %v820_v60 = vadd.f32 %v815_v55, %v807_v31  ;;  %v901_v63 = vmul.f32 %v900_v54, %v6919_v36 }
 0x133   : > { %v897_v62 = vadd.f32 %v895_v51, %v892_v47  ;;  %v902_v44 = vmul.f32 %v900_v54, %v6922_v37  ;;  %v914_v53 = vmul.f32 %v913_v56, %v6919_v36  ;;  %v7124_v1 = vmul.f32 %v913_v56, %v6922_v37 }
 0x134   : > { %v927_v2 = vmul.f32 %v6932_v40, %v926_v57  ;;  %v883_v3 = vadd.f32 %v880_v50, %v870_v59  ;;  %v826_v5 = vadd.f32 %v824_v39, %v820_v60  ;;  %v905_v46 = vrot.slane %v901_v63, 1 }
 0x135   : > { %v933_v55 = vmul.f32 %v6932_v40, %v932_v58  ;;  %v906_v6 = vrot.slane %v902_v44, 1  ;;  %v918_v8 = vrot.slane %v914_v53, 2  ;;  %v919_v10 = vrot.slane %v7124_v1, 2 }
 0x136   : > { %v7132_v11 = vmul.f32 %v6938_v43, %v932_v58  ;;  %v885_v12 = vmax.f32 %v883_v3, 0.0  ;;  %v839_v14 = vadd.f32 %v834_v7, %v826_v5  ;;  %v945_v16 = vstv %s7093_s21 }
 0x137   : > { %v937_v15 = vrot.slane %v933_v55, 1  ;;  %v907_v18 = vsel %vm696_vm0, %v905_v46, %v906_v6  ;;  %v920_v19 = vsel %vm710_vm1, %v918_v8, %v919_v10  ;;  %v946_v23 = vmul.f32 %v6932_v40, %v945_v16 }
 0x138   : > { %v938_v22 = vrot.slane %v7132_v11, 1  ;;  %5900 = vst [vmem:[%s7065_s23 + $0xe0] sm:$0xff] %v885_v12  ;;  %v852_v24 = vadd.f32 %v847_v17, %v839_v14  ;;  %v910_v25 = vadd.f32 %v907_v18, %v897_v62  ;;  %v7147_v0 = vmul.f32 %v6938_v43, %v945_v16 }
 0x139   : > { %v958_v7 = vstv %s7108_s24  ;;  %v950_v28 = vrot.slane %v946_v23, 2  ;;  %v964_v20 = vstv %s7114_s25  ;;  %v977_v39 = vstv %s7127_s10 }
 0x13a   : > { %v939_v26 = vsel %vm696_vm0, %v937_v15, %v938_v22  ;;  %v959_v13 = vmul.f32 %v6947_v52, %v958_v7  ;;  %v858_v9 = vadd.f32 %v856_v45, %v852_v24  ;;  %v923_v17 = vadd.f32 %v920_v19, %v910_v25 }
 0x13b   : > { %v951_v33 = vrot.slane %v7147_v0, 2  ;;  %v965_v34 = vmul.f32 %v6947_v52, %v964_v20  ;;  %v7166_v38 = vmul.f32 %v6959_v61, %v964_v20  ;;  %v896_v41 = vmul.f32 %v894_v48, %v6922_v37 }
 0x13c   : > { %v928_v21 = vmul.f32 %v6938_v43, %v926_v57  ;;  %v871_v42 = vadd.f32 %v866_v35, %v858_v9  ;;  %v929_v32 = vadd.f32 %v927_v2, %v923_v17  ;;  %v978_v31 = vmul.f32 %v6947_v52, %v977_v39 }
 0x13d   : > { %v952_v45 = vsel %vm710_vm1, %v950_v28, %v951_v33  ;;  %v969_v49 = vrot.slane %v965_v34, 1  ;;  %v970_v50 = vrot.slane %v7166_v38, 1  ;;  %v7177_v51 = vmul.f32 %v6959_v61, %v977_v39 }
 0x13e   : > { %v898_v48 = vadd.f32 %v896_v41, %v892_v47  ;;  %v884_v27 = vadd.f32 %v879_v29, %v871_v42  ;;  %v942_v35 = vadd.f32 %v939_v26, %v929_v32  ;;  %v960_v54 = vmul.f32 %v6959_v61, %v958_v7 }
 0x13f   : > { %v996_v56 = vstv %s7137_s26  ;;  %v971_v57 = vsel %vm696_vm0, %v969_v49, %v970_v50  ;;  %v982_v58 = vrot.slane %v978_v31, 2  ;;  %v983_v47 = vrot.slane %v7177_v51, 2 }
 0x140   : > { %v911_v59 = vadd.f32 %v906_v6, %v898_v48  ;;  %v886_v60 = vmax.f32 %v884_v27, 0.0  ;;  %v955_v62 = vadd.f32 %v952_v45, %v942_v35  ;;  %v998_v30 = vstv %s7150_s2 }
 0x141   : > { %v1004_v29 = vstv %s7152_s1  ;;  %v984_v63 = vsel %vm710_vm1, %v982_v58, %v983_v47  ;;  %v999_v53 = vmul.f32 %v998_v30, %v6919_v36  ;;  %v1017_v5 = vstv %s7161_s27 }
 0x142   : > { %v924_v44 = vadd.f32 %v919_v10, %v911_v59  ;;  %v1005_v1 = vmul.f32 %v1004_v29, %v6919_v36  ;;  %5901 = vst [vmem:[%s7065_s23 + $0xe8] sm:$0x3f] %v886_v60  ;;  %v961_v2 = vadd.f32 %v959_v13, %v955_v62  ;;  %v1006_v3 = vmul.f32 %v1004_v29, %v6922_v37 }
 0x143   : > { %v1030_v46 = vstv %s7163_s28  ;;  %v1001_v6 = vadd.f32 %v999_v53, %v996_v56  ;;  %v1018_v10 = vmul.f32 %v1017_v5, %v6919_v36  ;;  %v1019_v15 = vmul.f32 %v1017_v5, %v6922_v37 }
 0x144   : > { %v930_v55 = vadd.f32 %v928_v21, %v924_v44  ;;  %v1009_v8 = vrot.slane %v1005_v1, 1  ;;  %v974_v12 = vadd.f32 %v971_v57, %v961_v2  ;;  %v1010_v14 = vrot.slane %v1006_v3, 1 }
 0x145   : > { %v1031_v16 = vmul.f32 %v6932_v40, %v1030_v46  ;;  %v1022_v19 = vrot.slane %v1018_v10, 2  ;;  %v1036_v23 = vstv %s7181_s29  ;;  %v1049_v24 = vstv %s7183_s30 }
 0x146   : > { %v943_v18 = vadd.f32 %v938_v22, %v930_v55  ;;  %v987_v25 = vadd.f32 %v984_v63, %v974_v12  ;;  %v1011_v0 = vsel %vm696_vm0, %v1009_v8, %v1010_v14  ;;  %v1023_v7 = vrot.slane %v1019_v15, 2 }
 0x147   : > { %v1037_v36 = vmul.f32 %v6932_v40, %v1036_v23  ;;  %v1014_v28 = vadd.f32 %v1011_v0, %v1001_v6  ;;  %v1038_v13 = vmul.f32 %v6938_v43, %v1036_v23  ;;  %v1050_v11 = vmul.f32 %v6932_v40, %v1049_v24 }
 0x148   : > { %v956_v26 = vadd.f32 %v951_v33, %v943_v18  ;;  %v989_v22 = vmax.f32 %v987_v25, 0.0  ;;  %v1024_v20 = vsel %vm710_vm1, %v1022_v19, %v1023_v7  ;;  %v1051_v17 = vmul.f32 %v6938_v43, %v1049_v24 }
 0x149   : > { %v1041_v9 = vrot.slane %v1037_v36, 1  ;;  %v1027_v39 = vadd.f32 %v1024_v20, %v1014_v28  ;;  %v1042_v41 = vrot.slane %v1038_v13, 1  ;;  %v1054_v21 = vrot.slane %v1050_v11, 2 }
 0x14a   : > { %v962_v34 = vadd.f32 %v960_v54, %v956_v26  ;;  %5913 = vst [vmem:[%s7065_s23 + $0x1c0] sm:$0xff] %v989_v22  ;;  %v1055_v42 = vrot.slane %v1051_v17, 2  ;;  %v1062_v32 = vstv %s7198_s5  ;;  %v1068_v33 = vstv %s7204_s12 }
 0x14b   : > { %v1081_v45 = vstv %s7206_s13  ;;  %v1033_v31 = vadd.f32 %v1031_v16, %v1027_v39  ;;  %v1043_v40 = vsel %vm696_vm0, %v1041_v9, %v1042_v41  ;;  %v1063_v51 = vmul.f32 %v6947_v52, %v1062_v32 }
 0x14c   : > { %v975_v49 = vadd.f32 %v970_v50, %v962_v34  ;;  %v1056_v48 = vsel %vm710_vm1, %v1054_v21, %v1055_v42  ;;  %v1069_v27 = vmul.f32 %v6947_v52, %v1068_v33  ;;  %v1070_v35 = vmul.f32 %v6959_v61, %v1068_v33 }
 0x14d   : > { %v1082_v54 = vmul.f32 %v6947_v52, %v1081_v45  ;;  %v1046_v58 = vadd.f32 %v1043_v40, %v1033_v31  ;;  %v1083_v38 = vmul.f32 %v6959_v61, %v1081_v45  ;;  %v1000_v50 = vmul.f32 %v998_v30, %v6922_v37 }
 0x14e   : > { %v988_v57 = vadd.f32 %v983_v47, %v975_v49  ;;  %v1073_v59 = vrot.slane %v1069_v27, 1  ;;  %v1074_v60 = vrot.slane %v1070_v35, 1  ;;  %v1032_v47 = vmul.f32 %v6938_v43, %v1030_v46 }
 0x14f   : > { %v1086_v62 = vrot.slane %v1082_v54, 2  ;;  %v1059_v63 = vadd.f32 %v1056_v48, %v1046_v58  ;;  %v1087_v44 = vrot.slane %v1083_v38, 2  ;;  %v1002_v53 = vadd.f32 %v1000_v50, %v996_v56 }
 0x150   : > { %v990_v29 = vmax.f32 %v988_v57, 0.0  ;;  %v1075_v1 = vsel %vm696_vm0, %v1073_v59, %v1074_v60  ;;  %v1064_v10 = vmul.f32 %v6959_v61, %v1062_v32 }
 0x151   : > { %v1065_v2 = vadd.f32 %v1063_v51, %v1059_v63  ;;  %v1015_v52 = vadd.f32 %v1010_v14, %v1002_v53  ;;  %v1088_v3 = vsel %vm710_vm1, %v1086_v62, %v1087_v44 }
 0x152   : > { %5914 = vst [vmem:[%s7065_s23 + $0x1c8] sm:$0x3f] %v990_v29 }
 0x153   : > { %v1078_v37 = vadd.f32 %v1075_v1, %v1065_v2  ;;  %v1028_v30 = vadd.f32 %v1023_v7, %v1015_v52 }
 0x155   : > { %v1091_v5 = vadd.f32 %v1088_v3, %v1078_v37  ;;  %v1034_v55 = vadd.f32 %v1032_v47, %v1028_v30 }
 0x157   : > { %v1093_v6 = vmax.f32 %v1091_v5, 0.0  ;;  %v1047_v8 = vadd.f32 %v1042_v41, %v1034_v55 }
 0x159   : > { %5926 = vst [vmem:[%s7065_s23 + $0x2a0] sm:$0xff] %v1093_v6  ;;  %v1060_v56 = vadd.f32 %v1055_v42, %v1047_v8 }
 0x15b   : > { %v1066_v12 = vadd.f32 %v1064_v10, %v1060_v56 }
 0x15d   : > { %v1079_v15 = vadd.f32 %v1074_v60, %v1066_v12  ;;  %666 = sbr.rel (!%p664_p0) target bundleno = 267 (0x10b), region = 235 }
 0x15f   : > { %v1092_v16 = vadd.f32 %v1087_v44, %v1079_v15 }
 0x161   : > { %v1094_v18 = vmax.f32 %v1092_v16, 0.0 }
 0x163   : > { %5927 = vst [vmem:[%s7065_s23 + $0x2a8] sm:$0x3f] %v1094_v18 }
 0x164 LB: > { %s7254_s15 = sld [smem:[#allocation14]]  ;;  %s7256_s16 = sld [smem:[#allocation14 + $0x1]]  ;;  %s6705_s14 = sphi %s7249_s14, %s1104_s14  }
 0x165   : > { %s7258_s3 = sld [smem:[#allocation14 + $0x2]]  ;;  %s7260_s4 = sld [smem:[#allocation14 + $0x3]] }
 0x166   : > { %s7262_s0 = sld [smem:[#allocation14 + $0x4]]  ;;  %s7264_s17 = sld [smem:[#allocation14 + $0x5]] }
 0x167   : > { %s7266_s18 = sld [smem:[#allocation14 + $0x6]]  ;;  %s7268_s19 = sld [smem:[#allocation14 + $0x7]] }
 0x168   : > { %s5935_s20 = sshll.u32 %s6705_s14, 4  ;;  %s1125_s22 = sld [smem:[#allocation13]] }
 0x169   : > { %s5936_s23 = sld [smem:[#allocation13 + $0x24]]  ;;  %s5937_s21 = sld [smem:[#allocation13 + $0x48]] }
 0x16a   : > { %s7273_s24 = scalar_lea.vmem [#allocation3], %s5935_s20  ;;  %s7278_s25 = sld [smem:[#allocation13 + $0x6c]]  ;;  %v1106_v46 = vstv %s7254_s15  ;;  %v1108_v14 = vstv %s7256_s16 }
 0x16b   : > { %v7276_v43 = vld [vmem:[%s7273_s24] sm:$0xff]  ;;  %s7280_s10 = sld [smem:[#allocation13 + $0x90]]  ;;  %v7283_v61 = vld [vmem:[%s7273_s24 + $0x8] sm:$0x3f]  ;;  %s7285_s26 = sld [smem:[#allocation13 + $0xb4]]  ;;  %v1110_v19 = vstv %s7258_s3  ;;  %v1112_v23 = vstv %s7260_s4 }
 0x16c   : > { %s7287_s2 = sld [smem:[#allocation13 + $0xd8]]  ;;  %v1114_v24 = vstv %s7262_s0  ;;  %v1116_v25 = vstv %s7264_s17  ;;  %s7298_s1 = sld [smem:[#allocation13 + $0xfc]] }
 0x16d   : > { %v1118_v7 = vstv %s7266_s18  ;;  %s7300_s27 = sld [smem:[#allocation13 + $0x1]]  ;;  %v1120_v13 = vstv %s7268_s19  ;;  %s7307_s28 = sld [smem:[#allocation13 + $0x25]] }
 0x16e   : > { %v1126_v0 = vstv %s1125_s22  ;;  %s7309_s29 = sld [smem:[#allocation13 + $0x49]]  ;;  %s7319_s30 = sld [smem:[#allocation13 + $0x6d]] }
 0x16f   : > { %v1127_v36 = vmul.f32 %v1126_v0, %v7276_v43  ;;  %v1128_v26 = vmul.f32 %v1126_v0, %v7283_v61  ;;  %v1132_v28 = vstv %s5936_s23  ;;  %v1138_v20 = vstv %s5937_s21  ;;  %s7321_s5 = sld [smem:[#allocation13 + $0x91]]  ;;  %s7347_s12 = sld [smem:[#allocation13 + $0xb5]] }
 0x170   : > { %v1133_v11 = vmul.f32 %v1132_v28, %v7276_v43  ;;  %v1134_v22 = vmul.f32 %v1132_v28, %v7283_v61  ;;  %v1139_v34 = vmul.f32 %v1138_v20, %v7276_v43  ;;  %v1140_v39 = vmul.f32 %v1138_v20, %v7283_v61  ;;  %s7353_s13 = sld [smem:[#allocation13 + $0xd9]]  ;;  %s7355_s15 = sld [smem:[#allocation13 + $0xfd]] }
 0x171   : > { %v1129_v9 = vadd.f32 %v1127_v36, %v1106_v46  ;;  %v1130_v17 = vadd.f32 %v1128_v26, %v1106_v46  ;;  %v1144_v42 = vstv %s7278_s25  ;;  %v1150_v32 = vstv %s7280_s10  ;;  %s7376_s16 = sld [smem:[#allocation13 + $0x2]]  ;;  %s7378_s3 = sld [smem:[#allocation13 + $0x26]] }
 0x172   : > { %v1135_v41 = vadd.f32 %v1133_v11, %v1108_v14  ;;  %v1136_v21 = vadd.f32 %v1134_v22, %v1108_v14  ;;  %v1141_v33 = vadd.f32 %v1139_v34, %v1110_v19  ;;  %v1142_v45 = vadd.f32 %v1140_v39, %v1110_v19  ;;  %s7395_s4 = sld [smem:[#allocation13 + $0x4a]]  ;;  %s7397_s0 = sld [smem:[#allocation13 + $0x6e]] }
 0x173   : > { %v1145_v49 = vmul.f32 %v1144_v42, %v7276_v43  ;;  %v1146_v31 = vmul.f32 %v1144_v42, %v7283_v61  ;;  %v1151_v40 = vmul.f32 %v1150_v32, %v7276_v43  ;;  %v1152_v51 = vmul.f32 %v1150_v32, %v7283_v61  ;;  %s7415_s17 = sld [smem:[#allocation13 + $0x92]]  ;;  %s7435_s18 = sld [smem:[#allocation13 + $0xb6]] }
 0x174   : > { %v1156_v48 = vstv %s7285_s26  ;;  %v1162_v27 = vstv %s7287_s2  ;;  %v1168_v63 = vstv %s7298_s1  ;;  %v1174_v44 = vstv %s7300_s27  ;;  %s7437_s19 = sld [smem:[#allocation13 + $0xda]]  ;;  %s7455_s22 = sld [smem:[#allocation13 + $0xfe]] }
 0x175   : > { %v7323_v35 = vadd.f32 %v1145_v49, %v1112_v23  ;;  %v7325_v54 = vadd.f32 %v1146_v31, %v1112_v23  ;;  %v1157_v57 = vmul.f32 %v1156_v48, %v7276_v43  ;;  %v1158_v58 = vmul.f32 %v1156_v48, %v7283_v61  ;;  %s7457_s23 = sld [smem:[#allocation13 + $0x3]]  ;;  %s7471_s21 = sld [smem:[#allocation13 + $0x27]] }
 0x176   : > { %v7329_v38 = vadd.f32 %v1151_v40, %v1114_v24  ;;  %v7331_v50 = vadd.f32 %v1152_v51, %v1114_v24  ;;  %v1163_v59 = vmul.f32 %v1162_v27, %v7276_v43  ;;  %v1164_v60 = vmul.f32 %v1162_v27, %v7283_v61  ;;  %s7485_s25 = sld [smem:[#allocation13 + $0x4b]]  ;;  %s7487_s10 = sld [smem:[#allocation13 + $0x6f]] }
 0x177   : > { %v7335_v62 = vadd.f32 %v1157_v57, %v1116_v25  ;;  %v7337_v29 = vadd.f32 %v1158_v58, %v1116_v25  ;;  %v1169_v2 = vmul.f32 %v1168_v63, %v7276_v43  ;;  %v1170_v52 = vmul.f32 %v1168_v63, %v7283_v61  ;;  %s7504_s26 = sld [smem:[#allocation13 + $0x93]]  ;;  %s7509_s2 = sld [smem:[#allocation13 + $0xb7]] }
 0x178   : > { %v7341_v53 = vadd.f32 %v1163_v59, %v1118_v7  ;;  %v7343_v1 = vadd.f32 %v1164_v60, %v1118_v7  ;;  %v1175_v47 = vmul.f32 %v1174_v44, %v7276_v43  ;;  %v1176_v3 = vmul.f32 %v1174_v44, %v7283_v61  ;;  %s7515_s1 = sld [smem:[#allocation13 + $0xdb]]  ;;  %s7525_s27 = sld [smem:[#allocation13 + $0xff]] }
 0x179   : > { %v1188_v37 = vstv %s7307_s28  ;;  %v1201_v30 = vstv %s7309_s29  ;;  %v7357_v5 = vadd.f32 %v1169_v2, %v1120_v13  ;;  %v7359_v55 = vadd.f32 %v1170_v52, %v1120_v13  ;;  %s7527_s28 = sld [smem:[#allocation13 + $0x4]]  ;;  %s7537_s29 = sld [smem:[#allocation13 + $0x28]] }
 0x17a   : > { %v1189_v6 = vmul.f32 %v1188_v37, %v7276_v43  ;;  %v1190_v8 = vmul.f32 %v1188_v37, %v7283_v61  ;;  %v1180_v10 = vrot.slane %v1175_v47, 1  ;;  %v1181_v56 = vrot.slane %v1176_v3, 1  ;;  %s1104_s14 = sadd.s32 1, %s6705_s14  }
 0x17b   : > { %v1202_v12 = vmul.f32 %v1201_v30, %v7276_v43  ;;  %v1203_v15 = vmul.f32 %v1201_v30, %v7283_v61  ;;  %v1214_v46 = vstv %s7319_s30  ;;  %v1227_v14 = vstv %s7321_s5  ;;  %s7539_s30 = sld [smem:[#allocation13 + $0x4c]]  ;;  %s7552_s5 = sld [smem:[#allocation13 + $0x70]] }
 0x17c   : > { %v1193_v16 = vrot.slane %v1189_v6, 1  ;;  %v1194_v18 = vrot.slane %v1190_v8, 1  ;;  %v1182_v19 = vsel %vm696_vm0, %v1180_v10, %v1181_v56  ;;  %v7368_v23 = vadd.f32 %v1181_v56, %v1130_v17  ;;  %p1101_p1 = scmp.ge.s32.totalorder %s1104_s14, 12  }
 0x17d   : > { %v1206_v24 = vrot.slane %v1202_v12, 1  ;;  %v1207_v25 = vrot.slane %v1203_v15, 1  ;;  %v7370_v0 = vadd.f32 %v1182_v19, %v1129_v9  ;;  %v1215_v26 = vmul.f32 %v1214_v46, %v7276_v43 }
 0x17e   : > { %v1195_v7 = vsel %vm696_vm0, %v1193_v16, %v1194_v18  ;;  %v7373_v36 = vadd.f32 %v1194_v18, %v1136_v21  ;;  %v1216_v22 = vmul.f32 %v1214_v46, %v7283_v61  ;;  %v1228_v17 = vmul.f32 %v1227_v14, %v7276_v43 }
 0x17f   : > { %v7380_v28 = vadd.f32 %v1195_v7, %v1135_v41  ;;  %v1208_v13 = vsel %vm696_vm0, %v1206_v24, %v1207_v25  ;;  %v7383_v11 = vadd.f32 %v1207_v25, %v1142_v45  ;;  %v1219_v9 = vrot.slane %v1215_v26, 1 }
 0x180   : > { %v7386_v20 = vadd.f32 %v1208_v13, %v1141_v33  ;;  %v1229_v34 = vmul.f32 %v1227_v14, %v7283_v61  ;;  %v1220_v39 = vrot.slane %v1216_v22, 1  ;;  %v1240_v21 = vstv %s7347_s12  ;;  %s7554_s12 = sld [smem:[#allocation13 + $0x94]] }
 0x181   : > { %v1253_v42 = vstv %s7353_s13  ;;  %v1266_v32 = vstv %s7355_s15  ;;  %v1232_v49 = vrot.slane %v1228_v17, 1  ;;  %v1241_v31 = vmul.f32 %v1240_v21, %v7276_v43  ;;  %s7580_s13 = sld [smem:[#allocation13 + $0xb8]]  ;;  %s7586_s15 = sld [smem:[#allocation13 + $0xdc]] }
 0x182   : > { %v1233_v41 = vrot.slane %v1229_v34, 1  ;;  %v1242_v45 = vmul.f32 %v1240_v21, %v7283_v61  ;;  %v1221_v33 = vsel %vm696_vm0, %v1219_v9, %v1220_v39  ;;  %v7401_v40 = vadd.f32 %v1220_v39, %v7325_v54 }
 0x183   : > { %v1254_v51 = vmul.f32 %v1253_v42, %v7276_v43  ;;  %v1255_v48 = vmul.f32 %v1253_v42, %v7283_v61  ;;  %v7406_v27 = vadd.f32 %v1221_v33, %v7323_v35  ;;  %v1245_v59 = vrot.slane %v1241_v31, 1 }
 0x184   : > { %v1234_v57 = vsel %vm696_vm0, %v1232_v49, %v1233_v41  ;;  %v7410_v58 = vadd.f32 %v1233_v41, %v7331_v50  ;;  %v1246_v63 = vrot.slane %v1242_v45, 1  ;;  %v1267_v2 = vmul.f32 %v1266_v32, %v7276_v43 }
 0x185   : > { %v7413_v60 = vadd.f32 %v1234_v57, %v7329_v38  ;;  %v1258_v44 = vrot.slane %v1254_v51, 1  ;;  %v1259_v54 = vrot.slane %v1255_v48, 1  ;;  %v1268_v52 = vmul.f32 %v1266_v32, %v7283_v61 }
 0x186   : > { %v1279_v35 = vstv %s7376_s16  ;;  %v1293_v47 = vstv %s7378_s3  ;;  %v1247_v3 = vsel %vm696_vm0, %v1245_v59, %v1246_v63  ;;  %v7423_v50 = vadd.f32 %v1246_v63, %v7337_v29  ;;  %s7588_s16 = sld [smem:[#allocation13 + $0x100]]  ;;  %s7611_s3 = sld [smem:[#allocation13 + $0x5]] }
 0x187   : > { %v1260_v38 = vsel %vm696_vm0, %v1258_v44, %v1259_v54  ;;  %v7427_v37 = vadd.f32 %v1259_v54, %v7343_v1  ;;  %v7430_v30 = vadd.f32 %v1247_v3, %v7335_v62  ;;  %v1271_v8 = vrot.slane %v1267_v2, 1  ;;  %v7494_v54 = vld [vmem:[%s7273_s24 + $0x10] sm:$0xff] }
 0x188   : > { %v7433_v6 = vadd.f32 %v1260_v38, %v7341_v53  ;;  %v1272_v10 = vrot.slane %v1268_v52, 1  ;;  %v1280_v29 = vmul.f32 %v1279_v35, %v7276_v43  ;;  %v1281_v56 = vmul.f32 %v1279_v35, %v7283_v61  ;;  %v7500_v52 = vld [vmem:[%s7273_s24 + $0x18] sm:$0x3f] }
 0x189   : > { %v1294_v12 = vmul.f32 %v1293_v47, %v7276_v43  ;;  %v1295_v1 = vmul.f32 %v1293_v47, %v7283_v61  ;;  %v1306_v53 = vstv %s7395_s4  ;;  %v1319_v16 = vstv %s7397_s0  ;;  %s7613_s4 = sld [smem:[#allocation13 + $0x29]]  ;;  %s7630_s0 = sld [smem:[#allocation13 + $0x4d]] }
 0x18a   : > { %v1273_v62 = vsel %vm696_vm0, %v1271_v8, %v1272_v10  ;;  %v7445_v15 = vadd.f32 %v1272_v10, %v7359_v55  ;;  %v1285_v46 = vrot.slane %v1280_v29, 2  ;;  %v1286_v14 = vrot.slane %v1281_v56, 2 }
 0x18b   : > { %v7450_v18 = vadd.f32 %v1273_v62, %v7357_v5  ;;  %v1298_v19 = vrot.slane %v1294_v12, 2  ;;  %v1299_v24 = vrot.slane %v1295_v1, 2  ;;  %v1307_v25 = vmul.f32 %v1306_v53, %v7276_v43 }
 0x18c   : > { %v1308_v7 = vmul.f32 %v1306_v53, %v7283_v61  ;;  %v1320_v26 = vmul.f32 %v1319_v16, %v7276_v43  ;;  %v1287_v55 = vsel %vm710_vm1, %v1285_v46, %v1286_v14  ;;  %v1291_v5 = vadd.f32 %v1286_v14, %v7368_v23 }
 0x18d   : > { %v1321_v13 = vmul.f32 %v1319_v16, %v7283_v61  ;;  %v1332_v22 = vstv %s7415_s17  ;;  %v1290_v9 = vadd.f32 %v1287_v55, %v7370_v0  ;;  %v1300_v17 = vsel %vm710_vm1, %v1298_v19, %v1299_v24  ;;  %s7632_s17 = sld [smem:[#allocation13 + $0x71]] }
 0x18e   : > { %v7466_v34 = vadd.f32 %v1299_v24, %v7373_v36  ;;  %v1311_v39 = vrot.slane %v1307_v25, 2  ;;  %v7469_v21 = vadd.f32 %v1300_v17, %v7380_v28  ;;  %v1312_v42 = vrot.slane %v1308_v7, 2 }
 0x18f   : > { %v1324_v32 = vrot.slane %v1320_v26, 2  ;;  %v1325_v49 = vrot.slane %v1321_v13, 2  ;;  %v1333_v23 = vmul.f32 %v1332_v22, %v7276_v43  ;;  %v1334_v41 = vmul.f32 %v1332_v22, %v7283_v61 }
 0x190   : > { %v1345_v31 = vstv %s7435_s18  ;;  %v1358_v0 = vstv %s7437_s19  ;;  %v1313_v45 = vsel %vm710_vm1, %v1311_v39, %v1312_v42  ;;  %v1317_v36 = vadd.f32 %v1312_v42, %v7383_v11  ;;  %s7650_s18 = sld [smem:[#allocation13 + $0x95]]  ;;  %s7670_s19 = sld [smem:[#allocation13 + $0xb9]] }
 0x191   : > { %v1326_v28 = vsel %vm710_vm1, %v1324_v32, %v1325_v49  ;;  %v7481_v33 = vadd.f32 %v1325_v49, %v7401_v40  ;;  %v1316_v51 = vadd.f32 %v1313_v45, %v7386_v20  ;;  %v1337_v57 = vrot.slane %v1333_v23, 2 }
 0x192   : > { %v1329_v48 = vadd.f32 %v1326_v28, %v7406_v27  ;;  %v1338_v59 = vrot.slane %v1334_v41, 2  ;;  %v1346_v11 = vmul.f32 %v1345_v31, %v7276_v43  ;;  %v1347_v63 = vmul.f32 %v1345_v31, %v7283_v61 }
 0x193   : > { %v1359_v44 = vmul.f32 %v1358_v0, %v7276_v43  ;;  %v1360_v40 = vmul.f32 %v1358_v0, %v7283_v61  ;;  %v1371_v2 = vstv %s7455_s22  ;;  %v1389_v35 = vstv %s7457_s23  ;;  %s7672_s22 = sld [smem:[#allocation13 + $0xdd]]  ;;  %s7690_s23 = sld [smem:[#allocation13 + $0x101]] }
 0x194   : > { %v1339_v20 = vsel %vm710_vm1, %v1337_v57, %v1338_v59  ;;  %v1343_v27 = vadd.f32 %v1338_v59, %v7410_v58  ;;  %v1350_v3 = vrot.slane %v1346_v11, 2  ;;  %v1351_v38 = vrot.slane %v1347_v63, 2 }
 0x195   : > { %v1342_v47 = vadd.f32 %v1339_v20, %v7413_v60  ;;  %v1363_v8 = vrot.slane %v1359_v44, 2  ;;  %v1364_v10 = vrot.slane %v1360_v40, 2  ;;  %v1372_v29 = vmul.f32 %v1371_v2, %v7276_v43 }
 0x196   : > { %v1373_v56 = vmul.f32 %v1371_v2, %v7283_v61  ;;  %v1390_v12 = vmul.f32 %v7494_v54, %v1389_v35  ;;  %v1352_v58 = vsel %vm710_vm1, %v1350_v3, %v1351_v38  ;;  %v1356_v1 = vadd.f32 %v1351_v38, %v7423_v50 }
 0x197   : > { %v1391_v60 = vmul.f32 %v7500_v52, %v1389_v35  ;;  %v1395_v62 = vstv %s7471_s21  ;;  %v1355_v53 = vadd.f32 %v1352_v58, %v7430_v30  ;;  %v1365_v43 = vsel %vm710_vm1, %v1363_v8, %v1364_v10  ;;  %s7692_s21 = sld [smem:[#allocation13 + $0x6]] }
 0x198   : > { %v1369_v61 = vadd.f32 %v1364_v10, %v7427_v37  ;;  %v1376_v16 = vrot.slane %v1372_v29, 2  ;;  %v1368_v46 = vadd.f32 %v1365_v43, %v7433_v6  ;;  %v1377_v14 = vrot.slane %v1373_v56, 2 }
 0x199   : > { %v7521_v19 = vadd.f32 %v1390_v12, %v1290_v9  ;;  %v7523_v50 = vadd.f32 %v1391_v60, %v1291_v5  ;;  %v1396_v24 = vmul.f32 %v7494_v54, %v1395_v62  ;;  %v1397_v30 = vmul.f32 %v7500_v52, %v1395_v62 }
 0x19a   : > { %v1401_v25 = vstv %s7485_s25  ;;  %v1407_v7 = vstv %s7487_s10  ;;  %v1378_v37 = vsel %vm710_vm1, %v1376_v16, %v1377_v14  ;;  %v1382_v6 = vadd.f32 %v1377_v14, %v7445_v15  ;;  %s7706_s25 = sld [smem:[#allocation13 + $0x2a]]  ;;  %s7720_s10 = sld [smem:[#allocation13 + $0x4e]] }
 0x19b   : > { %v1402_v26 = vmul.f32 %v7494_v54, %v1401_v25  ;;  %v1403_v55 = vmul.f32 %v7500_v52, %v1401_v25  ;;  %v1381_v5 = vadd.f32 %v1378_v37, %v7450_v18  ;;  %v1398_v13 = vadd.f32 %v1396_v24, %v7469_v21 }
 0x19c   : > { %v1399_v22 = vadd.f32 %v1397_v30, %v7466_v34  ;;  %v1408_v9 = vmul.f32 %v7494_v54, %v1407_v7  ;;  %v1409_v39 = vmul.f32 %v7500_v52, %v1407_v7  ;;  %v1413_v42 = vstv %s7504_s26  ;;  %s7722_s26 = sld [smem:[#allocation13 + $0x72]] }
 0x19d   : > { %v1404_v17 = vadd.f32 %v1402_v26, %v1316_v51  ;;  %v1405_v15 = vadd.f32 %v1403_v55, %v1317_v36  ;;  %v1414_v49 = vmul.f32 %v7494_v54, %v1413_v42  ;;  %v1415_v18 = vmul.f32 %v7500_v52, %v1413_v42 }
 0x19e   : > { %v7547_v32 = vadd.f32 %v1408_v9, %v1329_v48  ;;  %v1419_v23 = vstv %s7509_s2  ;;  %v7557_v34 = vadd.f32 %v1409_v39, %v7481_v33  ;;  %v1425_v31 = vstv %s7515_s1  ;;  %s7739_s2 = sld [smem:[#allocation13 + $0x96]]  ;;  %s7744_s1 = sld [smem:[#allocation13 + $0xba]] }
 0x19f   : > { %v1420_v21 = vmul.f32 %v7494_v54, %v1419_v23  ;;  %v1421_v41 = vmul.f32 %v7500_v52, %v1419_v23  ;;  %v7562_v0 = vadd.f32 %v1414_v49, %v1342_v47  ;;  %v7564_v45 = vadd.f32 %v1415_v18, %v1343_v27 }
 0x1a0   : > { %v1426_v36 = vmul.f32 %v7494_v54, %v1425_v31  ;;  %v1427_v28 = vmul.f32 %v7500_v52, %v1425_v31  ;;  %v1431_v33 = vstv %s7525_s27  ;;  %v1437_v57 = vstv %s7527_s28  ;;  %s7750_s27 = sld [smem:[#allocation13 + $0xde]]  ;;  %s7760_s28 = sld [smem:[#allocation13 + $0x102]] }
 0x1a1   : > { %v7568_v51 = vadd.f32 %v1420_v21, %v1355_v53  ;;  %v7570_v48 = vadd.f32 %v1421_v41, %v1356_v1  ;;  %v1432_v63 = vmul.f32 %v7494_v54, %v1431_v33  ;;  %v1433_v44 = vmul.f32 %v7500_v52, %v1431_v33 }
 0x1a2   : > { %v7574_v59 = vadd.f32 %v1426_v36, %v1368_v46  ;;  %v7576_v11 = vadd.f32 %v1427_v28, %v1369_v61  ;;  %v1438_v40 = vmul.f32 %v7494_v54, %v1437_v57  ;;  %v1439_v20 = vmul.f32 %v7500_v52, %v1437_v57 }
 0x1a3   : > { %v1450_v27 = vstv %s7537_s29  ;;  %v1463_v2 = vstv %s7539_s30  ;;  %v7590_v35 = vadd.f32 %v1432_v63, %v1381_v5  ;;  %v7592_v47 = vadd.f32 %v1433_v44, %v1382_v6  ;;  %s7762_s29 = sld [smem:[#allocation13 + $0x7]]  ;;  %s7772_s30 = sld [smem:[#allocation13 + $0x2b]] }
 0x1a4   : > { %v1451_v3 = vmul.f32 %v7494_v54, %v1450_v27  ;;  %v1452_v38 = vmul.f32 %v7500_v52, %v1450_v27  ;;  %v1442_v8 = vrot.slane %v1438_v40, 1  ;;  %v1443_v10 = vrot.slane %v1439_v20, 1 }
 0x1a5   : > { %v1464_v29 = vmul.f32 %v7494_v54, %v1463_v2  ;;  %v1465_v56 = vmul.f32 %v7500_v52, %v1463_v2  ;;  %v1476_v1 = vstv %s7552_s5  ;;  %v1489_v60 = vstv %s7554_s12  ;;  %s7774_s5 = sld [smem:[#allocation13 + $0x4f]]  ;;  %s7787_s12 = sld [smem:[#allocation13 + $0x73]] }
 0x1a6   : > { %v1455_v12 = vrot.slane %v1451_v3, 1  ;;  %v1456_v58 = vrot.slane %v1452_v38, 1  ;;  %v1444_v62 = vsel %vm696_vm0, %v1442_v8, %v1443_v10  ;;  %v7602_v53 = vadd.f32 %v1443_v10, %v7523_v50 }
 0x1a7   : > { %v1468_v43 = vrot.slane %v1464_v29, 1  ;;  %v1469_v61 = vrot.slane %v1465_v56, 1  ;;  %v7605_v16 = vadd.f32 %v1444_v62, %v7521_v19  ;;  %v1477_v24 = vmul.f32 %v7494_v54, %v1476_v1 }
 0x1a8   : > { %v1457_v46 = vsel %vm696_vm0, %v1455_v12, %v1456_v58  ;;  %v7608_v14 = vadd.f32 %v1456_v58, %v1399_v22  ;;  %v1478_v19 = vmul.f32 %v7500_v52, %v1476_v1  ;;  %v1490_v6 = vmul.f32 %v7494_v54, %v1489_v60 }
 0x1a9   : > { %v7615_v50 = vadd.f32 %v1457_v46, %v1398_v13  ;;  %v1470_v30 = vsel %vm696_vm0, %v1468_v43, %v1469_v61  ;;  %v7618_v25 = vadd.f32 %v1469_v61, %v1405_v15  ;;  %v1481_v37 = vrot.slane %v1477_v24, 1 }
 0x1aa   : > { %v7621_v7 = vadd.f32 %v1470_v30, %v1404_v17  ;;  %v1491_v26 = vmul.f32 %v7500_v52, %v1489_v60  ;;  %v1482_v55 = vrot.slane %v1478_v19, 1  ;;  %v1502_v5 = vstv %s7580_s13  ;;  %s7789_s13 = sld [smem:[#allocation13 + $0x97]] }
 0x1ab   : > { %v1515_v22 = vstv %s7586_s15  ;;  %v1528_v9 = vstv %s7588_s16  ;;  %v1494_v39 = vrot.slane %v1490_v6, 1  ;;  %v1503_v42 = vmul.f32 %v7494_v54, %v1502_v5  ;;  %s7815_s15 = sld [smem:[#allocation13 + $0xbb]]  ;;  %s7821_s16 = sld [smem:[#allocation13 + $0xdf]] }
 0x1ac   : > { %v1495_v13 = vrot.slane %v1491_v26, 1  ;;  %v1504_v15 = vmul.f32 %v7500_v52, %v1502_v5  ;;  %v1483_v17 = vsel %vm696_vm0, %v1481_v37, %v1482_v55  ;;  %v7636_v49 = vadd.f32 %v1482_v55, %v7557_v34 }
 0x1ad   : > { %v1516_v18 = vmul.f32 %v7494_v54, %v1515_v22  ;;  %v1517_v23 = vmul.f32 %v7500_v52, %v1515_v22  ;;  %v7641_v21 = vadd.f32 %v1483_v17, %v7547_v32  ;;  %v1507_v36 = vrot.slane %v1503_v42, 1 }
 0x1ae   : > { %v1496_v41 = vsel %vm696_vm0, %v1494_v39, %v1495_v13  ;;  %v7645_v31 = vadd.f32 %v1495_v13, %v7564_v45  ;;  %v1508_v33 = vrot.slane %v1504_v15, 1  ;;  %v1529_v63 = vmul.f32 %v7494_v54, %v1528_v9 }
 0x1af   : > { %v7648_v28 = vadd.f32 %v1496_v41, %v7562_v0  ;;  %v1520_v57 = vrot.slane %v1516_v18, 1  ;;  %v1521_v34 = vrot.slane %v1517_v23, 1  ;;  %v1530_v44 = vmul.f32 %v7500_v52, %v1528_v9 }
 0x1b0   : > { %v1541_v32 = vstv %s7611_s3  ;;  %v1554_v40 = vstv %s7613_s4  ;;  %v1509_v20 = vsel %vm696_vm0, %v1507_v36, %v1508_v33  ;;  %v7658_v45 = vadd.f32 %v1508_v33, %v7570_v48  ;;  %s7823_s3 = sld [smem:[#allocation13 + $0x103]]  ;;  %s7846_s4 = sld [smem:[#allocation13 + $0x8]] }
 0x1b1   : > { %v1522_v0 = vsel %vm696_vm0, %v1520_v57, %v1521_v34  ;;  %v7662_v27 = vadd.f32 %v1521_v34, %v7576_v11  ;;  %v7665_v2 = vadd.f32 %v1509_v20, %v7568_v51  ;;  %v1533_v38 = vrot.slane %v1529_v63, 1  ;;  %v7729_v34 = vld [vmem:[%s7273_s24 + $0x20] sm:$0xff] }
 0x1b2   : > { %v7668_v3 = vadd.f32 %v1522_v0, %v7574_v59  ;;  %v1534_v8 = vrot.slane %v1530_v44, 1  ;;  %v1542_v48 = vmul.f32 %v7494_v54, %v1541_v32  ;;  %v1543_v10 = vmul.f32 %v7500_v52, %v1541_v32  ;;  %v7735_v44 = vld [vmem:[%s7273_s24 + $0x28] sm:$0x3f] }
 0x1b3   : > { %v1555_v29 = vmul.f32 %v7494_v54, %v1554_v40  ;;  %v1556_v11 = vmul.f32 %v7500_v52, %v1554_v40  ;;  %v1567_v59 = vstv %s7630_s0  ;;  %v1580_v12 = vstv %s7632_s17  ;;  %s7848_s0 = sld [smem:[#allocation13 + $0x2c]]  ;;  %s7865_s17 = sld [smem:[#allocation13 + $0x50]] }
 0x1b4   : > { %v1535_v51 = vsel %vm696_vm0, %v1533_v38, %v1534_v8  ;;  %v7680_v56 = vadd.f32 %v1534_v8, %v7592_v47  ;;  %v1546_v1 = vrot.slane %v1542_v48, 2  ;;  %v1547_v60 = vrot.slane %v1543_v10, 2 }
 0x1b5   : > { %v7685_v58 = vadd.f32 %v1535_v51, %v7590_v35  ;;  %v1559_v62 = vrot.slane %v1555_v29, 2  ;;  %v1560_v43 = vrot.slane %v1556_v11, 2  ;;  %v1568_v61 = vmul.f32 %v7494_v54, %v1567_v59 }
 0x1b6   : > { %v1569_v46 = vmul.f32 %v7500_v52, %v1567_v59  ;;  %v1581_v24 = vmul.f32 %v7494_v54, %v1580_v12  ;;  %v1548_v47 = vsel %vm710_vm1, %v1546_v1, %v1547_v60  ;;  %v1552_v35 = vadd.f32 %v1547_v60, %v7602_v53 }
 0x1b7   : > { %v1582_v30 = vmul.f32 %v7500_v52, %v1580_v12  ;;  %v1593_v19 = vstv %s7650_s18  ;;  %v1551_v37 = vadd.f32 %v1548_v47, %v7605_v16  ;;  %v1561_v6 = vsel %vm710_vm1, %v1559_v62, %v1560_v43  ;;  %s7867_s18 = sld [smem:[#allocation13 + $0x74]] }
 0x1b8   : > { %v7701_v26 = vadd.f32 %v1560_v43, %v7608_v14  ;;  %v1572_v55 = vrot.slane %v1568_v61, 2  ;;  %v7704_v5 = vadd.f32 %v1561_v6, %v7615_v50  ;;  %v1573_v22 = vrot.slane %v1569_v46, 2 }
 0x1b9   : > { %v1585_v9 = vrot.slane %v1581_v24, 2  ;;  %v1586_v39 = vrot.slane %v1582_v30, 2  ;;  %v1594_v53 = vmul.f32 %v7494_v54, %v1593_v19  ;;  %v1595_v13 = vmul.f32 %v7500_v52, %v1593_v19 }
 0x1ba   : > { %v1606_v42 = vstv %s7670_s19  ;;  %v1619_v16 = vstv %s7672_s22  ;;  %v1574_v15 = vsel %vm710_vm1, %v1572_v55, %v1573_v22  ;;  %v1578_v14 = vadd.f32 %v1573_v22, %v7618_v25  ;;  %s7885_s19 = sld [smem:[#allocation13 + $0x98]]  ;;  %s7905_s22 = sld [smem:[#allocation13 + $0xbc]] }
 0x1bb   : > { %v1587_v50 = vsel %vm710_vm1, %v1585_v9, %v1586_v39  ;;  %v7716_v17 = vadd.f32 %v1586_v39, %v7636_v49  ;;  %v1577_v18 = vadd.f32 %v1574_v15, %v7621_v7  ;;  %v1598_v41 = vrot.slane %v1594_v53, 2 }
 0x1bc   : > { %v1590_v23 = vadd.f32 %v1587_v50, %v7641_v21  ;;  %v1599_v36 = vrot.slane %v1595_v13, 2  ;;  %v1607_v25 = vmul.f32 %v7494_v54, %v1606_v42  ;;  %v1608_v33 = vmul.f32 %v7500_v52, %v1606_v42 }
 0x1bd   : > { %v1620_v57 = vmul.f32 %v7494_v54, %v1619_v16  ;;  %v1621_v49 = vmul.f32 %v7500_v52, %v1619_v16  ;;  %v1632_v63 = vstv %s7690_s23  ;;  %v1650_v32 = vstv %s7692_s21  ;;  %s7907_s23 = sld [smem:[#allocation13 + $0xe0]]  ;;  %s7925_s21 = sld [smem:[#allocation13 + $0x104]] }
 0x1be   : > { %v1600_v7 = vsel %vm710_vm1, %v1598_v41, %v1599_v36  ;;  %v1604_v21 = vadd.f32 %v1599_v36, %v7645_v31  ;;  %v1611_v20 = vrot.slane %v1607_v25, 2  ;;  %v1612_v0 = vrot.slane %v1608_v33, 2 }
 0x1bf   : > { %v1603_v40 = vadd.f32 %v1600_v7, %v7648_v28  ;;  %v1624_v38 = vrot.slane %v1620_v57, 2  ;;  %v1625_v8 = vrot.slane %v1621_v49, 2  ;;  %v1633_v48 = vmul.f32 %v7494_v54, %v1632_v63 }
 0x1c0   : > { %v1634_v10 = vmul.f32 %v7500_v52, %v1632_v63  ;;  %v1651_v29 = vmul.f32 %v7729_v34, %v1650_v32  ;;  %v1613_v31 = vsel %vm710_vm1, %v1611_v20, %v1612_v0  ;;  %v1617_v11 = vadd.f32 %v1612_v0, %v7658_v45 }
 0x1c1   : > { %v1652_v28 = vmul.f32 %v7735_v44, %v1650_v32  ;;  %v1656_v51 = vstv %s7706_s25  ;;  %v1616_v59 = vadd.f32 %v1613_v31, %v7665_v2  ;;  %v1626_v54 = vsel %vm710_vm1, %v1624_v38, %v1625_v8  ;;  %s7927_s25 = sld [smem:[#allocation13 + $0x9]] }
 0x1c2   : > { %v1630_v52 = vadd.f32 %v1625_v8, %v7662_v27  ;;  %v1637_v12 = vrot.slane %v1633_v48, 2  ;;  %v1629_v1 = vadd.f32 %v1626_v54, %v7668_v3  ;;  %v1638_v60 = vrot.slane %v1634_v10, 2 }
 0x1c3   : > { %v7756_v62 = vadd.f32 %v1651_v29, %v1551_v37  ;;  %v7758_v45 = vadd.f32 %v1652_v28, %v1552_v35  ;;  %v1657_v43 = vmul.f32 %v7729_v34, %v1656_v51  ;;  %v1658_v2 = vmul.f32 %v7735_v44, %v1656_v51 }
 0x1c4   : > { %v1662_v61 = vstv %s7720_s10  ;;  %v1668_v46 = vstv %s7722_s26  ;;  %v1639_v27 = vsel %vm710_vm1, %v1637_v12, %v1638_v60  ;;  %v1643_v3 = vadd.f32 %v1638_v60, %v7680_v56  ;;  %s7941_s10 = sld [smem:[#allocation13 + $0x2d]]  ;;  %s7955_s26 = sld [smem:[#allocation13 + $0x51]] }
 0x1c5   : > { %v1663_v24 = vmul.f32 %v7729_v34, %v1662_v61  ;;  %v1664_v47 = vmul.f32 %v7735_v44, %v1662_v61  ;;  %v1642_v35 = vadd.f32 %v1639_v27, %v7685_v58  ;;  %v1659_v30 = vadd.f32 %v1657_v43, %v7704_v5 }
 0x1c6   : > { %v1660_v19 = vadd.f32 %v1658_v2, %v7701_v26  ;;  %v1669_v37 = vmul.f32 %v7729_v34, %v1668_v46  ;;  %v1670_v55 = vmul.f32 %v7735_v44, %v1668_v46  ;;  %v1674_v22 = vstv %s7739_s2  ;;  %s7957_s2 = sld [smem:[#allocation13 + $0x75]] }
 0x1c7   : > { %v1665_v6 = vadd.f32 %v1663_v24, %v1577_v18  ;;  %v1666_v56 = vadd.f32 %v1664_v47, %v1578_v14  ;;  %v1675_v39 = vmul.f32 %v7729_v34, %v1674_v22  ;;  %v1676_v58 = vmul.f32 %v7735_v44, %v1674_v22 }
 0x1c8   : > { %v7782_v9 = vadd.f32 %v1669_v37, %v1590_v23  ;;  %v1680_v53 = vstv %s7744_s1  ;;  %v7792_v26 = vadd.f32 %v1670_v55, %v7716_v17  ;;  %v1686_v42 = vstv %s7750_s27  ;;  %s7974_s1 = sld [smem:[#allocation13 + $0x99]]  ;;  %s7979_s27 = sld [smem:[#allocation13 + $0xbd]] }
 0x1c9   : > { %v1681_v5 = vmul.f32 %v7729_v34, %v1680_v53  ;;  %v1682_v13 = vmul.f32 %v7735_v44, %v1680_v53  ;;  %v7797_v16 = vadd.f32 %v1675_v39, %v1603_v40  ;;  %v7799_v15 = vadd.f32 %v1676_v58, %v1604_v21 }
 0x1ca   : > { %v1687_v14 = vmul.f32 %v7729_v34, %v1686_v42  ;;  %v1688_v50 = vmul.f32 %v7735_v44, %v1686_v42  ;;  %v1692_v17 = vstv %s7760_s28  ;;  %v1698_v41 = vstv %s7762_s29  ;;  %s7985_s28 = sld [smem:[#allocation13 + $0xe1]]  ;;  %s7995_s29 = sld [smem:[#allocation13 + $0x105]] }
 0x1cb   : > { %v7803_v18 = vadd.f32 %v1681_v5, %v1616_v59  ;;  %v7805_v23 = vadd.f32 %v1682_v13, %v1617_v11  ;;  %v1693_v33 = vmul.f32 %v7729_v34, %v1692_v17  ;;  %v1694_v57 = vmul.f32 %v7735_v44, %v1692_v17 }
 0x1cc   : > { %v7809_v36 = vadd.f32 %v1687_v14, %v1629_v1  ;;  %v7811_v25 = vadd.f32 %v1688_v50, %v1630_v52  ;;  %v1699_v49 = vmul.f32 %v7729_v34, %v1698_v41  ;;  %v1700_v7 = vmul.f32 %v7735_v44, %v1698_v41 }
 0x1cd   : > { %v1711_v21 = vstv %s7772_s30  ;;  %v1724_v63 = vstv %s7774_s5  ;;  %v7825_v32 = vadd.f32 %v1693_v33, %v1642_v35  ;;  %v7827_v40 = vadd.f32 %v1694_v57, %v1643_v3  ;;  %s7997_s30 = sld [smem:[#allocation13 + $0xa]]  ;;  %s8007_s5 = sld [smem:[#allocation13 + $0x2e]] }
 0x1ce   : > { %v1712_v20 = vmul.f32 %v7729_v34, %v1711_v21  ;;  %v1713_v0 = vmul.f32 %v7735_v44, %v1711_v21  ;;  %v1703_v38 = vrot.slane %v1699_v49, 1  ;;  %v1704_v8 = vrot.slane %v1700_v7, 1 }
 0x1cf   : > { %v1725_v48 = vmul.f32 %v7729_v34, %v1724_v63  ;;  %v1726_v10 = vmul.f32 %v7735_v44, %v1724_v63  ;;  %v1737_v11 = vstv %s7787_s12  ;;  %v1750_v28 = vstv %s7789_s13  ;;  %s8009_s12 = sld [smem:[#allocation13 + $0x52]]  ;;  %s8022_s13 = sld [smem:[#allocation13 + $0x76]] }
 0x1d0   : > { %v1716_v29 = vrot.slane %v1712_v20, 1  ;;  %v1717_v31 = vrot.slane %v1713_v0, 1  ;;  %v1705_v51 = vsel %vm696_vm0, %v1703_v38, %v1704_v8  ;;  %v7837_v59 = vadd.f32 %v1704_v8, %v7758_v45 }
 0x1d1   : > { %v1729_v54 = vrot.slane %v1725_v48, 1  ;;  %v1730_v52 = vrot.slane %v1726_v10, 1  ;;  %v7840_v12 = vadd.f32 %v1705_v51, %v7756_v62  ;;  %v1738_v43 = vmul.f32 %v7729_v34, %v1737_v11 }
 0x1d2   : > { %v1718_v1 = vsel %vm696_vm0, %v1716_v29, %v1717_v31  ;;  %v7843_v60 = vadd.f32 %v1717_v31, %v1660_v19  ;;  %v1739_v62 = vmul.f32 %v7735_v44, %v1737_v11  ;;  %v1751_v3 = vmul.f32 %v7729_v34, %v1750_v28 }
 0x1d3   : > { %v7850_v45 = vadd.f32 %v1718_v1, %v1659_v30  ;;  %v1731_v2 = vsel %vm696_vm0, %v1729_v54, %v1730_v52  ;;  %v7853_v61 = vadd.f32 %v1730_v52, %v1666_v56  ;;  %v1742_v27 = vrot.slane %v1738_v43, 1 }
 0x1d4   : > { %v7856_v46 = vadd.f32 %v1731_v2, %v1665_v6  ;;  %v1752_v24 = vmul.f32 %v7735_v44, %v1750_v28  ;;  %v1743_v47 = vrot.slane %v1739_v62, 1  ;;  %v1763_v35 = vstv %s7815_s15  ;;  %s8024_s15 = sld [smem:[#allocation13 + $0x9a]] }
 0x1d5   : > { %v1776_v19 = vstv %s7821_s16  ;;  %v1789_v37 = vstv %s7823_s3  ;;  %v1755_v55 = vrot.slane %v1751_v3, 1  ;;  %v1764_v22 = vmul.f32 %v7729_v34, %v1763_v35  ;;  %s8050_s16 = sld [smem:[#allocation13 + $0xbe]]  ;;  %s8056_s3 = sld [smem:[#allocation13 + $0xe2]] }
 0x1d6   : > { %v1756_v30 = vrot.slane %v1752_v24, 1  ;;  %v1765_v56 = vmul.f32 %v7735_v44, %v1763_v35  ;;  %v1744_v6 = vsel %vm696_vm0, %v1742_v27, %v1743_v47  ;;  %v7871_v39 = vadd.f32 %v1743_v47, %v7792_v26 }
 0x1d7   : > { %v1777_v58 = vmul.f32 %v7729_v34, %v1776_v19  ;;  %v1778_v53 = vmul.f32 %v7735_v44, %v1776_v19  ;;  %v7876_v5 = vadd.f32 %v1744_v6, %v7782_v9  ;;  %v1768_v14 = vrot.slane %v1764_v22, 1 }
 0x1d8   : > { %v1757_v13 = vsel %vm696_vm0, %v1755_v55, %v1756_v30  ;;  %v7880_v42 = vadd.f32 %v1756_v30, %v7799_v15  ;;  %v1769_v17 = vrot.slane %v1765_v56, 1  ;;  %v1790_v33 = vmul.f32 %v7729_v34, %v1789_v37 }
 0x1d9   : > { %v7883_v50 = vadd.f32 %v1757_v13, %v7797_v16  ;;  %v1781_v41 = vrot.slane %v1777_v58, 1  ;;  %v1782_v26 = vrot.slane %v1778_v53, 1  ;;  %v1791_v57 = vmul.f32 %v7735_v44, %v1789_v37 }
 0x1da   : > { %v1802_v9 = vstv %s7846_s4  ;;  %v1815_v49 = vstv %s7848_s0  ;;  %v1770_v7 = vsel %vm696_vm0, %v1768_v14, %v1769_v17  ;;  %v7893_v15 = vadd.f32 %v1769_v17, %v7805_v23  ;;  %s8058_s4 = sld [smem:[#allocation13 + $0x106]]  ;;  %s8081_s0 = sld [smem:[#allocation13 + $0xb]] }
 0x1db   : > { %v1783_v16 = vsel %vm696_vm0, %v1781_v41, %v1782_v26  ;;  %v7897_v21 = vadd.f32 %v1782_v26, %v7811_v25  ;;  %v7900_v63 = vadd.f32 %v1770_v7, %v7803_v18  ;;  %v1794_v0 = vrot.slane %v1790_v33, 1  ;;  %v7964_v26 = vld [vmem:[%s7273_s24 + $0xe0] sm:$0xff] }
 0x1dc   : > { %v7903_v20 = vadd.f32 %v1783_v16, %v7809_v36  ;;  %v1795_v38 = vrot.slane %v1791_v57, 1  ;;  %v1803_v23 = vmul.f32 %v7729_v34, %v1802_v9  ;;  %v1804_v8 = vmul.f32 %v7735_v44, %v1802_v9  ;;  %v7970_v57 = vld [vmem:[%s7273_s24 + $0xe8] sm:$0x3f] }
 0x1dd   : > { %v1816_v48 = vmul.f32 %v7729_v34, %v1815_v49  ;;  %v1817_v25 = vmul.f32 %v7735_v44, %v1815_v49  ;;  %v1828_v36 = vstv %s7865_s17  ;;  %v1841_v29 = vstv %s7867_s18  ;;  %s8083_s17 = sld [smem:[#allocation13 + $0x2f]]  ;;  %s8100_s18 = sld [smem:[#allocation13 + $0x53]] }
 0x1de   : > { %v1796_v18 = vsel %vm696_vm0, %v1794_v0, %v1795_v38  ;;  %v7915_v10 = vadd.f32 %v1795_v38, %v7827_v40  ;;  %v1807_v11 = vrot.slane %v1803_v23, 2  ;;  %v1808_v28 = vrot.slane %v1804_v8, 2 }
 0x1df   : > { %v7920_v31 = vadd.f32 %v1796_v18, %v7825_v32  ;;  %v1820_v51 = vrot.slane %v1816_v48, 2  ;;  %v1821_v54 = vrot.slane %v1817_v25, 2  ;;  %v1829_v52 = vmul.f32 %v7729_v34, %v1828_v36 }
 0x1e0   : > { %v1830_v1 = vmul.f32 %v7735_v44, %v1828_v36  ;;  %v1842_v43 = vmul.f32 %v7729_v34, %v1841_v29  ;;  %v1809_v40 = vsel %vm710_vm1, %v1807_v11, %v1808_v28  ;;  %v1813_v32 = vadd.f32 %v1808_v28, %v7837_v59 }
 0x1e1   : > { %v1843_v2 = vmul.f32 %v7735_v44, %v1841_v29  ;;  %v1854_v62 = vstv %s7885_s19  ;;  %v1812_v27 = vadd.f32 %v1809_v40, %v7840_v12  ;;  %v1822_v3 = vsel %vm710_vm1, %v1820_v51, %v1821_v54  ;;  %s8102_s19 = sld [smem:[#allocation13 + $0x77]] }
 0x1e2   : > { %v7936_v24 = vadd.f32 %v1821_v54, %v7843_v60  ;;  %v1833_v47 = vrot.slane %v1829_v52, 2  ;;  %v7939_v35 = vadd.f32 %v1822_v3, %v7850_v45  ;;  %v1834_v19 = vrot.slane %v1830_v1, 2 }
 0x1e3   : > { %v1846_v37 = vrot.slane %v1842_v43, 2  ;;  %v1847_v55 = vrot.slane %v1843_v2, 2  ;;  %v1855_v59 = vmul.f32 %v7729_v34, %v1854_v62  ;;  %v1856_v30 = vmul.f32 %v7735_v44, %v1854_v62 }
 0x1e4   : > { %v1867_v22 = vstv %s7905_s22  ;;  %v1880_v12 = vstv %s7907_s23  ;;  %v1835_v56 = vsel %vm710_vm1, %v1833_v47, %v1834_v19  ;;  %v1839_v60 = vadd.f32 %v1834_v19, %v7853_v61  ;;  %s8120_s22 = sld [smem:[#allocation13 + $0x9b]]  ;;  %s8140_s23 = sld [smem:[#allocation13 + $0xbf]] }
 0x1e5   : > { %v1848_v45 = vsel %vm710_vm1, %v1846_v37, %v1847_v55  ;;  %v7951_v6 = vadd.f32 %v1847_v55, %v7871_v39  ;;  %v1838_v58 = vadd.f32 %v1835_v56, %v7856_v46  ;;  %v1859_v13 = vrot.slane %v1855_v59, 2 }
 0x1e6   : > { %v1851_v53 = vadd.f32 %v1848_v45, %v7876_v5  ;;  %v1860_v14 = vrot.slane %v1856_v30, 2  ;;  %v1868_v61 = vmul.f32 %v7729_v34, %v1867_v22  ;;  %v1869_v17 = vmul.f32 %v7735_v44, %v1867_v22 }
 0x1e7   : > { %v1881_v41 = vmul.f32 %v7729_v34, %v1880_v12  ;;  %v1882_v39 = vmul.f32 %v7735_v44, %v1880_v12  ;;  %v1893_v33 = vstv %s7925_s21  ;;  %v1910_v9 = vstv %s7927_s25  ;;  %s8142_s21 = sld [smem:[#allocation13 + $0xe3]]  ;;  %s8160_s25 = sld [smem:[#allocation13 + $0x107]] }
 0x1e8   : > { %v1861_v46 = vsel %vm710_vm1, %v1859_v13, %v1860_v14  ;;  %v1865_v5 = vadd.f32 %v1860_v14, %v7880_v42  ;;  %v1872_v7 = vrot.slane %v1868_v61, 2  ;;  %v1873_v16 = vrot.slane %v1869_v17, 2 }
 0x1e9   : > { %v1864_v49 = vadd.f32 %v1861_v46, %v7883_v50  ;;  %v1885_v0 = vrot.slane %v1881_v41, 2  ;;  %v1886_v38 = vrot.slane %v1882_v39, 2  ;;  %v1894_v23 = vmul.f32 %v7729_v34, %v1893_v33 }
 0x1ea   : > { %v1895_v8 = vmul.f32 %v7735_v44, %v1893_v33  ;;  %v1911_v48 = vmul.f32 %v7964_v26, %v1910_v9  ;;  %v1874_v42 = vsel %vm710_vm1, %v1872_v7, %v1873_v16  ;;  %v1878_v25 = vadd.f32 %v1873_v16, %v7893_v15 }
 0x1eb   : > { %v1912_v50 = vmul.f32 %v7970_v57, %v1910_v9  ;;  %v1916_v18 = vstv %s7941_s10  ;;  %v1877_v36 = vadd.f32 %v1874_v42, %v7900_v63  ;;  %v1887_v34 = vsel %vm710_vm1, %v1885_v0, %v1886_v38  ;;  %s8162_s10 = sld [smem:[#allocation13 + $0xc]] }
 0x1ec   : > { %v1891_v44 = vadd.f32 %v1886_v38, %v7897_v21  ;;  %v1898_v29 = vrot.slane %v1894_v23, 2  ;;  %v1890_v11 = vadd.f32 %v1887_v34, %v7903_v20  ;;  %v1899_v28 = vrot.slane %v1895_v8, 2 }
 0x1ed   : > { %v7991_v51 = vadd.f32 %v1911_v48, %v1812_v27  ;;  %v7993_v15 = vadd.f32 %v1912_v50, %v1813_v32  ;;  %v1917_v54 = vmul.f32 %v7964_v26, %v1916_v18  ;;  %v1918_v63 = vmul.f32 %v7970_v57, %v1916_v18 }
 0x1ee   : > { %v1922_v52 = vstv %s7955_s26  ;;  %v1928_v1 = vstv %s7957_s2  ;;  %v1900_v21 = vsel %vm710_vm1, %v1898_v29, %v1899_v28  ;;  %v1904_v20 = vadd.f32 %v1899_v28, %v7915_v10  ;;  %s8176_s26 = sld [smem:[#allocation13 + $0x30]]  ;;  %s8190_s2 = sld [smem:[#allocation13 + $0x54]] }
 0x1ef   : > { %v1923_v43 = vmul.f32 %v7964_v26, %v1922_v52  ;;  %v1924_v40 = vmul.f32 %v7970_v57, %v1922_v52  ;;  %v1903_v32 = vadd.f32 %v1900_v21, %v7920_v31  ;;  %v1919_v2 = vadd.f32 %v1917_v54, %v7939_v35 }
 0x1f0   : > { %v1920_v62 = vadd.f32 %v1918_v63, %v7936_v24  ;;  %v1929_v27 = vmul.f32 %v7964_v26, %v1928_v1  ;;  %v1930_v47 = vmul.f32 %v7970_v57, %v1928_v1  ;;  %v1934_v19 = vstv %s7974_s1  ;;  %s8192_s1 = sld [smem:[#allocation13 + $0x78]] }
 0x1f1   : > { %v1925_v3 = vadd.f32 %v1923_v43, %v1838_v58  ;;  %v1926_v10 = vadd.f32 %v1924_v40, %v1839_v60  ;;  %v1935_v55 = vmul.f32 %v7964_v26, %v1934_v19  ;;  %v1936_v31 = vmul.f32 %v7970_v57, %v1934_v19 }
 0x1f2   : > { %v8017_v37 = vadd.f32 %v1929_v27, %v1851_v53  ;;  %v1940_v59 = vstv %s7979_s27  ;;  %v8027_v24 = vadd.f32 %v1930_v47, %v7951_v6  ;;  %v1946_v22 = vstv %s7985_s28  ;;  %s8209_s27 = sld [smem:[#allocation13 + $0x9c]]  ;;  %s8214_s28 = sld [smem:[#allocation13 + $0xc0]] }
 0x1f3   : > { %v1941_v35 = vmul.f32 %v7964_v26, %v1940_v59  ;;  %v1942_v30 = vmul.f32 %v7970_v57, %v1940_v59  ;;  %v8032_v12 = vadd.f32 %v1935_v55, %v1864_v49  ;;  %v8034_v56 = vadd.f32 %v1936_v31, %v1865_v5 }
 0x1f4   : > { %v1947_v60 = vmul.f32 %v7964_v26, %v1946_v22  ;;  %v1948_v45 = vmul.f32 %v7970_v57, %v1946_v22  ;;  %v1952_v6 = vstv %s7995_s29  ;;  %v1958_v13 = vstv %s7997_s30  ;;  %s8220_s29 = sld [smem:[#allocation13 + $0xe4]]  ;;  %s8230_s30 = sld [smem:[#allocation13 + $0x108]] }
 0x1f5   : > { %v8038_v58 = vadd.f32 %v1941_v35, %v1877_v36  ;;  %v8040_v53 = vadd.f32 %v1942_v30, %v1878_v25  ;;  %v1953_v17 = vmul.f32 %v7964_v26, %v1952_v6  ;;  %v1954_v41 = vmul.f32 %v7970_v57, %v1952_v6 }
 0x1f6   : > { %v8044_v14 = vadd.f32 %v1947_v60, %v1890_v11  ;;  %v8046_v61 = vadd.f32 %v1948_v45, %v1891_v44  ;;  %v1959_v39 = vmul.f32 %v7964_v26, %v1958_v13  ;;  %v1960_v46 = vmul.f32 %v7970_v57, %v1958_v13 }
 0x1f7   : > { %v1971_v5 = vstv %s8007_s5  ;;  %v1984_v33 = vstv %s8009_s12  ;;  %v8060_v9 = vadd.f32 %v1953_v17, %v1903_v32  ;;  %v8062_v49 = vadd.f32 %v1954_v41, %v1904_v20  ;;  %s8232_s5 = sld [smem:[#allocation13 + $0xd]]  ;;  %s8242_s12 = sld [smem:[#allocation13 + $0x31]] }
 0x1f8   : > { %v1972_v7 = vmul.f32 %v7964_v26, %v1971_v5  ;;  %v1973_v16 = vmul.f32 %v7970_v57, %v1971_v5  ;;  %v1963_v0 = vrot.slane %v1959_v39, 1  ;;  %v1964_v38 = vrot.slane %v1960_v46, 1 }
 0x1f9   : > { %v1985_v23 = vmul.f32 %v7964_v26, %v1984_v33  ;;  %v1986_v8 = vmul.f32 %v7970_v57, %v1984_v33  ;;  %v1997_v25 = vstv %s8022_s13  ;;  %v2010_v50 = vstv %s8024_s15  ;;  %s8244_s13 = sld [smem:[#allocation13 + $0x55]]  ;;  %s8257_s15 = sld [smem:[#allocation13 + $0x79]] }
 0x1fa   : > { %v1976_v48 = vrot.slane %v1972_v7, 1  ;;  %v1977_v42 = vrot.slane %v1973_v16, 1  ;;  %v1965_v18 = vsel %vm696_vm0, %v1963_v0, %v1964_v38  ;;  %v8072_v36 = vadd.f32 %v1964_v38, %v7993_v15 }
 0x1fb   : > { %v1989_v34 = vrot.slane %v1985_v23, 1  ;;  %v1990_v44 = vrot.slane %v1986_v8, 1  ;;  %v8075_v29 = vadd.f32 %v1965_v18, %v7991_v51  ;;  %v1998_v54 = vmul.f32 %v7964_v26, %v1997_v25 }
 0x1fc   : > { %v1978_v11 = vsel %vm696_vm0, %v1976_v48, %v1977_v42  ;;  %v8078_v28 = vadd.f32 %v1977_v42, %v1920_v62  ;;  %v1999_v51 = vmul.f32 %v7970_v57, %v1997_v25  ;;  %v2011_v20 = vmul.f32 %v7964_v26, %v2010_v50 }
 0x1fd   : > { %v8085_v15 = vadd.f32 %v1978_v11, %v1919_v2  ;;  %v1991_v63 = vsel %vm696_vm0, %v1989_v34, %v1990_v44  ;;  %v8088_v52 = vadd.f32 %v1990_v44, %v1926_v10  ;;  %v2002_v21 = vrot.slane %v1998_v54, 1 }
 0x1fe   : > { %v8091_v1 = vadd.f32 %v1991_v63, %v1925_v3  ;;  %v2012_v43 = vmul.f32 %v7970_v57, %v2010_v50  ;;  %v2003_v40 = vrot.slane %v1999_v51, 1  ;;  %v2023_v32 = vstv %s8050_s16  ;;  %s8259_s16 = sld [smem:[#allocation13 + $0x9d]] }
 0x1ff   : > { %v2036_v62 = vstv %s8056_s3  ;;  %v2049_v27 = vstv %s8058_s4  ;;  %v2015_v47 = vrot.slane %v2011_v20, 1  ;;  %v2024_v19 = vmul.f32 %v7964_v26, %v2023_v32  ;;  %s8285_s3 = sld [smem:[#allocation13 + $0xc1]]  ;;  %s8291_s4 = sld [smem:[#allocation13 + $0xe5]] }
 0x200   : > { %v2016_v2 = vrot.slane %v2012_v43, 1  ;;  %v2025_v10 = vmul.f32 %v7970_v57, %v2023_v32  ;;  %v2004_v3 = vsel %vm696_vm0, %v2002_v21, %v2003_v40  ;;  %v8106_v55 = vadd.f32 %v2003_v40, %v8027_v24 }
 0x201   : > { %v2037_v31 = vmul.f32 %v7964_v26, %v2036_v62  ;;  %v2038_v59 = vmul.f32 %v7970_v57, %v2036_v62  ;;  %v8111_v35 = vadd.f32 %v2004_v3, %v8017_v37  ;;  %v2028_v60 = vrot.slane %v2024_v19, 1 }
 0x202   : > { %v2017_v30 = vsel %vm696_vm0, %v2015_v47, %v2016_v2  ;;  %v8115_v22 = vadd.f32 %v2016_v2, %v8034_v56  ;;  %v2029_v6 = vrot.slane %v2025_v10, 1  ;;  %v2050_v17 = vmul.f32 %v7964_v26, %v2049_v27 }
 0x203   : > { %v8118_v45 = vadd.f32 %v2017_v30, %v8032_v12  ;;  %v2041_v13 = vrot.slane %v2037_v31, 1  ;;  %v2042_v24 = vrot.slane %v2038_v59, 1  ;;  %v2051_v41 = vmul.f32 %v7970_v57, %v2049_v27 }
 0x204   : > { %v2062_v37 = vstv %s8081_s0  ;;  %v2075_v39 = vstv %s8083_s17  ;;  %v2030_v46 = vsel %vm696_vm0, %v2028_v60, %v2029_v6  ;;  %v8128_v56 = vadd.f32 %v2029_v6, %v8040_v53  ;;  %s8293_s0 = sld [smem:[#allocation13 + $0x109]]  ;;  %s8316_s17 = sld [smem:[#allocation13 + $0xe]] }
 0x205   : > { %v2043_v12 = vsel %vm696_vm0, %v2041_v13, %v2042_v24  ;;  %v8132_v5 = vadd.f32 %v2042_v24, %v8046_v61  ;;  %v8135_v33 = vadd.f32 %v2030_v46, %v8038_v58  ;;  %v2054_v16 = vrot.slane %v2050_v17, 1  ;;  %v8199_v24 = vld [vmem:[%s7273_s24 + $0xf0] sm:$0xff] }
 0x206   : > { %v8138_v7 = vadd.f32 %v2043_v12, %v8044_v14  ;;  %v2055_v0 = vrot.slane %v2051_v41, 1  ;;  %v2063_v53 = vmul.f32 %v7964_v26, %v2062_v37  ;;  %v2064_v38 = vmul.f32 %v7970_v57, %v2062_v37  ;;  %v8205_v41 = vld [vmem:[%s7273_s24 + $0xf8] sm:$0x3f] }
 0x207   : > { %v2076_v23 = vmul.f32 %v7964_v26, %v2075_v39  ;;  %v2077_v61 = vmul.f32 %v7970_v57, %v2075_v39  ;;  %v2088_v14 = vstv %s8100_s18  ;;  %v2101_v48 = vstv %s8102_s19  ;;  %s8318_s18 = sld [smem:[#allocation13 + $0x32]]  ;;  %s8335_s19 = sld [smem:[#allocation13 + $0x56]] }
 0x208   : > { %v2056_v58 = vsel %vm696_vm0, %v2054_v16, %v2055_v0  ;;  %v8150_v8 = vadd.f32 %v2055_v0, %v8062_v49  ;;  %v2067_v25 = vrot.slane %v2063_v53, 2  ;;  %v2068_v50 = vrot.slane %v2064_v38, 2 }
 0x209   : > { %v8155_v42 = vadd.f32 %v2056_v58, %v8060_v9  ;;  %v2080_v18 = vrot.slane %v2076_v23, 2  ;;  %v2081_v34 = vrot.slane %v2077_v61, 2  ;;  %v2089_v44 = vmul.f32 %v7964_v26, %v2088_v14 }
 0x20a   : > { %v2090_v11 = vmul.f32 %v7970_v57, %v2088_v14  ;;  %v2102_v54 = vmul.f32 %v7964_v26, %v2101_v48  ;;  %v2069_v49 = vsel %vm710_vm1, %v2067_v25, %v2068_v50  ;;  %v2073_v9 = vadd.f32 %v2068_v50, %v8072_v36 }
 0x20b   : > { %v2103_v63 = vmul.f32 %v7970_v57, %v2101_v48  ;;  %v2114_v51 = vstv %s8120_s22  ;;  %v2072_v21 = vadd.f32 %v2069_v49, %v8075_v29  ;;  %v2082_v20 = vsel %vm710_vm1, %v2080_v18, %v2081_v34  ;;  %s8337_s22 = sld [smem:[#allocation13 + $0x7a]] }
 0x20c   : > { %v8171_v43 = vadd.f32 %v2081_v34, %v8078_v28  ;;  %v2093_v40 = vrot.slane %v2089_v44, 2  ;;  %v8174_v32 = vadd.f32 %v2082_v20, %v8085_v15  ;;  %v2094_v62 = vrot.slane %v2090_v11, 2 }
 0x20d   : > { %v2106_v27 = vrot.slane %v2102_v54, 2  ;;  %v2107_v47 = vrot.slane %v2103_v63, 2  ;;  %v2115_v36 = vmul.f32 %v7964_v26, %v2114_v51  ;;  %v2116_v2 = vmul.f32 %v7970_v57, %v2114_v51 }
 0x20e   : > { %v2127_v19 = vstv %s8140_s23  ;;  %v2140_v29 = vstv %s8142_s21  ;;  %v2095_v10 = vsel %vm710_vm1, %v2093_v40, %v2094_v62  ;;  %v2099_v28 = vadd.f32 %v2094_v62, %v8088_v52  ;;  %s8355_s23 = sld [smem:[#allocation13 + $0x9e]]  ;;  %s8375_s21 = sld [smem:[#allocation13 + $0xc2]] }
 0x20f   : > { %v2108_v15 = vsel %vm710_vm1, %v2106_v27, %v2107_v47  ;;  %v8186_v3 = vadd.f32 %v2107_v47, %v8106_v55  ;;  %v2098_v31 = vadd.f32 %v2095_v10, %v8091_v1  ;;  %v2119_v30 = vrot.slane %v2115_v36, 2 }
 0x210   : > { %v2111_v59 = vadd.f32 %v2108_v15, %v8111_v35  ;;  %v2120_v60 = vrot.slane %v2116_v2, 2  ;;  %v2128_v52 = vmul.f32 %v7964_v26, %v2127_v19  ;;  %v2129_v6 = vmul.f32 %v7970_v57, %v2127_v19 }
 0x211   : > { %v2141_v13 = vmul.f32 %v7964_v26, %v2140_v29  ;;  %v2142_v55 = vmul.f32 %v7970_v57, %v2140_v29  ;;  %v2153_v17 = vstv %s8160_s25  ;;  %v2170_v37 = vstv %s8162_s10  ;;  %s8377_s25 = sld [smem:[#allocation13 + $0xe6]]  ;;  %s8395_s10 = sld [smem:[#allocation13 + $0x10a]] }
 0x212   : > { %v2121_v1 = vsel %vm710_vm1, %v2119_v30, %v2120_v60  ;;  %v2125_v35 = vadd.f32 %v2120_v60, %v8115_v22  ;;  %v2132_v46 = vrot.slane %v2128_v52, 2  ;;  %v2133_v12 = vrot.slane %v2129_v6, 2 }
 0x213   : > { %v2124_v39 = vadd.f32 %v2121_v1, %v8118_v45  ;;  %v2145_v16 = vrot.slane %v2141_v13, 2  ;;  %v2146_v0 = vrot.slane %v2142_v55, 2  ;;  %v2154_v53 = vmul.f32 %v7964_v26, %v2153_v17 }
 0x214   : > { %v2155_v38 = vmul.f32 %v7970_v57, %v2153_v17  ;;  %v2171_v23 = vmul.f32 %v8199_v24, %v2170_v37  ;;  %v2134_v22 = vsel %vm710_vm1, %v2132_v46, %v2133_v12  ;;  %v2138_v61 = vadd.f32 %v2133_v12, %v8128_v56 }
 0x215   : > { %v2172_v45 = vmul.f32 %v8205_v41, %v2170_v37  ;;  %v2176_v58 = vstv %s8176_s26  ;;  %v2137_v14 = vadd.f32 %v2134_v22, %v8135_v33  ;;  %v2147_v26 = vsel %vm710_vm1, %v2145_v16, %v2146_v0  ;;  %s8397_s26 = sld [smem:[#allocation13 + $0xf]] }
 0x216   : > { %v2151_v57 = vadd.f32 %v2146_v0, %v8132_v5  ;;  %v2158_v48 = vrot.slane %v2154_v53, 2  ;;  %v2150_v25 = vadd.f32 %v2147_v26, %v8138_v7  ;;  %v2159_v50 = vrot.slane %v2155_v38, 2 }
 0x217   : > { %v8226_v18 = vadd.f32 %v2171_v23, %v2072_v21  ;;  %v8228_v56 = vadd.f32 %v2172_v45, %v2073_v9  ;;  %v2177_v34 = vmul.f32 %v8199_v24, %v2176_v58  ;;  %v2178_v33 = vmul.f32 %v8205_v41, %v2176_v58 }
 0x218   : > { %v2182_v44 = vstv %s8190_s2  ;;  %v2188_v11 = vstv %s8192_s1  ;;  %v2160_v5 = vsel %vm710_vm1, %v2158_v48, %v2159_v50  ;;  %v2164_v7 = vadd.f32 %v2159_v50, %v8150_v8  ;;  %s8411_s2 = sld [smem:[#allocation13 + $0x33]]  ;;  %s8425_s1 = sld [smem:[#allocation13 + $0x57]] }
 0x219   : > { %v2183_v54 = vmul.f32 %v8199_v24, %v2182_v44  ;;  %v2184_v49 = vmul.f32 %v8205_v41, %v2182_v44  ;;  %v2163_v9 = vadd.f32 %v2160_v5, %v8155_v42  ;;  %v2179_v63 = vadd.f32 %v2177_v34, %v8174_v32 }
 0x21a   : > { %v2180_v51 = vadd.f32 %v2178_v33, %v8171_v43  ;;  %v2189_v21 = vmul.f32 %v8199_v24, %v2188_v11  ;;  %v2190_v40 = vmul.f32 %v8205_v41, %v2188_v11  ;;  %v2194_v62 = vstv %s8209_s27  ;;  %s8427_s27 = sld [smem:[#allocation13 + $0x7b]] }
 0x21b   : > { %v2185_v20 = vadd.f32 %v2183_v54, %v2098_v31  ;;  %v2186_v8 = vadd.f32 %v2184_v49, %v2099_v28  ;;  %v2195_v47 = vmul.f32 %v8199_v24, %v2194_v62  ;;  %v2196_v42 = vmul.f32 %v8205_v41, %v2194_v62 }
 0x21c   : > { %v8252_v27 = vadd.f32 %v2189_v21, %v2111_v59  ;;  %v2200_v36 = vstv %s8214_s28  ;;  %v8262_v43 = vadd.f32 %v2190_v40, %v8186_v3  ;;  %v2206_v19 = vstv %s8220_s29  ;;  %s8444_s28 = sld [smem:[#allocation13 + $0x9f]]  ;;  %s8449_s29 = sld [smem:[#allocation13 + $0xc3]] }
 0x21d   : > { %v2201_v32 = vmul.f32 %v8199_v24, %v2200_v36  ;;  %v2202_v2 = vmul.f32 %v8205_v41, %v2200_v36  ;;  %v8267_v29 = vadd.f32 %v2195_v47, %v2124_v39  ;;  %v8269_v10 = vadd.f32 %v2196_v42, %v2125_v35 }
 0x21e   : > { %v2207_v28 = vmul.f32 %v8199_v24, %v2206_v19  ;;  %v2208_v15 = vmul.f32 %v8205_v41, %v2206_v19  ;;  %v2212_v3 = vstv %s8230_s30  ;;  %v2218_v30 = vstv %s8232_s5  ;;  %s8455_s30 = sld [smem:[#allocation13 + $0xe7]]  ;;  %s8465_s5 = sld [smem:[#allocation13 + $0x10b]] }
 0x21f   : > { %v8273_v31 = vadd.f32 %v2201_v32, %v2137_v14  ;;  %v8275_v59 = vadd.f32 %v2202_v2, %v2138_v61  ;;  %v2213_v6 = vmul.f32 %v8199_v24, %v2212_v3  ;;  %v2214_v13 = vmul.f32 %v8205_v41, %v2212_v3 }
 0x220   : > { %v8279_v60 = vadd.f32 %v2207_v28, %v2150_v25  ;;  %v8281_v52 = vadd.f32 %v2208_v15, %v2151_v57  ;;  %v2219_v55 = vmul.f32 %v8199_v24, %v2218_v30  ;;  %v2220_v1 = vmul.f32 %v8205_v41, %v2218_v30 }
 0x221   : > { %v2231_v35 = vstv %s8242_s12  ;;  %v2244_v17 = vstv %s8244_s13  ;;  %v8295_v37 = vadd.f32 %v2213_v6, %v2163_v9  ;;  %v8297_v39 = vadd.f32 %v2214_v13, %v2164_v7  ;;  %s8467_s12 = sld [smem:[#allocation13 + $0x10]]  ;;  %s8477_s13 = sld [smem:[#allocation13 + $0x34]] }
 0x222   : > { %v2232_v46 = vmul.f32 %v8199_v24, %v2231_v35  ;;  %v2233_v12 = vmul.f32 %v8205_v41, %v2231_v35  ;;  %v2223_v16 = vrot.slane %v2219_v55, 1  ;;  %v2224_v0 = vrot.slane %v2220_v1, 1 }
 0x223   : > { %v2245_v53 = vmul.f32 %v8199_v24, %v2244_v17  ;;  %v2246_v38 = vmul.f32 %v8205_v41, %v2244_v17  ;;  %v2257_v61 = vstv %s8257_s15  ;;  %v2270_v45 = vstv %s8259_s16  ;;  %s8479_s15 = sld [smem:[#allocation13 + $0x58]]  ;;  %s8492_s16 = sld [smem:[#allocation13 + $0x7c]] }
 0x224   : > { %v2236_v23 = vrot.slane %v2232_v46, 1  ;;  %v2237_v22 = vrot.slane %v2233_v12, 1  ;;  %v2225_v58 = vsel %vm696_vm0, %v2223_v16, %v2224_v0  ;;  %v8307_v14 = vadd.f32 %v2224_v0, %v8228_v56 }
 0x225   : > { %v2249_v26 = vrot.slane %v2245_v53, 1  ;;  %v2250_v57 = vrot.slane %v2246_v38, 1  ;;  %v8310_v48 = vadd.f32 %v2225_v58, %v8226_v18  ;;  %v2258_v34 = vmul.f32 %v8199_v24, %v2257_v61 }
 0x226   : > { %v2238_v25 = vsel %vm696_vm0, %v2236_v23, %v2237_v22  ;;  %v8313_v50 = vadd.f32 %v2237_v22, %v2180_v51  ;;  %v2259_v18 = vmul.f32 %v8205_v41, %v2257_v61  ;;  %v2271_v7 = vmul.f32 %v8199_v24, %v2270_v45 }
 0x227   : > { %v8320_v56 = vadd.f32 %v2238_v25, %v2179_v63  ;;  %v2251_v33 = vsel %vm696_vm0, %v2249_v26, %v2250_v57  ;;  %v8323_v44 = vadd.f32 %v2250_v57, %v2186_v8  ;;  %v2262_v5 = vrot.slane %v2258_v34, 1 }
 0x228   : > { %v8326_v11 = vadd.f32 %v2251_v33, %v2185_v20  ;;  %v2272_v54 = vmul.f32 %v8205_v41, %v2270_v45  ;;  %v2263_v49 = vrot.slane %v2259_v18, 1  ;;  %v2283_v9 = vstv %s8285_s3  ;;  %s8494_s3 = sld [smem:[#allocation13 + $0xa0]] }
 0x229   : > { %v2296_v51 = vstv %s8291_s4  ;;  %v2309_v21 = vstv %s8293_s0  ;;  %v2275_v40 = vrot.slane %v2271_v7, 1  ;;  %v2284_v62 = vmul.f32 %v8199_v24, %v2283_v9  ;;  %s8520_s4 = sld [smem:[#allocation13 + $0xc4]]  ;;  %s8526_s0 = sld [smem:[#allocation13 + $0xe8]] }
 0x22a   : > { %v2276_v63 = vrot.slane %v2272_v54, 1  ;;  %v2285_v8 = vmul.f32 %v8205_v41, %v2283_v9  ;;  %v2264_v20 = vsel %vm696_vm0, %v2262_v5, %v2263_v49  ;;  %v8341_v47 = vadd.f32 %v2263_v49, %v8262_v43 }
 0x22b   : > { %v2297_v42 = vmul.f32 %v8199_v24, %v2296_v51  ;;  %v2298_v36 = vmul.f32 %v8205_v41, %v2296_v51  ;;  %v8346_v32 = vadd.f32 %v2264_v20, %v8252_v27  ;;  %v2288_v28 = vrot.slane %v2284_v62, 1 }
 0x22c   : > { %v2277_v2 = vsel %vm696_vm0, %v2275_v40, %v2276_v63  ;;  %v8350_v19 = vadd.f32 %v2276_v63, %v8269_v10  ;;  %v2289_v3 = vrot.slane %v2285_v8, 1  ;;  %v2310_v6 = vmul.f32 %v8199_v24, %v2309_v21 }
 0x22d   : > { %v8353_v15 = vadd.f32 %v2277_v2, %v8267_v29  ;;  %v2301_v30 = vrot.slane %v2297_v42, 1  ;;  %v2302_v43 = vrot.slane %v2298_v36, 1  ;;  %v2311_v13 = vmul.f32 %v8205_v41, %v2309_v21 }
 0x22e   : > { %v2322_v27 = vstv %s8316_s17  ;;  %v2335_v55 = vstv %s8318_s18  ;;  %v2290_v1 = vsel %vm696_vm0, %v2288_v28, %v2289_v3  ;;  %v8363_v10 = vadd.f32 %v2289_v3, %v8275_v59  ;;  %s8528_s17 = sld [smem:[#allocation13 + $0x10c]]  ;;  %s8551_s18 = sld [smem:[#allocation13 + $0x11]] }
 0x22f   : > { %v2303_v29 = vsel %vm696_vm0, %v2301_v30, %v2302_v43  ;;  %v8367_v35 = vadd.f32 %v2302_v43, %v8281_v52  ;;  %v8370_v17 = vadd.f32 %v2290_v1, %v8273_v31  ;;  %v2314_v12 = vrot.slane %v2310_v6, 1  ;;  %v8434_v43 = vld [vmem:[%s7273_s24 + $0x100] sm:$0xff] }
 0x230   : > { %v8373_v46 = vadd.f32 %v2303_v29, %v8279_v60  ;;  %v2315_v16 = vrot.slane %v2311_v13, 1  ;;  %v2323_v59 = vmul.f32 %v8199_v24, %v2322_v27  ;;  %v2324_v0 = vmul.f32 %v8205_v41, %v2322_v27  ;;  %v8440_v13 = vld [vmem:[%s7273_s24 + $0x108] sm:$0x3f] }
 0x231   : > { %v2336_v53 = vmul.f32 %v8199_v24, %v2335_v55  ;;  %v2337_v52 = vmul.f32 %v8205_v41, %v2335_v55  ;;  %v2348_v60 = vstv %s8335_s19  ;;  %v2361_v23 = vstv %s8337_s22  ;;  %s8553_s19 = sld [smem:[#allocation13 + $0x35]]  ;;  %s8570_s22 = sld [smem:[#allocation13 + $0x59]] }
 0x232   : > { %v2316_v31 = vsel %vm696_vm0, %v2314_v12, %v2315_v16  ;;  %v8385_v38 = vadd.f32 %v2315_v16, %v8297_v39  ;;  %v2327_v61 = vrot.slane %v2323_v59, 2  ;;  %v2328_v45 = vrot.slane %v2324_v0, 2 }
 0x233   : > { %v8390_v22 = vadd.f32 %v2316_v31, %v8295_v37  ;;  %v2340_v58 = vrot.slane %v2336_v53, 2  ;;  %v2341_v26 = vrot.slane %v2337_v52, 2  ;;  %v2349_v57 = vmul.f32 %v8199_v24, %v2348_v60 }
 0x234   : > { %v2350_v25 = vmul.f32 %v8205_v41, %v2348_v60  ;;  %v2362_v34 = vmul.f32 %v8199_v24, %v2361_v23  ;;  %v2329_v39 = vsel %vm710_vm1, %v2327_v61, %v2328_v45  ;;  %v2333_v37 = vadd.f32 %v2328_v45, %v8307_v14 }
 0x235   : > { %v2363_v33 = vmul.f32 %v8205_v41, %v2361_v23  ;;  %v2374_v18 = vstv %s8355_s23  ;;  %v2332_v5 = vadd.f32 %v2329_v39, %v8310_v48  ;;  %v2342_v7 = vsel %vm710_vm1, %v2340_v58, %v2341_v26  ;;  %s8572_s23 = sld [smem:[#allocation13 + $0x7d]] }
 0x236   : > { %v8406_v54 = vadd.f32 %v2341_v26, %v8313_v50  ;;  %v2353_v49 = vrot.slane %v2349_v57, 2  ;;  %v8409_v9 = vadd.f32 %v2342_v7, %v8320_v56  ;;  %v2354_v51 = vrot.slane %v2350_v25, 2 }
 0x237   : > { %v2366_v21 = vrot.slane %v2362_v34, 2  ;;  %v2367_v40 = vrot.slane %v2363_v33, 2  ;;  %v2375_v14 = vmul.f32 %v8199_v24, %v2374_v18  ;;  %v2376_v63 = vmul.f32 %v8205_v41, %v2374_v18 }
 0x238   : > { %v2387_v62 = vstv %s8375_s21  ;;  %v2400_v48 = vstv %s8377_s25  ;;  %v2355_v8 = vsel %vm710_vm1, %v2353_v49, %v2354_v51  ;;  %v2359_v50 = vadd.f32 %v2354_v51, %v8323_v44  ;;  %s8590_s21 = sld [smem:[#allocation13 + $0xa1]]  ;;  %s8610_s25 = sld [smem:[#allocation13 + $0xc5]] }
 0x239   : > { %v2368_v56 = vsel %vm710_vm1, %v2366_v21, %v2367_v40  ;;  %v8421_v20 = vadd.f32 %v2367_v40, %v8341_v47  ;;  %v2358_v42 = vadd.f32 %v2355_v8, %v8326_v11  ;;  %v2379_v2 = vrot.slane %v2375_v14, 2 }
 0x23a   : > { %v2371_v36 = vadd.f32 %v2368_v56, %v8346_v32  ;;  %v2380_v28 = vrot.slane %v2376_v63, 2  ;;  %v2388_v44 = vmul.f32 %v8199_v24, %v2387_v62  ;;  %v2389_v3 = vmul.f32 %v8205_v41, %v2387_v62 }
 0x23b   : > { %v2401_v30 = vmul.f32 %v8199_v24, %v2400_v48  ;;  %v2402_v47 = vmul.f32 %v8205_v41, %v2400_v48  ;;  %v2413_v6 = vstv %s8395_s10  ;;  %v2430_v27 = vstv %s8397_s26  ;;  %s8612_s10 = sld [smem:[#allocation13 + $0xe9]]  ;;  %s8630_s26 = sld [smem:[#allocation13 + $0x10d]] }
 0x23c   : > { %v2381_v11 = vsel %vm710_vm1, %v2379_v2, %v2380_v28  ;;  %v2385_v32 = vadd.f32 %v2380_v28, %v8350_v19  ;;  %v2392_v1 = vrot.slane %v2388_v44, 2  ;;  %v2393_v29 = vrot.slane %v2389_v3, 2 }
 0x23d   : > { %v2384_v55 = vadd.f32 %v2381_v11, %v8353_v15  ;;  %v2405_v12 = vrot.slane %v2401_v30, 2  ;;  %v2406_v16 = vrot.slane %v2402_v47, 2  ;;  %v2414_v59 = vmul.f32 %v8199_v24, %v2413_v6 }
 0x23e   : > { %v2415_v0 = vmul.f32 %v8205_v41, %v2413_v6  ;;  %v2431_v53 = vmul.f32 %v8434_v43, %v2430_v27  ;;  %v2394_v19 = vsel %vm710_vm1, %v2392_v1, %v2393_v29  ;;  %v2398_v52 = vadd.f32 %v2393_v29, %v8363_v10 }
 0x23f   : > { %v2432_v15 = vmul.f32 %v8440_v13, %v2430_v27  ;;  %v2436_v31 = vstv %s8411_s2  ;;  %v2397_v60 = vadd.f32 %v2394_v19, %v8370_v17  ;;  %v2407_v24 = vsel %vm710_vm1, %v2405_v12, %v2406_v16  ;;  %s8632_s2 = sld [smem:[#allocation13 + $0x12]] }
 0x240   : > { %v2411_v41 = vadd.f32 %v2406_v16, %v8367_v35  ;;  %v2418_v23 = vrot.slane %v2414_v59, 2  ;;  %v2410_v61 = vadd.f32 %v2407_v24, %v8373_v46  ;;  %v2419_v45 = vrot.slane %v2415_v0, 2 }
 0x241   : > { %v8461_v58 = vadd.f32 %v2431_v53, %v2332_v5  ;;  %v8463_v10 = vadd.f32 %v2432_v15, %v2333_v37  ;;  %v2437_v26 = vmul.f32 %v8434_v43, %v2436_v31  ;;  %v2438_v17 = vmul.f32 %v8440_v13, %v2436_v31 }
 0x242   : > { %v2442_v57 = vstv %s8425_s1  ;;  %v2448_v25 = vstv %s8427_s27  ;;  %v2420_v35 = vsel %vm710_vm1, %v2418_v23, %v2419_v45  ;;  %v2424_v46 = vadd.f32 %v2419_v45, %v8385_v38  ;;  %s8646_s1 = sld [smem:[#allocation13 + $0x36]]  ;;  %s8660_s27 = sld [smem:[#allocation13 + $0x5a]] }
 0x243   : > { %v2443_v34 = vmul.f32 %v8434_v43, %v2442_v57  ;;  %v2444_v39 = vmul.f32 %v8440_v13, %v2442_v57  ;;  %v2423_v37 = vadd.f32 %v2420_v35, %v8390_v22  ;;  %v2439_v33 = vadd.f32 %v2437_v26, %v8409_v9 }
 0x244   : > { %v2440_v18 = vadd.f32 %v2438_v17, %v8406_v54  ;;  %v2449_v5 = vmul.f32 %v8434_v43, %v2448_v25  ;;  %v2450_v49 = vmul.f32 %v8440_v13, %v2448_v25  ;;  %v2454_v51 = vstv %s8444_s28  ;;  %s8662_s28 = sld [smem:[#allocation13 + $0x7e]] }
 0x245   : > { %v2445_v7 = vadd.f32 %v2443_v34, %v2358_v42  ;;  %v2446_v38 = vadd.f32 %v2444_v39, %v2359_v50  ;;  %v2455_v40 = vmul.f32 %v8434_v43, %v2454_v51  ;;  %v2456_v22 = vmul.f32 %v8440_v13, %v2454_v51 }
 0x246   : > { %v8487_v21 = vadd.f32 %v2449_v5, %v2371_v36  ;;  %v2460_v14 = vstv %s8449_s29  ;;  %v8497_v54 = vadd.f32 %v2450_v49, %v8421_v20  ;;  %v2466_v62 = vstv %s8455_s30  ;;  %s8679_s29 = sld [smem:[#allocation13 + $0xa2]]  ;;  %s8684_s30 = sld [smem:[#allocation13 + $0xc6]] }
 0x247   : > { %v2461_v9 = vmul.f32 %v8434_v43, %v2460_v14  ;;  %v2462_v63 = vmul.f32 %v8440_v13, %v2460_v14  ;;  %v8502_v48 = vadd.f32 %v2455_v40, %v2384_v55  ;;  %v8504_v8 = vadd.f32 %v2456_v22, %v2385_v32 }
 0x248   : > { %v2467_v50 = vmul.f32 %v8434_v43, %v2466_v62  ;;  %v2468_v56 = vmul.f32 %v8440_v13, %v2466_v62  ;;  %v2472_v20 = vstv %s8465_s5  ;;  %v2478_v2 = vstv %s8467_s12  ;;  %s8690_s5 = sld [smem:[#allocation13 + $0xea]]  ;;  %s8700_s12 = sld [smem:[#allocation13 + $0x10e]] }
 0x249   : > { %v8508_v42 = vadd.f32 %v2461_v9, %v2397_v60  ;;  %v8510_v36 = vadd.f32 %v2462_v63, %v2398_v52  ;;  %v2473_v3 = vmul.f32 %v8434_v43, %v2472_v20  ;;  %v2474_v30 = vmul.f32 %v8440_v13, %v2472_v20 }
 0x24a   : > { %v8514_v28 = vadd.f32 %v2467_v50, %v2410_v61  ;;  %v8516_v44 = vadd.f32 %v2468_v56, %v2411_v41  ;;  %v2479_v47 = vmul.f32 %v8434_v43, %v2478_v2  ;;  %v2480_v11 = vmul.f32 %v8440_v13, %v2478_v2 }
 0x24b   : > { %v2491_v32 = vstv %s8477_s13  ;;  %v2504_v6 = vstv %s8479_s15  ;;  %v8530_v27 = vadd.f32 %v2473_v3, %v2423_v37  ;;  %v8532_v55 = vadd.f32 %v2474_v30, %v2424_v46  ;;  %s8702_s13 = sld [smem:[#allocation13 + $0x13]]  ;;  %s8712_s15 = sld [smem:[#allocation13 + $0x37]] }
 0x24c   : > { %v2492_v1 = vmul.f32 %v8434_v43, %v2491_v32  ;;  %v2493_v29 = vmul.f32 %v8440_v13, %v2491_v32  ;;  %v2483_v12 = vrot.slane %v2479_v47, 1  ;;  %v2484_v16 = vrot.slane %v2480_v11, 1 }
 0x24d   : > { %v2505_v59 = vmul.f32 %v8434_v43, %v2504_v6  ;;  %v2506_v0 = vmul.f32 %v8440_v13, %v2504_v6  ;;  %v2517_v52 = vstv %s8492_s16  ;;  %v2530_v15 = vstv %s8494_s3  ;;  %s8714_s16 = sld [smem:[#allocation13 + $0x5b]]  ;;  %s8727_s3 = sld [smem:[#allocation13 + $0x7f]] }
 0x24e   : > { %v2496_v53 = vrot.slane %v2492_v1, 1  ;;  %v2497_v19 = vrot.slane %v2493_v29, 1  ;;  %v2485_v31 = vsel %vm696_vm0, %v2483_v12, %v2484_v16  ;;  %v8542_v60 = vadd.f32 %v2484_v16, %v8463_v10 }
 0x24f   : > { %v2509_v24 = vrot.slane %v2505_v59, 1  ;;  %v2510_v41 = vrot.slane %v2506_v0, 1  ;;  %v8545_v23 = vadd.f32 %v2485_v31, %v8461_v58  ;;  %v2518_v26 = vmul.f32 %v8434_v43, %v2517_v52 }
 0x250   : > { %v2498_v61 = vsel %vm696_vm0, %v2496_v53, %v2497_v19  ;;  %v8548_v45 = vadd.f32 %v2497_v19, %v2440_v18  ;;  %v2519_v58 = vmul.f32 %v8440_v13, %v2517_v52  ;;  %v2531_v46 = vmul.f32 %v8434_v43, %v2530_v15 }
 0x251   : > { %v8555_v10 = vadd.f32 %v2498_v61, %v2439_v33  ;;  %v2511_v17 = vsel %vm696_vm0, %v2509_v24, %v2510_v41  ;;  %v8558_v57 = vadd.f32 %v2510_v41, %v2446_v38  ;;  %v2522_v35 = vrot.slane %v2518_v26, 1 }
 0x252   : > { %v8561_v25 = vadd.f32 %v2511_v17, %v2445_v7  ;;  %v2532_v34 = vmul.f32 %v8440_v13, %v2530_v15  ;;  %v2523_v39 = vrot.slane %v2519_v58, 1  ;;  %v2543_v37 = vstv %s8520_s4  ;;  %s8729_s4 = sld [smem:[#allocation13 + $0xa3]] }
 0x253   : > { %v2556_v18 = vstv %s8526_s0  ;;  %v2569_v5 = vstv %s8528_s17  ;;  %v2535_v49 = vrot.slane %v2531_v46, 1  ;;  %v2544_v51 = vmul.f32 %v8434_v43, %v2543_v37  ;;  %s8755_s0 = sld [smem:[#allocation13 + $0xc7]]  ;;  %s8761_s17 = sld [smem:[#allocation13 + $0xeb]] }
 0x254   : > { %v2536_v33 = vrot.slane %v2532_v34, 1  ;;  %v2545_v38 = vmul.f32 %v8440_v13, %v2543_v37  ;;  %v2524_v7 = vsel %vm696_vm0, %v2522_v35, %v2523_v39  ;;  %v8576_v40 = vadd.f32 %v2523_v39, %v8497_v54 }
 0x255   : > { %v2557_v22 = vmul.f32 %v8434_v43, %v2556_v18  ;;  %v2558_v14 = vmul.f32 %v8440_v13, %v2556_v18  ;;  %v8581_v9 = vadd.f32 %v2524_v7, %v8487_v21  ;;  %v2548_v50 = vrot.slane %v2544_v51, 1 }
 0x256   : > { %v2537_v63 = vsel %vm696_vm0, %v2535_v49, %v2536_v33  ;;  %v8585_v62 = vadd.f32 %v2536_v33, %v8504_v8  ;;  %v2549_v20 = vrot.slane %v2545_v38, 1  ;;  %v2570_v3 = vmul.f32 %v8434_v43, %v2569_v5 }
 0x257   : > { %v8588_v56 = vadd.f32 %v2537_v63, %v8502_v48  ;;  %v2561_v2 = vrot.slane %v2557_v22, 1  ;;  %v2562_v54 = vrot.slane %v2558_v14, 1  ;;  %v2571_v30 = vmul.f32 %v8440_v13, %v2569_v5 }
 0x258   : > { %v2582_v21 = vstv %s8551_s18  ;;  %v2595_v47 = vstv %s8553_s19  ;;  %v2550_v11 = vsel %vm696_vm0, %v2548_v50, %v2549_v20  ;;  %v8598_v8 = vadd.f32 %v2549_v20, %v8510_v36  ;;  %s8763_s18 = sld [smem:[#allocation13 + $0x10f]]  ;;  %s8786_s19 = sld [smem:[#allocation13 + $0x14]] }
 0x259   : > { %v2563_v48 = vsel %vm696_vm0, %v2561_v2, %v2562_v54  ;;  %v8602_v32 = vadd.f32 %v2562_v54, %v8516_v44  ;;  %v8605_v6 = vadd.f32 %v2550_v11, %v8508_v42  ;;  %v2574_v29 = vrot.slane %v2570_v3, 1  ;;  %v8669_v54 = vld [vmem:[%s7273_s24 + $0x1c0] sm:$0xff] }
 0x25a   : > { %v8608_v1 = vadd.f32 %v2563_v48, %v8514_v28  ;;  %v2575_v12 = vrot.slane %v2571_v30, 1  ;;  %v2583_v36 = vmul.f32 %v8434_v43, %v2582_v21  ;;  %v2584_v16 = vmul.f32 %v8440_v13, %v2582_v21  ;;  %v8675_v30 = vld [vmem:[%s7273_s24 + $0x1c8] sm:$0x3f] }
 0x25b   : > { %v2596_v59 = vmul.f32 %v8434_v43, %v2595_v47  ;;  %v2597_v44 = vmul.f32 %v8440_v13, %v2595_v47  ;;  %v2608_v28 = vstv %s8570_s22  ;;  %v2621_v53 = vstv %s8572_s23  ;;  %s8788_s22 = sld [smem:[#allocation13 + $0x38]]  ;;  %s8805_s23 = sld [smem:[#allocation13 + $0x5c]] }
 0x25c   : > { %v2576_v42 = vsel %vm696_vm0, %v2574_v29, %v2575_v12  ;;  %v8620_v0 = vadd.f32 %v2575_v12, %v8532_v55  ;;  %v2587_v52 = vrot.slane %v2583_v36, 2  ;;  %v2588_v15 = vrot.slane %v2584_v16, 2 }
 0x25d   : > { %v8625_v19 = vadd.f32 %v2576_v42, %v8530_v27  ;;  %v2600_v31 = vrot.slane %v2596_v59, 2  ;;  %v2601_v24 = vrot.slane %v2597_v44, 2  ;;  %v2609_v41 = vmul.f32 %v8434_v43, %v2608_v28 }
 0x25e   : > { %v2610_v61 = vmul.f32 %v8440_v13, %v2608_v28  ;;  %v2622_v26 = vmul.f32 %v8434_v43, %v2621_v53  ;;  %v2589_v55 = vsel %vm710_vm1, %v2587_v52, %v2588_v15  ;;  %v2593_v27 = vadd.f32 %v2588_v15, %v8542_v60 }
 0x25f   : > { %v2623_v17 = vmul.f32 %v8440_v13, %v2621_v53  ;;  %v2634_v58 = vstv %s8590_s21  ;;  %v2592_v35 = vadd.f32 %v2589_v55, %v8545_v23  ;;  %v2602_v46 = vsel %vm710_vm1, %v2600_v31, %v2601_v24  ;;  %s8807_s21 = sld [smem:[#allocation13 + $0x80]] }
 0x260   : > { %v8641_v34 = vadd.f32 %v2601_v24, %v8548_v45  ;;  %v2613_v39 = vrot.slane %v2609_v41, 2  ;;  %v8644_v37 = vadd.f32 %v2602_v46, %v8555_v10  ;;  %v2614_v18 = vrot.slane %v2610_v61, 2 }
 0x261   : > { %v2626_v5 = vrot.slane %v2622_v26, 2  ;;  %v2627_v49 = vrot.slane %v2623_v17, 2  ;;  %v2635_v60 = vmul.f32 %v8434_v43, %v2634_v58  ;;  %v2636_v33 = vmul.f32 %v8440_v13, %v2634_v58 }
 0x262   : > { %v2647_v51 = vstv %s8610_s25  ;;  %v2660_v23 = vstv %s8612_s10  ;;  %v2615_v38 = vsel %vm710_vm1, %v2613_v39, %v2614_v18  ;;  %v2619_v45 = vadd.f32 %v2614_v18, %v8558_v57  ;;  %s8825_s25 = sld [smem:[#allocation13 + $0xa4]]  ;;  %s8845_s10 = sld [smem:[#allocation13 + $0xc8]] }
 0x263   : > { %v2628_v10 = vsel %vm710_vm1, %v2626_v5, %v2627_v49  ;;  %v8656_v7 = vadd.f32 %v2627_v49, %v8576_v40  ;;  %v2618_v22 = vadd.f32 %v2615_v38, %v8561_v25  ;;  %v2639_v63 = vrot.slane %v2635_v60, 2 }
 0x264   : > { %v2631_v14 = vadd.f32 %v2628_v10, %v8581_v9  ;;  %v2640_v50 = vrot.slane %v2636_v33, 2  ;;  %v2648_v57 = vmul.f32 %v8434_v43, %v2647_v51  ;;  %v2649_v20 = vmul.f32 %v8440_v13, %v2647_v51 }
 0x265   : > { %v2661_v2 = vmul.f32 %v8434_v43, %v2660_v23  ;;  %v2662_v40 = vmul.f32 %v8440_v13, %v2660_v23  ;;  %v2673_v3 = vstv %s8630_s26  ;;  %v2690_v21 = vstv %s8632_s2  ;;  %s8847_s26 = sld [smem:[#allocation13 + $0xec]]  ;;  %s8865_s2 = sld [smem:[#allocation13 + $0x110]] }
 0x266   : > { %v2641_v25 = vsel %vm710_vm1, %v2639_v63, %v2640_v50  ;;  %v2645_v9 = vadd.f32 %v2640_v50, %v8585_v62  ;;  %v2652_v11 = vrot.slane %v2648_v57, 2  ;;  %v2653_v48 = vrot.slane %v2649_v20, 2 }
 0x267   : > { %v2644_v47 = vadd.f32 %v2641_v25, %v8588_v56  ;;  %v2665_v29 = vrot.slane %v2661_v2, 2  ;;  %v2666_v12 = vrot.slane %v2662_v40, 2  ;;  %v2674_v36 = vmul.f32 %v8434_v43, %v2673_v3 }
 0x268   : > { %v2675_v16 = vmul.f32 %v8440_v13, %v2673_v3  ;;  %v2691_v59 = vmul.f32 %v8669_v54, %v2690_v21  ;;  %v2654_v62 = vsel %vm710_vm1, %v2652_v11, %v2653_v48  ;;  %v2658_v44 = vadd.f32 %v2653_v48, %v8598_v8 }
 0x269   : > { %v2692_v56 = vmul.f32 %v8675_v30, %v2690_v21  ;;  %v2696_v42 = vstv %s8646_s1  ;;  %v2657_v28 = vadd.f32 %v2654_v62, %v8605_v6  ;;  %v2667_v43 = vsel %vm710_vm1, %v2665_v29, %v2666_v12  ;;  %s8867_s1 = sld [smem:[#allocation13 + $0x15]] }
 0x26a   : > { %v2671_v13 = vadd.f32 %v2666_v12, %v8602_v32  ;;  %v2678_v53 = vrot.slane %v2674_v36, 2  ;;  %v2670_v52 = vadd.f32 %v2667_v43, %v8608_v1  ;;  %v2679_v15 = vrot.slane %v2675_v16, 2 }
 0x26b   : > { %v8696_v31 = vadd.f32 %v2691_v59, %v2592_v35  ;;  %v8698_v8 = vadd.f32 %v2692_v56, %v2593_v27  ;;  %v2697_v24 = vmul.f32 %v8669_v54, %v2696_v42  ;;  %v2698_v6 = vmul.f32 %v8675_v30, %v2696_v42 }
 0x26c   : > { %v2702_v41 = vstv %s8660_s27  ;;  %v2708_v61 = vstv %s8662_s28  ;;  %v2680_v32 = vsel %vm710_vm1, %v2678_v53, %v2679_v15  ;;  %v2684_v1 = vadd.f32 %v2679_v15, %v8620_v0  ;;  %s8881_s27 = sld [smem:[#allocation13 + $0x39]]  ;;  %s8895_s28 = sld [smem:[#allocation13 + $0x5d]] }
 0x26d   : > { %v2703_v26 = vmul.f32 %v8669_v54, %v2702_v41  ;;  %v2704_v55 = vmul.f32 %v8675_v30, %v2702_v41  ;;  %v2683_v27 = vadd.f32 %v2680_v32, %v8625_v19  ;;  %v2699_v17 = vadd.f32 %v2697_v24, %v8644_v37 }
 0x26e   : > { %v2700_v58 = vadd.f32 %v2698_v6, %v8641_v34  ;;  %v2709_v35 = vmul.f32 %v8669_v54, %v2708_v61  ;;  %v2710_v39 = vmul.f32 %v8675_v30, %v2708_v61  ;;  %v2714_v18 = vstv %s8679_s29  ;;  %s8897_s29 = sld [smem:[#allocation13 + $0x81]] }
 0x26f   : > { %v2705_v46 = vadd.f32 %v2703_v26, %v2618_v22  ;;  %v2706_v0 = vadd.f32 %v2704_v55, %v2619_v45  ;;  %v2715_v49 = vmul.f32 %v8669_v54, %v2714_v18  ;;  %v2716_v19 = vmul.f32 %v8675_v30, %v2714_v18 }
 0x270   : > { %v8722_v5 = vadd.f32 %v2709_v35, %v2631_v14  ;;  %v2720_v60 = vstv %s8684_s30  ;;  %v8732_v34 = vadd.f32 %v2710_v39, %v8656_v7  ;;  %v2726_v51 = vstv %s8690_s5  ;;  %s8914_s30 = sld [smem:[#allocation13 + $0xa5]]  ;;  %s8919_s5 = sld [smem:[#allocation13 + $0xc9]] }
 0x271   : > { %v2721_v37 = vmul.f32 %v8669_v54, %v2720_v60  ;;  %v2722_v33 = vmul.f32 %v8675_v30, %v2720_v60  ;;  %v8737_v23 = vadd.f32 %v2715_v49, %v2644_v47  ;;  %v8739_v38 = vadd.f32 %v2716_v19, %v2645_v9 }
 0x272   : > { %v2727_v45 = vmul.f32 %v8669_v54, %v2726_v51  ;;  %v2728_v10 = vmul.f32 %v8675_v30, %v2726_v51  ;;  %v2732_v7 = vstv %s8700_s12  ;;  %v2738_v63 = vstv %s8702_s13  ;;  %s8925_s12 = sld [smem:[#allocation13 + $0xed]]  ;;  %s8935_s13 = sld [smem:[#allocation13 + $0x111]] }
 0x273   : > { %v8743_v22 = vadd.f32 %v2721_v37, %v2657_v28  ;;  %v8745_v14 = vadd.f32 %v2722_v33, %v2658_v44  ;;  %v2733_v20 = vmul.f32 %v8669_v54, %v2732_v7  ;;  %v2734_v2 = vmul.f32 %v8675_v30, %v2732_v7 }
 0x274   : > { %v8749_v50 = vadd.f32 %v2727_v45, %v2670_v52  ;;  %v8751_v57 = vadd.f32 %v2728_v10, %v2671_v13  ;;  %v2739_v40 = vmul.f32 %v8669_v54, %v2738_v63  ;;  %v2740_v25 = vmul.f32 %v8675_v30, %v2738_v63 }
 0x275   : > { %v2751_v9 = vstv %s8712_s15  ;;  %v2764_v3 = vstv %s8714_s16  ;;  %v8765_v21 = vadd.f32 %v2733_v20, %v2683_v27  ;;  %v8767_v47 = vadd.f32 %v2734_v2, %v2684_v1  ;;  %s8937_s15 = sld [smem:[#allocation13 + $0x16]]  ;;  %s8947_s16 = sld [smem:[#allocation13 + $0x3a]] }
 0x276   : > { %v2752_v11 = vmul.f32 %v8669_v54, %v2751_v9  ;;  %v2753_v48 = vmul.f32 %v8675_v30, %v2751_v9  ;;  %v2743_v29 = vrot.slane %v2739_v40, 1  ;;  %v2744_v12 = vrot.slane %v2740_v25, 1 }
 0x277   : > { %v2765_v36 = vmul.f32 %v8669_v54, %v2764_v3  ;;  %v2766_v16 = vmul.f32 %v8675_v30, %v2764_v3  ;;  %v2777_v44 = vstv %s8727_s3  ;;  %v2790_v56 = vstv %s8729_s4  ;;  %s8949_s3 = sld [smem:[#allocation13 + $0x5e]]  ;;  %s8962_s4 = sld [smem:[#allocation13 + $0x82]] }
 0x278   : > { %v2756_v59 = vrot.slane %v2752_v11, 1  ;;  %v2757_v62 = vrot.slane %v2753_v48, 1  ;;  %v2745_v42 = vsel %vm696_vm0, %v2743_v29, %v2744_v12  ;;  %v8777_v28 = vadd.f32 %v2744_v12, %v8698_v8 }
 0x279   : > { %v2769_v43 = vrot.slane %v2765_v36, 1  ;;  %v2770_v13 = vrot.slane %v2766_v16, 1  ;;  %v8780_v53 = vadd.f32 %v2745_v42, %v8696_v31  ;;  %v2778_v24 = vmul.f32 %v8669_v54, %v2777_v44 }
 0x27a   : > { %v2758_v52 = vsel %vm696_vm0, %v2756_v59, %v2757_v62  ;;  %v8783_v15 = vadd.f32 %v2757_v62, %v2700_v58  ;;  %v2779_v31 = vmul.f32 %v8675_v30, %v2777_v44  ;;  %v2791_v1 = vmul.f32 %v8669_v54, %v2790_v56 }
 0x27b   : > { %v8790_v8 = vadd.f32 %v2758_v52, %v2699_v17  ;;  %v2771_v6 = vsel %vm696_vm0, %v2769_v43, %v2770_v13  ;;  %v8793_v41 = vadd.f32 %v2770_v13, %v2706_v0  ;;  %v2782_v32 = vrot.slane %v2778_v24, 1 }
 0x27c   : > { %v8796_v61 = vadd.f32 %v2771_v6, %v2705_v46  ;;  %v2792_v26 = vmul.f32 %v8675_v30, %v2790_v56  ;;  %v2783_v55 = vrot.slane %v2779_v31, 1  ;;  %v2803_v27 = vstv %s8755_s0  ;;  %s8964_s0 = sld [smem:[#allocation13 + $0xa6]] }
 0x27d   : > { %v2816_v58 = vstv %s8761_s17  ;;  %v2829_v35 = vstv %s8763_s18  ;;  %v2795_v39 = vrot.slane %v2791_v1, 1  ;;  %v2804_v18 = vmul.f32 %v8669_v54, %v2803_v27  ;;  %s8990_s17 = sld [smem:[#allocation13 + $0xca]]  ;;  %s8996_s18 = sld [smem:[#allocation13 + $0xee]] }
 0x27e   : > { %v2796_v17 = vrot.slane %v2792_v26, 1  ;;  %v2805_v0 = vmul.f32 %v8675_v30, %v2803_v27  ;;  %v2784_v46 = vsel %vm696_vm0, %v2782_v32, %v2783_v55  ;;  %v8811_v49 = vadd.f32 %v2783_v55, %v8732_v34 }
 0x27f   : > { %v2817_v19 = vmul.f32 %v8669_v54, %v2816_v58  ;;  %v2818_v60 = vmul.f32 %v8675_v30, %v2816_v58  ;;  %v8816_v37 = vadd.f32 %v2784_v46, %v8722_v5  ;;  %v2808_v45 = vrot.slane %v2804_v18, 1 }
 0x280   : > { %v2797_v33 = vsel %vm696_vm0, %v2795_v39, %v2796_v17  ;;  %v8820_v51 = vadd.f32 %v2796_v17, %v8739_v38  ;;  %v2809_v7 = vrot.slane %v2805_v0, 1  ;;  %v2830_v20 = vmul.f32 %v8669_v54, %v2829_v35 }
 0x281   : > { %v8823_v10 = vadd.f32 %v2797_v33, %v8737_v23  ;;  %v2821_v63 = vrot.slane %v2817_v19, 1  ;;  %v2822_v34 = vrot.slane %v2818_v60, 1  ;;  %v2831_v2 = vmul.f32 %v8675_v30, %v2829_v35 }
 0x282   : > { %v2842_v5 = vstv %s8786_s19  ;;  %v2855_v40 = vstv %s8788_s22  ;;  %v2810_v25 = vsel %vm696_vm0, %v2808_v45, %v2809_v7  ;;  %v8833_v38 = vadd.f32 %v2809_v7, %v8745_v14  ;;  %s8998_s19 = sld [smem:[#allocation13 + $0x112]]  ;;  %s9021_s22 = sld [smem:[#allocation13 + $0x17]] }
 0x283   : > { %v2823_v23 = vsel %vm696_vm0, %v2821_v63, %v2822_v34  ;;  %v8837_v9 = vadd.f32 %v2822_v34, %v8751_v57  ;;  %v8840_v3 = vadd.f32 %v2810_v25, %v8743_v22  ;;  %v2834_v48 = vrot.slane %v2830_v20, 1  ;;  %v8904_v34 = vld [vmem:[%s7273_s24 + $0x1d0] sm:$0xff] }
 0x284   : > { %v8843_v11 = vadd.f32 %v2823_v23, %v8749_v50  ;;  %v2835_v29 = vrot.slane %v2831_v2, 1  ;;  %v2843_v14 = vmul.f32 %v8669_v54, %v2842_v5  ;;  %v2844_v12 = vmul.f32 %v8675_v30, %v2842_v5  ;;  %v8910_v2 = vld [vmem:[%s7273_s24 + $0x1d8] sm:$0x3f] }
 0x285   : > { %v2856_v36 = vmul.f32 %v8669_v54, %v2855_v40  ;;  %v2857_v57 = vmul.f32 %v8675_v30, %v2855_v40  ;;  %v2868_v50 = vstv %s8805_s23  ;;  %v2881_v59 = vstv %s8807_s21  ;;  %s9023_s23 = sld [smem:[#allocation13 + $0x3b]]  ;;  %s9040_s21 = sld [smem:[#allocation13 + $0x5f]] }
 0x286   : > { %v2836_v22 = vsel %vm696_vm0, %v2834_v48, %v2835_v29  ;;  %v8855_v16 = vadd.f32 %v2835_v29, %v8767_v47  ;;  %v2847_v44 = vrot.slane %v2843_v14, 2  ;;  %v2848_v56 = vrot.slane %v2844_v12, 2 }
 0x287   : > { %v8860_v62 = vadd.f32 %v2836_v22, %v8765_v21  ;;  %v2860_v42 = vrot.slane %v2856_v36, 2  ;;  %v2861_v43 = vrot.slane %v2857_v57, 2  ;;  %v2869_v13 = vmul.f32 %v8669_v54, %v2868_v50 }
 0x288   : > { %v2870_v52 = vmul.f32 %v8675_v30, %v2868_v50  ;;  %v2882_v24 = vmul.f32 %v8669_v54, %v2881_v59  ;;  %v2849_v47 = vsel %vm710_vm1, %v2847_v44, %v2848_v56  ;;  %v2853_v21 = vadd.f32 %v2848_v56, %v8777_v28 }
 0x289   : > { %v2883_v6 = vmul.f32 %v8675_v30, %v2881_v59  ;;  %v2894_v31 = vstv %s8825_s25  ;;  %v2852_v32 = vadd.f32 %v2849_v47, %v8780_v53  ;;  %v2862_v1 = vsel %vm710_vm1, %v2860_v42, %v2861_v43  ;;  %s9042_s25 = sld [smem:[#allocation13 + $0x83]] }
 0x28a   : > { %v8876_v26 = vadd.f32 %v2861_v43, %v8783_v15  ;;  %v2873_v55 = vrot.slane %v2869_v13, 2  ;;  %v8879_v27 = vadd.f32 %v2862_v1, %v8790_v8  ;;  %v2874_v58 = vrot.slane %v2870_v52, 2 }
 0x28b   : > { %v2886_v35 = vrot.slane %v2882_v24, 2  ;;  %v2887_v39 = vrot.slane %v2883_v6, 2  ;;  %v2895_v28 = vmul.f32 %v8669_v54, %v2894_v31  ;;  %v2896_v17 = vmul.f32 %v8675_v30, %v2894_v31 }
 0x28c   : > { %v2907_v18 = vstv %s8845_s10  ;;  %v2920_v53 = vstv %s8847_s26  ;;  %v2875_v0 = vsel %vm710_vm1, %v2873_v55, %v2874_v58  ;;  %v2879_v15 = vadd.f32 %v2874_v58, %v8793_v41  ;;  %s9060_s10 = sld [smem:[#allocation13 + $0xa7]]  ;;  %s9080_s26 = sld [smem:[#allocation13 + $0xcb]] }
 0x28d   : > { %v2888_v8 = vsel %vm710_vm1, %v2886_v35, %v2887_v39  ;;  %v8891_v46 = vadd.f32 %v2887_v39, %v8811_v49  ;;  %v2878_v19 = vadd.f32 %v2875_v0, %v8796_v61  ;;  %v2899_v33 = vrot.slane %v2895_v28, 2 }
 0x28e   : > { %v2891_v60 = vadd.f32 %v2888_v8, %v8816_v37  ;;  %v2900_v45 = vrot.slane %v2896_v17, 2  ;;  %v2908_v41 = vmul.f32 %v8669_v54, %v2907_v18  ;;  %v2909_v7 = vmul.f32 %v8675_v30, %v2907_v18 }
 0x28f   : > { %v2921_v63 = vmul.f32 %v8669_v54, %v2920_v53  ;;  %v2922_v49 = vmul.f32 %v8675_v30, %v2920_v53  ;;  %v2933_v20 = vstv %s8865_s2  ;;  %v2950_v5 = vstv %s8867_s1  ;;  %s9082_s2 = sld [smem:[#allocation13 + $0xef]]  ;;  %s9100_s1 = sld [smem:[#allocation13 + $0x113]] }
 0x290   : > { %v2901_v61 = vsel %vm710_vm1, %v2899_v33, %v2900_v45  ;;  %v2905_v37 = vadd.f32 %v2900_v45, %v8820_v51  ;;  %v2912_v25 = vrot.slane %v2908_v41, 2  ;;  %v2913_v23 = vrot.slane %v2909_v7, 2 }
 0x291   : > { %v2904_v40 = vadd.f32 %v2901_v61, %v8823_v10  ;;  %v2925_v48 = vrot.slane %v2921_v63, 2  ;;  %v2926_v29 = vrot.slane %v2922_v49, 2  ;;  %v2934_v14 = vmul.f32 %v8669_v54, %v2933_v20 }
 0x292   : > { %v2935_v12 = vmul.f32 %v8675_v30, %v2933_v20  ;;  %v2951_v36 = vmul.f32 %v8904_v34, %v2950_v5  ;;  %v2914_v51 = vsel %vm710_vm1, %v2912_v25, %v2913_v23  ;;  %v2918_v57 = vadd.f32 %v2913_v23, %v8833_v38 }
 0x293   : > { %v2952_v10 = vmul.f32 %v8910_v2, %v2950_v5  ;;  %v2956_v22 = vstv %s8881_s27  ;;  %v2917_v50 = vadd.f32 %v2914_v51, %v8840_v3  ;;  %v2927_v54 = vsel %vm710_vm1, %v2925_v48, %v2926_v29  ;;  %s9102_s27 = sld [smem:[#allocation13 + $0x18]] }
 0x294   : > { %v2931_v30 = vadd.f32 %v2926_v29, %v8837_v9  ;;  %v2938_v59 = vrot.slane %v2934_v14, 2  ;;  %v2930_v44 = vadd.f32 %v2927_v54, %v8843_v11  ;;  %v2939_v56 = vrot.slane %v2935_v12, 2 }
 0x295   : > { %v8931_v42 = vadd.f32 %v2951_v36, %v2852_v32  ;;  %v8933_v38 = vadd.f32 %v2952_v10, %v2853_v21  ;;  %v2957_v43 = vmul.f32 %v8904_v34, %v2956_v22  ;;  %v2958_v3 = vmul.f32 %v8910_v2, %v2956_v22 }
 0x296   : > { %v2962_v13 = vstv %s8895_s28  ;;  %v2968_v52 = vstv %s8897_s29  ;;  %v2940_v9 = vsel %vm710_vm1, %v2938_v59, %v2939_v56  ;;  %v2944_v11 = vadd.f32 %v2939_v56, %v8855_v16  ;;  %s9116_s28 = sld [smem:[#allocation13 + $0x3c]]  ;;  %s9130_s29 = sld [smem:[#allocation13 + $0x60]] }
 0x297   : > { %v2963_v24 = vmul.f32 %v8904_v34, %v2962_v13  ;;  %v2964_v47 = vmul.f32 %v8910_v2, %v2962_v13  ;;  %v2943_v21 = vadd.f32 %v2940_v9, %v8860_v62  ;;  %v2959_v6 = vadd.f32 %v2957_v43, %v8879_v27 }
 0x298   : > { %v2960_v31 = vadd.f32 %v2958_v3, %v8876_v26  ;;  %v2969_v32 = vmul.f32 %v8904_v34, %v2968_v52  ;;  %v2970_v55 = vmul.f32 %v8910_v2, %v2968_v52  ;;  %v2974_v58 = vstv %s8914_s30  ;;  %s9132_s30 = sld [smem:[#allocation13 + $0x84]] }
 0x299   : > { %v2965_v1 = vadd.f32 %v2963_v24, %v2878_v19  ;;  %v2966_v16 = vadd.f32 %v2964_v47, %v2879_v15  ;;  %v2975_v39 = vmul.f32 %v8904_v34, %v2974_v58  ;;  %v2976_v62 = vmul.f32 %v8910_v2, %v2974_v58 }
 0x29a   : > { %v8957_v35 = vadd.f32 %v2969_v32, %v2891_v60  ;;  %v2980_v28 = vstv %s8919_s5  ;;  %v8967_v26 = vadd.f32 %v2970_v55, %v8891_v46  ;;  %v2986_v18 = vstv %s8925_s12  ;;  %s9149_s5 = sld [smem:[#allocation13 + $0xa8]]  ;;  %s9154_s12 = sld [smem:[#allocation13 + $0xcc]] }
 0x29b   : > { %v2981_v27 = vmul.f32 %v8904_v34, %v2980_v28  ;;  %v2982_v17 = vmul.f32 %v8910_v2, %v2980_v28  ;;  %v8972_v53 = vadd.f32 %v2975_v39, %v2904_v40  ;;  %v8974_v0 = vadd.f32 %v2976_v62, %v2905_v37 }
 0x29c   : > { %v2987_v15 = vmul.f32 %v8904_v34, %v2986_v18  ;;  %v2988_v8 = vmul.f32 %v8910_v2, %v2986_v18  ;;  %v2992_v46 = vstv %s8935_s13  ;;  %v2998_v33 = vstv %s8937_s15  ;;  %s9160_s13 = sld [smem:[#allocation13 + $0xf0]]  ;;  %s9170_s15 = sld [smem:[#allocation13 + $0x114]] }
 0x29d   : > { %v8978_v19 = vadd.f32 %v2981_v27, %v2917_v50  ;;  %v8980_v60 = vadd.f32 %v2982_v17, %v2918_v57  ;;  %v2993_v7 = vmul.f32 %v8904_v34, %v2992_v46  ;;  %v2994_v63 = vmul.f32 %v8910_v2, %v2992_v46 }
 0x29e   : > { %v8984_v45 = vadd.f32 %v2987_v15, %v2930_v44  ;;  %v8986_v41 = vadd.f32 %v2988_v8, %v2931_v30  ;;  %v2999_v49 = vmul.f32 %v8904_v34, %v2998_v33  ;;  %v3000_v61 = vmul.f32 %v8910_v2, %v2998_v33 }
 0x29f   : > { %v3011_v37 = vstv %s8947_s16  ;;  %v3024_v20 = vstv %s8949_s3  ;;  %v9000_v5 = vadd.f32 %v2993_v7, %v2943_v21  ;;  %v9002_v40 = vadd.f32 %v2994_v63, %v2944_v11  ;;  %s9172_s16 = sld [smem:[#allocation13 + $0x19]]  ;;  %s9182_s3 = sld [smem:[#allocation13 + $0x3d]] }
 0x2a0   : > { %v3012_v25 = vmul.f32 %v8904_v34, %v3011_v37  ;;  %v3013_v23 = vmul.f32 %v8910_v2, %v3011_v37  ;;  %v3003_v48 = vrot.slane %v2999_v49, 1  ;;  %v3004_v29 = vrot.slane %v3000_v61, 1 }
 0x2a1   : > { %v3025_v14 = vmul.f32 %v8904_v34, %v3024_v20  ;;  %v3026_v12 = vmul.f32 %v8910_v2, %v3024_v20  ;;  %v3037_v57 = vstv %s8962_s4  ;;  %v3050_v10 = vstv %s8964_s0  ;;  %s9184_s4 = sld [smem:[#allocation13 + $0x61]]  ;;  %s9197_s0 = sld [smem:[#allocation13 + $0x85]] }
 0x2a2   : > { %v3016_v36 = vrot.slane %v3012_v25, 1  ;;  %v3017_v51 = vrot.slane %v3013_v23, 1  ;;  %v3005_v22 = vsel %vm696_vm0, %v3003_v48, %v3004_v29  ;;  %v9012_v50 = vadd.f32 %v3004_v29, %v8933_v38 }
 0x2a3   : > { %v3029_v54 = vrot.slane %v3025_v14, 1  ;;  %v3030_v30 = vrot.slane %v3026_v12, 1  ;;  %v9015_v59 = vadd.f32 %v3005_v22, %v8931_v42  ;;  %v3038_v43 = vmul.f32 %v8904_v34, %v3037_v57 }
 0x2a4   : > { %v3018_v44 = vsel %vm696_vm0, %v3016_v36, %v3017_v51  ;;  %v9018_v56 = vadd.f32 %v3017_v51, %v2960_v31  ;;  %v3039_v42 = vmul.f32 %v8910_v2, %v3037_v57  ;;  %v3051_v11 = vmul.f32 %v8904_v34, %v3050_v10 }
 0x2a5   : > { %v9025_v38 = vadd.f32 %v3018_v44, %v2959_v6  ;;  %v3031_v3 = vsel %vm696_vm0, %v3029_v54, %v3030_v30  ;;  %v9028_v13 = vadd.f32 %v3030_v30, %v2966_v16  ;;  %v3042_v9 = vrot.slane %v3038_v43, 1 }
 0x2a6   : > { %v9031_v52 = vadd.f32 %v3031_v3, %v2965_v1  ;;  %v3052_v24 = vmul.f32 %v8910_v2, %v3050_v10  ;;  %v3043_v47 = vrot.slane %v3039_v42, 1  ;;  %v3063_v21 = vstv %s8990_s17  ;;  %s9199_s17 = sld [smem:[#allocation13 + $0xa9]] }
 0x2a7   : > { %v3076_v31 = vstv %s8996_s18  ;;  %v3089_v32 = vstv %s8998_s19  ;;  %v3055_v55 = vrot.slane %v3051_v11, 1  ;;  %v3064_v58 = vmul.f32 %v8904_v34, %v3063_v21  ;;  %s9225_s18 = sld [smem:[#allocation13 + $0xcd]]  ;;  %s9231_s19 = sld [smem:[#allocation13 + $0xf1]] }
 0x2a8   : > { %v3056_v6 = vrot.slane %v3052_v24, 1  ;;  %v3065_v16 = vmul.f32 %v8910_v2, %v3063_v21  ;;  %v3044_v1 = vsel %vm696_vm0, %v3042_v9, %v3043_v47  ;;  %v9046_v39 = vadd.f32 %v3043_v47, %v8967_v26 }
 0x2a9   : > { %v3077_v62 = vmul.f32 %v8904_v34, %v3076_v31  ;;  %v3078_v28 = vmul.f32 %v8910_v2, %v3076_v31  ;;  %v9051_v27 = vadd.f32 %v3044_v1, %v8957_v35  ;;  %v3068_v15 = vrot.slane %v3064_v58, 1 }
 0x2aa   : > { %v3057_v17 = vsel %vm696_vm0, %v3055_v55, %v3056_v6  ;;  %v9055_v18 = vadd.f32 %v3056_v6, %v8974_v0  ;;  %v3069_v46 = vrot.slane %v3065_v16, 1  ;;  %v3090_v7 = vmul.f32 %v8904_v34, %v3089_v32 }
 0x2ab   : > { %v9058_v8 = vadd.f32 %v3057_v17, %v8972_v53  ;;  %v3081_v33 = vrot.slane %v3077_v62, 1  ;;  %v3082_v26 = vrot.slane %v3078_v28, 1  ;;  %v3091_v63 = vmul.f32 %v8910_v2, %v3089_v32 }
 0x2ac   : > { %v3102_v35 = vstv %s9021_s22  ;;  %v3115_v49 = vstv %s9023_s23  ;;  %v3070_v61 = vsel %vm696_vm0, %v3068_v15, %v3069_v46  ;;  %v9068_v0 = vadd.f32 %v3069_v46, %v8980_v60  ;;  %s9233_s22 = sld [smem:[#allocation13 + $0x115]]  ;;  %s9256_s23 = sld [smem:[#allocation13 + $0x1a]] }
 0x2ad   : > { %v3083_v53 = vsel %vm696_vm0, %v3081_v33, %v3082_v26  ;;  %v9072_v37 = vadd.f32 %v3082_v26, %v8986_v41  ;;  %v9075_v20 = vadd.f32 %v3070_v61, %v8978_v19  ;;  %v3094_v23 = vrot.slane %v3090_v7, 1  ;;  %v9139_v26 = vld [vmem:[%s7273_s24 + $0x1e0] sm:$0xff] }
 0x2ae   : > { %v9078_v25 = vadd.f32 %v3083_v53, %v8984_v45  ;;  %v3095_v48 = vrot.slane %v3091_v63, 1  ;;  %v3103_v60 = vmul.f32 %v8904_v34, %v3102_v35  ;;  %v3104_v29 = vmul.f32 %v8910_v2, %v3102_v35  ;;  %v9145_v63 = vld [vmem:[%s7273_s24 + $0x1e8] sm:$0x3f] }
 0x2af   : > { %v3116_v14 = vmul.f32 %v8904_v34, %v3115_v49  ;;  %v3117_v41 = vmul.f32 %v8910_v2, %v3115_v49  ;;  %v3128_v45 = vstv %s9040_s21  ;;  %v3141_v36 = vstv %s9042_s25  ;;  %s9258_s21 = sld [smem:[#allocation13 + $0x3e]]  ;;  %s9275_s25 = sld [smem:[#allocation13 + $0x62]] }
 0x2b0   : > { %v3096_v19 = vsel %vm696_vm0, %v3094_v23, %v3095_v48  ;;  %v9090_v12 = vadd.f32 %v3095_v48, %v9002_v40  ;;  %v3107_v57 = vrot.slane %v3103_v60, 2  ;;  %v3108_v10 = vrot.slane %v3104_v29, 2 }
 0x2b1   : > { %v9095_v51 = vadd.f32 %v3096_v19, %v9000_v5  ;;  %v3120_v22 = vrot.slane %v3116_v14, 2  ;;  %v3121_v54 = vrot.slane %v3117_v41, 2  ;;  %v3129_v30 = vmul.f32 %v8904_v34, %v3128_v45 }
 0x2b2   : > { %v3130_v44 = vmul.f32 %v8910_v2, %v3128_v45  ;;  %v3142_v43 = vmul.f32 %v8904_v34, %v3141_v36  ;;  %v3109_v40 = vsel %vm710_vm1, %v3107_v57, %v3108_v10  ;;  %v3113_v5 = vadd.f32 %v3108_v10, %v9012_v50 }
 0x2b3   : > { %v3143_v3 = vmul.f32 %v8910_v2, %v3141_v36  ;;  %v3154_v42 = vstv %s9060_s10  ;;  %v3112_v9 = vadd.f32 %v3109_v40, %v9015_v59  ;;  %v3122_v11 = vsel %vm710_vm1, %v3120_v22, %v3121_v54  ;;  %s9277_s10 = sld [smem:[#allocation13 + $0x86]] }
 0x2b4   : > { %v9111_v24 = vadd.f32 %v3121_v54, %v9018_v56  ;;  %v3133_v47 = vrot.slane %v3129_v30, 2  ;;  %v9114_v21 = vadd.f32 %v3122_v11, %v9025_v38  ;;  %v3134_v31 = vrot.slane %v3130_v44, 2 }
 0x2b5   : > { %v3146_v32 = vrot.slane %v3142_v43, 2  ;;  %v3147_v55 = vrot.slane %v3143_v3, 2  ;;  %v3155_v50 = vmul.f32 %v8904_v34, %v3154_v42  ;;  %v3156_v6 = vmul.f32 %v8910_v2, %v3154_v42 }
 0x2b6   : > { %v3167_v58 = vstv %s9080_s26  ;;  %v3180_v59 = vstv %s9082_s2  ;;  %v3135_v16 = vsel %vm710_vm1, %v3133_v47, %v3134_v31  ;;  %v3139_v56 = vadd.f32 %v3134_v31, %v9028_v13  ;;  %s9295_s26 = sld [smem:[#allocation13 + $0xaa]]  ;;  %s9315_s2 = sld [smem:[#allocation13 + $0xce]] }
 0x2b7   : > { %v3148_v38 = vsel %vm710_vm1, %v3146_v32, %v3147_v55  ;;  %v9126_v1 = vadd.f32 %v3147_v55, %v9046_v39  ;;  %v3138_v62 = vadd.f32 %v3135_v16, %v9031_v52  ;;  %v3159_v17 = vrot.slane %v3155_v50, 2 }
 0x2b8   : > { %v3151_v28 = vadd.f32 %v3148_v38, %v9051_v27  ;;  %v3160_v15 = vrot.slane %v3156_v6, 2  ;;  %v3168_v13 = vmul.f32 %v8904_v34, %v3167_v58  ;;  %v3169_v46 = vmul.f32 %v8910_v2, %v3167_v58 }
 0x2b9   : > { %v3181_v33 = vmul.f32 %v8904_v34, %v3180_v59  ;;  %v3182_v39 = vmul.f32 %v8910_v2, %v3180_v59  ;;  %v3193_v7 = vstv %s9100_s1  ;;  %v3210_v35 = vstv %s9102_s27  ;;  %s9317_s1 = sld [smem:[#allocation13 + $0xf2]]  ;;  %s9335_s27 = sld [smem:[#allocation13 + $0x116]] }
 0x2ba   : > { %v3161_v52 = vsel %vm710_vm1, %v3159_v17, %v3160_v15  ;;  %v3165_v27 = vadd.f32 %v3160_v15, %v9055_v18  ;;  %v3172_v61 = vrot.slane %v3168_v13, 2  ;;  %v3173_v53 = vrot.slane %v3169_v46, 2 }
 0x2bb   : > { %v3164_v49 = vadd.f32 %v3161_v52, %v9058_v8  ;;  %v3185_v23 = vrot.slane %v3181_v33, 2  ;;  %v3186_v48 = vrot.slane %v3182_v39, 2  ;;  %v3194_v60 = vmul.f32 %v8904_v34, %v3193_v7 }
 0x2bc   : > { %v3195_v29 = vmul.f32 %v8910_v2, %v3193_v7  ;;  %v3211_v14 = vmul.f32 %v9139_v26, %v3210_v35  ;;  %v3174_v18 = vsel %vm710_vm1, %v3172_v61, %v3173_v53  ;;  %v3178_v41 = vadd.f32 %v3173_v53, %v9068_v0 }
 0x2bd   : > { %v3212_v8 = vmul.f32 %v9145_v63, %v3210_v35  ;;  %v3216_v19 = vstv %s9116_s28  ;;  %v3177_v45 = vadd.f32 %v3174_v18, %v9075_v20  ;;  %v3187_v34 = vsel %vm710_vm1, %v3185_v23, %v3186_v48  ;;  %s9337_s28 = sld [smem:[#allocation13 + $0x1b]] }
 0x2be   : > { %v3191_v2 = vadd.f32 %v3186_v48, %v9072_v37  ;;  %v3198_v36 = vrot.slane %v3194_v60, 2  ;;  %v3190_v57 = vadd.f32 %v3187_v34, %v9078_v25  ;;  %v3199_v10 = vrot.slane %v3195_v29, 2 }
 0x2bf   : > { %v9166_v22 = vadd.f32 %v3211_v14, %v3112_v9  ;;  %v9168_v0 = vadd.f32 %v3212_v8, %v3113_v5  ;;  %v3217_v54 = vmul.f32 %v9139_v26, %v3216_v19  ;;  %v3218_v20 = vmul.f32 %v9145_v63, %v3216_v19 }
 0x2c0   : > { %v3222_v30 = vstv %s9130_s29  ;;  %v3228_v44 = vstv %s9132_s30  ;;  %v3200_v37 = vsel %vm710_vm1, %v3198_v36, %v3199_v10  ;;  %v3204_v25 = vadd.f32 %v3199_v10, %v9090_v12  ;;  %s9351_s29 = sld [smem:[#allocation13 + $0x3f]]  ;;  %s9365_s30 = sld [smem:[#allocation13 + $0x63]] }
 0x2c1   : > { %v3223_v43 = vmul.f32 %v9139_v26, %v3222_v30  ;;  %v3224_v40 = vmul.f32 %v9145_v63, %v3222_v30  ;;  %v3203_v5 = vadd.f32 %v3200_v37, %v9095_v51  ;;  %v3219_v3 = vadd.f32 %v3217_v54, %v9114_v21 }
 0x2c2   : > { %v3220_v42 = vadd.f32 %v3218_v20, %v9111_v24  ;;  %v3229_v9 = vmul.f32 %v9139_v26, %v3228_v44  ;;  %v3230_v47 = vmul.f32 %v9145_v63, %v3228_v44  ;;  %v3234_v31 = vstv %s9149_s5  ;;  %s9367_s5 = sld [smem:[#allocation13 + $0x87]] }
 0x2c3   : > { %v3225_v11 = vadd.f32 %v3223_v43, %v3138_v62  ;;  %v3226_v12 = vadd.f32 %v3224_v40, %v3139_v56  ;;  %v3235_v55 = vmul.f32 %v9139_v26, %v3234_v31  ;;  %v3236_v51 = vmul.f32 %v9145_v63, %v3234_v31 }
 0x2c4   : > { %v9192_v32 = vadd.f32 %v3229_v9, %v3151_v28  ;;  %v3240_v50 = vstv %s9154_s12  ;;  %v9202_v24 = vadd.f32 %v3230_v47, %v9126_v1  ;;  %v3246_v58 = vstv %s9160_s13  ;;  %s9384_s12 = sld [smem:[#allocation13 + $0xab]]  ;;  %s9389_s13 = sld [smem:[#allocation13 + $0xcf]] }
 0x2c5   : > { %v3241_v21 = vmul.f32 %v9139_v26, %v3240_v50  ;;  %v3242_v6 = vmul.f32 %v9145_v63, %v3240_v50  ;;  %v9207_v59 = vadd.f32 %v3235_v55, %v3164_v49  ;;  %v9209_v16 = vadd.f32 %v3236_v51, %v3165_v27 }
 0x2c6   : > { %v3247_v56 = vmul.f32 %v9139_v26, %v3246_v58  ;;  %v3248_v38 = vmul.f32 %v9145_v63, %v3246_v58  ;;  %v3252_v1 = vstv %s9170_s15  ;;  %v3258_v17 = vstv %s9172_s16  ;;  %s9395_s15 = sld [smem:[#allocation13 + $0xf3]]  ;;  %s9405_s16 = sld [smem:[#allocation13 + $0x117]] }
 0x2c7   : > { %v9213_v62 = vadd.f32 %v3241_v21, %v3177_v45  ;;  %v9215_v28 = vadd.f32 %v3242_v6, %v3178_v41  ;;  %v3253_v46 = vmul.f32 %v9139_v26, %v3252_v1  ;;  %v3254_v33 = vmul.f32 %v9145_v63, %v3252_v1 }
 0x2c8   : > { %v9219_v15 = vadd.f32 %v3247_v56, %v3190_v57  ;;  %v9221_v13 = vadd.f32 %v3248_v38, %v3191_v2  ;;  %v3259_v39 = vmul.f32 %v9139_v26, %v3258_v17  ;;  %v3260_v52 = vmul.f32 %v9145_v63, %v3258_v17 }
 0x2c9   : > { %v3271_v27 = vstv %s9182_s3  ;;  %v3284_v7 = vstv %s9184_s4  ;;  %v9235_v35 = vadd.f32 %v3253_v46, %v3203_v5  ;;  %v9237_v49 = vadd.f32 %v3254_v33, %v3204_v25  ;;  %s9407_s3 = sld [smem:[#allocation13 + $0x1c]]  ;;  %s9417_s4 = sld [smem:[#allocation13 + $0x40]] }
 0x2ca   : > { %v3272_v61 = vmul.f32 %v9139_v26, %v3271_v27  ;;  %v3273_v53 = vmul.f32 %v9145_v63, %v3271_v27  ;;  %v3263_v23 = vrot.slane %v3259_v39, 1  ;;  %v3264_v48 = vrot.slane %v3260_v52, 1 }
 0x2cb   : > { %v3285_v60 = vmul.f32 %v9139_v26, %v3284_v7  ;;  %v3286_v29 = vmul.f32 %v9145_v63, %v3284_v7  ;;  %v3297_v41 = vstv %s9197_s0  ;;  %v3310_v8 = vstv %s9199_s17  ;;  %s9419_s0 = sld [smem:[#allocation13 + $0x64]]  ;;  %s9432_s17 = sld [smem:[#allocation13 + $0x88]] }
 0x2cc   : > { %v3276_v14 = vrot.slane %v3272_v61, 1  ;;  %v3277_v18 = vrot.slane %v3273_v53, 1  ;;  %v3265_v19 = vsel %vm696_vm0, %v3263_v23, %v3264_v48  ;;  %v9247_v45 = vadd.f32 %v3264_v48, %v9168_v0 }
 0x2cd   : > { %v3289_v34 = vrot.slane %v3285_v60, 1  ;;  %v3290_v2 = vrot.slane %v3286_v29, 1  ;;  %v9250_v36 = vadd.f32 %v3265_v19, %v9166_v22  ;;  %v3298_v54 = vmul.f32 %v9139_v26, %v3297_v41 }
 0x2ce   : > { %v3278_v57 = vsel %vm696_vm0, %v3276_v14, %v3277_v18  ;;  %v9253_v10 = vadd.f32 %v3277_v18, %v3220_v42  ;;  %v3299_v22 = vmul.f32 %v9145_v63, %v3297_v41  ;;  %v3311_v25 = vmul.f32 %v9139_v26, %v3310_v8 }
 0x2cf   : > { %v9260_v0 = vadd.f32 %v3278_v57, %v3219_v3  ;;  %v3291_v20 = vsel %vm696_vm0, %v3289_v34, %v3290_v2  ;;  %v9263_v30 = vadd.f32 %v3290_v2, %v3226_v12  ;;  %v3302_v37 = vrot.slane %v3298_v54, 1 }
 0x2d0   : > { %v9266_v44 = vadd.f32 %v3291_v20, %v3225_v11  ;;  %v3312_v43 = vmul.f32 %v9145_v63, %v3310_v8  ;;  %v3303_v40 = vrot.slane %v3299_v22, 1  ;;  %v3323_v5 = vstv %s9225_s18  ;;  %s9434_s18 = sld [smem:[#allocation13 + $0xac]] }
 0x2d1   : > { %v3336_v42 = vstv %s9231_s19  ;;  %v3349_v9 = vstv %s9233_s22  ;;  %v3315_v47 = vrot.slane %v3311_v25, 1  ;;  %v3324_v31 = vmul.f32 %v9139_v26, %v3323_v5  ;;  %s9460_s19 = sld [smem:[#allocation13 + $0xd0]]  ;;  %s9466_s22 = sld [smem:[#allocation13 + $0xf4]] }
 0x2d2   : > { %v3316_v3 = vrot.slane %v3312_v43, 1  ;;  %v3325_v12 = vmul.f32 %v9145_v63, %v3323_v5  ;;  %v3304_v11 = vsel %vm696_vm0, %v3302_v37, %v3303_v40  ;;  %v9281_v55 = vadd.f32 %v3303_v40, %v9202_v24 }
 0x2d3   : > { %v3337_v51 = vmul.f32 %v9139_v26, %v3336_v42  ;;  %v3338_v50 = vmul.f32 %v9145_v63, %v3336_v42  ;;  %v9286_v21 = vadd.f32 %v3304_v11, %v9192_v32  ;;  %v3328_v56 = vrot.slane %v3324_v31, 1 }
 0x2d4   : > { %v3317_v6 = vsel %vm696_vm0, %v3315_v47, %v3316_v3  ;;  %v9290_v58 = vadd.f32 %v3316_v3, %v9209_v16  ;;  %v3329_v1 = vrot.slane %v3325_v12, 1  ;;  %v3350_v46 = vmul.f32 %v9139_v26, %v3349_v9 }
 0x2d5   : > { %v9293_v38 = vadd.f32 %v3317_v6, %v9207_v59  ;;  %v3341_v17 = vrot.slane %v3337_v51, 1  ;;  %v3342_v24 = vrot.slane %v3338_v50, 1  ;;  %v3351_v33 = vmul.f32 %v9145_v63, %v3349_v9 }
 0x2d6   : > { %v3362_v32 = vstv %s9256_s23  ;;  %v3375_v39 = vstv %s9258_s21  ;;  %v3330_v52 = vsel %vm696_vm0, %v3328_v56, %v3329_v1  ;;  %v9303_v16 = vadd.f32 %v3329_v1, %v9215_v28  ;;  %s9468_s23 = sld [smem:[#allocation13 + $0x118]]  ;;  %s9491_s21 = sld [smem:[#allocation13 + $0x1d]] }
 0x2d7   : > { %v3343_v59 = vsel %vm696_vm0, %v3341_v17, %v3342_v24  ;;  %v9307_v27 = vadd.f32 %v3342_v24, %v9221_v13  ;;  %v9310_v7 = vadd.f32 %v3330_v52, %v9213_v62  ;;  %v3354_v53 = vrot.slane %v3350_v46, 1  ;;  %v9374_v24 = vld [vmem:[%s7273_s24 + $0x2a0] sm:$0xff] }
 0x2d8   : > { %v9313_v61 = vadd.f32 %v3343_v59, %v9219_v15  ;;  %v3355_v23 = vrot.slane %v3351_v33, 1  ;;  %v3363_v28 = vmul.f32 %v9139_v26, %v3362_v32  ;;  %v3364_v48 = vmul.f32 %v9145_v63, %v3362_v32  ;;  %v9380_v33 = vld [vmem:[%s7273_s24 + $0x2a8] sm:$0x3f] }
 0x2d9   : > { %v3376_v60 = vmul.f32 %v9139_v26, %v3375_v39  ;;  %v3377_v13 = vmul.f32 %v9145_v63, %v3375_v39  ;;  %v3388_v15 = vstv %s9275_s25  ;;  %v3401_v14 = vstv %s9277_s10  ;;  %s9493_s25 = sld [smem:[#allocation13 + $0x41]]  ;;  %s9510_s10 = sld [smem:[#allocation13 + $0x65]] }
 0x2da   : > { %v3356_v62 = vsel %vm696_vm0, %v3354_v53, %v3355_v23  ;;  %v9325_v29 = vadd.f32 %v3355_v23, %v9237_v49  ;;  %v3367_v41 = vrot.slane %v3363_v28, 2  ;;  %v3368_v8 = vrot.slane %v3364_v48, 2 }
 0x2db   : > { %v9330_v18 = vadd.f32 %v3356_v62, %v9235_v35  ;;  %v3380_v19 = vrot.slane %v3376_v60, 2  ;;  %v3381_v34 = vrot.slane %v3377_v13, 2  ;;  %v3389_v2 = vmul.f32 %v9139_v26, %v3388_v15 }
 0x2dc   : > { %v3390_v57 = vmul.f32 %v9145_v63, %v3388_v15  ;;  %v3402_v54 = vmul.f32 %v9139_v26, %v3401_v14  ;;  %v3369_v49 = vsel %vm710_vm1, %v3367_v41, %v3368_v8  ;;  %v3373_v35 = vadd.f32 %v3368_v8, %v9247_v45 }
 0x2dd   : > { %v3403_v20 = vmul.f32 %v9145_v63, %v3401_v14  ;;  %v3414_v22 = vstv %s9295_s26  ;;  %v3372_v37 = vadd.f32 %v3369_v49, %v9250_v36  ;;  %v3382_v25 = vsel %vm710_vm1, %v3380_v19, %v3381_v34  ;;  %s9512_s26 = sld [smem:[#allocation13 + $0x89]] }
 0x2de   : > { %v9346_v43 = vadd.f32 %v3381_v34, %v9253_v10  ;;  %v3393_v40 = vrot.slane %v3389_v2, 2  ;;  %v9349_v5 = vadd.f32 %v3382_v25, %v9260_v0  ;;  %v3394_v42 = vrot.slane %v3390_v57, 2 }
 0x2df   : > { %v3406_v9 = vrot.slane %v3402_v54, 2  ;;  %v3407_v47 = vrot.slane %v3403_v20, 2  ;;  %v3415_v45 = vmul.f32 %v9139_v26, %v3414_v22  ;;  %v3416_v3 = vmul.f32 %v9145_v63, %v3414_v22 }
 0x2e0   : > { %v3427_v31 = vstv %s9315_s2  ;;  %v3440_v36 = vstv %s9317_s1  ;;  %v3395_v12 = vsel %vm710_vm1, %v3393_v40, %v3394_v42  ;;  %v3399_v10 = vadd.f32 %v3394_v42, %v9263_v30  ;;  %s9530_s2 = sld [smem:[#allocation13 + $0xad]]  ;;  %s9550_s1 = sld [smem:[#allocation13 + $0xd1]] }
 0x2e1   : > { %v3408_v0 = vsel %vm710_vm1, %v3406_v9, %v3407_v47  ;;  %v9361_v11 = vadd.f32 %v3407_v47, %v9281_v55  ;;  %v3398_v51 = vadd.f32 %v3395_v12, %v9266_v44  ;;  %v3419_v6 = vrot.slane %v3415_v45, 2 }
 0x2e2   : > { %v3411_v50 = vadd.f32 %v3408_v0, %v9286_v21  ;;  %v3420_v56 = vrot.slane %v3416_v3, 2  ;;  %v3428_v30 = vmul.f32 %v9139_v26, %v3427_v31  ;;  %v3429_v1 = vmul.f32 %v9145_v63, %v3427_v31 }
 0x2e3   : > { %v3441_v17 = vmul.f32 %v9139_v26, %v3440_v36  ;;  %v3442_v55 = vmul.f32 %v9145_v63, %v3440_v36  ;;  %v3453_v46 = vstv %s9335_s27  ;;  %v3470_v32 = vstv %s9337_s28  ;;  %s9552_s27 = sld [smem:[#allocation13 + $0xf5]]  ;;  %s9570_s28 = sld [smem:[#allocation13 + $0x119]] }
 0x2e4   : > { %v3421_v44 = vsel %vm710_vm1, %v3419_v6, %v3420_v56  ;;  %v3425_v21 = vadd.f32 %v3420_v56, %v9290_v58  ;;  %v3432_v52 = vrot.slane %v3428_v30, 2  ;;  %v3433_v59 = vrot.slane %v3429_v1, 2 }
 0x2e5   : > { %v3424_v39 = vadd.f32 %v3421_v44, %v9293_v38  ;;  %v3445_v53 = vrot.slane %v3441_v17, 2  ;;  %v3446_v23 = vrot.slane %v3442_v55, 2  ;;  %v3454_v28 = vmul.f32 %v9139_v26, %v3453_v46 }
 0x2e6   : > { %v3455_v48 = vmul.f32 %v9145_v63, %v3453_v46  ;;  %v3471_v60 = vmul.f32 %v9374_v24, %v3470_v32  ;;  %v3434_v58 = vsel %vm710_vm1, %v3432_v52, %v3433_v59  ;;  %v3438_v13 = vadd.f32 %v3433_v59, %v9303_v16 }
 0x2e7   : > { %v3472_v38 = vmul.f32 %v9380_v33, %v3470_v32  ;;  %v3476_v62 = vstv %s9351_s29  ;;  %v3437_v15 = vadd.f32 %v3434_v58, %v9310_v7  ;;  %v3447_v26 = vsel %vm710_vm1, %v3445_v53, %v3446_v23  ;;  %s9572_s29 = sld [smem:[#allocation13 + $0x1e]] }
 0x2e8   : > { %v3451_v63 = vadd.f32 %v3446_v23, %v9307_v27  ;;  %v3458_v14 = vrot.slane %v3454_v28, 2  ;;  %v3450_v41 = vadd.f32 %v3447_v26, %v9313_v61  ;;  %v3459_v8 = vrot.slane %v3455_v48, 2 }
 0x2e9   : > { %v9401_v19 = vadd.f32 %v3471_v60, %v3372_v37  ;;  %v9403_v16 = vadd.f32 %v3472_v38, %v3373_v35  ;;  %v3477_v34 = vmul.f32 %v9374_v24, %v3476_v62  ;;  %v3478_v7 = vmul.f32 %v9380_v33, %v3476_v62 }
 0x2ea   : > { %v3482_v2 = vstv %s9365_s30  ;;  %v3488_v57 = vstv %s9367_s5  ;;  %v3460_v27 = vsel %vm710_vm1, %v3458_v14, %v3459_v8  ;;  %v3464_v61 = vadd.f32 %v3459_v8, %v9325_v29  ;;  %s9586_s30 = sld [smem:[#allocation13 + $0x42]]  ;;  %s9600_s5 = sld [smem:[#allocation13 + $0x66]] }
 0x2eb   : > { %v3483_v54 = vmul.f32 %v9374_v24, %v3482_v2  ;;  %v3484_v49 = vmul.f32 %v9380_v33, %v3482_v2  ;;  %v3463_v35 = vadd.f32 %v3460_v27, %v9330_v18  ;;  %v3479_v20 = vadd.f32 %v3477_v34, %v9349_v5 }
 0x2ec   : > { %v3480_v22 = vadd.f32 %v3478_v7, %v9346_v43  ;;  %v3489_v37 = vmul.f32 %v9374_v24, %v3488_v57  ;;  %v3490_v40 = vmul.f32 %v9380_v33, %v3488_v57  ;;  %v3494_v42 = vstv %s9384_s12  ;;  %s9602_s12 = sld [smem:[#allocation13 + $0x8a]] }
 0x2ed   : > { %v3485_v25 = vadd.f32 %v3483_v54, %v3398_v51  ;;  %v3486_v29 = vadd.f32 %v3484_v49, %v3399_v10  ;;  %v3495_v47 = vmul.f32 %v9374_v24, %v3494_v42  ;;  %v3496_v18 = vmul.f32 %v9380_v33, %v3494_v42 }
 0x2ee   : > { %v9427_v9 = vadd.f32 %v3489_v37, %v3411_v50  ;;  %v3500_v45 = vstv %s9389_s13  ;;  %v9437_v43 = vadd.f32 %v3490_v40, %v9361_v11  ;;  %v3506_v31 = vstv %s9395_s15  ;;  %s9619_s13 = sld [smem:[#allocation13 + $0xae]]  ;;  %s9624_s15 = sld [smem:[#allocation13 + $0xd2]] }
 0x2ef   : > { %v3501_v5 = vmul.f32 %v9374_v24, %v3500_v45  ;;  %v3502_v3 = vmul.f32 %v9380_v33, %v3500_v45  ;;  %v9442_v36 = vadd.f32 %v3495_v47, %v3424_v39  ;;  %v9444_v12 = vadd.f32 %v3496_v18, %v3425_v21 }
 0x2f0   : > { %v3507_v10 = vmul.f32 %v9374_v24, %v3506_v31  ;;  %v3508_v0 = vmul.f32 %v9380_v33, %v3506_v31  ;;  %v3512_v11 = vstv %s9405_s16  ;;  %v3518_v6 = vstv %s9407_s3  ;;  %s9630_s16 = sld [smem:[#allocation13 + $0xf6]]  ;;  %s9640_s3 = sld [smem:[#allocation13 + $0x11a]] }
 0x2f1   : > { %v9448_v51 = vadd.f32 %v3501_v5, %v3437_v15  ;;  %v9450_v50 = vadd.f32 %v3502_v3, %v3438_v13  ;;  %v3513_v1 = vmul.f32 %v9374_v24, %v3512_v11  ;;  %v3514_v17 = vmul.f32 %v9380_v33, %v3512_v11 }
 0x2f2   : > { %v9454_v56 = vadd.f32 %v3507_v10, %v3450_v41  ;;  %v9456_v30 = vadd.f32 %v3508_v0, %v3451_v63  ;;  %v3519_v55 = vmul.f32 %v9374_v24, %v3518_v6  ;;  %v3520_v44 = vmul.f32 %v9380_v33, %v3518_v6 }
 0x2f3   : > { %v3531_v21 = vstv %s9417_s4  ;;  %v3544_v46 = vstv %s9419_s0  ;;  %v9470_v32 = vadd.f32 %v3513_v1, %v3463_v35  ;;  %v9472_v39 = vadd.f32 %v3514_v17, %v3464_v61  ;;  %s9642_s4 = sld [smem:[#allocation13 + $0x1f]]  ;;  %s9652_s0 = sld [smem:[#allocation13 + $0x43]] }
 0x2f4   : > { %v3532_v52 = vmul.f32 %v9374_v24, %v3531_v21  ;;  %v3533_v59 = vmul.f32 %v9380_v33, %v3531_v21  ;;  %v3523_v53 = vrot.slane %v3519_v55, 1  ;;  %v3524_v23 = vrot.slane %v3520_v44, 1 }
 0x2f5   : > { %v3545_v28 = vmul.f32 %v9374_v24, %v3544_v46  ;;  %v3546_v48 = vmul.f32 %v9380_v33, %v3544_v46  ;;  %v3557_v13 = vstv %s9432_s17  ;;  %v3570_v38 = vstv %s9434_s18  ;;  %s9654_s17 = sld [smem:[#allocation13 + $0x67]]  ;;  %s9667_s18 = sld [smem:[#allocation13 + $0x8b]] }
 0x2f6   : > { %v3536_v60 = vrot.slane %v3532_v52, 1  ;;  %v3537_v58 = vrot.slane %v3533_v59, 1  ;;  %v3525_v62 = vsel %vm696_vm0, %v3523_v53, %v3524_v23  ;;  %v9482_v15 = vadd.f32 %v3524_v23, %v9403_v16 }
 0x2f7   : > { %v3549_v26 = vrot.slane %v3545_v28, 1  ;;  %v3550_v63 = vrot.slane %v3546_v48, 1  ;;  %v9485_v14 = vadd.f32 %v3525_v62, %v9401_v19  ;;  %v3558_v34 = vmul.f32 %v9374_v24, %v3557_v13 }
 0x2f8   : > { %v3538_v41 = vsel %vm696_vm0, %v3536_v60, %v3537_v58  ;;  %v9488_v8 = vadd.f32 %v3537_v58, %v3480_v22  ;;  %v3559_v19 = vmul.f32 %v9380_v33, %v3557_v13  ;;  %v3571_v61 = vmul.f32 %v9374_v24, %v3570_v38 }
 0x2f9   : > { %v9495_v16 = vadd.f32 %v3538_v41, %v3479_v20  ;;  %v3551_v7 = vsel %vm696_vm0, %v3549_v26, %v3550_v63  ;;  %v9498_v2 = vadd.f32 %v3550_v63, %v3486_v29  ;;  %v3562_v27 = vrot.slane %v3558_v34, 1 }
 0x2fa   : > { %v9501_v57 = vadd.f32 %v3551_v7, %v3485_v25  ;;  %v3572_v54 = vmul.f32 %v9380_v33, %v3570_v38  ;;  %v3563_v49 = vrot.slane %v3559_v19, 1  ;;  %v3583_v35 = vstv %s9460_s19  ;;  %s9669_s19 = sld [smem:[#allocation13 + $0xaf]] }
 0x2fb   : > { %v3596_v22 = vstv %s9466_s22  ;;  %v3609_v37 = vstv %s9468_s23  ;;  %v3575_v40 = vrot.slane %v3571_v61, 1  ;;  %v3584_v42 = vmul.f32 %v9374_v24, %v3583_v35  ;;  %s9695_s22 = sld [smem:[#allocation13 + $0xd3]]  ;;  %s9701_s23 = sld [smem:[#allocation13 + $0xf7]] }
 0x2fc   : > { %v3576_v20 = vrot.slane %v3572_v54, 1  ;;  %v3585_v29 = vmul.f32 %v9380_v33, %v3583_v35  ;;  %v3564_v25 = vsel %vm696_vm0, %v3562_v27, %v3563_v49  ;;  %v9516_v47 = vadd.f32 %v3563_v49, %v9437_v43 }
 0x2fd   : > { %v3597_v18 = vmul.f32 %v9374_v24, %v3596_v22  ;;  %v3598_v45 = vmul.f32 %v9380_v33, %v3596_v22  ;;  %v9521_v5 = vadd.f32 %v3564_v25, %v9427_v9  ;;  %v3588_v10 = vrot.slane %v3584_v42, 1 }
 0x2fe   : > { %v3577_v3 = vsel %vm696_vm0, %v3575_v40, %v3576_v20  ;;  %v9525_v31 = vadd.f32 %v3576_v20, %v9444_v12  ;;  %v3589_v11 = vrot.slane %v3585_v29, 1  ;;  %v3610_v1 = vmul.f32 %v9374_v24, %v3609_v37 }
 0x2ff   : > { %v9528_v0 = vadd.f32 %v3577_v3, %v9442_v36  ;;  %v3601_v6 = vrot.slane %v3597_v18, 1  ;;  %v3602_v43 = vrot.slane %v3598_v45, 1  ;;  %v3611_v17 = vmul.f32 %v9380_v33, %v3609_v37 }
 0x300   : > { %v3622_v9 = vstv %s9491_s21  ;;  %v3635_v55 = vstv %s9493_s25  ;;  %v3590_v44 = vsel %vm696_vm0, %v3588_v10, %v3589_v11  ;;  %v9538_v12 = vadd.f32 %v3589_v11, %v9450_v50  ;;  %s9703_s21 = sld [smem:[#allocation13 + $0x11b]]  ;;  %s9726_s25 = sld [smem:[#allocation13 + $0x20]] }
 0x301   : > { %v3603_v36 = vsel %vm696_vm0, %v3601_v6, %v3602_v43  ;;  %v9542_v21 = vadd.f32 %v3602_v43, %v9456_v30  ;;  %v9545_v46 = vadd.f32 %v3590_v44, %v9448_v51  ;;  %v3614_v59 = vrot.slane %v3610_v1, 1  ;;  %v9609_v43 = vld [vmem:[%s7273_s24 + $0x2b0] sm:$0xff] }
 0x302   : > { %v9548_v52 = vadd.f32 %v3603_v36, %v9454_v56  ;;  %v3615_v53 = vrot.slane %v3611_v17, 1  ;;  %v3623_v50 = vmul.f32 %v9374_v24, %v3622_v9  ;;  %v3624_v23 = vmul.f32 %v9380_v33, %v3622_v9  ;;  %v9615_v17 = vld [vmem:[%s7273_s24 + $0x2b8] sm:$0x3f] }
 0x303   : > { %v3636_v28 = vmul.f32 %v9374_v24, %v3635_v55  ;;  %v3637_v30 = vmul.f32 %v9380_v33, %v3635_v55  ;;  %v3648_v56 = vstv %s9510_s10  ;;  %v3661_v60 = vstv %s9512_s26  ;;  %s9728_s10 = sld [smem:[#allocation13 + $0x44]]  ;;  %s9745_s26 = sld [smem:[#allocation13 + $0x68]] }
 0x304   : > { %v3616_v51 = vsel %vm696_vm0, %v3614_v59, %v3615_v53  ;;  %v9560_v48 = vadd.f32 %v3615_v53, %v9472_v39  ;;  %v3627_v13 = vrot.slane %v3623_v50, 2  ;;  %v3628_v38 = vrot.slane %v3624_v23, 2 }
 0x305   : > { %v9565_v58 = vadd.f32 %v3616_v51, %v9470_v32  ;;  %v3640_v62 = vrot.slane %v3636_v28, 2  ;;  %v3641_v26 = vrot.slane %v3637_v30, 2  ;;  %v3649_v63 = vmul.f32 %v9374_v24, %v3648_v56 }
 0x306   : > { %v3650_v41 = vmul.f32 %v9380_v33, %v3648_v56  ;;  %v3662_v34 = vmul.f32 %v9374_v24, %v3661_v60  ;;  %v3629_v39 = vsel %vm710_vm1, %v3627_v13, %v3628_v38  ;;  %v3633_v32 = vadd.f32 %v3628_v38, %v9482_v15 }
 0x307   : > { %v3663_v7 = vmul.f32 %v9380_v33, %v3661_v60  ;;  %v3674_v19 = vstv %s9530_s2  ;;  %v3632_v27 = vadd.f32 %v3629_v39, %v9485_v14  ;;  %v3642_v61 = vsel %vm710_vm1, %v3640_v62, %v3641_v26  ;;  %s9747_s2 = sld [smem:[#allocation13 + $0x8c]] }
 0x308   : > { %v9581_v54 = vadd.f32 %v3641_v26, %v9488_v8  ;;  %v3653_v49 = vrot.slane %v3649_v63, 2  ;;  %v9584_v35 = vadd.f32 %v3642_v61, %v9495_v16  ;;  %v3654_v22 = vrot.slane %v3650_v41, 2 }
 0x309   : > { %v3666_v37 = vrot.slane %v3662_v34, 2  ;;  %v3667_v40 = vrot.slane %v3663_v7, 2  ;;  %v3675_v15 = vmul.f32 %v9374_v24, %v3674_v19  ;;  %v3676_v20 = vmul.f32 %v9380_v33, %v3674_v19 }
 0x30a   : > { %v3687_v42 = vstv %s9550_s1  ;;  %v3700_v14 = vstv %s9552_s27  ;;  %v3655_v29 = vsel %vm710_vm1, %v3653_v49, %v3654_v22  ;;  %v3659_v8 = vadd.f32 %v3654_v22, %v9498_v2  ;;  %s9765_s1 = sld [smem:[#allocation13 + $0xb0]]  ;;  %s9785_s27 = sld [smem:[#allocation13 + $0xd4]] }
 0x30b   : > { %v3668_v16 = vsel %vm710_vm1, %v3666_v37, %v3667_v40  ;;  %v9596_v25 = vadd.f32 %v3667_v40, %v9516_v47  ;;  %v3658_v18 = vadd.f32 %v3655_v29, %v9501_v57  ;;  %v3679_v3 = vrot.slane %v3675_v15, 2 }
 0x30c   : > { %v3671_v45 = vadd.f32 %v3668_v16, %v9521_v5  ;;  %v3680_v10 = vrot.slane %v3676_v20, 2  ;;  %v3688_v2 = vmul.f32 %v9374_v24, %v3687_v42  ;;  %v3689_v11 = vmul.f32 %v9380_v33, %v3687_v42 }
 0x30d   : > { %v3701_v6 = vmul.f32 %v9374_v24, %v3700_v14  ;;  %v3702_v47 = vmul.f32 %v9380_v33, %v3700_v14  ;;  %v3713_v1 = vstv %s9570_s28  ;;  %v3730_v9 = vstv %s9572_s29  ;;  %s9787_s28 = sld [smem:[#allocation13 + $0xf8]]  ;;  %s9805_s29 = sld [smem:[#allocation13 + $0x11c]] }
 0x30e   : > { %v3681_v57 = vsel %vm710_vm1, %v3679_v3, %v3680_v10  ;;  %v3685_v5 = vadd.f32 %v3680_v10, %v9525_v31  ;;  %v3692_v44 = vrot.slane %v3688_v2, 2  ;;  %v3693_v36 = vrot.slane %v3689_v11, 2 }
 0x30f   : > { %v3684_v55 = vadd.f32 %v3681_v57, %v9528_v0  ;;  %v3705_v59 = vrot.slane %v3701_v6, 2  ;;  %v3706_v53 = vrot.slane %v3702_v47, 2  ;;  %v3714_v50 = vmul.f32 %v9374_v24, %v3713_v1 }
 0x310   : > { %v3715_v23 = vmul.f32 %v9380_v33, %v3713_v1  ;;  %v3731_v28 = vmul.f32 %v9609_v43, %v3730_v9  ;;  %v3694_v31 = vsel %vm710_vm1, %v3692_v44, %v3693_v36  ;;  %v3698_v30 = vadd.f32 %v3693_v36, %v9538_v12 }
 0x311   : > { %v3732_v0 = vmul.f32 %v9615_v17, %v3730_v9  ;;  %v3736_v51 = vstv %s9586_s30  ;;  %v3697_v56 = vadd.f32 %v3694_v31, %v9545_v46  ;;  %v3707_v24 = vsel %vm710_vm1, %v3705_v59, %v3706_v53  ;;  %s9807_s30 = sld [smem:[#allocation13 + $0x21]] }
 0x312   : > { %v3711_v33 = vadd.f32 %v3706_v53, %v9542_v21  ;;  %v3718_v60 = vrot.slane %v3714_v50, 2  ;;  %v3710_v13 = vadd.f32 %v3707_v24, %v9548_v52  ;;  %v3719_v38 = vrot.slane %v3715_v23, 2 }
 0x313   : > { %v9636_v62 = vadd.f32 %v3731_v28, %v3632_v27  ;;  %v9638_v12 = vadd.f32 %v3732_v0, %v3633_v32  ;;  %v3737_v26 = vmul.f32 %v9609_v43, %v3736_v51  ;;  %v3738_v46 = vmul.f32 %v9615_v17, %v3736_v51 }
 0x314   : > { %v3742_v63 = vstv %s9600_s5  ;;  %v3748_v41 = vstv %s9602_s12  ;;  %v3720_v21 = vsel %vm710_vm1, %v3718_v60, %v3719_v38  ;;  %v3724_v52 = vadd.f32 %v3719_v38, %v9560_v48  ;;  %s9821_s5 = sld [smem:[#allocation13 + $0x45]]  ;;  %s9835_s12 = sld [smem:[#allocation13 + $0x69]] }
 0x315   : > { %v3743_v34 = vmul.f32 %v9609_v43, %v3742_v63  ;;  %v3744_v39 = vmul.f32 %v9615_v17, %v3742_v63  ;;  %v3723_v32 = vadd.f32 %v3720_v21, %v9565_v58  ;;  %v3739_v7 = vadd.f32 %v3737_v26, %v9584_v35 }
 0x316   : > { %v3740_v19 = vadd.f32 %v3738_v46, %v9581_v54  ;;  %v3749_v27 = vmul.f32 %v9609_v43, %v3748_v41  ;;  %v3750_v49 = vmul.f32 %v9615_v17, %v3748_v41  ;;  %v3754_v22 = vstv %s9619_s13  ;;  %s9837_s13 = sld [smem:[#allocation13 + $0x8d]] }
 0x317   : > { %v3745_v61 = vadd.f32 %v3743_v34, %v3658_v18  ;;  %v3746_v48 = vadd.f32 %v3744_v39, %v3659_v8  ;;  %v3755_v40 = vmul.f32 %v9609_v43, %v3754_v22  ;;  %v3756_v58 = vmul.f32 %v9615_v17, %v3754_v22 }
 0x318   : > { %v9662_v37 = vadd.f32 %v3749_v27, %v3671_v45  ;;  %v3760_v15 = vstv %s9624_s15  ;;  %v9672_v54 = vadd.f32 %v3750_v49, %v9596_v25  ;;  %v3766_v42 = vstv %s9630_s16  ;;  %s9854_s15 = sld [smem:[#allocation13 + $0xb1]]  ;;  %s9859_s16 = sld [smem:[#allocation13 + $0xd5]] }
 0x319   : > { %v3761_v35 = vmul.f32 %v9609_v43, %v3760_v15  ;;  %v3762_v20 = vmul.f32 %v9615_v17, %v3760_v15  ;;  %v9677_v14 = vadd.f32 %v3755_v40, %v3684_v55  ;;  %v9679_v29 = vadd.f32 %v3756_v58, %v3685_v5 }
 0x31a   : > { %v3767_v8 = vmul.f32 %v9609_v43, %v3766_v42  ;;  %v3768_v16 = vmul.f32 %v9615_v17, %v3766_v42  ;;  %v3772_v25 = vstv %s9640_s3  ;;  %v3778_v3 = vstv %s9642_s4  ;;  %s9875_s3 = sld [smem:[#allocation13 + $0x11d]]  ;;  %s9877_s4 = sld [smem:[#allocation13 + $0x22]] }
 0x31b   : > { %v9683_v18 = vadd.f32 %v3761_v35, %v3697_v56  ;;  %v9685_v45 = vadd.f32 %v3762_v20, %v3698_v30  ;;  %v3773_v11 = vmul.f32 %v9609_v43, %v3772_v25  ;;  %v3774_v6 = vmul.f32 %v9615_v17, %v3772_v25 }
 0x31c   : > { %v9689_v10 = vadd.f32 %v3767_v8, %v3710_v13  ;;  %v9691_v2 = vadd.f32 %v3768_v16, %v3711_v33  ;;  %v3779_v47 = vmul.f32 %v9609_v43, %v3778_v3  ;;  %v3780_v57 = vmul.f32 %v9615_v17, %v3778_v3 }
 0x31d   : > { %v3791_v5 = vstv %s9652_s0  ;;  %v3804_v1 = vstv %s9654_s17  ;;  %v9705_v9 = vadd.f32 %v3773_v11, %v3723_v32  ;;  %v9707_v55 = vadd.f32 %v3774_v6, %v3724_v52  ;;  %s9887_s0 = sld [smem:[#allocation13 + $0x46]]  ;;  %s9889_s17 = sld [smem:[#allocation13 + $0x6a]] }
 0x31e   : > { %v3792_v44 = vmul.f32 %v9609_v43, %v3791_v5  ;;  %v3793_v36 = vmul.f32 %v9615_v17, %v3791_v5  ;;  %v3783_v59 = vrot.slane %v3779_v47, 1  ;;  %v3784_v53 = vrot.slane %v3780_v57, 1 }
 0x31f   : > { %v3805_v50 = vmul.f32 %v9609_v43, %v3804_v1  ;;  %v3806_v23 = vmul.f32 %v9615_v17, %v3804_v1  ;;  %v3817_v30 = vstv %s9667_s18  ;;  %v3830_v0 = vstv %s9669_s19  ;;  %s9902_s18 = sld [smem:[#allocation13 + $0x8e]]  ;;  %s9904_s19 = sld [smem:[#allocation13 + $0xb2]] }
 0x320   : > { %v3796_v28 = vrot.slane %v3792_v44, 1  ;;  %v3797_v31 = vrot.slane %v3793_v36, 1  ;;  %v3785_v51 = vsel %vm696_vm0, %v3783_v59, %v3784_v53  ;;  %v9717_v56 = vadd.f32 %v3784_v53, %v9638_v12 }
 0x321   : > { %v3809_v24 = vrot.slane %v3805_v50, 1  ;;  %v3810_v33 = vrot.slane %v3806_v23, 1  ;;  %v9720_v60 = vadd.f32 %v3785_v51, %v9636_v62  ;;  %v3818_v26 = vmul.f32 %v9609_v43, %v3817_v30 }
 0x322   : > { %v3798_v13 = vsel %vm696_vm0, %v3796_v28, %v3797_v31  ;;  %v9723_v38 = vadd.f32 %v3797_v31, %v3740_v19  ;;  %v3819_v62 = vmul.f32 %v9615_v17, %v3817_v30  ;;  %v3831_v52 = vmul.f32 %v9609_v43, %v3830_v0 }
 0x323   : > { %v9730_v12 = vadd.f32 %v3798_v13, %v3739_v7  ;;  %v3811_v46 = vsel %vm696_vm0, %v3809_v24, %v3810_v33  ;;  %v9733_v63 = vadd.f32 %v3810_v33, %v3746_v48  ;;  %v3822_v21 = vrot.slane %v3818_v26, 1 }
 0x324   : > { %v9736_v41 = vadd.f32 %v3811_v46, %v3745_v61  ;;  %v3832_v34 = vmul.f32 %v9615_v17, %v3830_v0  ;;  %v3823_v39 = vrot.slane %v3819_v62, 1  ;;  %v3843_v32 = vstv %s9695_s22  ;;  %s9930_s22 = sld [smem:[#allocation13 + $0xd6]] }
 0x325   : > { %v3856_v19 = vstv %s9701_s23  ;;  %v3869_v27 = vstv %s9703_s21  ;;  %v3835_v49 = vrot.slane %v3831_v52, 1  ;;  %v3844_v22 = vmul.f32 %v9609_v43, %v3843_v32  ;;  %s9936_s23 = sld [smem:[#allocation13 + $0xfa]]  ;;  %s9938_s21 = sld [smem:[#allocation13 + $0x11e]] }
 0x326   : > { %v3836_v7 = vrot.slane %v3832_v34, 1  ;;  %v3845_v48 = vmul.f32 %v9615_v17, %v3843_v32  ;;  %v3824_v61 = vsel %vm696_vm0, %v3822_v21, %v3823_v39  ;;  %v9751_v40 = vadd.f32 %v3823_v39, %v9672_v54 }
 0x327   : > { %v3857_v58 = vmul.f32 %v9609_v43, %v3856_v19  ;;  %v3858_v15 = vmul.f32 %v9615_v17, %v3856_v19  ;;  %v9756_v35 = vadd.f32 %v3824_v61, %v9662_v37  ;;  %v3848_v8 = vrot.slane %v3844_v22, 1 }
 0x328   : > { %v3837_v20 = vsel %vm696_vm0, %v3835_v49, %v3836_v7  ;;  %v9760_v42 = vadd.f32 %v3836_v7, %v9679_v29  ;;  %v3849_v25 = vrot.slane %v3845_v48, 1  ;;  %v3870_v11 = vmul.f32 %v9609_v43, %v3869_v27 }
 0x329   : > { %v9763_v16 = vadd.f32 %v3837_v20, %v9677_v14  ;;  %v3861_v3 = vrot.slane %v3857_v58, 1  ;;  %v3862_v54 = vrot.slane %v3858_v15, 1  ;;  %v3871_v6 = vmul.f32 %v9615_v17, %v3869_v27 }
 0x32a   : > { %v3882_v37 = vstv %s9726_s25  ;;  %v3895_v47 = vstv %s9728_s10  ;;  %v3850_v57 = vsel %vm696_vm0, %v3848_v8, %v3849_v25  ;;  %v9773_v29 = vadd.f32 %v3849_v25, %v9685_v45  ;;  %s9961_s25 = sld [smem:[#allocation13 + $0x23]]  ;;  %s9963_s10 = sld [smem:[#allocation13 + $0x47]] }
 0x32b   : > { %v3863_v14 = vsel %vm696_vm0, %v3861_v3, %v3862_v54  ;;  %v9777_v5 = vadd.f32 %v3862_v54, %v9691_v2  ;;  %v9780_v1 = vadd.f32 %v3850_v57, %v9683_v18  ;;  %v3874_v36 = vrot.slane %v3870_v11, 1  ;;  %v9844_v54 = vld [vmem:[%s7273_s24 + $0x2c0] sm:$0xff] }
 0x32c   : > { %v9783_v44 = vadd.f32 %v3863_v14, %v9689_v10  ;;  %v3875_v59 = vrot.slane %v3871_v6, 1  ;;  %v3883_v45 = vmul.f32 %v9609_v43, %v3882_v37  ;;  %v3884_v53 = vmul.f32 %v9615_v17, %v3882_v37  ;;  %v9850_v6 = vld [vmem:[%s7273_s24 + $0x2c8] sm:$0x3f]  ;;  %s9865_s24 = sld [smem:[#allocation13 + $0xf9]] }
 0x32d   : > { %v3896_v50 = vmul.f32 %v9609_v43, %v3895_v47  ;;  %v3897_v2 = vmul.f32 %v9615_v17, %v3895_v47  ;;  %v3908_v10 = vstv %s9745_s26  ;;  %v3921_v28 = vstv %s9747_s2  ;;  %s9980_s26 = sld [smem:[#allocation13 + $0x6b]]  ;;  %s9982_s2 = sld [smem:[#allocation13 + $0x8f]] }
 0x32e   : > { %v3876_v18 = vsel %vm696_vm0, %v3874_v36, %v3875_v59  ;;  %v9795_v23 = vadd.f32 %v3875_v59, %v9707_v55  ;;  %v3887_v30 = vrot.slane %v3883_v45, 2  ;;  %v3888_v0 = vrot.slane %v3884_v53, 2 }
 0x32f   : > { %v9800_v31 = vadd.f32 %v3876_v18, %v9705_v9  ;;  %v3900_v51 = vrot.slane %v3896_v50, 2  ;;  %v3901_v24 = vrot.slane %v3897_v2, 2  ;;  %v3909_v33 = vmul.f32 %v9609_v43, %v3908_v10 }
 0x330   : > { %v3910_v13 = vmul.f32 %v9615_v17, %v3908_v10  ;;  %v3922_v26 = vmul.f32 %v9609_v43, %v3921_v28  ;;  %v3889_v55 = vsel %vm710_vm1, %v3887_v30, %v3888_v0  ;;  %v3893_v9 = vadd.f32 %v3888_v0, %v9717_v56 }
 0x331   : > { %v3923_v46 = vmul.f32 %v9615_v17, %v3921_v28  ;;  %v3934_v62 = vstv %s9765_s1  ;;  %v3892_v21 = vadd.f32 %v3889_v55, %v9720_v60  ;;  %v3902_v52 = vsel %vm710_vm1, %v3900_v51, %v3901_v24  ;;  %s9998_s1 = sld [smem:[#allocation13 + $0xb3]] }
 0x332   : > { %v9816_v34 = vadd.f32 %v3901_v24, %v9723_v38  ;;  %v3913_v39 = vrot.slane %v3909_v33, 2  ;;  %v9819_v32 = vadd.f32 %v3902_v52, %v9730_v12  ;;  %v3914_v19 = vrot.slane %v3910_v13, 2 }
 0x333   : > { %v3926_v27 = vrot.slane %v3922_v26, 2  ;;  %v3927_v49 = vrot.slane %v3923_v46, 2  ;;  %v3935_v56 = vmul.f32 %v9609_v43, %v3934_v62  ;;  %v3936_v7 = vmul.f32 %v9615_v17, %v3934_v62 }
 0x334   : > { %v3947_v22 = vstv %s9785_s27  ;;  %v3960_v60 = vstv %s9787_s28  ;;  %v3915_v48 = vsel %vm710_vm1, %v3913_v39, %v3914_v19  ;;  %v3919_v38 = vadd.f32 %v3914_v19, %v9733_v63  ;;  %s10018_s27 = sld [smem:[#allocation13 + $0xd7]]  ;;  %s10020_s28 = sld [smem:[#allocation13 + $0xfb]] }
 0x335   : > { %v3928_v12 = vsel %vm710_vm1, %v3926_v27, %v3927_v49  ;;  %v9831_v61 = vadd.f32 %v3927_v49, %v9751_v40  ;;  %v3918_v58 = vadd.f32 %v3915_v48, %v9736_v41  ;;  %v3939_v20 = vrot.slane %v3935_v56, 2 }
 0x336   : > { %v3931_v15 = vadd.f32 %v3928_v12, %v9756_v35  ;;  %v3940_v8 = vrot.slane %v3936_v7, 2  ;;  %v3948_v63 = vmul.f32 %v9609_v43, %v3947_v22  ;;  %v3949_v25 = vmul.f32 %v9615_v17, %v3947_v22 }
 0x337   : > { %v3961_v3 = vmul.f32 %v9609_v43, %v3960_v60  ;;  %v3962_v40 = vmul.f32 %v9615_v17, %v3960_v60  ;;  %v3973_v11 = vstv %s9805_s29  ;;  %v3990_v37 = vstv %s9807_s30  ;;  %s10038_s29 = sld [smem:[#allocation13 + $0x11f]]  ;;  %s10069_s30 = scalar_lea.vmem [#allocation4], %s5935_s20 }
 0x338   : > { %v3941_v41 = vsel %vm710_vm1, %v3939_v20, %v3940_v8  ;;  %v3945_v35 = vadd.f32 %v3940_v8, %v9760_v42  ;;  %v3952_v57 = vrot.slane %v3948_v63, 2  ;;  %v3953_v14 = vrot.slane %v3949_v25, 2 }
 0x339   : > { %v3944_v47 = vadd.f32 %v3941_v41, %v9763_v16  ;;  %v3965_v36 = vrot.slane %v3961_v3, 2  ;;  %v3966_v59 = vrot.slane %v3962_v40, 2  ;;  %v3974_v45 = vmul.f32 %v9609_v43, %v3973_v11 }
 0x33a   : > { %v3975_v53 = vmul.f32 %v9615_v17, %v3973_v11  ;;  %v3991_v50 = vmul.f32 %v9844_v54, %v3990_v37  ;;  %v3954_v42 = vsel %vm710_vm1, %v3952_v57, %v3953_v14  ;;  %v3958_v2 = vadd.f32 %v3953_v14, %v9773_v29 }
 0x33b   : > { %v3992_v16 = vmul.f32 %v9850_v6, %v3990_v37  ;;  %v3996_v18 = vstv %s9821_s5  ;;  %v3957_v10 = vadd.f32 %v3954_v42, %v9780_v1  ;;  %v3967_v43 = vsel %vm710_vm1, %v3965_v36, %v3966_v59 }
 0x33c   : > { %v3971_v17 = vadd.f32 %v3966_v59, %v9777_v5  ;;  %v3978_v28 = vrot.slane %v3974_v45, 2  ;;  %v3970_v30 = vadd.f32 %v3967_v43, %v9783_v44  ;;  %v3979_v0 = vrot.slane %v3975_v53, 2 }
 0x33d   : > { %v9871_v51 = vadd.f32 %v3991_v50, %v3892_v21  ;;  %v9873_v29 = vadd.f32 %v3992_v16, %v3893_v9  ;;  %v3997_v24 = vmul.f32 %v9844_v54, %v3996_v18  ;;  %v3998_v1 = vmul.f32 %v9850_v6, %v3996_v18 }
 0x33e   : > { %v4002_v33 = vstv %s9835_s12  ;;  %v4008_v13 = vstv %s9837_s13  ;;  %v3980_v5 = vsel %vm710_vm1, %v3978_v28, %v3979_v0  ;;  %v3984_v44 = vadd.f32 %v3979_v0, %v9795_v23 }
 0x33f   : > { %v4003_v26 = vmul.f32 %v9844_v54, %v4002_v33  ;;  %v4004_v55 = vmul.f32 %v9850_v6, %v4002_v33  ;;  %v3983_v9 = vadd.f32 %v3980_v5, %v9800_v31  ;;  %v3999_v46 = vadd.f32 %v3997_v24, %v9819_v32 }
 0x340   : > { %v4000_v62 = vadd.f32 %v3998_v1, %v9816_v34  ;;  %v4009_v21 = vmul.f32 %v9844_v54, %v4008_v13  ;;  %v4010_v39 = vmul.f32 %v9850_v6, %v4008_v13  ;;  %v4014_v19 = vstv %s9854_s15 }
 0x341   : > { %v4005_v52 = vadd.f32 %v4003_v26, %v3918_v58  ;;  %v4006_v23 = vadd.f32 %v4004_v55, %v3919_v38  ;;  %v4015_v49 = vmul.f32 %v9844_v54, %v4014_v19  ;;  %v4016_v31 = vmul.f32 %v9850_v6, %v4014_v19 }
 0x342   : > { %v9897_v27 = vadd.f32 %v4009_v21, %v3931_v15  ;;  %v4020_v56 = vstv %s9859_s16  ;;  %v9907_v34 = vadd.f32 %v4010_v39, %v9831_v61  ;;  %v4026_v22 = vstv %s9865_s24 }
 0x343   : > { %v4021_v32 = vmul.f32 %v9844_v54, %v4020_v56  ;;  %v4022_v7 = vmul.f32 %v9850_v6, %v4020_v56  ;;  %v9912_v60 = vadd.f32 %v4015_v49, %v3944_v47  ;;  %v9914_v48 = vadd.f32 %v4016_v31, %v3945_v35 }
 0x344   : > { %v4027_v38 = vmul.f32 %v9844_v54, %v4026_v22  ;;  %v4028_v12 = vmul.f32 %v9850_v6, %v4026_v22  ;;  %v4032_v61 = vstv %s9875_s3  ;;  %v4038_v20 = vstv %s9877_s4 }
 0x345   : > { %v9918_v58 = vadd.f32 %v4021_v32, %v3957_v10  ;;  %v9920_v15 = vadd.f32 %v4022_v7, %v3958_v2  ;;  %v4033_v25 = vmul.f32 %v9844_v54, %v4032_v61  ;;  %v4034_v3 = vmul.f32 %v9850_v6, %v4032_v61 }
 0x346   : > { %v9924_v8 = vadd.f32 %v4027_v38, %v3970_v30  ;;  %v9926_v63 = vadd.f32 %v4028_v12, %v3971_v17  ;;  %v4039_v40 = vmul.f32 %v9844_v54, %v4038_v20  ;;  %v4040_v41 = vmul.f32 %v9850_v6, %v4038_v20 }
 0x347   : > { %v4051_v35 = vstv %s9887_s0  ;;  %v4064_v11 = vstv %s9889_s17  ;;  %v9940_v37 = vadd.f32 %v4033_v25, %v3983_v9  ;;  %v9942_v47 = vadd.f32 %v4034_v3, %v3984_v44 }
 0x348   : > { %v4052_v57 = vmul.f32 %v9844_v54, %v4051_v35  ;;  %v4053_v14 = vmul.f32 %v9850_v6, %v4051_v35  ;;  %v4043_v36 = vrot.slane %v4039_v40, 1  ;;  %v4044_v59 = vrot.slane %v4040_v41, 1 }
 0x349   : > { %v4065_v45 = vmul.f32 %v9844_v54, %v4064_v11  ;;  %v4066_v53 = vmul.f32 %v9850_v6, %v4064_v11  ;;  %v4077_v2 = vstv %s9902_s18  ;;  %v4090_v16 = vstv %s9904_s19 }
 0x34a   : > { %v4056_v50 = vrot.slane %v4052_v57, 1  ;;  %v4057_v42 = vrot.slane %v4053_v14, 1  ;;  %v4045_v18 = vsel %vm696_vm0, %v4043_v36, %v4044_v59  ;;  %v9952_v10 = vadd.f32 %v4044_v59, %v9873_v29 }
 0x34b   : > { %v4069_v43 = vrot.slane %v4065_v45, 1  ;;  %v4070_v17 = vrot.slane %v4066_v53, 1  ;;  %v9955_v28 = vadd.f32 %v4045_v18, %v9871_v51  ;;  %v4078_v24 = vmul.f32 %v9844_v54, %v4077_v2 }
 0x34c   : > { %v4058_v30 = vsel %vm696_vm0, %v4056_v50, %v4057_v42  ;;  %v9958_v0 = vadd.f32 %v4057_v42, %v4000_v62  ;;  %v4079_v51 = vmul.f32 %v9850_v6, %v4077_v2  ;;  %v4091_v44 = vmul.f32 %v9844_v54, %v4090_v16 }
 0x34d   : > { %v9965_v29 = vadd.f32 %v4058_v30, %v3999_v46  ;;  %v4071_v1 = vsel %vm696_vm0, %v4069_v43, %v4070_v17  ;;  %v9968_v33 = vadd.f32 %v4070_v17, %v4006_v23  ;;  %v4082_v5 = vrot.slane %v4078_v24, 1 }
 0x34e   : > { %v9971_v13 = vadd.f32 %v4071_v1, %v4005_v52  ;;  %v4092_v26 = vmul.f32 %v9850_v6, %v4090_v16  ;;  %v4083_v55 = vrot.slane %v4079_v51, 1  ;;  %v4103_v9 = vstv %s9930_s22 }
 0x34f   : > { %v4116_v62 = vstv %s9936_s23  ;;  %v4129_v21 = vstv %s9938_s21  ;;  %v4095_v39 = vrot.slane %v4091_v44, 1  ;;  %v4104_v19 = vmul.f32 %v9844_v54, %v4103_v9 }
 0x350   : > { %v4096_v46 = vrot.slane %v4092_v26, 1  ;;  %v4105_v23 = vmul.f32 %v9850_v6, %v4103_v9  ;;  %v4084_v52 = vsel %vm696_vm0, %v4082_v5, %v4083_v55  ;;  %v9986_v49 = vadd.f32 %v4083_v55, %v9907_v34 }
 0x351   : > { %v4117_v31 = vmul.f32 %v9844_v54, %v4116_v62  ;;  %v4118_v56 = vmul.f32 %v9850_v6, %v4116_v62  ;;  %v4087_v32 = vadd.f32 %v4084_v52, %v9897_v27  ;;  %v4108_v38 = vrot.slane %v4104_v19, 1 }
 0x352   : > { %v4097_v7 = vsel %vm696_vm0, %v4095_v39, %v4096_v46  ;;  %v9993_v22 = vadd.f32 %v4096_v46, %v9914_v48  ;;  %v4109_v61 = vrot.slane %v4105_v23, 1  ;;  %v4130_v34 = vmul.f32 %v9844_v54, %v4129_v21 }
 0x353   : > { %v9996_v12 = vadd.f32 %v4097_v7, %v9912_v60  ;;  %v4121_v20 = vrot.slane %v4117_v31, 1  ;;  %v4122_v25 = vrot.slane %v4118_v56, 1  ;;  %v4131_v3 = vmul.f32 %v9850_v6, %v4129_v21 }
 0x354   : > { %v4142_v40 = vstv %s9961_s25  ;;  %v4155_v27 = vstv %s9963_s10  ;;  %v4110_v41 = vsel %vm696_vm0, %v4108_v38, %v4109_v61  ;;  %v10006_v48 = vadd.f32 %v4109_v61, %v9920_v15 }
 0x355   : > { %v4123_v60 = vsel %vm696_vm0, %v4121_v20, %v4122_v25  ;;  %v10010_v35 = vadd.f32 %v4122_v25, %v9926_v63  ;;  %v10013_v11 = vadd.f32 %v4110_v41, %v9918_v58  ;;  %v4134_v14 = vrot.slane %v4130_v34, 1 }
 0x356   : > { %v10016_v57 = vadd.f32 %v4123_v60, %v9924_v8  ;;  %v4135_v36 = vrot.slane %v4131_v3, 1  ;;  %v4143_v15 = vmul.f32 %v9844_v54, %v4142_v40  ;;  %v4144_v59 = vmul.f32 %v9850_v6, %v4142_v40 }
 0x357   : > { %v4156_v45 = vmul.f32 %v9844_v54, %v4155_v27  ;;  %v4157_v63 = vmul.f32 %v9850_v6, %v4155_v27  ;;  %v4168_v53 = vstv %s9980_s26  ;;  %v4181_v50 = vstv %s9982_s2 }
 0x358   : > { %v4136_v58 = vsel %vm696_vm0, %v4134_v14, %v4135_v36  ;;  %v10028_v8 = vadd.f32 %v4135_v36, %v9942_v47  ;;  %v4147_v2 = vrot.slane %v4143_v15, 2  ;;  %v4148_v16 = vrot.slane %v4144_v59, 2 }
 0x359   : > { %v10033_v42 = vadd.f32 %v4136_v58, %v9940_v37  ;;  %v4160_v18 = vrot.slane %v4156_v45, 2  ;;  %v4161_v43 = vrot.slane %v4157_v63, 2  ;;  %v4169_v17 = vmul.f32 %v9844_v54, %v4168_v53 }
 0x35a   : > { %v4170_v30 = vmul.f32 %v9850_v6, %v4168_v53  ;;  %v4182_v24 = vmul.f32 %v9844_v54, %v4181_v50  ;;  %v4149_v47 = vsel %vm710_vm1, %v4147_v2, %v4148_v16  ;;  %v4153_v1 = vadd.f32 %v4148_v16, %v9952_v10 }
 0x35b   : > { %v4183_v37 = vmul.f32 %v9850_v6, %v4181_v50  ;;  %v4194_v51 = vstv %s9998_s1  ;;  %v4152_v5 = vadd.f32 %v4149_v47, %v9955_v28  ;;  %v4162_v44 = vsel %vm710_vm1, %v4160_v18, %v4161_v43 }
 0x35c   : > { %v4166_v26 = vadd.f32 %v4161_v43, %v9958_v0  ;;  %v4173_v55 = vrot.slane %v4169_v17, 2  ;;  %v4165_v9 = vadd.f32 %v4162_v44, %v9965_v29  ;;  %v4174_v62 = vrot.slane %v4170_v30, 2 }
 0x35d   : > { %v4186_v21 = vrot.slane %v4182_v24, 2  ;;  %v4187_v39 = vrot.slane %v4183_v37, 2  ;;  %v4195_v46 = vmul.f32 %v9844_v54, %v4194_v51  ;;  %v4196_v19 = vmul.f32 %v9850_v6, %v4194_v51 }
 0x35e   : > { %v4207_v10 = vstv %s10018_s27  ;;  %v4220_v23 = vstv %s10020_s28  ;;  %v4175_v52 = vsel %vm710_vm1, %v4173_v55, %v4174_v62  ;;  %v4179_v28 = vadd.f32 %v4174_v62, %v9968_v33 }
 0x35f   : > { %v4188_v31 = vsel %vm710_vm1, %v4186_v21, %v4187_v39  ;;  %v4192_v0 = vadd.f32 %v4187_v39, %v9986_v49  ;;  %v4178_v29 = vadd.f32 %v4175_v52, %v9971_v13  ;;  %v4199_v7 = vrot.slane %v4195_v46, 2 }
 0x360   : > { %v4191_v56 = vadd.f32 %v4188_v31, %v4087_v32  ;;  %v4200_v38 = vrot.slane %v4196_v19, 2  ;;  %v4208_v61 = vmul.f32 %v9844_v54, %v4207_v10  ;;  %v4209_v20 = vmul.f32 %v9850_v6, %v4207_v10 }
 0x361   : > { %v4221_v25 = vmul.f32 %v9844_v54, %v4220_v23  ;;  %v4222_v34 = vmul.f32 %v9850_v6, %v4220_v23  ;;  %v4233_v40 = vstv %s10038_s29  ;;  %v4245_v49 = vmax.f32 %v4152_v5, 0.0 }
 0x362   : > { %v4201_v33 = vsel %vm710_vm1, %v4199_v7, %v4200_v38  ;;  %v4205_v3 = vadd.f32 %v4200_v38, %v9993_v22  ;;  %v4212_v32 = vrot.slane %v4208_v61, 2  ;;  %v4213_v27 = vrot.slane %v4209_v20, 2 }
 0x363   : > { %v4204_v13 = vadd.f32 %v4201_v33, %v9996_v12  ;;  %v4225_v41 = vrot.slane %v4221_v25, 2  ;;  %v4226_v60 = vrot.slane %v4222_v34, 2  ;;  %v4234_v14 = vmul.f32 %v9844_v54, %v4233_v40  ;;  %4248 = vst [vmem:[%s10069_s30] sm:$0xff] %v4245_v49 }
 0x364   : > { %v4235_v36 = vmul.f32 %v9850_v6, %v4233_v40  ;;  %v4246_v15 = vmax.f32 %v4153_v1, 0.0  ;;  %v4214_v22 = vsel %vm710_vm1, %v4212_v32, %v4213_v27  ;;  %v4218_v12 = vadd.f32 %v4213_v27, %v10006_v48 }
 0x365   : > { %v4250_v59 = vmax.f32 %v4165_v9, 0.0  ;;  %v4251_v45 = vmax.f32 %v4166_v26, 0.0  ;;  %v4217_v63 = vadd.f32 %v4214_v22, %v10013_v11  ;;  %v4227_v54 = vsel %vm710_vm1, %v4225_v41, %v4226_v60 }
 0x366   : > { %v4231_v6 = vadd.f32 %v4226_v60, %v10010_v35  ;;  %v4238_v58 = vrot.slane %v4234_v14, 2  ;;  %4249 = vst [vmem:[%s10069_s30 + $0x8] sm:$0xf] %v4246_v15  ;;  %v4230_v53 = vadd.f32 %v4227_v54, %v10016_v57  ;;  %v4239_v50 = vrot.slane %v4235_v36, 2 }
 0x367   : > { %6257 = vst [vmem:[%s10069_s30 + $0xc0] sm:$0xff] %v4250_v59  ;;  %6258 = vst [vmem:[%s10069_s30 + $0xc8] sm:$0xf] %v4251_v45  ;;  %v4256_v48 = vmax.f32 %v4178_v29, 0.0  ;;  %v4257_v2 = vmax.f32 %v4179_v28, 0.0  ;;  %v4262_v11 = vmax.f32 %v4191_v56, 0.0 }
 0x368   : > { %v4263_v16 = vmax.f32 %v4192_v0, 0.0  ;;  %v4268_v18 = vmax.f32 %v4204_v13, 0.0  ;;  %v4269_v35 = vmax.f32 %v4205_v3, 0.0  ;;  %v4240_v43 = vsel %vm710_vm1, %v4238_v58, %v4239_v50  ;;  %1103 = sbr.rel (!%p1101_p1) target bundleno = 356 (0x164), region = 246 }
 0x369   : > { %v4244_v57 = vadd.f32 %v4239_v50, %v10028_v8  ;;  %6260 = vst [vmem:[%s10069_s30 + $0x180] sm:$0xff] %v4256_v48  ;;  %6261 = vst [vmem:[%s10069_s30 + $0x188] sm:$0xf] %v4257_v2  ;;  %v4274_v17 = vmax.f32 %v4217_v63, 0.0  ;;  %v4275_v30 = vmax.f32 %v4218_v12, 0.0  ;;  %v4243_v24 = vadd.f32 %v4240_v43, %v10033_v42 }
 0x36a   : > { %6263 = vst [vmem:[%s10069_s30 + $0x240] sm:$0xff] %v4262_v11  ;;  %6264 = vst [vmem:[%s10069_s30 + $0x248] sm:$0xf] %v4263_v16  ;;  %v4280_v47 = vmax.f32 %v4230_v53, 0.0  ;;  %v4281_v1 = vmax.f32 %v4231_v6, 0.0  ;;  %v6714_v62 = vmov (%p1101_p1), 0  }
 0x36b   : > { %6266 = vst [vmem:[%s10069_s30 + $0x300] sm:$0xff] %v4268_v18  ;;  %6267 = vst [vmem:[%s10069_s30 + $0x308] sm:$0xf] %v4269_v35  ;;  %v4287_v37 = vmax.f32 %v4244_v57, 0.0  ;;  %v4286_v8 = vmax.f32 %v4243_v24, 0.0  ;;  %6555 = vset.pattern.permute.xlu0 (%p1101_p1), %v6714_v62  ;;  %6556 = vset.pattern.permute.xlu1 (%p1101_p1), %v6714_v62  ;;  %vm5314_vm2 = vcmask (%p1101_p1), 130048  }
 0x36c   : > { %6269 = vst [vmem:[%s10069_s30 + $0x3c0] sm:$0xff] %v4274_v17  ;;  %6270 = vst [vmem:[%s10069_s30 + $0x3c8] sm:$0xf] %v4275_v30  ;;  %vm5600_vm3 = vcmask (%p1101_p1), 261120   ;;  %vm6716_vm4 = vmmov (%p1101_p1), 0  }
 0x36d   : > { %6272 = vst [vmem:[%s10069_s30 + $0x480] sm:$0xff] %v4280_v47  ;;  %6273 = vst [vmem:[%s10069_s30 + $0x488] sm:$0xf] %v4281_v1 }
 0x36e   : > { %6276 = vst [vmem:[%s10069_s30 + $0x548] sm:$0xf] %v4287_v37  ;;  %6275 = vst [vmem:[%s10069_s30 + $0x540] sm:$0xff] %v4286_v8 }
 0x375   :  { %v4502_v42 = vld [vmem:[#allocation4 + $0x160] sm:$0xff]  ;;  %v4503_v51 = vld [vmem:[#allocation4 + $0x168] sm:$0xf]  ;;  %v4505_v5 = vld [vmem:[#allocation4 + $0x170] sm:$0xff] }
 0x376   :  { %v4506_v44 = vld [vmem:[#allocation4 + $0x178] sm:$0xf]  ;;  %v4507_v26 = vmax.f32 %v4502_v42, %v4505_v5  ;;  %v4521_v55 = vld [vmem:[#allocation4 + $0x180] sm:$0xff]  ;;  %v4522_v9 = vld [vmem:[#allocation4 + $0x188] sm:$0xf] }
 0x377   :  { %v4508_v21 = vmax.f32 %v4503_v51, %v4506_v44  ;;  %v4524_v39 = vld [vmem:[#allocation4 + $0x190] sm:$0xff]  ;;  %v4525_v46 = vld [vmem:[#allocation4 + $0x198] sm:$0xf]  ;;  %v4540_v19 = vld [vmem:[#allocation4 + $0x1a0] sm:$0xff] }
 0x378   :  { %v4511_v10 = vrot.slane %v4507_v26, 1  ;;  %v4526_v23 = vmax.f32 %v4521_v55, %v4524_v39  ;;  %v4527_v52 = vmax.f32 %v4522_v9, %v4525_v46  ;;  %v4541_v28 = vld [vmem:[#allocation4 + $0x1a8] sm:$0xf]  ;;  %v4543_v31 = vld [vmem:[#allocation4 + $0x1b0] sm:$0xff]  ;;  %v4544_v0 = vld [vmem:[#allocation4 + $0x1b8] sm:$0xf] }
 0x379   :  { %v4512_v29 = vrot.slane %v4508_v21, 1  ;;  %v4545_v56 = vmax.f32 %v4540_v19, %v4543_v31  ;;  %v10099_v7 = vmax.f32 %v4541_v28, %v4544_v0  ;;  %v4292_v38 = vld [vmem:[#allocation4] sm:$0xff]  ;;  %v4293_v61 = vld [vmem:[#allocation4 + $0x8] sm:$0xf]  ;;  %v4295_v20 = vld [vmem:[#allocation4 + $0x10] sm:$0xff] }
 0x37a   :  { %v4530_v25 = vrot.slane %v4526_v23, 1  ;;  %v4531_v34 = vrot.slane %v4527_v52, 1  ;;  %v4296_v33 = vld [vmem:[#allocation4 + $0x18] sm:$0xf]  ;;  %v10101_v3 = vmax.f32 %v4292_v38, %v4295_v20  ;;  %v4312_v40 = vld [vmem:[#allocation4 + $0x20] sm:$0xff]  ;;  %v4315_v49 = vld [vmem:[#allocation4 + $0x30] sm:$0xff] }
 0x37b   :  { %v4513_v13 = vsel %vm696_vm0, %v4511_v10, %v4512_v29  ;;  %v4517_v32 = vmax.f32 %v4508_v21, %v4512_v29  ;;  %v4549_v27 = vrot.slane %v4545_v56, 1  ;;  %v4550_v41 = vrot.slane %v10099_v7, 1  ;;  %v4313_v60 = vld [vmem:[#allocation4 + $0x28] sm:$0xf]  ;;  %v4316_v14 = vld [vmem:[#allocation4 + $0x38] sm:$0xf] }
 0x37c   :  { %v4516_v36 = vmax.f32 %v4507_v26, %v4513_v13  ;;  %v4532_v15 = vsel %vm696_vm0, %v4530_v25, %v4531_v34  ;;  %v4536_v22 = vmax.f32 %v4527_v52, %v4531_v34  ;;  %v4298_v12 = vmax.f32 %v4293_v61, %v4296_v33  ;;  %v4939_v59 = vld [vmem:[#allocation4 + $0x440] sm:$0xff]  ;;  %v4940_v45 = vld [vmem:[#allocation4 + $0x448] sm:$0xf]  ;;  %v4942_v63 = vld [vmem:[#allocation4 + $0x450] sm:$0xff] }
 0x37d   :  { %4519 = vst [vmem:[#allocation5 + $0x81] sm:$0x7] %v4517_v32  ;;  %v4535_v54 = vmax.f32 %v4526_v23, %v4532_v15  ;;  %v4551_v6 = vsel %vm696_vm0, %v4549_v27, %v4550_v41  ;;  %v4302_v58 = vrot.slane %v10101_v3, 1  ;;  %v4317_v53 = vmax.f32 %v4312_v40, %v4315_v49  ;;  %v4943_v50 = vld [vmem:[#allocation4 + $0x458] sm:$0xf]  ;;  %v4958_v48 = vld [vmem:[#allocation4 + $0x460] sm:$0xff] }
 0x37e   :  { %v4959_v2 = vld [vmem:[#allocation4 + $0x468] sm:$0xf]  ;;  %4518 = vst [vmem:[#allocation5 + $0x79] sm:$0xff] %v4516_v36  ;;  %4538 = vst [vmem:[#allocation5 + $0x8c] sm:$0x7] %v4536_v22  ;;  %v4554_v11 = vmax.f32 %v4545_v56, %v4551_v6  ;;  %v4303_v16 = vrot.slane %v4298_v12, 1  ;;  %v10110_v18 = vmax.f32 %v4313_v60, %v4316_v14  ;;  %v10112_v35 = vmax.f32 %v4939_v59, %v4942_v63 }
 0x37f   :  { %v4961_v43 = vld [vmem:[#allocation4 + $0x470] sm:$0xff]  ;;  %v4962_v57 = vld [vmem:[#allocation4 + $0x478] sm:$0xf]  ;;  %v4977_v17 = vld [vmem:[#allocation4 + $0x480] sm:$0xff]  ;;  %4537 = vst [vmem:[#allocation5 + $0x84] sm:$0xff] %v4535_v54  ;;  %v4321_v30 = vrot.slane %v4317_v53, 1  ;;  %v4945_v24 = vmax.f32 %v4940_v45, %v4943_v50  ;;  %v4555_v6 = vmax.f32 %v10099_v7, %v4550_v41 }
 0x380   :  { %v4963_v47 = vmax.f32 %v4958_v48, %v4961_v43  ;;  %v4964_v1 = vmax.f32 %v4959_v2, %v4962_v57  ;;  %v4978_v37 = vld [vmem:[#allocation4 + $0x488] sm:$0xf]  ;;  %v4980_v8 = vld [vmem:[#allocation4 + $0x490] sm:$0xff]  ;;  %v4981_v42 = vld [vmem:[#allocation4 + $0x498] sm:$0xf]  ;;  %4556 = vst [vmem:[#allocation5 + $0x8f] sm:$0xff] %v4554_v11  ;;  %v10115_v51 = vsel %vm696_vm0, %v4302_v58, %v4303_v16  ;;  %v4308_v5 = vmax.f32 %v4298_v12, %v4303_v16 }
 0x381   :  { %v4322_v44 = vrot.slane %v10110_v18, 1  ;;  %v4948_v26 = vrot.slane %v10112_v35, 1  ;;  %v4730_v55 = vld [vmem:[#allocation4 + $0x2e0] sm:$0xff]  ;;  %v4731_v9 = vld [vmem:[#allocation4 + $0x2e8] sm:$0xf]  ;;  %v4733_v62 = vld [vmem:[#allocation4 + $0x2f0] sm:$0xff]  ;;  %v4307_v21 = vmax.f32 %v10101_v3, %v10115_v51  ;;  %v4982_v28 = vmax.f32 %v4977_v17, %v4980_v8 }
 0x382   :  { %v4949_v39 = vrot.slane %v4945_v24, 1  ;;  %v4967_v46 = vrot.slane %v4963_v47, 1  ;;  %v4968_v19 = vrot.slane %v4964_v1, 1  ;;  %v4734_v10 = vld [vmem:[#allocation4 + $0x2f8] sm:$0xf]  ;;  %v4749_v23 = vld [vmem:[#allocation4 + $0x300] sm:$0xff]  ;;  %v10122_v31 = vmax.f32 %v4978_v37, %v4981_v42 }
 0x383   :  { %4310 = vst [vmem:[#allocation5 + $0x8] sm:$0x7] %v4308_v5  ;;  %v4323_v52 = vsel %vm696_vm0, %v4321_v30, %v4322_v44  ;;  %v10124_v0 = vmax.f32 %v4730_v55, %v4733_v62  ;;  %v4750_v29 = vld [vmem:[#allocation4 + $0x308] sm:$0xf]  ;;  %v4752_v56 = vld [vmem:[#allocation4 + $0x310] sm:$0xff]  ;;  %v4559_v33 = vld [vmem:[#allocation4 + $0x1c0] sm:$0xff]  ;;  %v4736_v36 = vmax.f32 %v4731_v9, %v4734_v10 }
 0x384   :  { %v4753_v38 = vld [vmem:[#allocation4 + $0x318] sm:$0xf]  ;;  %v4326_v61 = vmax.f32 %v4317_v53, %v4323_v52  ;;  %v10127_v20 = vsel %vm696_vm0, %v4948_v26, %v4949_v39  ;;  %v4954_v25 = vmax.f32 %v4945_v24, %v4949_v39  ;;  %v4969_v34 = vsel %vm696_vm0, %v4967_v46, %v4968_v19  ;;  %v4560_v40 = vld [vmem:[#allocation4 + $0x1c8] sm:$0xf]  ;;  %v4562_v49 = vld [vmem:[#allocation4 + $0x1d0] sm:$0xff] }
 0x385   :  { %v4972_v13 = vmax.f32 %v4963_v47, %v4969_v34  ;;  %v4973_v32 = vmax.f32 %v4964_v1, %v4968_v19  ;;  %v4986_v27 = vrot.slane %v4982_v28, 1  ;;  %v4987_v60 = vrot.slane %v10122_v31, 1  ;;  %v4563_v14 = vld [vmem:[#allocation4 + $0x1d8] sm:$0xf]  ;;  %v4331_v59 = vld [vmem:[#allocation4 + $0x40] sm:$0xff]  ;;  %v4334_v45 = vld [vmem:[#allocation4 + $0x50] sm:$0xff] }
 0x386   :  { %4328 = vst [vmem:[#allocation5 + $0xb] sm:$0xff] %v4326_v61  ;;  %4956 = vst [vmem:[#allocation5 + $0x17e] sm:$0x7] %v4954_v25  ;;  %v4739_v15 = vrot.slane %v10124_v0, 1  ;;  %v10132_v22 = vmax.f32 %v4749_v23, %v4752_v56  ;;  %v4755_v12 = vmax.f32 %v4750_v29, %v4753_v38  ;;  %v5220_v63 = vld [vmem:[#allocation5 + $0x80] sm:$0xff]  ;;  %v4564_v58 = vmax.f32 %v4559_v33, %v4562_v49  ;;  %v4999_v41 = vld [vmem:[#allocation4 + $0x4b0] sm:$0xff] }
 0x387   :  { %4974 = vst [vmem:[#allocation5 + $0x181] sm:$0xff] %v4972_v13  ;;  %4975 = vst [vmem:[#allocation5 + $0x189] sm:$0x7] %v4973_v32  ;;  %v4988_v54 = vsel %vm696_vm0, %v4986_v27, %v4987_v60  ;;  %v10138_v53 = vmax.f32 %v4560_v40, %v4563_v14  ;;  %v4332_v50 = vld [vmem:[#allocation4 + $0x48] sm:$0xf]  ;;  %v4740_v16 = vrot.slane %v4736_v36, 1  ;;  %v4327_v1 = vmax.f32 %v10110_v18, %v4322_v44 }
 0x388   :  { %v4335_v48 = vld [vmem:[#allocation4 + $0x58] sm:$0xf]  ;;  %v5221_v2 = vld [vmem:[#allocation5 + $0x88] sm:$0xff]  ;;  %v4991_v11 = vmax.f32 %v4982_v28, %v4988_v54  ;;  %v4758_v43 = vrot.slane %v10132_v22, 1  ;;  %v4759_v57 = vrot.slane %v4755_v12, 1  ;;  %v4568_v24 = vrot.slane %v4564_v58, 1 }
 0x389   :  { %v4997_v17 = vld [vmem:[#allocation4 + $0x4a8] sm:$0xf]  ;;  %v6415_v30 = vpack.c.bf16 %v5221_v2, %v5220_v63  ;;  %4557 = vst [vmem:[#allocation5 + $0x97] sm:$0x7] %v4555_v6  ;;  %v4569_v47 = vrot.slane %v10138_v53, 1  ;;  %v4996_v7 = vld [vmem:[#allocation4 + $0x4a0] sm:$0xff]  ;;  %v4741_v8 = vsel %vm696_vm0, %v4739_v15, %v4740_v16  ;;  %v4745_v42 = vmax.f32 %v4736_v36, %v4740_v16 }
 0x38a   :  { %v5000_v37 = vld [vmem:[#allocation4 + $0x4b8] sm:$0xf]  ;;  %4993 = vst [vmem:[#allocation5 + $0x18c] sm:$0xff] %v4991_v11  ;;  %v10145_v5 = vsel %vm696_vm0, %v4758_v43, %v4759_v57  ;;  %v4336_v26 = vmax.f32 %v4331_v59, %v4334_v45  ;;  %v4768_v55 = vld [vmem:[#allocation4 + $0x320] sm:$0xff]  ;;  %v4769_v9 = vld [vmem:[#allocation4 + $0x328] sm:$0xf]  ;;  %v4744_v39 = vmax.f32 %v10124_v0, %v4741_v8  ;;  %v4337_v46 = vmax.f32 %v4332_v50, %v4335_v48 }
 0x38b   :  { %v4771_v62 = vld [vmem:[#allocation4 + $0x330] sm:$0xff]  ;;  %6416 = vmatprep.subr.bf16.mxu0 %v6415_v30  ;;  %v4763_v18 = vmax.f32 %v10132_v22, %v10145_v5  ;;  %v4570_v44 = vsel %vm696_vm0, %v4568_v24, %v4569_v47  ;;  %4329 = vst [vmem:[#allocation5 + $0x13] sm:$0x7] %v4327_v1  ;;  %v4772_v19 = vld [vmem:[#allocation4 + $0x338] sm:$0xf]  ;;  %v4787_v10 = vld [vmem:[#allocation4 + $0x340] sm:$0xff]  ;;  %v4992_v29 = vmax.f32 %v10122_v31, %v4987_v60 }
 0x38c   :  { %v4790_v23 = vld [vmem:[#allocation4 + $0x350] sm:$0xff]  ;;  %4747 = vst [vmem:[#allocation5 + $0x105] sm:$0x7] %v4745_v42  ;;  %v4573_v52 = vmax.f32 %v4564_v58, %v4570_v44  ;;  %v4340_v28 = vrot.slane %v4336_v26, 1  ;;  %v5001_v56 = vmax.f32 %v4996_v7, %v4999_v41  ;;  %v4788_v38 = vld [vmem:[#allocation4 + $0x348] sm:$0xf]  ;;  %v5002_v25 = vmax.f32 %v4997_v17, %v5000_v37 }
 0x38d   :  { %v5205_v0 = vld [vmem:[#allocation5 + $0x8] sm:$0xff]  ;;  %4746 = vst [vmem:[#allocation5 + $0xfd] sm:$0xff] %v4744_v39  ;;  %v4341_v61 = vrot.slane %v4337_v46, 1  ;;  %v4764_v34 = vmax.f32 %v4755_v12, %v4759_v57  ;;  %v4773_v33 = vmax.f32 %v4768_v55, %v4771_v62  ;;  %v4791_v40 = vld [vmem:[#allocation4 + $0x358] sm:$0xf]  ;;  %v4578_v49 = vld [vmem:[#allocation4 + $0x1e0] sm:$0xff]  ;;  %v4774_v27 = vmax.f32 %v4769_v9, %v4772_v19 }
 0x38e   :  { %v6417_v13 = vpack.c.bf16 %v5205_v0, %v4307_v21  ;;  %4575 = vst [vmem:[#allocation5 + $0x9a] sm:$0xff] %v4573_v52  ;;  %4994 = vst [vmem:[#allocation5 + $0x194] sm:$0x7] %v4992_v29  ;;  %v5005_v32 = vrot.slane %v5001_v56, 1  ;;  %v10157_v14 = vmax.f32 %v4787_v10, %v4790_v23  ;;  %v4579_v31 = vld [vmem:[#allocation4 + $0x1e8] sm:$0xf]  ;;  %v10160_v58 = vmax.f32 %v4788_v38, %v4791_v40 }
 0x38f   :  { %v4581_v60 = vld [vmem:[#allocation4 + $0x1f0] sm:$0xff]  ;;  %v4582_v36 = vld [vmem:[#allocation4 + $0x1f8] sm:$0xf]  ;;  %v5252_v15 = vld [vmem:[#allocation5 + $0x180] sm:$0xff]  ;;  %v4342_v59 = vsel %vm696_vm0, %v4340_v28, %v4341_v61  ;;  %v4346_v12 = vmax.f32 %v4337_v46, %v4341_v61  ;;  %v5006_v45 = vrot.slane %v5002_v25, 1  ;;  %v4777_v63 = vrot.slane %v4773_v33, 1 }
 0x390   :  { %4766 = vst [vmem:[#allocation5 + $0x110] sm:$0x7] %v4764_v34  ;;  %v4350_v54 = vld [vmem:[#allocation4 + $0x60] sm:$0xff]  ;;  %v4351_v6 = vld [vmem:[#allocation4 + $0x68] sm:$0xf]  ;;  %6418 = vmatpush3.bf16.msra.mxu0 %v6417_v13  ;;  %v4345_v51 = vmax.f32 %v4336_v26, %v4342_v59  ;;  %v4778_v21 = vrot.slane %v4774_v27, 1  ;;  %v4574_v17 = vmax.f32 %v10138_v53, %v4569_v47  ;;  %v10167_v30 = vmax.f32 %v4578_v49, %v4581_v60 }
 0x391   :  { %v4354_v3 = vld [vmem:[#allocation4 + $0x78] sm:$0xf]  ;;  %v4796_v50 = vrot.slane %v10157_v14, 1  ;;  %v4353_v48 = vld [vmem:[#allocation4 + $0x70] sm:$0xff]  ;;  %v4369_v2 = vld [vmem:[#allocation4 + $0x80] sm:$0xff]  ;;  %v5007_v43 = vsel %vm696_vm0, %v5005_v32, %v5006_v45  ;;  %v5011_v57 = vmax.f32 %v5002_v25, %v5006_v45  ;;  %v4797_v62 = vrot.slane %v10160_v58, 1 }
 0x392   :  { %v4370_v11 = vld [vmem:[#allocation4 + $0x88] sm:$0xf]  ;;  %4348 = vst [vmem:[#allocation5 + $0x1e] sm:$0x7] %v4346_v12  ;;  %v4372_v24 = vld [vmem:[#allocation4 + $0x90] sm:$0xff]  ;;  %4347 = vst [vmem:[#allocation5 + $0x16] sm:$0xff] %v4345_v51  ;;  %v5010_v41 = vmax.f32 %v5001_v56, %v5007_v43  ;;  %v4779_v37 = vsel %vm696_vm0, %v4777_v63, %v4778_v21  ;;  %v4783_v8 = vmax.f32 %v4774_v27, %v4778_v21 }
 0x393   :  { %v5253_v16 = vld [vmem:[#allocation5 + $0x188] sm:$0xff]  ;;  %v4373_v1 = vld [vmem:[#allocation4 + $0x98] sm:$0xf]  ;;  %v5015_v42 = vld [vmem:[#allocation4 + $0x4c0] sm:$0xff]  ;;  %5013 = vst [vmem:[#allocation5 + $0x19f] sm:$0x7] %v5011_v57  ;;  %v4782_v9 = vmax.f32 %v4773_v33, %v4779_v37  ;;  %v4584_v39 = vmax.f32 %v4579_v31, %v4582_v36  ;;  %v4355_v44 = vmax.f32 %v4350_v54, %v4353_v48  ;;  %v4356_v46 = vmax.f32 %v4351_v6, %v4354_v3 }
 0x394   :  { %v6447_v7 = vpack.c.bf16 %v5253_v16, %v5252_v15  ;;  %v5018_v26 = vld [vmem:[#allocation4 + $0x4d0] sm:$0xff]  ;;  %4576 = vst [vmem:[#allocation5 + $0xa2] sm:$0x7] %v4574_v17  ;;  %v4587_v53 = vrot.slane %v10167_v30, 1  ;;  %v5236_v47 = vld [vmem:[#allocation5 + $0x100] sm:$0xff]  ;;  %5012 = vst [vmem:[#allocation5 + $0x197] sm:$0xff] %v5010_v41  ;;  %v10172_v19 = vmax.f32 %v4369_v2, %v4372_v24  ;;  %v10174_v10 = vmax.f32 %v4370_v11, %v4373_v1 }
 0x395   :  { %v5222_v55 = vld [vmem:[#allocation5 + $0x90] sm:$0xff]  ;;  %4785 = vst [vmem:[#allocation5 + $0x11b] sm:$0x7] %v4783_v8  ;;  %v5016_v23 = vld [vmem:[#allocation4 + $0x4c8] sm:$0xf]  ;;  %v6449_v52 = vpack.c.bf16 %v4763_v18, %v5236_v47  ;;  %v5223_v28 = vld [vmem:[#allocation5 + $0x98] sm:$0xff]  ;;  %v4798_v29 = vsel %vm696_vm0, %v4796_v50, %v4797_v62  ;;  %v10182_v0 = vmax.f32 %v5015_v42, %v5018_v26  ;;  %v4802_v8 = vmax.f32 %v10160_v58, %v4797_v62 }
 0x396   :  { %6448 = vmatprep.subr.bf16.mxu1 %v6447_v7  ;;  %4784 = vst [vmem:[#allocation5 + $0x113] sm:$0xff] %v4782_v9  ;;  %v4588_v56 = vrot.slane %v4584_v39, 1  ;;  %v5019_v38 = vld [vmem:[#allocation4 + $0x4d8] sm:$0xf]  ;;  %v5035_v61 = vld [vmem:[#allocation4 + $0x4e8] sm:$0xf]  ;;  %v6419_v25 = vpack.c.bf16 %v5223_v28, %v5222_v55  ;;  %v4801_v34 = vmax.f32 %v10157_v14, %v4798_v29 }
 0x397   :  { %v4359_v33 = vrot.slane %v4355_v44, 1  ;;  %v4360_v40 = vrot.slane %v4356_v46, 1  ;;  %v5034_v49 = vld [vmem:[#allocation4 + $0x4e0] sm:$0xff]  ;;  %v5037_v13 = vld [vmem:[#allocation4 + $0x4f0] sm:$0xff]  ;;  %v5038_v22 = vld [vmem:[#allocation4 + $0x4f8] sm:$0xf]  ;;  %6450 = vmatpush3.bf16.msra.mxu1 %v6449_v52  ;;  %v5021_v12 = vmax.f32 %v5016_v23, %v5019_v38 }
 0x398   :  { %v4589_v5 = vsel %vm696_vm0, %v4587_v53, %v4588_v56  ;;  %v4593_v18 = vmax.f32 %v4584_v39, %v4588_v56  ;;  %v4378_v32 = vrot.slane %v10172_v19, 1  ;;  %v4379_v27 = vrot.slane %v10174_v10, 1  ;;  %v4806_v31 = vld [vmem:[#allocation4 + $0x360] sm:$0xff]  ;;  %v4807_v60 = vld [vmem:[#allocation4 + $0x368] sm:$0xf]  ;;  %v4809_v36 = vld [vmem:[#allocation4 + $0x370] sm:$0xff]  ;;  %6420 = vmatprep.subr.bf16.mxu0 %v6419_v25 }
 0x399   :  { %4803 = vst [vmem:[#allocation5 + $0x11e] sm:$0xff] %v4801_v34  ;;  %v4592_v14 = vmax.f32 %v10167_v30, %v4589_v5  ;;  %v4361_v15 = vsel %vm696_vm0, %v4359_v33, %v4360_v40  ;;  %v4365_v59 = vmax.f32 %v4356_v46, %v4360_v40  ;;  %v4810_v45 = vld [vmem:[#allocation4 + $0x378] sm:$0xf]  ;;  %v4597_v63 = vld [vmem:[#allocation4 + $0x200] sm:$0xff]  ;;  %v4600_v54 = vld [vmem:[#allocation4 + $0x210] sm:$0xff]  ;;  %v5024_v50 = vrot.slane %v10182_v0, 1 }
 0x39a   :  { %v5206_v6 = vld [vmem:[#allocation5 + $0x10] sm:$0xff]  ;;  %v5207_v3 = vld [vmem:[#allocation5 + $0x18] sm:$0xff]  ;;  %4595 = vst [vmem:[#allocation5 + $0xad] sm:$0x7] %v4593_v18  ;;  %v4364_v51 = vmax.f32 %v4355_v44, %v4361_v15  ;;  %v4380_v21 = vsel %vm696_vm0, %v4378_v32, %v4379_v27  ;;  %v5039_v48 = vmax.f32 %v5034_v49, %v5037_v13  ;;  %v4598_v2 = vld [vmem:[#allocation4 + $0x208] sm:$0xf]  ;;  %v5040_v17 = vmax.f32 %v5035_v61, %v5038_v22 }
 0x39b   :  { %v4616_v11 = vld [vmem:[#allocation4 + $0x220] sm:$0xff]  ;;  %v6421_v16 = vpack.c.bf16 %v5207_v3, %v5206_v6  ;;  %4594 = vst [vmem:[#allocation5 + $0xa5] sm:$0xff] %v4592_v14  ;;  %4367 = vst [vmem:[#allocation5 + $0x29] sm:$0x7] %v4365_v59  ;;  %v4383_v43 = vmax.f32 %v10172_v19, %v4380_v21  ;;  %v5025_v57 = vrot.slane %v5021_v12, 1  ;;  %v4619_v1 = vld [vmem:[#allocation4 + $0x230] sm:$0xff]  ;;  %v4811_v42 = vmax.f32 %v4806_v31, %v4809_v36 }
 0x39c   :  { %v4601_v30 = vld [vmem:[#allocation4 + $0x218] sm:$0xf]  ;;  %v4617_v24 = vld [vmem:[#allocation4 + $0x228] sm:$0xf]  ;;  %v5254_v7 = vld [vmem:[#allocation5 + $0x190] sm:$0xff]  ;;  %4366 = vst [vmem:[#allocation5 + $0x21] sm:$0xff] %v4364_v51  ;;  %v10198_v26 = vmax.f32 %v4807_v60, %v4810_v45  ;;  %v10203_v52 = vmax.f32 %v4597_v63, %v4600_v54  ;;  %v10206_v56 = vmax.f32 %v4616_v11, %v4619_v1  ;;  %v4384_v13 = vmax.f32 %v10174_v10, %v4379_v27 }
 0x39d   :  { %v5255_v41 = vld [vmem:[#allocation5 + $0x198] sm:$0xff]  ;;  %v5043_v37 = vrot.slane %v5039_v48, 1  ;;  %6422 = vmatpush3.bf16.msra.mxu0 %v6421_v16  ;;  %4385 = vst [vmem:[#allocation5 + $0x2c] sm:$0xff] %v4383_v43  ;;  %v5026_v39 = vsel %vm696_vm0, %v5024_v50, %v5025_v57  ;;  %v5030_v53 = vmax.f32 %v5021_v12, %v5025_v57  ;;  %v5044_v47 = vrot.slane %v5040_v17, 1  ;;  %v5238_v44 = vld [vmem:[#allocation5 + $0x110] sm:$0xff]  ;;  %v4388_v58 = vld [vmem:[#allocation4 + $0xa0] sm:$0xff] }
 0x39e   :  { %v4620_v55 = vld [vmem:[#allocation4 + $0x238] sm:$0xf]  ;;  %v6451_v9 = vpack.c.bf16 %v5255_v41, %v5254_v7  ;;  %v5029_v46 = vmax.f32 %v10182_v0, %v5026_v39  ;;  %4804 = vst [vmem:[#allocation5 + $0x126] sm:$0x7] %v4802_v8  ;;  %v4815_v19 = vrot.slane %v4811_v42, 1  ;;  %v4816_v23 = vrot.slane %v10198_v26, 1 }
 0x39f   :  { %v4389_v62 = vld [vmem:[#allocation4 + $0xa8] sm:$0xf]  ;;  %5032 = vst [vmem:[#allocation5 + $0x1aa] sm:$0x7] %v5030_v53  ;;  %v5045_v28 = vsel %vm696_vm0, %v5043_v37, %v5044_v47  ;;  %v4603_v29 = vmax.f32 %v4598_v2, %v4601_v30  ;;  %v10208_v38 = vmax.f32 %v4617_v24, %v4620_v55  ;;  %v4391_v61 = vld [vmem:[#allocation4 + $0xb0] sm:$0xff]  ;;  %v5053_v0 = vld [vmem:[#allocation4 + $0x500] sm:$0xff]  ;;  %v5049_v54 = vmax.f32 %v5040_v17, %v5044_v47 }
 0x3a0   :  { %6452 = vmatprep.subr.bf16.mxu1 %v6451_v9  ;;  %v4392_v25 = vld [vmem:[#allocation4 + $0xb8] sm:$0xf]  ;;  %5031 = vst [vmem:[#allocation5 + $0x1a2] sm:$0xff] %v5029_v46  ;;  %v5048_v33 = vmax.f32 %v5039_v48, %v5045_v28  ;;  %v4817_v40 = vsel %vm696_vm0, %v4815_v19, %v4816_v23  ;;  %v4606_v49 = vrot.slane %v10203_v52, 1  ;;  %v5054_v22 = vld [vmem:[#allocation4 + $0x508] sm:$0xf]  ;;  %v4393_v45 = vmax.f32 %v4388_v58, %v4391_v61 }
 0x3a1   :  { %v5239_v34 = vld [vmem:[#allocation5 + $0x118] sm:$0xff]  ;;  %v5056_v5 = vld [vmem:[#allocation4 + $0x510] sm:$0xff]  ;;  %v4820_v32 = vmax.f32 %v4811_v42, %v4817_v40  ;;  %v4607_v31 = vrot.slane %v4603_v29, 1  ;;  %v4625_v60 = vrot.slane %v10206_v56, 1  ;;  %v4825_v14 = vld [vmem:[#allocation4 + $0x380] sm:$0xff]  ;;  %v4626_v12 = vrot.slane %v10208_v38, 1 }
 0x3a2   :  { %v6453_v18 = vpack.c.bf16 %v5239_v34, %v5238_v44  ;;  %v5057_v36 = vld [vmem:[#allocation4 + $0x518] sm:$0xf]  ;;  %v5224_v15 = vld [vmem:[#allocation5 + $0xa0] sm:$0xff]  ;;  %v5225_v59 = vld [vmem:[#allocation5 + $0xa8] sm:$0xff]  ;;  %5050 = vst [vmem:[#allocation5 + $0x1ad] sm:$0xff] %v5048_v33  ;;  %v4394_v63 = vmax.f32 %v4389_v62, %v4392_v25  ;;  %v10222_v50 = vmax.f32 %v5053_v0, %v5056_v5  ;;  %v4397_v57 = vrot.slane %v4393_v45, 1 }
 0x3a3   :  { %4386 = vst [vmem:[#allocation5 + $0x34] sm:$0x7] %v4384_v13  ;;  %v4826_v6 = vld [vmem:[#allocation4 + $0x388] sm:$0xf]  ;;  %v4828_v10 = vld [vmem:[#allocation4 + $0x390] sm:$0xff]  ;;  %v6423_v27 = vpack.c.bf16 %v5225_v59, %v5224_v15  ;;  %v5208_v3 = vld [vmem:[#allocation5 + $0x20] sm:$0xff]  ;;  %v10220_v51 = vsel %vm696_vm0, %v4606_v49, %v4607_v31  ;;  %v4612_v21 = vmax.f32 %v4603_v29, %v4607_v31  ;;  %v4627_v43 = vsel %vm696_vm0, %v4625_v60, %v4626_v12 }
 0x3a4   :  { %6454 = vmatpush3.bf16.msra.mxu1 %v6453_v18  ;;  %4822 = vst [vmem:[#allocation5 + $0x129] sm:$0xff] %v4820_v32  ;;  %v4829_v48 = vld [vmem:[#allocation4 + $0x398] sm:$0xf]  ;;  %v4844_v2 = vld [vmem:[#allocation4 + $0x3a0] sm:$0xff]  ;;  %v5209_v11 = vld [vmem:[#allocation5 + $0x28] sm:$0xff]  ;;  %v4611_v16 = vmax.f32 %v10203_v52, %v10220_v51  ;;  %v4398_v17 = vrot.slane %v4394_v63, 1  ;;  %v4630_v7 = vmax.f32 %v10206_v56, %v4627_v43  ;;  %v10228_v41 = vmax.f32 %v5054_v22, %v5057_v36 }
 0x3a5   :  { %5051 = vst [vmem:[#allocation5 + $0x1b5] sm:$0x7] %v5049_v54  ;;  %v4845_v30 = vld [vmem:[#allocation4 + $0x3a8] sm:$0xf]  ;;  %v4847_v24 = vld [vmem:[#allocation4 + $0x3b0] sm:$0xff]  ;;  %6424 = vmatprep.subr.bf16.mxu0 %v6423_v27  ;;  %v6425_v1 = vpack.c.bf16 %v5209_v11, %v5208_v3  ;;  %v5062_v37 = vrot.slane %v10222_v50, 1  ;;  %v4821_v53 = vmax.f32 %v10198_v26, %v4816_v23  ;;  %v4830_v47 = vmax.f32 %v4825_v14, %v4828_v10 }
 0x3a6   :  { %4614 = vst [vmem:[#allocation5 + $0xb8] sm:$0x7] %v4612_v21  ;;  %v4848_v8 = vld [vmem:[#allocation4 + $0x3b8] sm:$0xf]  ;;  %v4635_v42 = vld [vmem:[#allocation4 + $0x240] sm:$0xff]  ;;  %v4638_v55 = vld [vmem:[#allocation4 + $0x250] sm:$0xff]  ;;  %v4399_v9 = vsel %vm696_vm0, %v4397_v57, %v4398_v17  ;;  %v4403_v39 = vmax.f32 %v4394_v63, %v4398_v17  ;;  %v4831_v28 = vmax.f32 %v4826_v6, %v4829_v48  ;;  %v4849_v29 = vmax.f32 %v4844_v2, %v4847_v24 }
 0x3a7   :  { %v4636_v44 = vld [vmem:[#allocation4 + $0x248] sm:$0xf]  ;;  %v4639_v46 = vld [vmem:[#allocation4 + $0x258] sm:$0xf]  ;;  %6426 = vmatpush3.bf16.msra.mxu0 %v6425_v1  ;;  %v5256_v19 = vld [vmem:[#allocation5 + $0x1a0] sm:$0xff]  ;;  %4632 = vst [vmem:[#allocation5 + $0xbb] sm:$0xff] %v4630_v7  ;;  %v4402_v58 = vmax.f32 %v4393_v45, %v4399_v9  ;;  %v10236_v25 = vmax.f32 %v4845_v30, %v4848_v8  ;;  %v4631_v0 = vmax.f32 %v10208_v38, %v4626_v12 }
 0x3a8   :  { %v5063_v62 = vrot.slane %v10228_v41, 1  ;;  %v5240_v56 = vld [vmem:[#allocation5 + $0x120] sm:$0xff]  ;;  %4405 = vst [vmem:[#allocation5 + $0x3f] sm:$0x7] %v4403_v39  ;;  %4823 = vst [vmem:[#allocation5 + $0x131] sm:$0x7] %v4821_v53  ;;  %v4640_v26 = vmax.f32 %v4635_v42, %v4638_v55  ;;  %v4641_v22 = vmax.f32 %v4636_v44, %v4639_v46 }
 0x3a9   :  { %v4834_v61 = vrot.slane %v4830_v47, 1  ;;  %v4407_v23 = vld [vmem:[#allocation4 + $0xc0] sm:$0xff]  ;;  %v4408_v34 = vld [vmem:[#allocation4 + $0xc8] sm:$0xf]  ;;  %4404 = vst [vmem:[#allocation5 + $0x37] sm:$0xff] %v4402_v58  ;;  %v4835_v49 = vrot.slane %v4831_v28, 1 }
 0x3aa   :  { %v5257_v33 = vld [vmem:[#allocation5 + $0x1a8] sm:$0xff]  ;;  %v5064_v40 = vsel %vm696_vm0, %v5062_v37, %v5063_v62  ;;  %v4853_v13 = vrot.slane %v4849_v29, 1  ;;  %v4410_v5 = vld [vmem:[#allocation4 + $0xd0] sm:$0xff]  ;;  %v4411_v18 = vld [vmem:[#allocation4 + $0xd8] sm:$0xf]  ;;  %v4854_v38 = vrot.slane %v10236_v25, 1  ;;  %v5068_v44 = vmax.f32 %v10228_v41, %v5063_v62 }
 0x3ab   :  { %v6455_v32 = vpack.c.bf16 %v5257_v33, %v5256_v19  ;;  %v5241_v31 = vld [vmem:[#allocation5 + $0x128] sm:$0xff]  ;;  %v5067_v60 = vmax.f32 %v10222_v50, %v5064_v40  ;;  %4633 = vst [vmem:[#allocation5 + $0xc3] sm:$0x7] %v4631_v0  ;;  %v4644_v36 = vrot.slane %v4640_v26, 1  ;;  %v4426_v14 = vld [vmem:[#allocation4 + $0xe0] sm:$0xff]  ;;  %v4836_v45 = vsel %vm696_vm0, %v4834_v61, %v4835_v49  ;;  %v4429_v6 = vld [vmem:[#allocation4 + $0xf0] sm:$0xff] }
 0x3ac   :  { %v4427_v15 = vld [vmem:[#allocation4 + $0xe8] sm:$0xf]  ;;  %v6457_v59 = vpack.c.bf16 %v5241_v31, %v5240_v56  ;;  %v5258_v12 = vld [vmem:[#allocation5 + $0x1b0] sm:$0xff]  ;;  %v4840_v63 = vmax.f32 %v4831_v28, %v4835_v49  ;;  %v4645_v54 = vrot.slane %v4641_v22, 1  ;;  %v4430_v10 = vld [vmem:[#allocation4 + $0xf8] sm:$0xf]  ;;  %v4839_v3 = vmax.f32 %v4830_v47, %v4836_v45 }
 0x3ad   :  { %6456 = vmatprep.subr.bf16.mxu1 %v6455_v32  ;;  %v6459_v27 = vpack.c.bf16 %v5067_v60, %v5258_v12  ;;  %v4855_v21 = vsel %vm696_vm0, %v4853_v13, %v4854_v38  ;;  %v10248_v50 = vmax.f32 %v4407_v23, %v4410_v5  ;;  %v5072_v48 = vld [vmem:[#allocation4 + $0x520] sm:$0xff]  ;;  %v5073_v2 = vld [vmem:[#allocation4 + $0x528] sm:$0xf]  ;;  %v5075_v11 = vld [vmem:[#allocation4 + $0x530] sm:$0xff]  ;;  %v4413_v30 = vmax.f32 %v4408_v34, %v4411_v18 }
 0x3ae   :  { %6458 = vmatpush3.bf16.msra.mxu1 %v6457_v59  ;;  %4842 = vst [vmem:[#allocation5 + $0x13c] sm:$0x7] %v4840_v63  ;;  %v4858_v43 = vmax.f32 %v4849_v29, %v4855_v21  ;;  %v4646_v57 = vsel %vm696_vm0, %v4644_v36, %v4645_v54  ;;  %v4650_v17 = vmax.f32 %v4641_v22, %v4645_v54  ;;  %v5076_v24 = vld [vmem:[#allocation4 + $0x538] sm:$0xf]  ;;  %v5091_v1 = vld [vmem:[#allocation4 + $0x540] sm:$0xff]  ;;  %v5094_v7 = vld [vmem:[#allocation4 + $0x550] sm:$0xff] }
 0x3af   :  { %v5227_v37 = vld [vmem:[#allocation5 + $0xb8] sm:$0xff]  ;;  %6460 = vmatprep.subr.bf16.mxu1 %v6459_v27  ;;  %4841 = vst [vmem:[#allocation5 + $0x134] sm:$0xff] %v4839_v3  ;;  %v4649_v8 = vmax.f32 %v4640_v26, %v4646_v57  ;;  %v4416_v42 = vrot.slane %v10248_v50, 1  ;;  %v4431_v55 = vmax.f32 %v4426_v14, %v4429_v6  ;;  %v10252_v9 = vmax.f32 %v4427_v15, %v4430_v10  ;;  %v5092_v39 = vld [vmem:[#allocation4 + $0x548] sm:$0xf]  ;;  %v4863_v58 = vld [vmem:[#allocation4 + $0x3c0] sm:$0xff] }
 0x3b0   :  { %v6427_v53 = vpack.c.bf16 %v5227_v37, %v4611_v16  ;;  %4860 = vst [vmem:[#allocation5 + $0x13f] sm:$0xff] %v4858_v43  ;;  %4652 = vst [vmem:[#allocation5 + $0xce] sm:$0x7] %v4650_v17  ;;  %v4417_v47 = vrot.slane %v4413_v30, 1  ;;  %v5077_v46 = vmax.f32 %v5072_v48, %v5075_v11  ;;  %v5095_v19 = vld [vmem:[#allocation4 + $0x558] sm:$0xf]  ;;  %v5078_v26 = vmax.f32 %v5073_v2, %v5076_v24 }
 0x3b1   :  { %v4864_v28 = vld [vmem:[#allocation4 + $0x3c8] sm:$0xf]  ;;  %v5210_v29 = vld [vmem:[#allocation5 + $0x30] sm:$0xff]  ;;  %v5211_v56 = vld [vmem:[#allocation5 + $0x38] sm:$0xff]  ;;  %4651 = vst [vmem:[#allocation5 + $0xc6] sm:$0xff] %v4649_v8  ;;  %v4435_v61 = vrot.slane %v4431_v55, 1  ;;  %v10261_v52 = vmax.f32 %v5091_v1, %v5094_v7  ;;  %v10268_v5 = vmax.f32 %v5092_v39, %v5095_v19  ;;  %v4859_v14 = vmax.f32 %v10236_v25, %v4854_v38 }
 0x3b2   :  { %v4436_v0 = vrot.slane %v10252_v9, 1  ;;  %v4866_v51 = vld [vmem:[#allocation4 + $0x3d0] sm:$0xff]  ;;  %6428 = vmatprep.subr.bf16.mxu0 %v6427_v53  ;;  %v6429_v16 = vpack.c.bf16 %v5211_v56, %v5210_v29  ;;  %v4418_v23 = vsel %vm696_vm0, %v4416_v42, %v4417_v47  ;;  %v4422_v34 = vmax.f32 %v4413_v30, %v4417_v47  ;;  %5070 = vst [vmem:[#allocation5 + $0x1c0] sm:$0x7] %v5068_v44  ;;  %v4867_v62 = vld [vmem:[#allocation4 + $0x3d8] sm:$0xf] }
 0x3b3   :  { %v5081_v41 = vrot.slane %v5077_v46, 1  ;;  %v4654_v33 = vld [vmem:[#allocation4 + $0x260] sm:$0xff]  ;;  %v4655_v40 = vld [vmem:[#allocation4 + $0x268] sm:$0xf]  ;;  %v4421_v49 = vmax.f32 %v10248_v50, %v4418_v23  ;;  %v5082_v22 = vrot.slane %v5078_v26, 1  ;;  %v4657_v18 = vld [vmem:[#allocation4 + $0x270] sm:$0xff]  ;;  %v4868_v15 = vmax.f32 %v4863_v58, %v4866_v51 }
 0x3b4   :  { %v4437_v13 = vsel %vm696_vm0, %v4435_v61, %v4436_v0  ;;  %v4658_v32 = vld [vmem:[#allocation4 + $0x278] sm:$0xf]  ;;  %v4673_v31 = vld [vmem:[#allocation4 + $0x280] sm:$0xff]  ;;  %6430 = vmatpush3.bf16.msra.mxu0 %v6429_v16  ;;  %4424 = vst [vmem:[#allocation5 + $0x4a] sm:$0x7] %v4422_v34  ;;  %v5100_v36 = vrot.slane %v10261_v52, 1  ;;  %v10276_v10 = vmax.f32 %v4864_v28, %v4867_v62  ;;  %v4659_v50 = vmax.f32 %v4654_v33, %v4657_v18 }
 0x3b5   :  { %v4440_v60 = vmax.f32 %v4431_v55, %v4437_v13  ;;  %v4674_v59 = vld [vmem:[#allocation4 + $0x288] sm:$0xf]  ;;  %v4676_v12 = vld [vmem:[#allocation4 + $0x290] sm:$0xff]  ;;  %v4677_v45 = vld [vmem:[#allocation4 + $0x298] sm:$0xf]  ;;  %4423 = vst [vmem:[#allocation5 + $0x42] sm:$0xff] %v4421_v49  ;;  %v5083_v63 = vsel %vm696_vm0, %v5081_v41, %v5082_v22  ;;  %v5087_v54 = vmax.f32 %v5078_v26, %v5082_v22  ;;  %v4660_v48 = vmax.f32 %v4655_v40, %v4658_v32 }
 0x3b6   :  { %v5101_v6 = vrot.slane %v10268_v5, 1  ;;  %v5242_v27 = vld [vmem:[#allocation5 + $0x130] sm:$0xff]  ;;  %v5086_v3 = vmax.f32 %v5077_v46, %v5083_v63  ;;  %4861 = vst [vmem:[#allocation5 + $0x147] sm:$0x7] %v4859_v14  ;;  %v4872_v21 = vrot.slane %v4868_v15, 1  ;;  %v4445_v25 = vld [vmem:[#allocation4 + $0x100] sm:$0xff]  ;;  %v4678_v57 = vmax.f32 %v4673_v31, %v4676_v12 }
 0x3b7   :  { %4442 = vst [vmem:[#allocation5 + $0x4d] sm:$0xff] %v4440_v60  ;;  %v4446_v38 = vld [vmem:[#allocation4 + $0x108] sm:$0xf]  ;;  %v5243_v2 = vld [vmem:[#allocation5 + $0x138] sm:$0xff]  ;;  %5089 = vst [vmem:[#allocation5 + $0x1cb] sm:$0x7] %v5087_v54  ;;  %v10280_v17 = vmax.f32 %v4674_v59, %v4677_v45  ;;  %v4441_v26 = vmax.f32 %v10252_v9, %v4436_v0 }
 0x3b8   :  { %v5102_v11 = vsel %vm696_vm0, %v5100_v36, %v5101_v6  ;;  %v4873_v43 = vrot.slane %v10276_v10, 1  ;;  %v4448_v30 = vld [vmem:[#allocation4 + $0x110] sm:$0xff]  ;;  %v4449_v24 = vld [vmem:[#allocation4 + $0x118] sm:$0xf]  ;;  %v6461_v1 = vpack.c.bf16 %v5243_v2, %v5242_v27  ;;  %v5228_v7 = vld [vmem:[#allocation5 + $0xc0] sm:$0xff]  ;;  %5088 = vst [vmem:[#allocation5 + $0x1c3] sm:$0xff] %v5086_v3  ;;  %v5106_v22 = vmax.f32 %v10268_v5, %v5101_v6 }
 0x3b9   :  { %v5229_v37 = vld [vmem:[#allocation5 + $0xc8] sm:$0xff]  ;;  %v5105_v8 = vmax.f32 %v10261_v52, %v5102_v11  ;;  %v4663_v42 = vrot.slane %v4659_v50, 1  ;;  %v4664_v55 = vrot.slane %v4660_v48, 1  ;;  %v4682_v44 = vrot.slane %v4678_v57, 1  ;;  %v5110_v19 = vld [vmem:[#allocation4 + $0x560] sm:$0xff]  ;;  %v5113_v58 = vld [vmem:[#allocation4 + $0x570] sm:$0xff] }
 0x3ba   :  { %v5111_v39 = vld [vmem:[#allocation4 + $0x568] sm:$0xf]  ;;  %v6431_v53 = vpack.c.bf16 %v5229_v37, %v5228_v7  ;;  %v4874_v47 = vsel %vm696_vm0, %v4872_v21, %v4873_v43  ;;  %v4683_v46 = vrot.slane %v10280_v17, 1  ;;  %v5114_v28 = vld [vmem:[#allocation4 + $0x578] sm:$0xf]  ;;  %6462 = vmatpush3.bf16.msra.mxu1 %v6461_v1  ;;  %v4882_v52 = vld [vmem:[#allocation4 + $0x3e0] sm:$0xff]  ;;  %v10290_v34 = vmax.f32 %v4445_v25, %v4448_v30 }
 0x3bb   :  { %5107 = vst [vmem:[#allocation5 + $0x1ce] sm:$0xff] %v5105_v8  ;;  %v4877_v29 = vmax.f32 %v4868_v15, %v4874_v47  ;;  %v4665_v56 = vsel %vm696_vm0, %v4663_v42, %v4664_v55  ;;  %v4669_v61 = vmax.f32 %v4660_v48, %v4664_v55  ;;  %v4885_v51 = vld [vmem:[#allocation4 + $0x3f0] sm:$0xff]  ;;  %v4451_v41 = vmax.f32 %v4446_v38, %v4449_v24  ;;  %v4883_v62 = vld [vmem:[#allocation4 + $0x3e8] sm:$0xf]  ;;  %v4886_v33 = vld [vmem:[#allocation4 + $0x3f8] sm:$0xf] }
 0x3bc   :  { %6432 = vmatprep.subr.bf16.mxu0 %v6431_v53  ;;  %v4668_v16 = vmax.f32 %v4659_v50, %v4665_v56  ;;  %v4684_v23 = vsel %vm696_vm0, %v4682_v44, %v4683_v46  ;;  %v4692_v40 = vld [vmem:[#allocation4 + $0x2a0] sm:$0xff]  ;;  %4443 = vst [vmem:[#allocation5 + $0x55] sm:$0x7] %v4441_v26  ;;  %v5115_v9 = vmax.f32 %v5110_v19, %v5113_v58  ;;  %v4693_v18 = vld [vmem:[#allocation4 + $0x2a8] sm:$0xf]  ;;  %v4695_v32 = vld [vmem:[#allocation4 + $0x2b0] sm:$0xff] }
 0x3bd   :  { %v5212_v49 = vld [vmem:[#allocation5 + $0x40] sm:$0xff]  ;;  %4879 = vst [vmem:[#allocation5 + $0x14a] sm:$0xff] %v4877_v29  ;;  %4671 = vst [vmem:[#allocation5 + $0xd9] sm:$0x7] %v4669_v61  ;;  %v4687_v13 = vmax.f32 %v4678_v57, %v4684_v23  ;;  %v10293_v0 = vmax.f32 %v5111_v39, %v5114_v28  ;;  %v4454_v60 = vrot.slane %v10290_v34, 1  ;;  %v4455_v36 = vrot.slane %v4451_v41, 1 }
 0x3be   :  { %v5213_v31 = vld [vmem:[#allocation5 + $0x48] sm:$0xff]  ;;  %4670 = vst [vmem:[#allocation5 + $0xd1] sm:$0xff] %v4668_v16  ;;  %v4878_v14 = vmax.f32 %v10276_v10, %v4873_v43  ;;  %v10297_v15 = vmax.f32 %v4882_v52, %v4885_v51  ;;  %v4696_v59 = vld [vmem:[#allocation4 + $0x2b8] sm:$0xf]  ;;  %5108 = vst [vmem:[#allocation5 + $0x1d6] sm:$0x7] %v5106_v22  ;;  %v4888_v63 = vmax.f32 %v4883_v62, %v4886_v33 }
 0x3bf   :  { %v6433_v12 = vpack.c.bf16 %v5213_v31, %v5212_v49  ;;  %4689 = vst [vmem:[#allocation5 + $0xdc] sm:$0xff] %v4687_v13  ;;  %v5119_v45 = vrot.slane %v5115_v9, 1  ;;  %v5120_v5 = vrot.slane %v10293_v0, 1  ;;  %v4464_v54 = vld [vmem:[#allocation4 + $0x120] sm:$0xff]  ;;  %v4465_v6 = vld [vmem:[#allocation4 + $0x128] sm:$0xf]  ;;  %v4456_v21 = vsel %vm696_vm0, %v4454_v60, %v4455_v36 }
 0x3c0   :  { %v4467_v27 = vld [vmem:[#allocation4 + $0x130] sm:$0xff]  ;;  %v5260_v3 = vld [vmem:[#allocation5 + $0x1c0] sm:$0xff]  ;;  %4880 = vst [vmem:[#allocation5 + $0x152] sm:$0x7] %v4878_v14  ;;  %v4891_v50 = vrot.slane %v10297_v15, 1  ;;  %v4688_v10 = vmax.f32 %v10280_v17, %v4683_v46  ;;  %v10303_v48 = vmax.f32 %v4692_v40, %v4695_v32  ;;  %v4459_v2 = vmax.f32 %v10290_v34, %v4456_v21 }
 0x3c1   :  { %v4468_v25 = vld [vmem:[#allocation4 + $0x138] sm:$0xf]  ;;  %v4483_v38 = vld [vmem:[#allocation4 + $0x140] sm:$0xff]  ;;  %6434 = vmatpush3.bf16.msra.mxu0 %v6433_v12  ;;  %v5121_v11 = vsel %vm696_vm0, %v5119_v45, %v5120_v5  ;;  %v4892_v43 = vrot.slane %v4888_v63, 1  ;;  %v4698_v57 = vmax.f32 %v4693_v18, %v4696_v59  ;;  %v4484_v30 = vld [vmem:[#allocation4 + $0x148] sm:$0xf]  ;;  %v4460_v42 = vmax.f32 %v4451_v41, %v4455_v36 }
 0x3c2   :  { %v4486_v24 = vld [vmem:[#allocation4 + $0x150] sm:$0xff]  ;;  %v4487_v1 = vld [vmem:[#allocation4 + $0x158] sm:$0xf]  ;;  %v5261_v7 = vld [vmem:[#allocation5 + $0x1c8] sm:$0xff]  ;;  %v5124_v8 = vmax.f32 %v5115_v9, %v5121_v11  ;;  %4690 = vst [vmem:[#allocation5 + $0xe4] sm:$0x7] %v4688_v10  ;;  %v10310_v55 = vmax.f32 %v4464_v54, %v4467_v27  ;;  %v4470_v52 = vmax.f32 %v4465_v6, %v4468_v25  ;;  %v5125_v59 = vmax.f32 %v10293_v0, %v5120_v5 }
 0x3c3   :  { %v5244_v37 = vld [vmem:[#allocation5 + $0x140] sm:$0xff]  ;;  %v4701_v17 = vrot.slane %v10303_v48, 1  ;;  %v5130_v53 = vld [vmem:[#allocation4 + $0x588] sm:$0xf]  ;;  %v6463_v47 = vpack.c.bf16 %v5261_v7, %v5260_v3  ;;  %v4893_v44 = vsel %vm696_vm0, %v4891_v50, %v4892_v43  ;;  %v4897_v46 = vmax.f32 %v4888_v63, %v4892_v43  ;;  %v5132_v58 = vld [vmem:[#allocation4 + $0x590] sm:$0xff] }
 0x3c4   :  { %v5129_v39 = vld [vmem:[#allocation4 + $0x580] sm:$0xff]  ;;  %v4702_v19 = vrot.slane %v4698_v57, 1  ;;  %v5133_v28 = vld [vmem:[#allocation4 + $0x598] sm:$0xf]  ;;  %v5245_v56 = vld [vmem:[#allocation5 + $0x148] sm:$0xff]  ;;  %5126 = vst [vmem:[#allocation5 + $0x1d9] sm:$0xff] %v5124_v8  ;;  %v4896_v26 = vmax.f32 %v10297_v15, %v4893_v44  ;;  %v10315_v16 = vmax.f32 %v4483_v38, %v4486_v24  ;;  %v10319_v31 = vmax.f32 %v4484_v30, %v4487_v1 }
 0x3c5   :  { %v5148_v29 = vld [vmem:[#allocation4 + $0x5a0] sm:$0xff]  ;;  %v5214_v61 = vld [vmem:[#allocation5 + $0x50] sm:$0xff]  ;;  %4462 = vst [vmem:[#allocation5 + $0x60] sm:$0x7] %v4460_v42  ;;  %v4473_v51 = vrot.slane %v10310_v55, 1  ;;  %6464 = vmatprep.subr.bf16.mxu1 %v6463_v47  ;;  %v6465_v41 = vpack.c.bf16 %v5245_v56, %v5244_v37  ;;  %v4474_v32 = vrot.slane %v4470_v52, 1  ;;  %v5134_v12 = vmax.f32 %v5129_v39, %v5132_v58 }
 0x3c6   :  { %v5149_v23 = vld [vmem:[#allocation4 + $0x5a8] sm:$0xf]  ;;  %v5151_v34 = vld [vmem:[#allocation4 + $0x5b0] sm:$0xff]  ;;  %v6437_v33 = vpack.c.bf16 %v4459_v2, %v5214_v61  ;;  %4899 = vst [vmem:[#allocation5 + $0x15d] sm:$0x7] %v4897_v46  ;;  %v4703_v40 = vsel %vm696_vm0, %v4701_v17, %v4702_v19  ;;  %v4707_v49 = vmax.f32 %v4698_v57, %v4702_v19  ;;  %v5271_v22 = vld [vmem:[#allocation16 + $0x8] sm:$0xff]  ;;  %v5135_v45 = vmax.f32 %v5130_v53, %v5133_v28 }
 0x3c7   :  { %v5230_v62 = vld [vmem:[#allocation5 + $0xd0] sm:$0xff]  ;;  %v5152_v13 = vld [vmem:[#allocation4 + $0x5b8] sm:$0xf]  ;;  %4898 = vst [vmem:[#allocation5 + $0x155] sm:$0xff] %v4896_v26  ;;  %v4706_v18 = vmax.f32 %v10303_v48, %v4703_v40  ;;  %v4492_v60 = vrot.slane %v10315_v16, 1  ;;  %v4901_v36 = vld [vmem:[#allocation4 + $0x400] sm:$0xff]  ;;  %5391 = vmatprep.mubr.f32.mxu0 %v5271_v22  ;;  %6466 = vmatpush3.bf16.msra.mxu1 %v6465_v41  ;;  %v4475_v27 = vsel %vm696_vm0, %v4473_v51, %v4474_v32 }
 0x3c8   :  { %v5231_v9 = vld [vmem:[#allocation5 + $0xd8] sm:$0xff]  ;;  %v4902_v14 = vld [vmem:[#allocation4 + $0x408] sm:$0xf]  ;;  %4709 = vst [vmem:[#allocation5 + $0xef] sm:$0x7] %v4707_v49  ;;  %v4904_v63 = vld [vmem:[#allocation4 + $0x410] sm:$0xff]  ;;  %v4479_v3 = vmax.f32 %v4470_v52, %v4474_v32  ;;  %v5153_v50 = vmax.f32 %v5148_v29, %v5151_v34  ;;  %v4478_v25 = vmax.f32 %v10310_v55, %v4475_v27  ;;  %v5154_v38 = vmax.f32 %v5149_v23, %v5152_v13 }
 0x3c9   :  { %v6435_v15 = vpack.c.bf16 %v5231_v9, %v5230_v62  ;;  %v4905_v54 = vld [vmem:[#allocation4 + $0x418] sm:$0xf]  ;;  %v5273_v6 = vld [vmem:[#allocation16 + $0x18] sm:$0xff]  ;;  %4708 = vst [vmem:[#allocation5 + $0xe7] sm:$0xff] %v4706_v18  ;;  %v4493_v21 = vrot.slane %v10319_v31, 1  ;;  %v4920_v10 = vld [vmem:[#allocation4 + $0x420] sm:$0xff]  ;;  %v10331_v30 = vmax.f32 %v4901_v36, %v4904_v63 }
 0x3ca   :  { %5476 = vmatprep.mubr.f32.mxu1 %v5273_v6  ;;  %v5262_v48 = vld [vmem:[#allocation5 + $0x1d0] sm:$0xff]  ;;  %5127 = vst [vmem:[#allocation5 + $0x1e1] sm:$0x7] %v5125_v59  ;;  %v5138_v0 = vrot.slane %v5134_v12, 1  ;;  %v5139_v5 = vrot.slane %v5135_v45, 1  ;;  %v5157_v57 = vrot.slane %v5153_v50, 1  ;;  %v4907_v24 = vmax.f32 %v4902_v14, %v4905_v54 }
 0x3cb   :  { %6436 = vmatprep.subr.bf16.mxu0 %v6435_v15  ;;  %v4921_v2 = vld [vmem:[#allocation4 + $0x428] sm:$0xf]  ;;  %v4923_v11 = vld [vmem:[#allocation4 + $0x430] sm:$0xff]  ;;  %4481 = vst [vmem:[#allocation5 + $0x6b] sm:$0x7] %v4479_v3  ;;  %v4494_v43 = vsel %vm696_vm0, %v4492_v60, %v4493_v21  ;;  %v4711_v7 = vld [vmem:[#allocation4 + $0x2c0] sm:$0xff]  ;;  %v4498_v59 = vmax.f32 %v10319_v31, %v4493_v21 }
 0x3cc   :  { %6438 = vmatpush3.bf16.msra.mxu0 %v6437_v33  ;;  %v4924_v1 = vld [vmem:[#allocation4 + $0x438] sm:$0xf]  ;;  %v4714_v37 = vld [vmem:[#allocation4 + $0x2d0] sm:$0xff]  ;;  %4480 = vst [vmem:[#allocation5 + $0x63] sm:$0xff] %v4478_v25  ;;  %v4497_v17 = vmax.f32 %v10315_v16, %v4494_v43  ;;  %v5140_v42 = vsel %vm696_vm0, %v5138_v0, %v5139_v5  ;;  %v5144_v55 = vmax.f32 %v5135_v45, %v5139_v5  ;;  %v5158_v39 = vrot.slane %v5154_v38, 1  ;;  %v5167_v28 = vld [vmem:[#allocation4 + $0x5c0] sm:$0xff] }
 0x3cd   :  { %v5263_v8 = vld [vmem:[#allocation5 + $0x1d8] sm:$0xff]  ;;  %v4712_v53 = vld [vmem:[#allocation4 + $0x2c8] sm:$0xf]  ;;  %v5143_v44 = vmax.f32 %v5134_v12, %v5140_v42  ;;  %v4910_v46 = vrot.slane %v10331_v30, 1  ;;  %v4911_v19 = vrot.slane %v4907_v24, 1  ;;  %v4925_v26 = vmax.f32 %v4920_v10, %v4923_v11  ;;  %v5170_v33 = vld [vmem:[#allocation4 + $0x5d0] sm:$0xff] }
 0x3ce   :  { %v6467_v47 = vpack.c.bf16 %v5263_v8, %v5262_v48  ;;  %v4715_v58 = vld [vmem:[#allocation4 + $0x2d8] sm:$0xf]  ;;  %v5246_v29 = vld [vmem:[#allocation5 + $0x150] sm:$0xff]  ;;  %4499 = vst [vmem:[#allocation5 + $0x6e] sm:$0xff] %v4497_v17  ;;  %5146 = vst [vmem:[#allocation5 + $0x1ec] sm:$0x7] %v5144_v55  ;;  %v5159_v61 = vsel %vm696_vm0, %v5157_v57, %v5158_v39  ;;  %v4926_v52 = vmax.f32 %v4921_v2, %v4924_v1 }
 0x3cf   :  { %v5247_v56 = vld [vmem:[#allocation5 + $0x158] sm:$0xff]  ;;  %v4716_v51 = vmax.f32 %v4711_v7, %v4714_v37  ;;  %v5168_v16 = vld [vmem:[#allocation4 + $0x5c8] sm:$0xf]  ;;  %5145 = vst [vmem:[#allocation5 + $0x1e4] sm:$0xff] %v5143_v44  ;;  %v5162_v34 = vmax.f32 %v5153_v50, %v5159_v61  ;;  %v10338_v41 = vsel %vm696_vm0, %v4910_v46, %v4911_v19  ;;  %v4916_v62 = vmax.f32 %v4907_v24, %v4911_v19  ;;  %v5186_v49 = vld [vmem:[#allocation4 + $0x5e0] sm:$0xff] }
 0x3d0   :  { %6468 = vmatprep.subr.bf16.mxu1 %v6467_v47  ;;  %v6469_v23 = vpack.c.bf16 %v5247_v56, %v5246_v29  ;;  %v5171_v40 = vld [vmem:[#allocation4 + $0x5d8] sm:$0xf]  ;;  %v5232_v13 = vld [vmem:[#allocation5 + $0xe0] sm:$0xff]  ;;  %v5233_v22 = vld [vmem:[#allocation5 + $0xe8] sm:$0xff]  ;;  %v4915_v9 = vmax.f32 %v10331_v30, %v10338_v41  ;;  %v4929_v18 = vrot.slane %v4925_v26, 1  ;;  %v4930_v32 = vrot.slane %v4926_v52, 1 }
 0x3d1   :  { %v4717_v60 = vmax.f32 %v4712_v53, %v4715_v58  ;;  %v5189_v36 = vld [vmem:[#allocation4 + $0x5f0] sm:$0xff]  ;;  %v6439_v14 = vpack.c.bf16 %v5233_v22, %v5232_v13  ;;  %5164 = vst [vmem:[#allocation5 + $0x1ef] sm:$0xff] %v5162_v34  ;;  %4918 = vst [vmem:[#allocation5 + $0x168] sm:$0x7] %v4916_v62  ;;  %v4720_v15 = vrot.slane %v4716_v51, 1  ;;  %v5163_v12 = vmax.f32 %v5154_v38, %v5158_v39  ;;  %v5290_v45 = vld [vmem:[%s10407_s6] sm:$0xff] }
 0x3d2   :  { %6470 = vmatpush3.bf16.msra.mxu1 %v6469_v23  ;;  %v4931_v63 = vsel %vm696_vm0, %v4929_v18, %v4930_v32  ;;  %v5172_v6 = vmax.f32 %v5167_v28, %v5170_v33  ;;  %v5173_v27 = vmax.f32 %v5168_v16, %v5171_v40  ;;  %v5187_v3 = vld [vmem:[#allocation4 + $0x5e8] sm:$0xf]  ;;  %v5190_v50 = vld [vmem:[#allocation4 + $0x5f8] sm:$0xf]  ;;  %5296 = vperm.xlu0 %6555, %v5290_v45   ;;  %v5292_v10 = vld [vmem:[%s10407_s6 + $0x10] sm:$0xff] }
 0x3d3   :  { %v4721_v54 = vrot.slane %v4717_v60, 1  ;;  %6440 = vmatprep.subr.bf16.mxu0 %v6439_v14  ;;  %v5216_v48 = vld [vmem:[#allocation5 + $0x60] sm:$0xff]  ;;  %v4934_v31 = vmax.f32 %v4925_v26, %v4931_v63  ;;  %4500 = vst [vmem:[#allocation5 + $0x76] sm:$0x7] %v4498_v59  ;;  %5165 = vst [vmem:[#allocation5 + $0x1f7] sm:$0x7] %v5163_v12  ;;  %v4935_v21 = vmax.f32 %v4926_v52, %v4930_v32  ;;  %5306 = vperm.xlu1 %6556, %v5292_v10  }
 0x3d4   :  { %v4953_v25 = vmax.f32 %v10112_v35, %v10127_v20  ;;  %v5191_v0 = vmax.f32 %v5186_v49, %v5189_v36  ;;  %v5291_v5 = vld [vmem:[%s10407_s6 + $0x8] sm:$0xff]  ;;  %v5176_v11 = vrot.slane %v5172_v6, 1  ;;  %v5177_v43 = vrot.slane %v5173_v27, 1  ;;  %v5293_v35 = vld [vmem:[%s10407_s6 + $0x18] sm:$0xff]  ;;  %v5588_v39 = vld [vmem:[%s10409_s8] sm:$0xff] }
 0x3d5   :  { %v4722_v38 = vsel %vm696_vm0, %v4720_v15, %v4721_v54  ;;  %v4726_v2 = vmax.f32 %v4717_v60, %v4721_v54  ;;  %v5217_v57 = vld [vmem:[#allocation5 + $0x68] sm:$0xff]  ;;  %4936 = vst [vmem:[#allocation5 + $0x16b] sm:$0xff] %v4934_v31  ;;  %4937 = vst [vmem:[#allocation5 + $0x173] sm:$0x7] %v4935_v21  ;;  %v5192_v1 = vmax.f32 %v5187_v3, %v5190_v50  ;;  %v5685_v56 = vld [vmem:[#allocation6] sm:$0x1] }
 0x3d6   :  { %v4725_v24 = vmax.f32 %v4716_v51, %v4722_v38  ;;  %4955 = vst [vmem:[#allocation5 + $0x176] sm:$0xff] %v4953_v25  ;;  %v5195_v7 = vrot.slane %v5191_v0, 1  ;;  %v6441_v20 = vpack.c.bf16 %v5217_v57, %v5216_v48  ;;  %v5264_v37 = vld [vmem:[#allocation5 + $0x1e0] sm:$0xff]  ;;  %v5178_v8 = vsel %vm696_vm0, %v5176_v11, %v5177_v43  ;;  %5301 = vperm.xlu0 %6555, %v5291_v5   ;;  %v5589_v19 = vld [vmem:[%s10409_s8 + $0x8] sm:$0xff]  ;;  %v5270_v22 = vld [vmem:[#allocation16] sm:$0xff] }
 0x3d7   :  { %4728 = vst [vmem:[#allocation5 + $0xfa] sm:$0x7] %v4726_v2  ;;  %v5182_v17 = vmax.f32 %v5173_v27, %v5177_v43  ;;  %v5181_v42 = vmax.f32 %v5172_v6, %v5178_v8  ;;  %v5196_v55 = vrot.slane %v5192_v1, 1  ;;  %5311 = vperm.xlu1 %6556, %v5293_v35   ;;  %v5276_v18 = vld [vmem:[#allocation16 + $0x30] sm:$0xff]  ;;  %v5278_v60 = vld [vmem:[#allocation16 + $0x40] sm:$0xff]  ;;  %v5275_v36 = vld [vmem:[#allocation16 + $0x28] sm:$0xff] }
 0x3d8   :  { %4727 = vst [vmem:[#allocation5 + $0xf2] sm:$0xff] %v4725_v24  ;;  %6442 = vmatpush3.bf16.msra.mxu0 %v6441_v20  ;;  %v5265_v53 = vld [vmem:[#allocation5 + $0x1e8] sm:$0xff]  ;;  %v5283_v59 = vld [vmem:[#allocation16 + $0x68] sm:$0xff]  ;;  %v5286_v45 = vld [vmem:[#allocation16 + $0x80] sm:$0xff] }
 0x3d9   :  { %5184 = vst [vmem:[#allocation5 + $0x202] sm:$0x7] %v5182_v17  ;;  %v6471_v47 = vpack.c.bf16 %v5265_v53, %v5264_v37  ;;  %5183 = vst [vmem:[#allocation5 + $0x1fa] sm:$0xff] %v5181_v42  ;;  %v5197_v44 = vsel %vm696_vm0, %v5195_v7, %v5196_v55  ;;  %v5201_v46 = vmax.f32 %v5192_v1, %v5196_v55  ;;  %v5272_v41 = vld [vmem:[#allocation16 + $0x10] sm:$0xff]  ;;  %v5281_v14 = vld [vmem:[#allocation16 + $0x58] sm:$0xff] }
 0x3da   :  { %v5200_v58 = vmax.f32 %v5191_v0, %v5197_v44  ;;  %5592 = vperm.xlu0 %6555, %v5588_v39   ;;  %v5218_v28 = vld [vmem:[#allocation5 + $0x70] sm:$0xff]  ;;  %v5219_v29 = vld [vmem:[#allocation5 + $0x78] sm:$0xff]  ;;  %v5280_v12 = vld [vmem:[#allocation16 + $0x50] sm:$0xff] }
 0x3db   :  { %6472 = vmatprep.subr.bf16.mxu1 %v6471_v47  ;;  %5203 = vst [vmem:[#allocation5 + $0x20d] sm:$0x7] %v5201_v46  ;;  %5597 = vperm.xlu1 %6556, %v5589_v19   ;;  %v6445_v34 = vpack.c.bf16 %v5219_v29, %v5218_v28  ;;  %v5266_v62 = vld [vmem:[#allocation5 + $0x1f0] sm:$0xff]  ;;  %v5288_v54 = vld [vmem:[#allocation16 + $0x90] sm:$0xff]  ;;  %v5287_v3 = vld [vmem:[#allocation16 + $0x88] sm:$0xff] }
 0x3dc   :  { %v5249_v61 = vld [vmem:[#allocation5 + $0x168] sm:$0xff]  ;;  %5202 = vst [vmem:[#allocation5 + $0x205] sm:$0xff] %v5200_v58  ;;  %v5282_v63 = vld [vmem:[#allocation16 + $0x60] sm:$0xff]  ;;  %v5279_v50 = vld [vmem:[#allocation16 + $0x48] sm:$0xff] }
 0x3dd   :  { %v6473_v26 = vpack.c.bf16 %v5249_v61, %v4915_v9  ;;  %v5250_v52 = vld [vmem:[#allocation5 + $0x170] sm:$0xff]  ;;  %v5251_v51 = vld [vmem:[#allocation5 + $0x178] sm:$0xff]  ;;  %v5284_v10 = vld [vmem:[#allocation16 + $0x70] sm:$0xff] }
 0x3de   :  { %5688 = vperm.xlu0 %6555, %v5685_v56   ;;  %v6477_v49 = vpack.c.bf16 %v5251_v51, %v5250_v52  ;;  %v5277_v15 = vld [vmem:[#allocation16 + $0x38] sm:$0xff]  ;;  %v5274_v27 = vld [vmem:[#allocation16 + $0x20] sm:$0xff]  ;;  %v5586_v31 = vld [vmem:[%s10408_s7] sm:$0xff] }
 0x3df   :  { %v5234_v16 = vld [vmem:[#allocation5 + $0xf0] sm:$0xff]  ;;  %v5235_v23 = vld [vmem:[#allocation5 + $0xf8] sm:$0xff]  ;;  %6474 = vmatpush3.bf16.msra.mxu1 %v6473_v26 }
 0x3e0   :  { %v6443_v33 = vpack.c.bf16 %v5235_v23, %v5234_v16  ;;  %v5267_v40 = vld [vmem:[#allocation5 + $0x1f8] sm:$0xff]  ;;  %v5285_v6 = vld [vmem:[#allocation16 + $0x78] sm:$0xff] }
 0x3e1   :  { %v6475_v13 = vpack.c.bf16 %v5267_v40, %v5266_v62  ;;  %v5289_v48 = vld [vmem:[#allocation16 + $0x98] sm:$0xff] }
 0x3e2   :  { %6444 = vmatprep.subr.bf16.mxu0 %v6443_v33 }
 0x3e3   :  { %6446 = vmatpush3.bf16.msra.mxu0 %v6445_v34  ;;  %6476 = vmatprep.subr.bf16.mxu1 %v6475_v13  ;;  %v5268_v32 = vld [vmem:[#allocation5 + $0x200] sm:$0xff]  ;;  %v5269_v30 = vld [vmem:[#allocation5 + $0x208] sm:$0xff] }
 0x3e4   :  { %6478 = vmatpush3.bf16.msra.mxu1 %v6477_v49  ;;  %v6479_v9 = vpack.c.bf16 %v5269_v30, %v5268_v32 }
 0x3e6   :  { %5392 = vmatmul.mubr.f32.vlgmr.msra.gmra.mrb[0].mxu0 %v5270_v22  ;;  %6480 = vmatprep.subr.bf16.mxu0 %v6479_v9 }
 0x3e7   :  { %5396 = vmatprep.mubr.f32.mxu0 %v5276_v18  ;;  %5477 = vmatmul.mubr.f32.vlgmr.msra.gmra.mrb[0].mxu1 %v5272_v41 }
 0x3e8   :  { %6482 = vmatpush3.bf16.msra.mxu0 %v6479_v9  ;;  %5481 = vmatprep.mubr.f32.mxu1 %v5278_v60 }
 0x3ea   :  { %5397 = vmatmul.mubr.f32.gmra.mrb[2].mxu0 %v5275_v36 }
 0x3eb   :  { %5401 = vmatprep.mubr.f32.mxu0 %v5281_v14  ;;  %5482 = vmatmul.mubr.f32.gmra.mrb[2].mxu1 %v5277_v15  ;;  %v5587_v15 = vld [vmem:[%s10408_s7 + $0x8] sm:$0xff]  ;;  %s6718_s7 = smov [#allocation17]  }
 0x3ec   :  { %5486 = vmatprep.mubr.f32.mxu1 %v5283_v59  ;;  %v6715_v59 = vmov 0.0|0.0   ;;  %s5775_s21 = sshll.u32 %s6718_s7, 4  ;;  %s5776_s21 = int_to_ptr.vmem [resolvable:$true] %s5775_s21 }
 0x3ed   :  { %s6659_s25 = scalar_lea.vmem %s5776_s21, 16  ;;  %s6663_s10 = scalar_lea.vmem %s5776_s21, 32 }
 0x3ee   :  { %5402 = vmatmul.mubr.f32.gmra.mrb[4].mxu0 %v5280_v12  ;;  %v6717_v12 = vmov 0.0   ;;  %p6660_p2 = scmp.ne.s32.totalorder %s5776_s21, %s6659_s25  ;;  %p6664_p3 = scmp.lt.s32.totalorder %s5776_s21, %s5776_s21 }
 0x3ef   :  { %5406 = vmatprep.mubr.f32.mxu0 %v5286_v45  ;;  %5487 = vmatmul.mubr.f32.gmra.mrb[4].mxu1 %v5282_v63  ;;  %p6665_p4 = scmp.lt.s32.totalorder %s6663_s10, %s6659_s25 }
 0x3f0   :  { %5491 = vmatprep.mubr.f32.mxu1 %v5288_v54 }
 0x3f1   :  { %p6666_p5 = por %p6665_p4, %p6664_p3 }
 0x3f2   :  { %5407 = vmatmul.mubr.f32.gmra.mrb[6].mxu0 %v5285_v6 }
 0x3f3   :  { %6391 = vmatprep.mubr.msk.f32.mxu0 %vm5314_vm2, %v5274_v27  ;;  %5492 = vmatmul.mubr.f32.gmra.mrb[6].mxu1 %v5287_v3  ;;  %p6667_p6 = pnand %p6666_p5, %p6660_p2 }
 0x3f4   :  { %6405 = vmatprep.mubr.msk.f32.mxu1 %vm5600_vm3, %v5586_v31  ;;  %v5684_v31 = vld [vmem:[%s10410_s9] sm:$0x1] }
 0x3f6   :  { %6392 = vmatmul.mubr.msk.f32.vlgmr.msra.gmra.mrb[8].mxu0 %vm5314_vm2, %v5279_v50 }
 0x3f7   :  { %6394 = vmatprep.mubr.msk.f32.mxu0 %vm5314_vm2, %v5284_v10 }
 0x3fa   :  { %6395 = vmatmul.mubr.msk.f32.gmra.mrb[10].mxu0 %vm5314_vm2, %v5289_v48 }
 0x451   :  { %v5297_v25 = vpop.permute.xlu0 %5296 }
 0x452   :  { %v5307_v55 = vpop.permute.xlu1 %5306 }
 0x455   :  { %v5302_v20 = vpop.permute.xlu0 %5301 }
 0x456   :  { %v5312_v52 = vpop.permute.xlu1 %5311 }
 0x459   :  { %v5593_v54 = vpop.permute.xlu0 %5592 }
 0x45a   :  { %v5598_v45 = vpop.permute.xlu1 %5597 }
 0x4b9   :  { %v6316_v21 = vpop.f32.mrb[0].mxu0 }
 0x4ba   :  { %v6317_v0 = vpop.f32.mrb[1].mxu0  ;;  %v6360_v38 = vpop.f32.mrb[0].mxu1 }
 0x4bb   :  { %v6318_v5 = vadd.f32 %v6317_v0, %v6316_v21  ;;  %v6361_v2 = vpop.f32.mrb[1].mxu1  ;;  %v5693_v21 = vsub.s32 0, %v6812_v4 }
 0x4bc   :  { %v6362_v43 = vadd.f32 %v6361_v2, %v6360_v38 }
 0x4bd   :  { %v5394_v11 = vadd.f32 %v6318_v5, %v5297_v25  ;;  %v6319_v57 = vpop.f32.mrb[2].mxu0  ;;  %v5689_v25 = vpop.permute.xlu0 %5688 }
 0x4be   :  { %v6320_v24 = vpop.f32.mrb[3].mxu0  ;;  %v6363_v7 = vpop.f32.mrb[2].mxu1  ;;  %v5694_v0 = vrot.slane %v5689_v25, %v5693_v21 }
 0x4bf   :  { %v6321_v1 = vadd.f32 %v6320_v24, %v6319_v57  ;;  %v5479_v35 = vadd.f32 %v6362_v43, %v5394_v11  ;;  %v6364_v37 = vpop.f32.mrb[3].mxu1 }
 0x4c0   :  { %v6365_v17 = vadd.f32 %v6364_v37, %v6363_v7 }
 0x4c1   :  { %v5399_v8 = vadd.f32 %v6321_v1, %v5302_v20  ;;  %v6322_v42 = vpop.f32.mrb[4].mxu0 }
 0x4c2   :  { %v6323_v39 = vpop.f32.mrb[5].mxu0  ;;  %v6366_v47 = vpop.f32.mrb[4].mxu1 }
 0x4c3   :  { %v6324_v53 = vadd.f32 %v6323_v39, %v6322_v42  ;;  %v5484_v44 = vadd.f32 %v6365_v17, %v5399_v8  ;;  %v6367_v46 = vpop.f32.mrb[5].mxu1 }
 0x4c4   :  { %v6368_v58 = vadd.f32 %v6367_v46, %v6366_v47 }
 0x4c5   :  { %v5404_v19 = vadd.f32 %v6324_v53, %v5307_v55  ;;  %v6325_v28 = vpop.f32.mrb[6].mxu0 }
 0x4c6   :  { %v6326_v29 = vpop.f32.mrb[7].mxu0  ;;  %v6369_v61 = vpop.f32.mrb[6].mxu1 }
 0x4c7   :  { %v6327_v56 = vadd.f32 %v6326_v29, %v6325_v28  ;;  %v5489_v26 = vadd.f32 %v6368_v58, %v5404_v19  ;;  %v6370_v51 = vpop.f32.mrb[7].mxu1 }
 0x4c8   :  { %v6371_v23 = vadd.f32 %v6370_v51, %v6369_v61 }
 0x4c9   :  { %v5409_v16 = vadd.f32 %v6327_v56, %v5312_v52  ;;  %v6393_v34 = vpop.f32.mrb[8].mxu0 }
 0x4ca   :  { %v5569_v62 = vadd.f32 %v6393_v34, %v5484_v44  ;;  %v5563_v33 = vpop.f32.mrb[9].mxu0 }
 0x4cb   :  { %v5564_v40 = vadd.f32 %v5563_v33, %v5479_v35  ;;  %v5494_v49 = vadd.f32 %v6371_v23, %v5409_v16 }
 0x4cc   :  { %v5583_v13 = vmax.f32 %v5569_v62, 0.0 }
 0x4cd   :  { %v5582_v22 = vmax.f32 %v5564_v40, 0.0  ;;  %v6396_v18 = vpop.f32.mrb[10].mxu0 }
 0x4ce   :  { %v5579_v32 = vadd.f32 %v6396_v18, %v5494_v49  ;;  %v5573_v30 = vpop.f32.mrb[11].mxu0 }
 0x4cf   :  { %v6483_v41 = vpack.c.bf16 %v5583_v13, %v5582_v22  ;;  %v5574_v9 = vadd.f32 %v5573_v30, %v5489_v26 }
 0x4d0   :  { %v5585_v60 = vmax.f32 %v5579_v32, 0.0 }
 0x4d1   :  { %v5584_v36 = vmax.f32 %v5574_v9, 0.0  ;;  %6484 = vmatprep.subr.bf16.mxu1 %v6483_v41 }
 0x4d2   :  { %6486 = vmatpush3.bf16.msra.mxu1 %v6483_v41 }
 0x4d3   :  { %v6487_v14 = vpack.c.bf16 %v5585_v60, %v5584_v36 }
 0x4d5   :  { %6488 = vmatprep.subr.bf16.mxu1 %v6487_v14 }
 0x4d6   :  { %6490 = vmatpush3.bf16.msra.mxu1 %v6487_v14 }
 0x4d7   :  { %6491 = vmatprep.subr.bf16.mxu1 %v6715_v59 }
 0x4d9   :  { %6406 = vmatmul.mubr.msk.f32.vlgmr.msra.gmra.mrb[8].mxu1 %vm5600_vm3, %v5587_v15 }
 0x4da   :  { %6412 = vmatprep.mubr.msk.f32.mxu1 %vm6716_vm4, %v6717_v12 }
 0x5ac   :  { %v6407_v63 = vpop.f32.mrb[8].mxu1 }
 0x5ad   :  { %v5679_v6 = vadd.f32 %v6407_v63, %v5598_v45  ;;  %v5673_v27 = vpop.f32.mrb[9].mxu1 }
 0x5ae   :  { %v5674_v3 = vadd.f32 %v5673_v27, %v5593_v54 }
 0x5af   :  { %v5683_v50 = vmax.f32 %v5679_v6, 0.0 }
 0x5b0   :  { %v5682_v10 = vmax.f32 %v5674_v3, 0.0 }
 0x5b2   :  { %v6492_v48 = vpack.c.bf16 %v5683_v50, %v5682_v10 }
 0x5b4   :  { %6493 = vmatpush3.bf16.msra.mxu1 %v6492_v48 }
 0x5b7   :  { %6413 = vmatmul.mubr.msk.f32.vlgmr.msra.gmra.mrb[10].mxu1 %vm5314_vm2, %v5684_v31 }
 0x68a   :  { %v5764_v5 = vpop.f32.mrb[10].mxu1 }
 0x68b   :  { %v5765_v38 = vadd.f32 %v5764_v5, %v5694_v0  ;;  %v6414_v2 = vpop.f32.mrb[11].mxu1 }
 0x68d   :  { %5768 = vst [vmem:[#allocation17] sm:$0x1] %v5765_v38 }
 0x68e   :  { %6670 = shalt.err (!%p6667_p6)
}
 0x68f   :  { %s6671_s2 = scalar_lea.hbm %s10412_s11, 16 }
 0x690   :  { %p6672_p7 = scmp.ne.s32.totalorder %s10412_s11, %s6671_s2  ;;  %p6675_p8 = scmp.lt.u32.totalorder %s6671_s2, %s10412_s11 }
 0x692   :  { %p6677_p9 = pnand %p6675_p8, %p6672_p7 }
 0x694   :  { %6680 = shalt.err (!%p6677_p9)
}
 0x695   :  { %5778 = dma.vmem_to_hbm [thread:$0]  %s5776_s21, 16, %s10412_s11, [#allocation9]  }
 0x696   :  { %6697 = dma.done.wait [#allocation9], 16  }
 0x697   :  { %6698 = vsyncadd [#allocation9], 4294967280 }
 0x698   :  { %5782 = vsyncpa [#allocation8], 1 }
 0x699   :  { %5783 = vsyncpa [#allocation9], 1 }
 0x69a   :  { %5784 = vsyncpa [#allocation10], 1 }
 0x69b   :  { %5785 = vsyncpa [#allocation12], 1 }
 0x69c   :  { %5786 = vsyncpa [#allocation15], 1 }

</bundles_post_ra>
